<compile_context>
chip_gen: v5e
topology: v5e:2x2
jax: 0.10.0
libtpu: 0.0.40
codegen_flags: <defaults>
</compile_context>

<pallas_src>
import jax
import jax.numpy as jnp
from jax.experimental import pallas as pl
from jax.experimental.pallas import tpu as pltpu


HIDDEN_INTERNAL = 1024  # fixed by the module definition


def _round_up(x, m):
    return (x + m - 1) // m * m


def _value_head_kernel(x_ref, w1_ref, b1_ref, w2_ref, b2_ref, w3_ref, b3_ref,
                       o_ref, h1_acc_ref):
    """One (batch-tile, K-tile) grid step of the 3-layer MLP.

    x_ref : (TB, TK)       native dtype (cast to bf16 in-kernel for the MXU)
    w1    : (TK, 1024) bf16   b1: (1, 1024) f32
    w2    : (1024, 1024) bf16 b2: (1, 1024) f32
    w3    : (1, 1024) bf16    b3: (1, 1)    f32
    o_ref : (TB, 1) f32       h1_acc_ref: (TB, 1024) f32 scratch
    """
    k = pl.program_id(1)

    @pl.when(k == 0)
    def _():
        h1_acc_ref[...] = jnp.zeros_like(h1_acc_ref)

    # Layer 1 partial contraction: bf16 MXU operands, f32 accumulation.
    x = x_ref[...].astype(jnp.bfloat16)
    h1_acc_ref[...] += jnp.dot(x, w1_ref[...],
                               preferred_element_type=jnp.float32)

    @pl.when(k == pl.num_programs(1) - 1)
    def _():
        # sigmoid(z) == 0.5 * tanh(0.5 * z) + 0.5 -> a single EUP op per
        # element instead of exp + divide (halves EUP pressure on v6e/v7x).
        h1 = 0.5 * jnp.tanh(0.5 * (h1_acc_ref[...] + b1_ref[...])) + 0.5
        z2 = jnp.dot(h1.astype(jnp.bfloat16), w2_ref[...],
                     preferred_element_type=jnp.float32) + b2_ref[...]
        h2 = 0.5 * jnp.tanh(0.5 * z2) + 0.5
        # Final Linear(1024 -> 1): VPU multiply + lane reduction (XLU),
        # avoiding a wasted 1-column MXU pass.
        w3_row = w3_ref[...].astype(jnp.float32)               # (1, 1024)
        o_ref[...] = jnp.sum(h2 * w3_row, axis=-1, keepdims=True) + b3_ref[...]


def _plan(B, H, x_itemsize):
    """Pick (TB, TK, n_b, n_k, vmem_limit_bytes) from a per-TC VMEM budget."""
    try:
        vmem_cap = int(pltpu.get_tpu_info().vmem_capacity_bytes)
    except Exception:
        vmem_cap = 64 * 1024 * 1024            # v7x has the smallest VMEM/TC
    budget = int(vmem_cap * 0.85)              # headroom for Mosaic scratch

    # K-tile w1 once its resident footprint gets large (~12 MiB, H >= ~6K).
    w1_bytes = H * HIDDEN_INTERNAL * 2         # bf16
    if w1_bytes > 12 * 1024 * 1024 and H % 128 == 0:
        tk = 2048
        while tk >= 128 and H % tk != 0:
            tk -= 128
        TK = tk if tk >= 128 else H
    else:
        TK = H
    n_k = H // TK

    # Resident bytes: single-buffered invariant weights + w1 tile buffers.
    invariant_bytes = (HIDDEN_INTERNAL * HIDDEN_INTERNAL * 2   # w2 (bf16)
                       + 2 * HIDDEN_INTERNAL * 4               # b1, b2 (f32)
                       + HIDDEN_INTERNAL * 2 + 4)              # w3, b3
    w1_resident = (TK * HIDDEN_INTERNAL * 2) * (1 if n_k == 1 else 2)
    fixed = invariant_bytes + w1_resident

    # Per batch-row VMEM: double-buffered x tile + f32 h1 accumulator +
    # elementwise temporaries (~3 f32 rows) + output tile.
    per_row = 2 * TK * x_itemsize + 4 * HIDDEN_INTERNAL * 4 + 2 * 4

    max_tb = (budget - fixed) // per_row
    max_tb = max(8, min(512, (max_tb // 8) * 8))

    n_b = pl.cdiv(B, max_tb)
    if n_b == 1 and B >= 256:
        n_b = 2                                # give both v7x TensorCores work
    if n_b == 1:
        TB = B                                 # full batch dim: no padding / alignment needed
    else:
        TB = _round_up(pl.cdiv(B, n_b), 8)     # balanced tiles, minimal waste
        n_b = pl.cdiv(B, TB)

    need = fixed + per_row * TB + (4 << 20)
    vmem_limit = int(min(vmem_cap, max(32 * 1024 * 1024, need)))
    return TB, TK, n_b, n_k, vmem_limit


def value_head_forward(model_head, params, pre_encoded_input=True):
    """JAX wrapper reproducing ValueHeadModuleFn.forward.

    model_head: (B, S, H) if pre_encoded_input else (B, H).  Prefer bf16
    activations upstream (halves x DMA on v6e); the f32/bf16 cast happens
    in-kernel either way.
    returns: (B, 1) float32
    """
    w1, b1, w2, b2, w3, b3 = (params[k] for k in
                              ("w1", "b1", "w2", "b2", "w3", "b3"))
    H = w1.shape[0]

    if pre_encoded_input:
        B, S, _ = model_head.shape
    else:
        B, _ = model_head.shape
        S = None

    TB, TK, n_b, n_k, vmem_limit = _plan(B, H, model_head.dtype.itemsize)

    # Fuse the last-token slice into the x BlockSpec when the lane constraint
    # allows it (H % 128 == 0): reshape to (B, S*H) (free for contiguous
    # layout) and DMA block column S-1 directly -> no strided HBM copy.
    fused = pre_encoded_input and (H % 128 == 0)
    if fused:
        x_in = model_head.reshape(B, S * H)
        col0 = (S - 1) * (H // TK)
        x_index = lambda i, k: (i, col0 + k)
    else:
        x_in = model_head[:, -1, :] if pre_encoded_input else model_head
        x_index = lambda i, k: (i, k)

    const_map = lambda i, k: (0, 0)

    # Advisory cost estimate so XLA can schedule neighbors around the kernel.
    flops = 2 * B * (H * HIDDEN_INTERNAL
                     + HIDDEN_INTERNAL * HIDDEN_INTERNAL
                     + HIDDEN_INTERNAL)
    bytes_accessed = (B * H * model_head.dtype.itemsize
                      + sum(p.size * p.dtype.itemsize
                            for p in (w1, b1, w2, b2, w3, b3))
                      + B * 4)
    cost = pl.CostEstimate(flops=flops,
                           transcendentals=2 * B * HIDDEN_INTERNAL,
                           bytes_accessed=bytes_accessed)

    def run(single_buffer_invariant_weights):
        wb = ({"pipeline_mode": pl.Buffered(1)}
              if single_buffer_invariant_weights else {})
        in_specs = [
            pl.BlockSpec((TB, TK), x_index),                                  # x tile
            (pl.BlockSpec((TK, HIDDEN_INTERNAL), lambda i, k: (k, 0))         # w1 (K-tiled)
             if n_k > 1 else
             pl.BlockSpec((H, HIDDEN_INTERNAL), const_map, **wb)),            # w1 (resident)
            pl.BlockSpec((1, HIDDEN_INTERNAL), const_map, **wb),              # b1
            pl.BlockSpec((HIDDEN_INTERNAL, HIDDEN_INTERNAL), const_map, **wb),  # w2
            pl.BlockSpec((1, HIDDEN_INTERNAL), const_map, **wb),              # b2
            pl.BlockSpec((1, HIDDEN_INTERNAL), const_map, **wb),              # w3 row
            pl.BlockSpec((1, 1), const_map, **wb),                            # b3
        ]
        return pl.pallas_call(
            _value_head_kernel,
            out_shape=jax.ShapeDtypeStruct((B, 1), jnp.float32),
            grid_spec=pltpu.PrefetchScalarGridSpec(
                num_scalar_prefetch=0,
                grid=(n_b, n_k),
                in_specs=in_specs,
                out_specs=pl.BlockSpec((TB, 1), lambda i, k: (i, 0)),
                scratch_shapes=[pltpu.VMEM((TB, HIDDEN_INTERNAL), jnp.float32)],
            ),
            compiler_params=pltpu.CompilerParams(
                dimension_semantics=("parallel", "arbitrary"),
                vmem_limit_bytes=vmem_limit),
            cost_estimate=cost,
        )(x_in, w1, b1, w2, b2, w3, b3)

    try:
        return run(True)
    except Exception:
        # pipeline_mode=pl.Buffered(1) not supported by this jax/libtpu:
        # fall back to default double-buffering of the invariant weights.
        return run(False)


def init_params(hidden_size, key):
    """Deterministic parameter init mimicking nn.Linear's uniform init.

    Policy (documented deviation from the f32 PyTorch module): weights are
    stored as (in, out) bf16 (MXU-native, half the HBM/VMEM bytes); biases
    stay f32; all matmuls accumulate in f32.  w3 is a (1, 1024) row.
    """
    ks = jax.random.split(key, 6)

    def linear(kw, kb, fan_in, fan_out):
        bound = 1.0 / jnp.sqrt(fan_in)
        w = jax.random.uniform(kw, (fan_in, fan_out), jnp.float32,
                               minval=-bound, maxval=bound)
        b = jax.random.uniform(kb, (1, fan_out), jnp.float32,
                               minval=-bound, maxval=bound)
        return w, b

    w1, b1 = linear(ks[0], ks[1], hidden_size, HIDDEN_INTERNAL)
    w2, b2 = linear(ks[2], ks[3], HIDDEN_INTERNAL, HIDDEN_INTERNAL)
    w3, b3 = linear(ks[4], ks[5], HIDDEN_INTERNAL, 1)
    return {
        "w1": w1.astype(jnp.bfloat16), "b1": b1,
        "w2": w2.astype(jnp.bfloat16), "b2": b2,
        "w3": w3.T.astype(jnp.bfloat16),             # (1, 1024) row
        "b3": b3,                                     # (1, 1)
    }


def _reference_bf16(model_head, params, pre_encoded_input=True):
    """Pure-JAX reference matching the kernel's bf16-matmul/f32-accum math."""
    x = model_head[:, -1, :] if pre_encoded_input else model_head
    xb = x.astype(jnp.bfloat16)
    h1 = jax.nn.sigmoid(
        jnp.dot(xb, params["w1"], preferred_element_type=jnp.float32)
        + params["b1"])
    h2 = jax.nn.sigmoid(
        jnp.dot(h1.astype(jnp.bfloat16), params["w2"],
                preferred_element_type=jnp.float32)
        + params["b2"])
    w3_row = params["w3"].astype(jnp.float32)
    return jnp.sum(h2 * w3_row, axis=-1, keepdims=True) + params["b3"]


def _reference_f32(model_head, params, pre_encoded_input=True):
    """'True' f32 reference mirroring the PyTorch module (.float() Linears)."""
    x = (model_head[:, -1, :] if pre_encoded_input else model_head)
    x = x.astype(jnp.float32)
    w1 = params["w1"].astype(jnp.float32)
    w2 = params["w2"].astype(jnp.float32)
    w3 = params["w3"].astype(jnp.float32)
    h1 = jax.nn.sigmoid(x @ w1 + params["b1"])
    h2 = jax.nn.sigmoid(h1 @ w2 + params["b2"])
    return jnp.sum(h2 * w3, axis=-1, keepdims=True) + params["b3"]


if __name__ == "__main__":
    key = jax.random.PRNGKey(0)
    k1, k2, k3, k4 = jax.random.split(key, 4)

    # Case 1: small hidden (H % 128 != 0) -> wrapper slices the last token.
    B, S, H = 2, 8, 32
    model_head = jax.random.normal(k1, (B, S, H), dtype=jnp.float32)
    params = init_params(H, k2)
    out = jax.block_until_ready(value_head_forward(model_head, params))
    assert out.shape == (B, 1), out.shape
    assert jnp.allclose(out, _reference_bf16(model_head, params),
                        atol=2e-3, rtol=2e-3)
    assert jnp.allclose(out, _reference_f32(model_head, params),
                        atol=3e-2, rtol=3e-2)

    # Case 2: H % 128 == 0 -> last-token slice fused into the x BlockSpec;
    # bf16 activations (the preferred caller contract, halves x DMA on v6e).
    B2, S2, H2 = 10, 4, 128
    model_head2 = jax.random.normal(k3, (B2, S2, H2),
                                    dtype=jnp.float32).astype(jnp.bfloat16)
    params2 = init_params(H2, k4)
    out2 = jax.block_until_ready(value_head_forward(model_head2, params2))
    assert out2.shape == (B2, 1), out2.shape
    assert jnp.allclose(out2, _reference_bf16(model_head2, params2),
                        atol=2e-3, rtol=2e-3)
    assert jnp.allclose(out2, _reference_f32(model_head2, params2),
                        atol=3e-2, rtol=3e-2)

    print("KERNEL_OK")
</pallas_src>

<mosaic_0001>
module attributes {stable_mosaic.version = 11 : i64} {
  func.func @_value_head_kernel(%arg0: i32, %arg1: i32, %arg2: memref<2x32xf32, #tpu.memory_space<vmem>>, %arg3: memref<32x1024xbf16, #tpu.memory_space<vmem>>, %arg4: memref<1x1024xf32, #tpu.memory_space<vmem>>, %arg5: memref<1024x1024xbf16, #tpu.memory_space<vmem>>, %arg6: memref<1x1024xf32, #tpu.memory_space<vmem>>, %arg7: memref<1x1024xbf16, #tpu.memory_space<vmem>>, %arg8: memref<1x1xf32, #tpu.memory_space<vmem>>, %arg9: memref<2x1xf32, #tpu.memory_space<vmem>>, %arg10: memref<2x1024xf32, #tpu.memory_space<vmem>>) attributes {dimension_semantics = [#tpu.dimension_semantics<parallel>, #tpu.dimension_semantics<arbitrary>], iteration_bounds = array<i64: 1, 1>, scalar_prefetch = 0 : i64, scratch_operands = 1 : i64, tpu.core_type = #tpu.core_type<tc>, window_params = [{transform_indices = @transform_0, window_bounds = array<i64: 2, 32>}, {pipeline_mode = #tpu.pipeline_mode<synchronous>, transform_indices = @transform_1, window_bounds = array<i64: 32, 1024>}, {pipeline_mode = #tpu.pipeline_mode<synchronous>, transform_indices = @transform_2, window_bounds = array<i64: 1, 1024>}, {pipeline_mode = #tpu.pipeline_mode<synchronous>, transform_indices = @transform_3, window_bounds = array<i64: 1024, 1024>}, {pipeline_mode = #tpu.pipeline_mode<synchronous>, transform_indices = @transform_4, window_bounds = array<i64: 1, 1024>}, {pipeline_mode = #tpu.pipeline_mode<synchronous>, transform_indices = @transform_5, window_bounds = array<i64: 1, 1024>}, {pipeline_mode = #tpu.pipeline_mode<synchronous>, transform_indices = @transform_6, window_bounds = array<i64: 1, 1>}, {transform_indices = @transform_7, window_bounds = array<i64: 2, 1>}]} {
    %c0_i32 = arith.constant 0 : i32
    %0 = arith.cmpi eq, %arg1, %c0_i32 : i32
    %1 = arith.extui %0 : i1 to i32
    %c0_i32_0 = arith.constant 0 : i32
    %2 = arith.cmpi ne, %1, %c0_i32_0 : i32
    scf.if %2 {
      %cst_10 = arith.constant 0.000000e+00 : f32
      %13 = vector.broadcast %cst_10 : f32 to vector<2x1024xf32>
      %c0_11 = arith.constant 0 : index
      %c0_12 = arith.constant 0 : index
      %14 = vector.load %arg10[%c0_11, %c0_12] : memref<2x1024xf32, #tpu.memory_space<vmem>>, vector<2x1024xf32>
      tpu.vector_store %arg10[%c0_11, %c0_12], %13 {strides = array<i32>} : memref<2x1024xf32, #tpu.memory_space<vmem>>, vector<2x1024xf32>,
    } else {
    }
    %c0 = arith.constant 0 : index
    %c0_1 = arith.constant 0 : index
    %3 = vector.load %arg2[%c0, %c0_1] : memref<2x32xf32, #tpu.memory_space<vmem>>, vector<2x32xf32>
    %4 = arith.truncf %3 : vector<2x32xf32> to vector<2x32xbf16>
    %c0_2 = arith.constant 0 : index
    %c0_3 = arith.constant 0 : index
    %5 = vector.load %arg10[%c0_2, %c0_3] : memref<2x1024xf32, #tpu.memory_space<vmem>>, vector<2x1024xf32>
    %c0_4 = arith.constant 0 : index
    %c0_5 = arith.constant 0 : index
    %6 = vector.load %arg3[%c0_4, %c0_5] : memref<32x1024xbf16, #tpu.memory_space<vmem>>, vector<32x1024xbf16>
    %cst = arith.constant dense<0.000000e+00> : vector<2x1024xf32>
    %7 = tpu.matmul %4, %6, %cst {dimension_numbers = #tpu.dot_dimension_numbers<[1], [0], [0], [1], [0, 0, 1, 1], [], []>} : vector<2x32xbf16>, vector<32x1024xbf16>, vector<2x1024xf32> -> vector<2x1024xf32>
    %8 = arith.addf %5, %7 : vector<2x1024xf32>
    %c0_6 = arith.constant 0 : index
    %c0_7 = arith.constant 0 : index
    %9 = vector.load %arg10[%c0_6, %c0_7] : memref<2x1024xf32, #tpu.memory_space<vmem>>, vector<2x1024xf32>
    tpu.vector_store %arg10[%c0_6, %c0_7], %8 {strides = array<i32>} : memref<2x1024xf32, #tpu.memory_space<vmem>>, vector<2x1024xf32>,
    %c0_i32_8 = arith.constant 0 : i32
    %10 = arith.cmpi eq, %arg1, %c0_i32_8 : i32
    %11 = arith.extui %10 : i1 to i32
    %c0_i32_9 = arith.constant 0 : i32
    %12 = arith.cmpi ne, %11, %c0_i32_9 : i32
    scf.if %12 {
      %c0_10 = arith.constant 0 : index
      %c0_11 = arith.constant 0 : index
      %13 = vector.load %arg10[%c0_10, %c0_11] : memref<2x1024xf32, #tpu.memory_space<vmem>>, vector<2x1024xf32>
      %c0_12 = arith.constant 0 : index
      %c0_13 = arith.constant 0 : index
      %14 = vector.load %arg4[%c0_12, %c0_13] : memref<1x1024xf32, #tpu.memory_space<vmem>>, vector<1x1024xf32>
      %15 = vector.broadcast %14 : vector<1x1024xf32> to vector<2x1024xf32>
      %16 = arith.addf %13, %15 : vector<2x1024xf32>
      %cst_14 = arith.constant 5.000000e-01 : f32
      %17 = vector.broadcast %cst_14 : f32 to vector<2x1024xf32>
      %18 = arith.mulf %17, %16 : vector<2x1024xf32>
      %19 = math.tanh %18 : vector<2x1024xf32>
      %cst_15 = arith.constant 5.000000e-01 : f32
      %20 = vector.broadcast %cst_15 : f32 to vector<2x1024xf32>
      %21 = arith.mulf %20, %19 : vector<2x1024xf32>
      %cst_16 = arith.constant 5.000000e-01 : f32
      %22 = vector.broadcast %cst_16 : f32 to vector<2x1024xf32>
      %23 = arith.addf %21, %22 : vector<2x1024xf32>
      %24 = arith.truncf %23 : vector<2x1024xf32> to vector<2x1024xbf16>
      %c0_17 = arith.constant 0 : index
      %c0_18 = arith.constant 0 : index
      %25 = vector.load %arg5[%c0_17, %c0_18] : memref<1024x1024xbf16, #tpu.memory_space<vmem>>, vector<1024x1024xbf16>
      %cst_19 = arith.constant dense<0.000000e+00> : vector<2x1024xf32>
      %26 = tpu.matmul %24, %25, %cst_19 {dimension_numbers = #tpu.dot_dimension_numbers<[1], [0], [0], [1], [0, 0, 1, 1], [], []>} : vector<2x1024xbf16>, vector<1024x1024xbf16>, vector<2x1024xf32> -> vector<2x1024xf32>
      %c0_20 = arith.constant 0 : index
      %c0_21 = arith.constant 0 : index
      %27 = vector.load %arg6[%c0_20, %c0_21] : memref<1x1024xf32, #tpu.memory_space<vmem>>, vector<1x1024xf32>
      %28 = vector.broadcast %27 : vector<1x1024xf32> to vector<2x1024xf32>
      %29 = arith.addf %26, %28 : vector<2x1024xf32>
      %cst_22 = arith.constant 5.000000e-01 : f32
      %30 = vector.broadcast %cst_22 : f32 to vector<2x1024xf32>
      %31 = arith.mulf %30, %29 : vector<2x1024xf32>
      %32 = math.tanh %31 : vector<2x1024xf32>
      %cst_23 = arith.constant 5.000000e-01 : f32
      %33 = vector.broadcast %cst_23 : f32 to vector<2x1024xf32>
      %34 = arith.mulf %33, %32 : vector<2x1024xf32>
      %cst_24 = arith.constant 5.000000e-01 : f32
      %35 = vector.broadcast %cst_24 : f32 to vector<2x1024xf32>
      %36 = arith.addf %34, %35 : vector<2x1024xf32>
      %c0_25 = arith.constant 0 : index
      %c0_26 = arith.constant 0 : index
      %37 = vector.load %arg7[%c0_25, %c0_26] : memref<1x1024xbf16, #tpu.memory_space<vmem>>, vector<1x1024xbf16>
      %38 = arith.extf %37 : vector<1x1024xbf16> to vector<1x1024xf32>
      %39 = vector.broadcast %38 : vector<1x1024xf32> to vector<2x1024xf32>
      %40 = arith.mulf %36, %39 : vector<2x1024xf32>
      %cst_27 = arith.constant dense<0.000000e+00> : vector<2xf32>
      %41 = vector.multi_reduction <add>, %40, %cst_27 [1] : vector<2x1024xf32> to vector<2xf32>
      %42 = vector.shape_cast %41 : vector<2xf32> to vector<2x1xf32>
      %c0_28 = arith.constant 0 : index
      %c0_29 = arith.constant 0 : index
      %43 = vector.load %arg8[%c0_28, %c0_29] : memref<1x1xf32, #tpu.memory_space<vmem>>, vector<1x1xf32>
      %44 = vector.broadcast %43 : vector<1x1xf32> to vector<2x1xf32>
      %45 = arith.addf %42, %44 : vector<2x1xf32>
      %c0_30 = arith.constant 0 : index
      %c0_31 = arith.constant 0 : index
      %46 = vector.load %arg9[%c0_30, %c0_31] : memref<2x1xf32, #tpu.memory_space<vmem>>, vector<2x1xf32>
      tpu.vector_store %arg9[%c0_30, %c0_31], %45 {strides = array<i32>} : memref<2x1xf32, #tpu.memory_space<vmem>>, vector<2x1xf32>,
    } else {
    }
    return
  }
  func.func @transform_0(%arg0: i32, %arg1: i32) -> (i32, i32) {
    %c0_i32 = arith.constant 0 : i32
    return %arg0, %arg1 : i32, i32
  }
  func.func @transform_1(%arg0: i32, %arg1: i32) -> (i32, i32) {
    %c0_i32 = arith.constant 0 : i32
    %c0_i32_0 = arith.constant 0 : i32
    %c0_i32_1 = arith.constant 0 : i32
    return %c0_i32, %c0_i32_0 : i32, i32
  }
  func.func @transform_2(%arg0: i32, %arg1: i32) -> (i32, i32) {
    %c0_i32 = arith.constant 0 : i32
    %c0_i32_0 = arith.constant 0 : i32
    %c0_i32_1 = arith.constant 0 : i32
    return %c0_i32, %c0_i32_0 : i32, i32
  }
  func.func @transform_3(%arg0: i32, %arg1: i32) -> (i32, i32) {
    %c0_i32 = arith.constant 0 : i32
    %c0_i32_0 = arith.constant 0 : i32
    %c0_i32_1 = arith.constant 0 : i32
    return %c0_i32, %c0_i32_0 : i32, i32
  }
  func.func @transform_4(%arg0: i32, %arg1: i32) -> (i32, i32) {
    %c0_i32 = arith.constant 0 : i32
    %c0_i32_0 = arith.constant 0 : i32
    %c0_i32_1 = arith.constant 0 : i32
    return %c0_i32, %c0_i32_0 : i32, i32
  }
  func.func @transform_5(%arg0: i32, %arg1: i32) -> (i32, i32) {
    %c0_i32 = arith.constant 0 : i32
    %c0_i32_0 = arith.constant 0 : i32
    %c0_i32_1 = arith.constant 0 : i32
    return %c0_i32, %c0_i32_0 : i32, i32
  }
  func.func @transform_6(%arg0: i32, %arg1: i32) -> (i32, i32) {
    %c0_i32 = arith.constant 0 : i32
    %c0_i32_0 = arith.constant 0 : i32
    %c0_i32_1 = arith.constant 0 : i32
    return %c0_i32, %c0_i32_0 : i32, i32
  }
  func.func @transform_7(%arg0: i32, %arg1: i32) -> (i32, i32) {
    %c0_i32 = arith.constant 0 : i32
    %c0_i32_0 = arith.constant 0 : i32
    return %arg0, %c0_i32 : i32, i32
  }
}

module attributes {stable_mosaic.version = 11 : i64} {
  func.func @_value_head_kernel(%arg0: i32, %arg1: i32, %arg2: memref<2x32xf32, #tpu.memory_space<vmem>>, %arg3: memref<32x1024xbf16, #tpu.memory_space<vmem>>, %arg4: memref<1x1024xf32, #tpu.memory_space<vmem>>, %arg5: memref<1024x1024xbf16, #tpu.memory_space<vmem>>, %arg6: memref<1x1024xf32, #tpu.memory_space<vmem>>, %arg7: memref<1x1024xbf16, #tpu.memory_space<vmem>>, %arg8: memref<1x1xf32, #tpu.memory_space<vmem>>, %arg9: memref<2x1xf32, #tpu.memory_space<vmem>>, %arg10: memref<2x1024xf32, #tpu.memory_space<vmem>>) attributes {dimension_semantics = [#tpu.dimension_semantics<parallel>, #tpu.dimension_semantics<arbitrary>], iteration_bounds = array<i64: 1, 1>, scalar_prefetch = 0 : i64, scratch_operands = 1 : i64, tpu.core_type = #tpu.core_type<tc>, window_params = [{transform_indices = @transform_0, window_bounds = array<i64: 2, 32>}, {pipeline_mode = #tpu.pipeline_mode<synchronous>, transform_indices = @transform_1, window_bounds = array<i64: 32, 1024>}, {pipeline_mode = #tpu.pipeline_mode<synchronous>, transform_indices = @transform_2, window_bounds = array<i64: 1, 1024>}, {pipeline_mode = #tpu.pipeline_mode<synchronous>, transform_indices = @transform_3, window_bounds = array<i64: 1024, 1024>}, {pipeline_mode = #tpu.pipeline_mode<synchronous>, transform_indices = @transform_4, window_bounds = array<i64: 1, 1024>}, {pipeline_mode = #tpu.pipeline_mode<synchronous>, transform_indices = @transform_5, window_bounds = array<i64: 1, 1024>}, {pipeline_mode = #tpu.pipeline_mode<synchronous>, transform_indices = @transform_6, window_bounds = array<i64: 1, 1>}, {transform_indices = @transform_7, window_bounds = array<i64: 2, 1>}]} {
    %c0_i32 = arith.constant 0 : i32
    %0 = arith.cmpi eq, %arg1, %c0_i32 : i32
    %1 = arith.extui %0 : i1 to i32
    %c0_i32_0 = arith.constant 0 : i32
    %2 = arith.cmpi ne, %1, %c0_i32_0 : i32
    scf.if %2 {
      %cst_10 = arith.constant 0.000000e+00 : f32
      %13 = vector.broadcast %cst_10 : f32 to vector<2x1024xf32>
      %c0_11 = arith.constant 0 : index
      %c0_12 = arith.constant 0 : index
      %14 = vector.load %arg10[%c0_11, %c0_12] : memref<2x1024xf32, #tpu.memory_space<vmem>>, vector<2x1024xf32>
      tpu.vector_store %arg10[%c0_11, %c0_12], %13 {strides = array<i32>} : memref<2x1024xf32, #tpu.memory_space<vmem>>, vector<2x1024xf32>,
    } else {
    }
    %c0 = arith.constant 0 : index
    %c0_1 = arith.constant 0 : index
    %3 = vector.load %arg2[%c0, %c0_1] : memref<2x32xf32, #tpu.memory_space<vmem>>, vector<2x32xf32>
    %4 = arith.truncf %3 : vector<2x32xf32> to vector<2x32xbf16>
    %c0_2 = arith.constant 0 : index
    %c0_3 = arith.constant 0 : index
    %5 = vector.load %arg10[%c0_2, %c0_3] : memref<2x1024xf32, #tpu.memory_space<vmem>>, vector<2x1024xf32>
    %c0_4 = arith.constant 0 : index
    %c0_5 = arith.constant 0 : index
    %6 = vector.load %arg3[%c0_4, %c0_5] : memref<32x1024xbf16, #tpu.memory_space<vmem>>, vector<32x1024xbf16>
    %cst = arith.constant dense<0.000000e+00> : vector<2x1024xf32>
    %7 = tpu.matmul %4, %6, %cst {dimension_numbers = #tpu.dot_dimension_numbers<[1], [0], [0], [1], [0, 0, 1, 1], [], []>} : vector<2x32xbf16>, vector<32x1024xbf16>, vector<2x1024xf32> -> vector<2x1024xf32>
    %8 = arith.addf %5, %7 : vector<2x1024xf32>
    %c0_6 = arith.constant 0 : index
    %c0_7 = arith.constant 0 : index
    %9 = vector.load %arg10[%c0_6, %c0_7] : memref<2x1024xf32, #tpu.memory_space<vmem>>, vector<2x1024xf32>
    tpu.vector_store %arg10[%c0_6, %c0_7], %8 {strides = array<i32>} : memref<2x1024xf32, #tpu.memory_space<vmem>>, vector<2x1024xf32>,
    %c0_i32_8 = arith.constant 0 : i32
    %10 = arith.cmpi eq, %arg1, %c0_i32_8 : i32
    %11 = arith.extui %10 : i1 to i32
    %c0_i32_9 = arith.constant 0 : i32
    %12 = arith.cmpi ne, %11, %c0_i32_9 : i32
    scf.if %12 {
      %c0_10 = arith.constant 0 : index
      %c0_11 = arith.constant 0 : index
      %13 = vector.load %arg10[%c0_10, %c0_11] : memref<2x1024xf32, #tpu.memory_space<vmem>>, vector<2x1024xf32>
      %c0_12 = arith.constant 0 : index
      %c0_13 = arith.constant 0 : index
      %14 = vector.load %arg4[%c0_12, %c0_13] : memref<1x1024xf32, #tpu.memory_space<vmem>>, vector<1x1024xf32>
      %15 = vector.broadcast %14 : vector<1x1024xf32> to vector<2x1024xf32>
      %16 = arith.addf %13, %15 : vector<2x1024xf32>
      %cst_14 = arith.constant 5.000000e-01 : f32
      %17 = vector.broadcast %cst_14 : f32 to vector<2x1024xf32>
      %18 = arith.mulf %17, %16 : vector<2x1024xf32>
      %19 = math.tanh %18 : vector<2x1024xf32>
      %cst_15 = arith.constant 5.000000e-01 : f32
      %20 = vector.broadcast %cst_15 : f32 to vector<2x1024xf32>
      %21 = arith.mulf %20, %19 : vector<2x1024xf32>
      %cst_16 = arith.constant 5.000000e-01 : f32
      %22 = vector.broadcast %cst_16 : f32 to vector<2x1024xf32>
      %23 = arith.addf %21, %22 : vector<2x1024xf32>
      %24 = arith.truncf %23 : vector<2x1024xf32> to vector<2x1024xbf16>
      %c0_17 = arith.constant 0 : index
      %c0_18 = arith.constant 0 : index
      %25 = vector.load %arg5[%c0_17, %c0_18] : memref<1024x1024xbf16, #tpu.memory_space<vmem>>, vector<1024x1024xbf16>
      %cst_19 = arith.constant dense<0.000000e+00> : vector<2x1024xf32>
      %26 = tpu.matmul %24, %25, %cst_19 {dimension_numbers = #tpu.dot_dimension_numbers<[1], [0], [0], [1], [0, 0, 1, 1], [], []>} : vector<2x1024xbf16>, vector<1024x1024xbf16>, vector<2x1024xf32> -> vector<2x1024xf32>
      %c0_20 = arith.constant 0 : index
      %c0_21 = arith.constant 0 : index
      %27 = vector.load %arg6[%c0_20, %c0_21] : memref<1x1024xf32, #tpu.memory_space<vmem>>, vector<1x1024xf32>
      %28 = vector.broadcast %27 : vector<1x1024xf32> to vector<2x1024xf32>
      %29 = arith.addf %26, %28 : vector<2x1024xf32>
      %cst_22 = arith.constant 5.000000e-01 : f32
      %30 = vector.broadcast %cst_22 : f32 to vector<2x1024xf32>
      %31 = arith.mulf %30, %29 : vector<2x1024xf32>
      %32 = math.tanh %31 : vector<2x1024xf32>
      %cst_23 = arith.constant 5.000000e-01 : f32
      %33 = vector.broadcast %cst_23 : f32 to vector<2x1024xf32>
      %34 = arith.mulf %33, %32 : vector<2x1024xf32>
      %cst_24 = arith.constant 5.000000e-01 : f32
      %35 = vector.broadcast %cst_24 : f32 to vector<2x1024xf32>
      %36 = arith.addf %34, %35 : vector<2x1024xf32>
      %c0_25 = arith.constant 0 : index
      %c0_26 = arith.constant 0 : index
      %37 = vector.load %arg7[%c0_25, %c0_26] : memref<1x1024xbf16, #tpu.memory_space<vmem>>, vector<1x1024xbf16>
      %38 = arith.extf %37 : vector<1x1024xbf16> to vector<1x1024xf32>
      %39 = vector.broadcast %38 : vector<1x1024xf32> to vector<2x1024xf32>
      %40 = arith.mulf %36, %39 : vector<2x1024xf32>
      %cst_27 = arith.constant dense<0.000000e+00> : vector<2xf32>
      %41 = vector.multi_reduction <add>, %40, %cst_27 [1] : vector<2x1024xf32> to vector<2xf32>
      %42 = vector.shape_cast %41 : vector<2xf32> to vector<2x1xf32>
      %c0_28 = arith.constant 0 : index
      %c0_29 = arith.constant 0 : index
      %43 = vector.load %arg8[%c0_28, %c0_29] : memref<1x1xf32, #tpu.memory_space<vmem>>, vector<1x1xf32>
      %44 = vector.broadcast %43 : vector<1x1xf32> to vector<2x1xf32>
      %45 = arith.addf %42, %44 : vector<2x1xf32>
      %c0_30 = arith.constant 0 : index
      %c0_31 = arith.constant 0 : index
      %46 = vector.load %arg9[%c0_30, %c0_31] : memref<2x1xf32, #tpu.memory_space<vmem>>, vector<2x1xf32>
      tpu.vector_store %arg9[%c0_30, %c0_31], %45 {strides = array<i32>} : memref<2x1xf32, #tpu.memory_space<vmem>>, vector<2x1xf32>,
    } else {
    }
    return
  }
  func.func @transform_0(%arg0: i32, %arg1: i32) -> (i32, i32) {
    %c0_i32 = arith.constant 0 : i32
    return %arg0, %arg1 : i32, i32
  }
  func.func @transform_1(%arg0: i32, %arg1: i32) -> (i32, i32) {
    %c0_i32 = arith.constant 0 : i32
    %c0_i32_0 = arith.constant 0 : i32
    %c0_i32_1 = arith.constant 0 : i32
    return %c0_i32, %c0_i32_0 : i32, i32
  }
  func.func @transform_2(%arg0: i32, %arg1: i32) -> (i32, i32) {
    %c0_i32 = arith.constant 0 : i32
    %c0_i32_0 = arith.constant 0 : i32
    %c0_i32_1 = arith.constant 0 : i32
    return %c0_i32, %c0_i32_0 : i32, i32
  }
  func.func @transform_3(%arg0: i32, %arg1: i32) -> (i32, i32) {
    %c0_i32 = arith.constant 0 : i32
    %c0_i32_0 = arith.constant 0 : i32
    %c0_i32_1 = arith.constant 0 : i32
    return %c0_i32, %c0_i32_0 : i32, i32
  }
  func.func @transform_4(%arg0: i32, %arg1: i32) -> (i32, i32) {
    %c0_i32 = arith.constant 0 : i32
    %c0_i32_0 = arith.constant 0 : i32
    %c0_i32_1 = arith.constant 0 : i32
    return %c0_i32, %c0_i32_0 : i32, i32
  }
  func.func @transform_5(%arg0: i32, %arg1: i32) -> (i32, i32) {
    %c0_i32 = arith.constant 0 : i32
    %c0_i32_0 = arith.constant 0 : i32
    %c0_i32_1 = arith.constant 0 : i32
    return %c0_i32, %c0_i32_0 : i32, i32
  }
  func.func @transform_6(%arg0: i32, %arg1: i32) -> (i32, i32) {
    %c0_i32 = arith.constant 0 : i32
    %c0_i32_0 = arith.constant 0 : i32
    %c0_i32_1 = arith.constant 0 : i32
    return %c0_i32, %c0_i32_0 : i32, i32
  }
  func.func @transform_7(%arg0: i32, %arg1: i32) -> (i32, i32) {
    %c0_i32 = arith.constant 0 : i32
    %c0_i32_0 = arith.constant 0 : i32
    return %arg0, %c0_i32 : i32, i32
  }
}

</mosaic_0001>

<bundles_post_ra>
// kernel: tpu_custom_call.1
= control target key start
LH: loop header
LB: loop body
LE: loop exit
PB: predicated region body
PF: predicated region fallthrough
CT: control target
= control target key end

     0   :  { %s7534_s0 = inlined_call_operand.hbm [shape: f32[2,32], index: 0, kind: input, shape index: {}]   ;;  %s7535_s1 = inlined_call_operand.hbm [shape: bf16[32,1024], index: 1, kind: input, shape index: {}]   ;;  %s7536_s2 = inlined_call_operand.hbm [shape: f32[1,1024], index: 2, kind: input, shape index: {}]   ;;  %s7537_s3 = inlined_call_operand.hbm [shape: bf16[1024,1024], index: 3, kind: input, shape index: {}]   ;;  %s7538_s4 = inlined_call_operand.hbm [shape: f32[1,1024], index: 4, kind: input, shape index: {}]   ;;  %s7539_s5 = inlined_call_operand.hbm [shape: bf16[1,1024], index: 5, kind: input, shape index: {}]   ;;  %s7540_s6 = inlined_call_operand.<no memory space> [shape: f32[1,1], index: 6, kind: input, shape index: {}]   ;;  %s7541_s7 = inlined_call_operand.vmem [shape: f32[2,1], index: 7, kind: output, shape index: {}]  }
   0x1   :  { %v12_v0 = vstv %s7540_s6 }
   0x2   :  { %13 = vst [vmem:[#allocation3] sm:$0x1] %v12_v0 }
   0x3   :  { %14 = vsyncpa [#allocation5], 0 }
   0x4   :  { %15 = vsyncpa [#allocation7], 0 }
   0x5   :  { %16 = vsyncpa [#allocation10], 0  ;;  %s33_s28 = sshll.u32 %s7535_s1, 4  ;;  %s34_s28 = int_to_ptr.hbm [resolvable:$true] %s33_s28 }
   0x6   :  { %17 = vsyncpa [#allocation13], 0  ;;  %s7281_s29 = smov [#allocation6]   ;;  %s57_s10 = sshll.u32 %s7537_s3, 4  ;;  %s58_s10 = int_to_ptr.hbm [resolvable:$true] %s57_s10 }
   0x7   :  { %s35_s30 = sshll.u32 %s7281_s29, 4  ;;  %s7282_s11 = smov 512   ;;  %s36_s30 = int_to_ptr.vmem [resolvable:$true] %s35_s30 }
   0x8   :  { %s7283_s12 = smov 32   ;;  %s7284_s6 = smov [#allocation9]  }
   0x9   :  { %41 = dma.hbm_to_vmem [thread:$0]  %s34_s28, 2048, %s36_s30, [#allocation7], %s7282_s11, %s7282_s11, %s7283_s12  }
   0xa   :  { %s59_s13 = sshll.u32 %s7284_s6, 4  ;;  %s23_s16 = sshll.u32 %s7534_s0, 4  ;;  %s60_s13 = int_to_ptr.vmem [resolvable:$true] %s59_s13  ;;  %s24_s16 = int_to_ptr.hbm [resolvable:$true] %s23_s16 }
   0xb   :  { %65 = dma.hbm_to_vmem [thread:$0]  %s58_s10, 65536, %s60_s13, [#allocation10], %s7282_s11, %s7282_s11, %s7283_s12  }
   0xc   :  { %s47_s18 = sshll.u32 %s7536_s2, 4  ;;  %s7285_s19 = smov [#allocation4]   ;;  %s48_s18 = int_to_ptr.hbm [resolvable:$true] %s47_s18 }
   0xd   :  { %s25_s20 = sshll.u32 %s7285_s19, 4  ;;  %s7286_s3 = smov [#allocation8]   ;;  %s26_s20 = int_to_ptr.vmem [resolvable:$true] %s25_s20 }
   0xe   :  { %28 = dma.hbm_to_vmem [thread:$0]  %s24_s16, 32, %s26_s20, [#allocation5]  }
   0xf   :  { %s49_s21 = sshll.u32 %s7286_s3, 4  ;;  %s71_s24 = sshll.u32 %s7538_s4, 4  ;;  %s50_s21 = int_to_ptr.vmem [resolvable:$true] %s49_s21  ;;  %s72_s24 = int_to_ptr.hbm [resolvable:$true] %s71_s24 }
  0x10   :  { %52 = dma.hbm_to_vmem [thread:$0]  %s48_s18, 128, %s50_s21, [#allocation7]  }
  0x11   :  { %s82_s26 = sshll.u32 %s7539_s5, 4  ;;  %s7287_s27 = smov [#allocation11]   ;;  %s83_s26 = int_to_ptr.hbm [resolvable:$true] %s82_s26 }
  0x12   :  { %s73_s2 = sshll.u32 %s7287_s27, 4  ;;  %s7288_s28 = smov [#allocation12]   ;;  %s74_s2 = int_to_ptr.vmem [resolvable:$true] %s73_s2 }
  0x13   :  { %76 = dma.hbm_to_vmem [thread:$0]  %s72_s24, 128, %s74_s2, [#allocation10]  }
  0x14   :  { %s84_s29 = sshll.u32 %s7288_s28, 4  ;;  %s85_s29 = int_to_ptr.vmem [resolvable:$true] %s84_s29 }
  0x15   :  { %87 = dma.hbm_to_vmem [thread:$0]  %s83_s26, 128, %s85_s29, [#allocation13]  }
  0x16   :  { %7273 = dma.done.wait [#allocation5], 32  }
  0x17   :  { %7274 = vsyncadd [#allocation5], 4294967264 }
  0x18   :  { %7275 = dma.done.wait [#allocation7], 2176  }
  0x19   :  { %7276 = vsyncadd [#allocation7], 4294965120 }
  0x1a   :  { %7277 = dma.done.wait [#allocation10], 65664  }
  0x1b   :  { %7278 = vsyncadd [#allocation10], 4294901632 }
  0x1c   :  { %7279 = dma.done.wait [#allocation13], 128  }
  0x1d   :  { %7280 = vsyncadd [#allocation13], 4294967168  ;;  %vm221_vm0 = vcmask 261120   ;;  %v4483_v1 = vld [vmem:[#allocation6 + $0x40] sm:$0xf]  ;;  %vm343_vm1 = vcmask 1041408  }
  0x1e   :  { %v6581_v2 = vld [vmem:[#allocation6 + $0x5c] sm:$0xf0]  ;;  %v6577_v3 = vld [vmem:[#allocation6 + $0x44] sm:$0xf]  ;;  %v4491_v6 = vld [vmem:[#allocation6 + $0x48] sm:$0xf] }
  0x1f   :  { %v4484_v4 = vor.u32 %v6581_v2, %v4483_v1  ;;  %v4485_v5 = vld [vmem:[#allocation6 + $0x60] sm:$0xf0]  ;;  %v6582_v7 = vld [vmem:[#allocation6 + $0x64] sm:$0xf0]  ;;  %v6578_v10 = vld [vmem:[#allocation6 + $0x4c] sm:$0xf] }
  0x20   :  { %v4488_v8 = vor.u32 %v6577_v3, %v4485_v5  ;;  %v4492_v9 = vor.u32 %v6582_v7, %v4491_v6  ;;  %v4493_v11 = vld [vmem:[#allocation6 + $0x68] sm:$0xf0]  ;;  %v4451_v12 = vld [vmem:[#allocation6] sm:$0xf]  ;;  %v6569_v15 = vld [vmem:[#allocation6 + $0x4] sm:$0xf] }
  0x21   :  { %231 = vmatpush.bf16.msra.mxu0 %v4484_v4  ;;  %v4496_v13 = vor.u32 %v6578_v10, %v4493_v11  ;;  %v6573_v14 = vld [vmem:[#allocation6 + $0x1c] sm:$0xf0]  ;;  %v4453_v16 = vld [vmem:[#allocation6 + $0x20] sm:$0xf0]  ;;  %v4459_v19 = vld [vmem:[#allocation6 + $0x8] sm:$0xf] }
  0x22   :  { %244 = vmatpush.bf16.msra.mxu1 %v4488_v8  ;;  %257 = vmatpush.bf16.msra.mxu2 %v4492_v9  ;;  %v4452_v17 = vor.u32 %v6573_v14, %v4451_v12  ;;  %v4456_v18 = vor.u32 %v6569_v15, %v4453_v16  ;;  %v6574_v20 = vld [vmem:[#allocation6 + $0x24] sm:$0xf0]  ;;  %v6570_v21 = vld [vmem:[#allocation6 + $0xc] sm:$0xf]  ;;  %v121_v24 = vld [vmem:[#allocation4] sm:$0x3] }
  0x23   :  { %270 = vmatpush.bf16.msra.mxu3 %v4496_v13  ;;  %v4460_v22 = vor.u32 %v6574_v20, %v4459_v19  ;;  %v4461_v23 = vld [vmem:[#allocation6 + $0x28] sm:$0xf0]  ;;  %v4507_v25 = vld [vmem:[#allocation6 + $0x58] sm:$0xf]  ;;  %v7350_v27 = vpack.c.bf16 %v121_v24, %v121_v24  ;;  %v6580_v29 = vld [vmem:[#allocation6 + $0x5c] sm:$0xf] }
  0x24   :  { %v4464_v26 = vor.u32 %v6570_v21, %v4461_v23  ;;  %v6584_v28 = vld [vmem:[#allocation6 + $0x74] sm:$0xf0]  ;;  %v4509_v30 = vld [vmem:[#allocation6 + $0x78] sm:$0xf0]  ;;  %v6579_v37 = vld [vmem:[#allocation6 + $0x54] sm:$0xf] }
  0x25   :  { %232 = vmatpush.bf16.msra.mxu0 %v4452_v17  ;;  %v4508_v31 = vor.u32 %v6584_v28, %v4507_v25  ;;  %v4512_v32 = vor.u32 %v6580_v29, %v4509_v30  ;;  %v4475_v33 = vld [vmem:[#allocation6 + $0x18] sm:$0xf]  ;;  %v6572_v35 = vld [vmem:[#allocation6 + $0x1c] sm:$0xf]  ;;  %v4501_v38 = vld [vmem:[#allocation6 + $0x70] sm:$0xf0] }
  0x26   :  { %v6576_v34 = vld [vmem:[#allocation6 + $0x34] sm:$0xf0]  ;;  %245 = vmatpush.bf16.msra.mxu1 %v4456_v18  ;;  %258 = vmatpush.bf16.msra.mxu2 %v4460_v22  ;;  %v4477_v36 = vld [vmem:[#allocation6 + $0x38] sm:$0xf0]  ;;  %v4504_v40 = vor.u32 %v6579_v37, %v4501_v38  ;;  %v4499_v41 = vld [vmem:[#allocation6 + $0x50] sm:$0xf] }
  0x27   :  { %271 = vmatpush.bf16.msra.mxu3 %v4464_v26  ;;  %v4476_v39 = vor.u32 %v6576_v34, %v4475_v33  ;;  %v6583_v42 = vld [vmem:[#allocation6 + $0x6c] sm:$0xf0]  ;;  %v6571_v43 = vld [vmem:[#allocation6 + $0x14] sm:$0xf]  ;;  %v4480_v44 = vor.u32 %v6572_v35, %v4477_v36  ;;  %v4747_v49 = vld [vmem:[#allocation9 + $0x1c0] sm:$0xf] }
  0x28   :  { %4513 = vmatmul.msk.bf16.vlgmr.msra.gmra.mxu0 %vm221_vm0, %v7350_v27  ;;  %v4500_v45 = vor.u32 %v6583_v42, %v4499_v41  ;;  %v4469_v46 = vld [vmem:[#allocation6 + $0x30] sm:$0xf0]  ;;  %v4467_v47 = vld [vmem:[#allocation6 + $0x10] sm:$0xf]  ;;  %v6645_v50 = vld [vmem:[#allocation9 + $0x1dc] sm:$0xf0] }
  0x29   :  { %v6575_v48 = vld [vmem:[#allocation6 + $0x2c] sm:$0xf0]  ;;  %4514 = vmatmul.msk.bf16.vlgmr.msra.gmra.mxu1 %vm221_vm0, %v7350_v27  ;;  %4515 = vmatmul.msk.bf16.vlgmr.msra.gmra.mxu2 %vm221_vm0, %v7350_v27  ;;  %v5003_v51 = vld [vmem:[#allocation9 + $0x3c0] sm:$0xf]  ;;  %v4472_v52 = vor.u32 %v6571_v43, %v4469_v46  ;;  %v4748_v62 = vor.u32 %v6645_v50, %v4747_v49  ;;  %vm345_vm2 = vcmask 1045508   ;;  %vm347_vm3 = vcmask 1043456  }
  0x2a   :  { %309 = vmatpush.bf16.msrb.mxu2 %v4508_v31  ;;  %4516 = vmatmul.msk.bf16.vlgmr.msra.gmra.mxu3 %vm221_vm0, %v7350_v27  ;;  %v6709_v53 = vld [vmem:[#allocation9 + $0x3dc] sm:$0xf0]  ;;  %v4468_v56 = vor.u32 %v6575_v48, %v4467_v47  ;;  %vm4439_vm4 = vcmask 1024  }
  0x2b   :  { %322 = vmatpush.bf16.msrb.mxu3 %v4512_v32  ;;  %296 = vmatpush.bf16.msrb.mxu1 %v4504_v40  ;;  %v5259_v54 = vld [vmem:[#allocation9 + $0x5c0] sm:$0xf]  ;;  %v5004_v57 = vor.u32 %v6709_v53, %v5003_v51 }
  0x2c   :  { %v6773_v55 = vld [vmem:[#allocation9 + $0x5dc] sm:$0xf0]  ;;  %283 = vmatpush.bf16.msrb.mxu0 %v4500_v45 }
  0x2d   :  { %v5260_v58 = vor.u32 %v6773_v55, %v5259_v54  ;;  %v5515_v59 = vld [vmem:[#allocation9 + $0x7c0] sm:$0xf] }
  0x2e   :  { %310 = vmatpush.bf16.msrb.mxu2 %v4476_v39  ;;  %v6837_v60 = vld [vmem:[#allocation9 + $0x7dc] sm:$0xf0] }
  0x2f   :  { %v4715_v61 = vld [vmem:[#allocation9 + $0x180] sm:$0xf]  ;;  %323 = vmatpush.bf16.msrb.mxu3 %v4480_v44  ;;  %v5516_v63 = vor.u32 %v6837_v60, %v5515_v59  ;;  %297 = vmatpush.bf16.msrb.mxu1 %v4472_v52 }
  0x30   :  { %v6637_v0 = vld [vmem:[#allocation9 + $0x19c] sm:$0xf0]  ;;  %284 = vmatpush.bf16.msrb.mxu0 %v4468_v56 }
  0x31   :  { %v4971_v1 = vld [vmem:[#allocation9 + $0x380] sm:$0xf]  ;;  %v4716_v13 = vor.u32 %v6637_v0, %v4715_v61 }
  0x32   :  { %v6701_v2 = vld [vmem:[#allocation9 + $0x39c] sm:$0xf0]  ;;  %3542 = vmatpush.bf16.msra.mxu2 %v5260_v58 }
  0x33   :  { %v5227_v3 = vld [vmem:[#allocation9 + $0x580] sm:$0xf]  ;;  %3555 = vmatpush.bf16.msra.mxu3 %v5516_v63  ;;  %3529 = vmatpush.bf16.msra.mxu1 %v5004_v57  ;;  %v4972_v8 = vor.u32 %v6701_v2, %v4971_v1 }
  0x34   :  { %v6765_v4 = vld [vmem:[#allocation9 + $0x59c] sm:$0xf0]  ;;  %3516 = vmatpush.bf16.msra.mxu0 %v4748_v62 }
  0x35   :  { %v5483_v5 = vld [vmem:[#allocation9 + $0x780] sm:$0xf]  ;;  %v5228_v6 = vor.u32 %v6765_v4, %v5227_v3 }
  0x36   :  { %v6829_v7 = vld [vmem:[#allocation9 + $0x79c] sm:$0xf0] }
  0x37   :  { %v5484_v9 = vor.u32 %v6829_v7, %v5483_v5  ;;  %v4939_v10 = vld [vmem:[#allocation9 + $0x340] sm:$0xf]  ;;  %3543 = vmatpush.bf16.msra.mxu2 %v5228_v6  ;;  %3530 = vmatpush.bf16.msra.mxu1 %v4972_v8 }
  0x38   :  { %v6693_v11 = vld [vmem:[#allocation9 + $0x35c] sm:$0xf0]  ;;  %3517 = vmatpush.bf16.msra.mxu0 %v4716_v13 }
  0x39   :  { %v5195_v12 = vld [vmem:[#allocation9 + $0x540] sm:$0xf]  ;;  %3556 = vmatpush.bf16.msra.mxu3 %v5484_v9  ;;  %v4940_v21 = vor.u32 %v6693_v11, %v4939_v10  ;;  %4517 = vmatmul.msk.bf16.vlgmr.msrb.gmra.mxu0 %vm221_vm0, %v7350_v27 }
  0x3a   :  { %v6757_v14 = vld [vmem:[#allocation9 + $0x55c] sm:$0xf0]  ;;  %4519 = vmatmul.msk.bf16.vlgmr.msrb.gmra.mxu2 %vm221_vm0, %v7350_v27  ;;  %4518 = vmatmul.msk.bf16.vlgmr.msrb.gmra.mxu1 %vm221_vm0, %v7350_v27 }
  0x3b   :  { %v5451_v15 = vld [vmem:[#allocation9 + $0x740] sm:$0xf]  ;;  %v5196_v17 = vor.u32 %v6757_v14, %v5195_v12  ;;  %3531 = vmatpush.bf16.msra.mxu1 %v4940_v21  ;;  %4520 = vmatmul.msk.bf16.vlgmr.msrb.gmra.mxu3 %vm221_vm0, %v7350_v27 }
  0x3c   :  { %v6821_v16 = vld [vmem:[#allocation9 + $0x75c] sm:$0xf0] }
  0x3d   :  { %v5452_v18 = vor.u32 %v6821_v16, %v5451_v15  ;;  %v4683_v19 = vld [vmem:[#allocation9 + $0x140] sm:$0xf]  ;;  %3544 = vmatpush.bf16.msra.mxu2 %v5196_v17 }
  0x3e   :  { %v6629_v20 = vld [vmem:[#allocation9 + $0x15c] sm:$0xf0] }
  0x3f   :  { %v4907_v22 = vld [vmem:[#allocation9 + $0x300] sm:$0xf]  ;;  %v4684_v29 = vor.u32 %v6629_v20, %v4683_v19  ;;  %3557 = vmatpush.bf16.msra.mxu3 %v5452_v18 }
  0x40   :  { %v6685_v23 = vld [vmem:[#allocation9 + $0x31c] sm:$0xf0] }
  0x41   :  { %v5163_v24 = vld [vmem:[#allocation9 + $0x500] sm:$0xf]  ;;  %v4908_v32 = vor.u32 %v6685_v23, %v4907_v22  ;;  %3518 = vmatpush.bf16.msra.mxu0 %v4684_v29 }
  0x42   :  { %v6749_v25 = vld [vmem:[#allocation9 + $0x51c] sm:$0xf0] }
  0x43   :  { %v5419_v26 = vld [vmem:[#allocation9 + $0x700] sm:$0xf]  ;;  %v5164_v33 = vor.u32 %v6749_v25, %v5163_v24  ;;  %3532 = vmatpush.bf16.msra.mxu1 %v4908_v32 }
  0x44   :  { %v6813_v28 = vld [vmem:[#allocation9 + $0x71c] sm:$0xf0] }
  0x45   :  { %v4651_v30 = vld [vmem:[#allocation9 + $0x100] sm:$0xf]  ;;  %v5420_v35 = vor.u32 %v6813_v28, %v5419_v26  ;;  %3545 = vmatpush.bf16.msra.mxu2 %v5164_v33 }
  0x46   :  { %v6621_v31 = vld [vmem:[#allocation9 + $0x11c] sm:$0xf0] }
  0x47   :  { %v4875_v34 = vld [vmem:[#allocation9 + $0x2c0] sm:$0xf]  ;;  %v4652_v41 = vor.u32 %v6621_v31, %v4651_v30  ;;  %3558 = vmatpush.bf16.msra.mxu3 %v5420_v35 }
  0x48   :  { %v6677_v36 = vld [vmem:[#allocation9 + $0x2dc] sm:$0xf0] }
  0x49   :  { %v5131_v37 = vld [vmem:[#allocation9 + $0x4c0] sm:$0xf]  ;;  %v4876_v44 = vor.u32 %v6677_v36, %v4875_v34  ;;  %3519 = vmatpush.bf16.msra.mxu0 %v4652_v41 }
  0x4a   :  { %v6741_v38 = vld [vmem:[#allocation9 + $0x4dc] sm:$0xf0] }
  0x4b   :  { %v5387_v39 = vld [vmem:[#allocation9 + $0x6c0] sm:$0xf]  ;;  %v5132_v45 = vor.u32 %v6741_v38, %v5131_v37  ;;  %3533 = vmatpush.bf16.msra.mxu1 %v4876_v44 }
  0x4c   :  { %v6805_v40 = vld [vmem:[#allocation9 + $0x6dc] sm:$0xf0] }
  0x4d   :  { %v4619_v42 = vld [vmem:[#allocation9 + $0xc0] sm:$0xf]  ;;  %v5388_v47 = vor.u32 %v6805_v40, %v5387_v39  ;;  %3546 = vmatpush.bf16.msra.mxu2 %v5132_v45 }
  0x4e   :  { %v6613_v43 = vld [vmem:[#allocation9 + $0xdc] sm:$0xf0] }
  0x4f   :  { %v4843_v46 = vld [vmem:[#allocation9 + $0x280] sm:$0xf]  ;;  %v4620_v53 = vor.u32 %v6613_v43, %v4619_v42  ;;  %3559 = vmatpush.bf16.msra.mxu3 %v5388_v47 }
  0x50   :  { %v6669_v48 = vld [vmem:[#allocation9 + $0x29c] sm:$0xf0] }
  0x51   :  { %v5099_v49 = vld [vmem:[#allocation9 + $0x480] sm:$0xf]  ;;  %v4844_v55 = vor.u32 %v6669_v48, %v4843_v46  ;;  %3520 = vmatpush.bf16.msra.mxu0 %v4620_v53 }
  0x52   :  { %v6733_v50 = vld [vmem:[#allocation9 + $0x49c] sm:$0xf0] }
  0x53   :  { %v5355_v51 = vld [vmem:[#allocation9 + $0x680] sm:$0xf]  ;;  %v5100_v56 = vor.u32 %v6733_v50, %v5099_v49  ;;  %3534 = vmatpush.bf16.msra.mxu1 %v4844_v55 }
  0x54   :  { %v6797_v52 = vld [vmem:[#allocation9 + $0x69c] sm:$0xf0] }
  0x55   :  { %v4587_v27 = vld [vmem:[#allocation9 + $0x80] sm:$0xf]  ;;  %v5356_v57 = vor.u32 %v6797_v52, %v5355_v51  ;;  %3547 = vmatpush.bf16.msra.mxu2 %v5100_v56 }
  0x56   :  { %v6605_v54 = vld [vmem:[#allocation9 + $0x9c] sm:$0xf0] }
  0x57   :  { %v4588_v58 = vor.u32 %v6605_v54, %v4587_v27  ;;  %3560 = vmatpush.bf16.msra.mxu3 %v5356_v57  ;;  %v4555_v59 = vld [vmem:[#allocation9 + $0x40] sm:$0xf] }
  0x58   :  { %v6597_v60 = vld [vmem:[#allocation9 + $0x5c] sm:$0xf0] }
  0x59   :  { %3521 = vmatpush.bf16.msra.mxu0 %v4588_v58  ;;  %v4811_v61 = vld [vmem:[#allocation9 + $0x240] sm:$0xf]  ;;  %v4556_v62 = vor.u32 %v6597_v60, %v4555_v59 }
  0x5a   :  { %v6661_v63 = vld [vmem:[#allocation9 + $0x25c] sm:$0xf0] }
  0x5b   :  { %v5067_v0 = vld [vmem:[#allocation9 + $0x440] sm:$0xf]  ;;  %v4812_v1 = vor.u32 %v6661_v63, %v4811_v61 }
  0x5c   :  { %v6725_v2 = vld [vmem:[#allocation9 + $0x45c] sm:$0xf0] }
  0x5d   :  { %v5323_v3 = vld [vmem:[#allocation9 + $0x640] sm:$0xf]  ;;  %3522 = vmatpush.bf16.msra.mxu0 %v4556_v62  ;;  %v5068_v5 = vor.u32 %v6725_v2, %v5067_v0  ;;  %3535 = vmatpush.bf16.msra.mxu1 %v4812_v1 }
  0x5e   :  { %v6789_v4 = vld [vmem:[#allocation9 + $0x65c] sm:$0xf0] }
  0x5f   :  { %v5324_v6 = vor.u32 %v6789_v4, %v5323_v3  ;;  %v4523_v7 = vld [vmem:[#allocation9] sm:$0xf]  ;;  %3548 = vmatpush.bf16.msra.mxu2 %v5068_v5 }
  0x60   :  { %v6589_v8 = vld [vmem:[#allocation9 + $0x1c] sm:$0xf0] }
  0x61   :  { %v4779_v9 = vld [vmem:[#allocation9 + $0x200] sm:$0xf]  ;;  %3561 = vmatpush.bf16.msra.mxu3 %v5324_v6  ;;  %v4524_v10 = vor.u32 %v6589_v8, %v4523_v7 }
  0x62   :  { %v6653_v11 = vld [vmem:[#allocation9 + $0x21c] sm:$0xf0] }
  0x63   :  { %v5035_v12 = vld [vmem:[#allocation9 + $0x400] sm:$0xf]  ;;  %v4780_v13 = vor.u32 %v6653_v11, %v4779_v9  ;;  %3523 = vmatpush.bf16.msra.mxu0 %v4524_v10 }
  0x64   :  { %v6717_v14 = vld [vmem:[#allocation9 + $0x41c] sm:$0xf0] }
  0x65   :  { %v5036_v15 = vor.u32 %v6717_v14, %v5035_v12  ;;  %v5291_v16 = vld [vmem:[#allocation9 + $0x600] sm:$0xf]  ;;  %3536 = vmatpush.bf16.msra.mxu1 %v4780_v13  ;;  %v7368_v13 = vld [vmem:[#allocation8] sm:$0xff] }
  0x66   :  { %v6781_v17 = vld [vmem:[#allocation9 + $0x61c] sm:$0xf0] }
  0x67   :  { %v5771_v18 = vld [vmem:[#allocation9 + $0x9c0] sm:$0xf]  ;;  %3549 = vmatpush.bf16.msra.mxu2 %v5036_v15  ;;  %v5292_v20 = vor.u32 %v6781_v17, %v5291_v16 }
  0x68   :  { %v6901_v19 = vld [vmem:[#allocation9 + $0x9dc] sm:$0xf0] }
  0x69   :  { %v5772_v21 = vor.u32 %v6901_v19, %v5771_v18  ;;  %v6027_v22 = vld [vmem:[#allocation9 + $0xbc0] sm:$0xf]  ;;  %3562 = vmatpush.bf16.msra.mxu3 %v5292_v20 }
  0x6a   :  { %v6965_v23 = vld [vmem:[#allocation9 + $0xbdc] sm:$0xf0] }
  0x6b   :  { %v6028_v24 = vor.u32 %v6965_v23, %v6027_v22  ;;  %v6283_v25 = vld [vmem:[#allocation9 + $0xdc0] sm:$0xf]  ;;  %3568 = vmatpush.bf16.msrb.mxu0 %v5772_v21 }
  0x6c   :  { %v7029_v26 = vld [vmem:[#allocation9 + $0xddc] sm:$0xf0] }
  0x6d   :  { %v6284_v28 = vor.u32 %v7029_v26, %v6283_v25  ;;  %v6539_v29 = vld [vmem:[#allocation9 + $0xfc0] sm:$0xf]  ;;  %3581 = vmatpush.bf16.msrb.mxu1 %v6028_v24  ;;  %v366_v24 = vperm.slane %v7368_v13, 1  ;;  %v367_v25 = vperm.slane %v7368_v13, 2  ;;  %v368_v26 = vperm.slane %v7368_v13, 3 }
  0x6e   :  { %v7093_v30 = vld [vmem:[#allocation9 + $0xfdc] sm:$0xf0] }
  0x6f   :  { %v5739_v31 = vld [vmem:[#allocation9 + $0x980] sm:$0xf]  ;;  %v6540_v32 = vor.u32 %v7093_v30, %v6539_v29  ;;  %3594 = vmatpush.bf16.msrb.mxu2 %v6284_v28 }
  0x70   :  { %v6893_v33 = vld [vmem:[#allocation9 + $0x99c] sm:$0xf0] }
  0x71   :  { %v5995_v34 = vld [vmem:[#allocation9 + $0xb80] sm:$0xf]  ;;  %v5740_v36 = vor.u32 %v6893_v33, %v5739_v31  ;;  %3607 = vmatpush.bf16.msrb.mxu3 %v6540_v32 }
  0x72   :  { %v6957_v35 = vld [vmem:[#allocation9 + $0xb9c] sm:$0xf0] }
  0x73   :  { %v5996_v37 = vor.u32 %v6957_v35, %v5995_v34  ;;  %v6251_v38 = vld [vmem:[#allocation9 + $0xd80] sm:$0xf]  ;;  %3569 = vmatpush.bf16.msrb.mxu0 %v5740_v36 }
  0x74   :  { %v7021_v39 = vld [vmem:[#allocation9 + $0xd9c] sm:$0xf0] }
  0x75   :  { %v6507_v40 = vld [vmem:[#allocation9 + $0xf80] sm:$0xf]  ;;  %v6252_v41 = vor.u32 %v7021_v39, %v6251_v38  ;;  %3582 = vmatpush.bf16.msrb.mxu1 %v5996_v37 }
  0x76   :  { %v7085_v42 = vld [vmem:[#allocation9 + $0xf9c] sm:$0xf0] }
  0x77   :  { %v5707_v43 = vld [vmem:[#allocation9 + $0x940] sm:$0xf]  ;;  %v6508_v45 = vor.u32 %v7085_v42, %v6507_v40  ;;  %3595 = vmatpush.bf16.msrb.mxu2 %v6252_v41 }
  0x78   :  { %v6885_v44 = vld [vmem:[#allocation9 + $0x95c] sm:$0xf0] }
  0x79   :  { %v5708_v46 = vor.u32 %v6885_v44, %v5707_v43  ;;  %v5963_v47 = vld [vmem:[#allocation9 + $0xb40] sm:$0xf]  ;;  %3608 = vmatpush.bf16.msrb.mxu3 %v6508_v45  ;;  %v365_v43 = vperm.slane %v7368_v13, 0  ;;  %v373_v44 = vrot.slane %v366_v24, 6 }
  0x7a   :  { %v6949_v48 = vld [vmem:[#allocation9 + $0xb5c] sm:$0xf0] }
  0x7b   :  { %v6219_v49 = vld [vmem:[#allocation9 + $0xd40] sm:$0xf]  ;;  %v5964_v50 = vor.u32 %v6949_v48, %v5963_v47  ;;  %3570 = vmatpush.bf16.msrb.mxu0 %v5708_v46  ;;  %v374_v46 = vrot.slane %v367_v25, 4  ;;  %v375_v47 = vrot.slane %v368_v26, 2 }
  0x7c   :  { %v7013_v51 = vld [vmem:[#allocation9 + $0xd5c] sm:$0xf0] }
  0x7d   :  { %v6475_v52 = vld [vmem:[#allocation9 + $0xf40] sm:$0xf]  ;;  %v6220_v27 = vor.u32 %v7013_v51, %v6219_v49  ;;  %3583 = vmatpush.bf16.msrb.mxu1 %v5964_v50 }
  0x7e   :  { %v7077_v53 = vld [vmem:[#allocation9 + $0xf5c] sm:$0xf0] }
  0x7f   :  { %v5675_v54 = vld [vmem:[#allocation9 + $0x900] sm:$0xf]  ;;  %v6476_v57 = vor.u32 %v7077_v53, %v6475_v52  ;;  %3596 = vmatpush.bf16.msrb.mxu2 %v6220_v27 }
  0x80   :  { %v6877_v55 = vld [vmem:[#allocation9 + $0x91c] sm:$0xf0] }
  0x81   :  { %v5931_v56 = vld [vmem:[#allocation9 + $0xb00] sm:$0xf]  ;;  %v5676_v61 = vor.u32 %v6877_v55, %v5675_v54  ;;  %3609 = vmatpush.bf16.msrb.mxu3 %v6476_v57 }
  0x82   :  { %v6941_v58 = vld [vmem:[#allocation9 + $0xb1c] sm:$0xf0] }
  0x83   :  { %v6187_v59 = vld [vmem:[#allocation9 + $0xd00] sm:$0xf]  ;;  %v5932_v0 = vor.u32 %v6941_v58, %v5931_v56  ;;  %3571 = vmatpush.bf16.msrb.mxu0 %v5676_v61 }
  0x84   :  { %v7005_v60 = vld [vmem:[#allocation9 + $0xd1c] sm:$0xf0] }
  0x85   :  { %v6443_v62 = vld [vmem:[#allocation9 + $0xf00] sm:$0xf]  ;;  %v6188_v1 = vor.u32 %v7005_v60, %v6187_v59  ;;  %3584 = vmatpush.bf16.msrb.mxu1 %v5932_v0 }
  0x86   :  { %v7069_v63 = vld [vmem:[#allocation9 + $0xf1c] sm:$0xf0] }
  0x87   :  { %v5643_v2 = vld [vmem:[#allocation9 + $0x8c0] sm:$0xf]  ;;  %v6444_v5 = vor.u32 %v7069_v63, %v6443_v62  ;;  %3597 = vmatpush.bf16.msrb.mxu2 %v6188_v1  ;;  %v379_v62 = vsel %vm343_vm1, %v365_v43, %v373_v44  ;;  %v380_v63 = vsel %vm345_vm2, %v374_v46, %v375_v47  ;;  %v6641_v44 = vld [vmem:[#allocation9 + $0x1c4] sm:$0xf] }
  0x88   :  { %v6869_v3 = vld [vmem:[#allocation9 + $0x8dc] sm:$0xf0]  ;;  %v6705_v46 = vld [vmem:[#allocation9 + $0x3c4] sm:$0xf] }
  0x89   :  { %v5899_v4 = vld [vmem:[#allocation9 + $0xac0] sm:$0xf]  ;;  %v5644_v9 = vor.u32 %v6869_v3, %v5643_v2  ;;  %3610 = vmatpush.bf16.msrb.mxu3 %v6444_v5  ;;  %v5005_v47 = vld [vmem:[#allocation9 + $0x3e0] sm:$0xf0] }
  0x8a   :  { %v6933_v6 = vld [vmem:[#allocation9 + $0xadc] sm:$0xf0] }
  0x8b   :  { %v6155_v7 = vld [vmem:[#allocation9 + $0xcc0] sm:$0xf]  ;;  %v5900_v12 = vor.u32 %v6933_v6, %v5899_v4  ;;  %3572 = vmatpush.bf16.msrb.mxu0 %v5644_v9 }
  0x8c   :  { %v6997_v8 = vld [vmem:[#allocation9 + $0xcdc] sm:$0xf0] }
  0x8d   :  { %v6411_v10 = vld [vmem:[#allocation9 + $0xec0] sm:$0xf]  ;;  %v6156_v14 = vor.u32 %v6997_v8, %v6155_v7  ;;  %3585 = vmatpush.bf16.msrb.mxu1 %v5900_v12  ;;  %v381_v7 = vsel %vm347_vm3, %v379_v62, %v380_v63 }
  0x8e   :  { %v7061_v11 = vld [vmem:[#allocation9 + $0xedc] sm:$0xf0] }
  0x8f   :  { %v5611_v15 = vld [vmem:[#allocation9 + $0x880] sm:$0xf]  ;;  %v6412_v17 = vor.u32 %v7061_v11, %v6411_v10  ;;  %3598 = vmatpush.bf16.msrb.mxu2 %v6156_v14  ;;  %v370_v14 = vperm.slane %v7368_v13, 5 }
  0x90   :  { %v6861_v16 = vld [vmem:[#allocation9 + $0x89c] sm:$0xf0] }
  0x91   :  { %v5867_v18 = vld [vmem:[#allocation9 + $0xa80] sm:$0xf]  ;;  %v5612_v20 = vor.u32 %v6861_v16, %v5611_v15  ;;  %3611 = vmatpush.bf16.msrb.mxu3 %v6412_v17  ;;  %v371_v15 = vperm.slane %v7368_v13, 6  ;;  %v372_v16 = vperm.slane %v7368_v13, 7 }
  0x92   :  { %v6925_v19 = vld [vmem:[#allocation9 + $0xa9c] sm:$0xf0] }
  0x93   :  { %v6123_v21 = vld [vmem:[#allocation9 + $0xc80] sm:$0xf]  ;;  %v5868_v28 = vor.u32 %v6925_v19, %v5867_v18  ;;  %3573 = vmatpush.bf16.msrb.mxu0 %v5612_v20  ;;  %v369_v20 = vperm.slane %v7368_v13, 4 }
  0x94   :  { %v6989_v22 = vld [vmem:[#allocation9 + $0xc9c] sm:$0xf0] }
  0x95   :  { %v6379_v23 = vld [vmem:[#allocation9 + $0xe80] sm:$0xf]  ;;  %v6124_v30 = vor.u32 %v6989_v22, %v6123_v21  ;;  %3586 = vmatpush.bf16.msrb.mxu1 %v5868_v28  ;;  %v376_v21 = vrot.slane %v370_v14, 6  ;;  %v377_v22 = vrot.slane %v371_v15, 4  ;;  %v6689_v14 = vld [vmem:[#allocation9 + $0x344] sm:$0xf] }
  0x96   :  { %v7053_v29 = vld [vmem:[#allocation9 + $0xe9c] sm:$0xf0] }
  0x97   :  { %v5579_v31 = vld [vmem:[#allocation9 + $0x840] sm:$0xf]  ;;  %v6380_v34 = vor.u32 %v7053_v29, %v6379_v23  ;;  %3599 = vmatpush.bf16.msrb.mxu2 %v6124_v30  ;;  %v378_v23 = vrot.slane %v372_v16, 2  ;;  %v382_v28 = vsel %vm343_vm1, %v369_v20, %v376_v21  ;;  %v6817_v21 = vld [vmem:[#allocation9 + $0x744] sm:$0xf] }
  0x98   :  { %v6853_v32 = vld [vmem:[#allocation9 + $0x85c] sm:$0xf0] }
  0x99   :  { %v5835_v33 = vld [vmem:[#allocation9 + $0xa40] sm:$0xf]  ;;  %v5580_v39 = vor.u32 %v6853_v32, %v5579_v31  ;;  %3612 = vmatpush.bf16.msrb.mxu3 %v6380_v34  ;;  %v383_v29 = vsel %vm345_vm2, %v377_v22, %v378_v23  ;;  %v5453_v22 = vld [vmem:[#allocation9 + $0x760] sm:$0xf0] }
  0x9a   :  { %v6917_v35 = vld [vmem:[#allocation9 + $0xa5c] sm:$0xf0]  ;;  %v384_v13 = vsel %vm347_vm3, %v382_v28, %v383_v29  ;;  %v5456_v29 = vor.u32 %v6817_v21, %v5453_v22  ;;  %v4525_v22 = vld [vmem:[#allocation9 + $0x20] sm:$0xf0] }
  0x9b   :  { %v6091_v36 = vld [vmem:[#allocation9 + $0xc40] sm:$0xf]  ;;  %v5836_v45 = vor.u32 %v6917_v35, %v5835_v33  ;;  %3574 = vmatpush.bf16.msrb.mxu0 %v5580_v39 }
  0x9c   :  { %v6981_v37 = vld [vmem:[#allocation9 + $0xc5c] sm:$0xf0] }
  0x9d   :  { %v6347_v40 = vld [vmem:[#allocation9 + $0xe40] sm:$0xf]  ;;  %v6092_v48 = vor.u32 %v6981_v37, %v6091_v36  ;;  %3587 = vmatpush.bf16.msrb.mxu1 %v5836_v45  ;;  %v4749_v45 = vld [vmem:[#allocation9 + $0x1e0] sm:$0xf0] }
  0x9e   :  { %v7045_v41 = vld [vmem:[#allocation9 + $0xe5c] sm:$0xf0] }
  0x9f   :  { %v5547_v49 = vld [vmem:[#allocation9 + $0x800] sm:$0xf]  ;;  %v6348_v51 = vor.u32 %v7045_v41, %v6347_v40  ;;  %3600 = vmatpush.bf16.msrb.mxu2 %v6092_v48  ;;  %v6769_v48 = vld [vmem:[#allocation9 + $0x5c4] sm:$0xf] }
  0xa0   :  { %v6845_v50 = vld [vmem:[#allocation9 + $0x81c] sm:$0xf0] }
  0xa1   :  { %v5803_v52 = vld [vmem:[#allocation9 + $0xa00] sm:$0xf]  ;;  %v5548_v54 = vor.u32 %v6845_v50, %v5547_v49  ;;  %3613 = vmatpush.bf16.msrb.mxu3 %v6348_v51  ;;  %v5261_v49 = vld [vmem:[#allocation9 + $0x5e0] sm:$0xf0] }
  0xa2   :  { %v6909_v53 = vld [vmem:[#allocation9 + $0xa1c] sm:$0xf0]  ;;  %v6833_v50 = vld [vmem:[#allocation9 + $0x7c4] sm:$0xf]  ;;  %v5264_v63 = vor.u32 %v6769_v48, %v5261_v49 }
  0xa3   :  { %v6059_v27 = vld [vmem:[#allocation9 + $0xc00] sm:$0xf]  ;;  %v5804_v59 = vor.u32 %v6909_v53, %v5803_v52  ;;  %3575 = vmatpush.bf16.msrb.mxu0 %v5548_v54  ;;  %v5517_v51 = vld [vmem:[#allocation9 + $0x7e0] sm:$0xf0] }
  0xa4   :  { %v6973_v55 = vld [vmem:[#allocation9 + $0xc1c] sm:$0xf0]  ;;  %v4717_v54 = vld [vmem:[#allocation9 + $0x1a0] sm:$0xf0] }
  0xa5   :  { %v234_v38 = vpop.f32.mrf.mxu0  ;;  %v6315_v56 = vld [vmem:[#allocation9 + $0xe00] sm:$0xf]  ;;  %v6060_v60 = vor.u32 %v6973_v55, %v6059_v27  ;;  %3588 = vmatpush.bf16.msrb.mxu1 %v5804_v59  ;;  %v6633_v27 = vld [vmem:[#allocation9 + $0x184] sm:$0xf]  ;;  %v4752_v59 = vor.u32 %v6641_v44, %v4749_v45 }
  0xa6   :  { %v247_v42 = vpop.f32.mrf.mxu1  ;;  %v7037_v57 = vld [vmem:[#allocation9 + $0xe1c] sm:$0xf0]  ;;  %v5133_v44 = vld [vmem:[#allocation9 + $0x4e0] sm:$0xf0] }
  0xa7   :  { %v337_v58 = vrot.slane %v247_v42, 6  ;;  %v6316_v0 = vor.u32 %v7037_v57, %v6315_v56  ;;  %3601 = vmatpush.bf16.msrb.mxu2 %v6060_v60  ;;  %v5008_v60 = vor.u32 %v6705_v46, %v5005_v47  ;;  %v6801_v45 = vld [vmem:[#allocation9 + $0x6c4] sm:$0xf] }
  0xa8   :  { %v5389_v46 = vld [vmem:[#allocation9 + $0x6e0] sm:$0xf0] }
  0xa9   :  { %v344_v4 = vsel %vm343_vm1, %v234_v38, %v337_v58  ;;  %3614 = vmatpush.bf16.msrb.mxu3 %v6316_v0  ;;  %v5520_v0 = vor.u32 %v6833_v50, %v5517_v51  ;;  %v6601_v51 = vld [vmem:[#allocation9 + $0x84] sm:$0xf] }
  0xac   :  { %v260_v61 = vpop.f32.mrf.mxu2 }
  0xad   :  { %v338_v1 = vrot.slane %v260_v61, 4  ;;  %v273_v2 = vpop.f32.mrf.mxu3  ;;  %v236_v3 = vpop.f32.mrf.mxu0 }
  0xae   :  { %v339_v5 = vrot.slane %v273_v2, 2  ;;  %v249_v6 = vpop.f32.mrf.mxu1  ;;  %v4973_v2 = vld [vmem:[#allocation9 + $0x3a0] sm:$0xf0] }
  0xaf   :  { %v6761_v3 = vld [vmem:[#allocation9 + $0x584] sm:$0xf] }
  0xb0   :  { %v346_v8 = vsel %vm345_vm2, %v338_v1, %v339_v5  ;;  %v6697_v1 = vld [vmem:[#allocation9 + $0x384] sm:$0xf] }
  0xb1   :  { %v348_v9 = vsel %vm347_vm3, %v344_v4, %v346_v8  ;;  %v5229_v4 = vld [vmem:[#allocation9 + $0x5a0] sm:$0xf0] }
  0xb2   :  { %v387_v10 = vadd.f32 %v381_v7, %v348_v9  ;;  %v6825_v5 = vld [vmem:[#allocation9 + $0x784] sm:$0xf]  ;;  %v5232_v15 = vor.u32 %v6761_v3, %v5229_v4 }
  0xb3   :  { %v5485_v6 = vld [vmem:[#allocation9 + $0x7a0] sm:$0xf0] }
  0xb4   :  { %v389_v11 = vmul.f32 0.5, %v387_v10  ;;  %v262_v12 = vpop.f32.mrf.mxu2  ;;  %v6625_v8 = vld [vmem:[#allocation9 + $0x144] sm:$0xf]  ;;  %v4720_v10 = vor.u32 %v6633_v27, %v4717_v54  ;;  %v5488_v16 = vor.u32 %v6825_v5, %v5485_v6 }
  0xb5   :  { %v275_v17 = vpop.f32.mrf.mxu3  ;;  %v4685_v12 = vld [vmem:[#allocation9 + $0x160] sm:$0xf0] }
  0xb6   :  { %v286_v18 = vpop.f32.mrf.mxu0  ;;  %7106 = vtanh.f32 %v389_v11  ;;  %v4976_v11 = vor.u32 %v6697_v1, %v4973_v2  ;;  %v4941_v17 = vld [vmem:[#allocation9 + $0x360] sm:$0xf0]  ;;  %v4688_v23 = vor.u32 %v6625_v8, %v4685_v12 }
  0xb7   :  { %v299_v19 = vpop.f32.mrf.mxu1  ;;  %v4845_v1 = vld [vmem:[#allocation9 + $0x2a0] sm:$0xf0] }
  0xb8   :  { %v340_v24 = vrot.slane %v299_v19, 6  ;;  %v5197_v19 = vld [vmem:[#allocation9 + $0x560] sm:$0xf0] }
  0xb9   :  { %v6729_v2 = vld [vmem:[#allocation9 + $0x484] sm:$0xf] }
  0xba   :  { %v349_v35 = vsel %vm343_vm1, %v286_v18, %v340_v24  ;;  %v6753_v18 = vld [vmem:[#allocation9 + $0x544] sm:$0xf]  ;;  %v4944_v24 = vor.u32 %v6689_v14, %v4941_v17 }
  0xbb   :  { %v5200_v28 = vor.u32 %v6753_v18, %v5197_v19  ;;  %v5101_v3 = vld [vmem:[#allocation9 + $0x4a0] sm:$0xf0] }
  0xbc   :  { %v7107_v25 = vpop.eup %7106  ;;  %v6793_v4 = vld [vmem:[#allocation9 + $0x684] sm:$0xf] }
  0xbd   :  { %v312_v26 = vpop.f32.mrf.mxu2  ;;  %v393_v30 = vmul.f32 0.5, %v7107_v25  ;;  %v6617_v25 = vld [vmem:[#allocation9 + $0x104] sm:$0xf] }
  0xbe   :  { %v341_v31 = vrot.slane %v312_v26, 4  ;;  %v325_v32 = vpop.f32.mrf.mxu3  ;;  %v288_v33 = vpop.f32.mrf.mxu0  ;;  %v4653_v26 = vld [vmem:[#allocation9 + $0x120] sm:$0xf0] }
  0xbf   :  { %v342_v34 = vrot.slane %v325_v32, 2  ;;  %v301_v36 = vpop.f32.mrf.mxu1  ;;  %v395_v37 = vadd.f32 0.5, %v393_v30  ;;  %v6681_v30 = vld [vmem:[#allocation9 + $0x304] sm:$0xf] }
  0xc0   :  { %v6745_v32 = vld [vmem:[#allocation9 + $0x504] sm:$0xf] }
  0xc1   :  { %v350_v38 = vsel %vm345_vm2, %v341_v31, %v342_v34  ;;  %399 = vst [vmem:[#allocation1] ss:$4 sm:$0xff] %v395_v37  ;;  %v4909_v31 = vld [vmem:[#allocation9 + $0x320] sm:$0xf0]  ;;  %v4656_v37 = vor.u32 %v6617_v25, %v4653_v26 }
  0xc2   :  { %v351_v39 = vsel %vm347_vm3, %v349_v35, %v350_v38  ;;  %v5165_v33 = vld [vmem:[#allocation9 + $0x520] sm:$0xf0] }
  0xc3   :  { %v388_v40 = vadd.f32 %v384_v13, %v351_v39  ;;  %v6809_v34 = vld [vmem:[#allocation9 + $0x704] sm:$0xf]  ;;  %v4912_v13 = vor.u32 %v6681_v30, %v4909_v31 }
  0xc4   :  { %v5421_v35 = vld [vmem:[#allocation9 + $0x720] sm:$0xf0] }
  0xc5   :  { %v390_v41 = vmul.f32 0.5, %v388_v40  ;;  %v314_v42 = vpop.f32.mrf.mxu2  ;;  %v6609_v36 = vld [vmem:[#allocation9 + $0xc4] sm:$0xf] }
  0xc6   :  { %v327_v43 = vpop.f32.mrf.mxu3  ;;  %v4621_v38 = vld [vmem:[#allocation9 + $0xe0] sm:$0xf0]  ;;  %v5424_v42 = vor.u32 %v6809_v34, %v5421_v35 }
  0xc7   :  { %7108 = vtanh.f32 %v390_v41  ;;  %v6673_v39 = vld [vmem:[#allocation9 + $0x2c4] sm:$0xf]  ;;  %v5168_v41 = vor.u32 %v6745_v32, %v5165_v33  ;;  %v4624_v49 = vor.u32 %v6609_v36, %v4621_v38 }
  0xc8   :  { %v402_v52 = vld.sshfl [vmem:[#allocation1] sm:$0xff pattern:$0x73625140]  ;;  %v403_v53 = vld.sshfl [vmem:[#allocation1 + $0x8] sm:$0xff pattern:$0x73625140] }
  0xc9   :  { %v7390_v55 = vpack.c.bf16 %v402_v52, %v402_v52  ;;  %v7392_v56 = vpack.c.bf16 %v403_v53, %v403_v53  ;;  %v404_v57 = vld.sshfl [vmem:[#allocation1 + $0x10] sm:$0xff pattern:$0x73625140]  ;;  %v405_v58 = vld.sshfl [vmem:[#allocation1 + $0x18] sm:$0xff pattern:$0x73625140] }
  0xca   :  { %v7394_v61 = vpack.c.bf16 %v404_v57, %v404_v57  ;;  %v7396_v62 = vpack.c.bf16 %v405_v58, %v405_v58  ;;  %v4877_v40 = vld [vmem:[#allocation9 + $0x2e0] sm:$0xf0] }
  0xcb   :  { %3524 = vmatmul.bf16.vlgmr.msra.gmra.mxu0 %v7390_v55  ;;  %3537 = vmatmul.bf16.vlgmr.msra.gmra.mxu1 %v7392_v56  ;;  %v6737_v43 = vld [vmem:[#allocation9 + $0x4c4] sm:$0xf]  ;;  %v4880_v50 = vor.u32 %v6673_v39, %v4877_v40 }
  0xcc   :  { %3550 = vmatmul.bf16.vlgmr.msra.gmra.mxu2 %v7394_v61  ;;  %3563 = vmatmul.bf16.vlgmr.msra.gmra.mxu3 %v7396_v62  ;;  %v4589_v52 = vld [vmem:[#allocation9 + $0xa0] sm:$0xf0]  ;;  %v5136_v58 = vor.u32 %v6737_v43, %v5133_v44 }
  0xcd   :  { %v7109_v7 = vpop.eup %7108  ;;  %3620 = vmatpush.bf16.msra.mxu0 %v4752_v59  ;;  %3633 = vmatpush.bf16.msra.mxu1 %v5008_v60  ;;  %v5357_v5 = vld [vmem:[#allocation9 + $0x6a0] sm:$0xf0]  ;;  %v4592_v6 = vor.u32 %v6601_v51, %v4589_v52 }
  0xce   :  { %v394_v9 = vmul.f32 0.5, %v7109_v7  ;;  %3646 = vmatpush.bf16.msra.mxu2 %v5264_v63  ;;  %3659 = vmatpush.bf16.msra.mxu3 %v5520_v0  ;;  %v5392_v63 = vor.u32 %v6801_v45, %v5389_v46  ;;  %v6665_v0 = vld [vmem:[#allocation9 + $0x284] sm:$0xf] }
  0xcf   :  { %v4848_v7 = vor.u32 %v6665_v0, %v4845_v1  ;;  %v6593_v8 = vld [vmem:[#allocation9 + $0x44] sm:$0xf] }
  0xd0   :  { %v396_v20 = vadd.f32 0.5, %v394_v9  ;;  %v4557_v9 = vld [vmem:[#allocation9 + $0x60] sm:$0xf0] }
  0xd1   :  { %3621 = vmatpush.bf16.msra.mxu0 %v4720_v10  ;;  %3634 = vmatpush.bf16.msra.mxu1 %v4976_v11  ;;  %v5104_v10 = vor.u32 %v6729_v2, %v5101_v3  ;;  %v5360_v11 = vor.u32 %v6793_v4, %v5357_v5  ;;  %v6657_v12 = vld [vmem:[#allocation9 + $0x244] sm:$0xf] }
  0xd2   :  { %401 = vst [vmem:[#allocation1 + $0x20] ss:$4 sm:$0xff] %v396_v20  ;;  %3647 = vmatpush.bf16.msra.mxu2 %v5232_v15  ;;  %3660 = vmatpush.bf16.msra.mxu3 %v5488_v16  ;;  %v4813_v14 = vld [vmem:[#allocation9 + $0x260] sm:$0xf0]  ;;  %v4560_v20 = vor.u32 %v6593_v8, %v4557_v9 }
  0xd3   :  { %v6721_v15 = vld [vmem:[#allocation9 + $0x444] sm:$0xf]  ;;  %v4816_v21 = vor.u32 %v6657_v12, %v4813_v14 }
  0xd4   :  { %v5069_v16 = vld [vmem:[#allocation9 + $0x460] sm:$0xf0] }
  0xd5   :  { %3622 = vmatpush.bf16.msra.mxu0 %v4688_v23  ;;  %3635 = vmatpush.bf16.msra.mxu1 %v4944_v24  ;;  %v6785_v17 = vld [vmem:[#allocation9 + $0x644] sm:$0xf]  ;;  %v5072_v25 = vor.u32 %v6721_v15, %v5069_v16 }
  0xd6   :  { %3648 = vmatpush.bf16.msra.mxu2 %v5200_v28  ;;  %3661 = vmatpush.bf16.msra.mxu3 %v5456_v29  ;;  %v5325_v18 = vld [vmem:[#allocation9 + $0x660] sm:$0xf0] }
  0xd7   :  { %v6585_v19 = vld [vmem:[#allocation9 + $0x4] sm:$0xf]  ;;  %v5328_v26 = vor.u32 %v6785_v17, %v5325_v18 }
  0xd8   :  { %v6649_v23 = vld [vmem:[#allocation9 + $0x204] sm:$0xf] }
  0xd9   :  { %v406_v47 = vld.sshfl [vmem:[#allocation1 + $0x20] sm:$0xff pattern:$0x73625140]  ;;  %v407_v48 = vld.sshfl [vmem:[#allocation1 + $0x28] sm:$0xff pattern:$0x73625140]  ;;  %3623 = vmatpush.bf16.msra.mxu0 %v4656_v37  ;;  %3636 = vmatpush.bf16.msra.mxu1 %v4912_v13  ;;  %v4528_v37 = vor.u32 %v6585_v19, %v4525_v22 }
  0xda   :  { %v7402_v53 = vpack.c.bf16 %v406_v47, %v406_v47  ;;  %v7404_v27 = vpack.c.bf16 %v407_v48, %v407_v48  ;;  %v408_v54 = vld.sshfl [vmem:[#allocation1 + $0x30] sm:$0xff pattern:$0x73625140]  ;;  %v409_v57 = vld.sshfl [vmem:[#allocation1 + $0x38] sm:$0xff pattern:$0x73625140]  ;;  %3649 = vmatpush.bf16.msra.mxu2 %v5168_v41  ;;  %3662 = vmatpush.bf16.msra.mxu3 %v5424_v42 }
  0xdb   :  { %v7406_v59 = vpack.c.bf16 %v408_v54, %v408_v54  ;;  %v7408_v60 = vpack.c.bf16 %v409_v57, %v409_v57  ;;  %v4781_v24 = vld [vmem:[#allocation9 + $0x220] sm:$0xf0] }
  0xdc   :  { %3576 = vmatmul.bf16.vlgmr.msrb.gmra.mxu0 %v7402_v53  ;;  %3589 = vmatmul.bf16.vlgmr.msrb.gmra.mxu1 %v7404_v27  ;;  %v6713_v28 = vld [vmem:[#allocation9 + $0x404] sm:$0xf]  ;;  %v4784_v13 = vor.u32 %v6649_v23, %v4781_v24 }
  0xdd   :  { %3602 = vmatmul.bf16.vlgmr.msrb.gmra.mxu2 %v7406_v59  ;;  %3615 = vmatmul.bf16.vlgmr.msrb.gmra.mxu3 %v7408_v60  ;;  %v5037_v29 = vld [vmem:[#allocation9 + $0x420] sm:$0xf0] }
  0xde   :  { %3624 = vmatpush.bf16.msra.mxu0 %v4624_v49  ;;  %3637 = vmatpush.bf16.msra.mxu1 %v4880_v50  ;;  %v6777_v30 = vld [vmem:[#allocation9 + $0x604] sm:$0xf]  ;;  %v5040_v41 = vor.u32 %v6713_v28, %v5037_v29 }
  0xdf   :  { %3650 = vmatpush.bf16.msra.mxu2 %v5136_v58  ;;  %3663 = vmatpush.bf16.msra.mxu3 %v5392_v63  ;;  %v5293_v31 = vld [vmem:[#allocation9 + $0x620] sm:$0xf0] }
  0xe0   :  { %v6897_v32 = vld [vmem:[#allocation9 + $0x9c4] sm:$0xf]  ;;  %v5296_v42 = vor.u32 %v6777_v30, %v5293_v31 }
  0xe1   :  { %v5773_v33 = vld [vmem:[#allocation9 + $0x9e0] sm:$0xf0] }
  0xe2   :  { %3625 = vmatpush.bf16.msra.mxu0 %v4592_v6  ;;  %3638 = vmatpush.bf16.msra.mxu1 %v4848_v7  ;;  %v6961_v34 = vld [vmem:[#allocation9 + $0xbc4] sm:$0xf]  ;;  %v5776_v43 = vor.u32 %v6897_v32, %v5773_v33 }
  0xe3   :  { %3651 = vmatpush.bf16.msra.mxu2 %v5104_v10  ;;  %3664 = vmatpush.bf16.msra.mxu3 %v5360_v11  ;;  %v6029_v35 = vld [vmem:[#allocation9 + $0xbe0] sm:$0xf0] }
  0xe4   :  { %v7025_v36 = vld [vmem:[#allocation9 + $0xdc4] sm:$0xf]  ;;  %v6032_v44 = vor.u32 %v6961_v34, %v6029_v35 }
  0xe5   :  { %v6285_v38 = vld [vmem:[#allocation9 + $0xde0] sm:$0xf0] }
  0xe6   :  { %3626 = vmatpush.bf16.msra.mxu0 %v4560_v20  ;;  %3639 = vmatpush.bf16.msra.mxu1 %v4816_v21  ;;  %v7089_v39 = vld [vmem:[#allocation9 + $0xfc4] sm:$0xf]  ;;  %v6288_v47 = vor.u32 %v7025_v36, %v6285_v38 }
  0xe7   :  { %v6541_v40 = vld [vmem:[#allocation9 + $0xfe0] sm:$0xf0]  ;;  %3652 = vmatpush.bf16.msra.mxu2 %v5072_v25  ;;  %3665 = vmatpush.bf16.msra.mxu3 %v5328_v26 }
  0xe8   :  { %v6889_v45 = vld [vmem:[#allocation9 + $0x984] sm:$0xf]  ;;  %v6544_v48 = vor.u32 %v7089_v39, %v6541_v40 }
  0xe9   :  { %v5741_v46 = vld [vmem:[#allocation9 + $0x9a0] sm:$0xf0] }
  0xea   :  { %v6953_v49 = vld [vmem:[#allocation9 + $0xb84] sm:$0xf]  ;;  %3627 = vmatpush.bf16.msra.mxu0 %v4528_v37  ;;  %3640 = vmatpush.bf16.msra.mxu1 %v4784_v13  ;;  %v5744_v58 = vor.u32 %v6889_v45, %v5741_v46 }
  0xeb   :  { %v5997_v50 = vld [vmem:[#allocation9 + $0xba0] sm:$0xf0]  ;;  %3653 = vmatpush.bf16.msra.mxu2 %v5040_v41  ;;  %3666 = vmatpush.bf16.msra.mxu3 %v5296_v42 }
  0xec   :  { %v7017_v51 = vld [vmem:[#allocation9 + $0xd84] sm:$0xf]  ;;  %v6000_v63 = vor.u32 %v6953_v49, %v5997_v50 }
  0xed   :  { %v6253_v52 = vld [vmem:[#allocation9 + $0xda0] sm:$0xf0]  ;;  %3628 = vmatmul.bf16.vlgmr.msra.gmra.mxu0 %v7390_v55  ;;  %3641 = vmatmul.bf16.vlgmr.msra.gmra.mxu1 %v7392_v56 }
  0xee   :  { %v7081_v54 = vld [vmem:[#allocation9 + $0xf84] sm:$0xf]  ;;  %3672 = vmatpush.bf16.msrb.mxu0 %v5776_v43  ;;  %3685 = vmatpush.bf16.msrb.mxu1 %v6032_v44  ;;  %v6256_v2 = vor.u32 %v7017_v51, %v6253_v52 }
  0xef   :  { %v6509_v57 = vld [vmem:[#allocation9 + $0xfa0] sm:$0xf0]  ;;  %3698 = vmatpush.bf16.msrb.mxu2 %v6288_v47  ;;  %3711 = vmatpush.bf16.msrb.mxu3 %v6544_v48 }
  0xf0   :  { %v6881_v0 = vld [vmem:[#allocation9 + $0x944] sm:$0xf]  ;;  %v6512_v3 = vor.u32 %v7081_v54, %v6509_v57  ;;  %3654 = vmatmul.bf16.vlgmr.msra.gmra.mxu2 %v7394_v61  ;;  %3667 = vmatmul.bf16.vlgmr.msra.gmra.mxu3 %v7396_v62 }
  0xf1   :  { %v5709_v1 = vld [vmem:[#allocation9 + $0x960] sm:$0xf0] }
  0xf2   :  { %v6945_v4 = vld [vmem:[#allocation9 + $0xb44] sm:$0xf]  ;;  %3673 = vmatpush.bf16.msrb.mxu0 %v5744_v58  ;;  %3686 = vmatpush.bf16.msrb.mxu1 %v6000_v63  ;;  %v5712_v10 = vor.u32 %v6881_v0, %v5709_v1 }
  0xf3   :  { %v5965_v5 = vld [vmem:[#allocation9 + $0xb60] sm:$0xf0]  ;;  %3699 = vmatpush.bf16.msrb.mxu2 %v6256_v2  ;;  %3712 = vmatpush.bf16.msrb.mxu3 %v6512_v3 }
  0xf4   :  { %v7009_v6 = vld [vmem:[#allocation9 + $0xd44] sm:$0xf]  ;;  %v5968_v11 = vor.u32 %v6945_v4, %v5965_v5 }
  0xf5   :  { %v6221_v7 = vld [vmem:[#allocation9 + $0xd60] sm:$0xf0] }
  0xf6   :  { %v7073_v8 = vld [vmem:[#allocation9 + $0xf44] sm:$0xf]  ;;  %v6224_v15 = vor.u32 %v7009_v6, %v6221_v7  ;;  %3674 = vmatpush.bf16.msrb.mxu0 %v5712_v10  ;;  %3687 = vmatpush.bf16.msrb.mxu1 %v5968_v11 }
  0xf7   :  { %v6477_v9 = vld [vmem:[#allocation9 + $0xf60] sm:$0xf0] }
  0xf8   :  { %v6873_v12 = vld [vmem:[#allocation9 + $0x904] sm:$0xf]  ;;  %v6480_v16 = vor.u32 %v7073_v8, %v6477_v9  ;;  %3700 = vmatpush.bf16.msrb.mxu2 %v6224_v15  ;;  %v4755_v15 = vld [vmem:[#allocation9 + $0x1c8] sm:$0xf] }
  0xf9   :  { %v5677_v14 = vld [vmem:[#allocation9 + $0x920] sm:$0xf0] }
  0xfa   :  { %v6937_v17 = vld [vmem:[#allocation9 + $0xb04] sm:$0xf]  ;;  %v5680_v23 = vor.u32 %v6873_v12, %v5677_v14  ;;  %3713 = vmatpush.bf16.msrb.mxu3 %v6480_v16  ;;  %v6646_v16 = vld [vmem:[#allocation9 + $0x1e4] sm:$0xf0] }
  0xfb   :  { %v5933_v18 = vld [vmem:[#allocation9 + $0xb20] sm:$0xf0] }
  0xfc   :  { %v7001_v19 = vld [vmem:[#allocation9 + $0xd04] sm:$0xf]  ;;  %v5936_v24 = vor.u32 %v6937_v17, %v5933_v18  ;;  %3675 = vmatpush.bf16.msrb.mxu0 %v5680_v23  ;;  %v5011_v17 = vld [vmem:[#allocation9 + $0x3c8] sm:$0xf] }
  0xfd   :  { %v6189_v20 = vld [vmem:[#allocation9 + $0xd20] sm:$0xf0]  ;;  %v6710_v18 = vld [vmem:[#allocation9 + $0x3e4] sm:$0xf0] }
  0xfe   :  { %v7065_v21 = vld [vmem:[#allocation9 + $0xf04] sm:$0xf]  ;;  %v6192_v28 = vor.u32 %v7001_v19, %v6189_v20  ;;  %3688 = vmatpush.bf16.msrb.mxu1 %v5936_v24  ;;  %v5267_v19 = vld [vmem:[#allocation9 + $0x5c8] sm:$0xf] }
  0xff   :  { %v6445_v22 = vld [vmem:[#allocation9 + $0xf20] sm:$0xf0]  ;;  %v5523_v23 = vld [vmem:[#allocation9 + $0x7c8] sm:$0xf] }
 0x100   :  { %v6865_v25 = vld [vmem:[#allocation9 + $0x8c4] sm:$0xf]  ;;  %v6448_v29 = vor.u32 %v7065_v21, %v6445_v22  ;;  %3701 = vmatpush.bf16.msrb.mxu2 %v6192_v28  ;;  %v6774_v22 = vld [vmem:[#allocation9 + $0x5e4] sm:$0xf0]  ;;  %v4756_v28 = vor.u32 %v6646_v16, %v4755_v15 }
 0x101   :  { %v5645_v26 = vld [vmem:[#allocation9 + $0x8e0] sm:$0xf0]  ;;  %v6838_v24 = vld [vmem:[#allocation9 + $0x7e4] sm:$0xf0] }
 0x102   :  { %v6929_v30 = vld [vmem:[#allocation9 + $0xac4] sm:$0xf]  ;;  %v5648_v36 = vor.u32 %v6865_v25, %v5645_v26  ;;  %3714 = vmatpush.bf16.msrb.mxu3 %v6448_v29  ;;  %v5012_v29 = vor.u32 %v6710_v18, %v5011_v17  ;;  %v5139_v15 = vld [vmem:[#allocation9 + $0x4c8] sm:$0xf] }
 0x103   :  { %v5901_v31 = vld [vmem:[#allocation9 + $0xae0] sm:$0xf0]  ;;  %v6742_v16 = vld [vmem:[#allocation9 + $0x4e4] sm:$0xf0] }
 0x104   :  { %v6993_v32 = vld [vmem:[#allocation9 + $0xcc4] sm:$0xf]  ;;  %v5904_v37 = vor.u32 %v6929_v30, %v5901_v31  ;;  %3676 = vmatpush.bf16.msrb.mxu0 %v5648_v36  ;;  %v4723_v30 = vld [vmem:[#allocation9 + $0x188] sm:$0xf] }
 0x105   :  { %v6157_v33 = vld [vmem:[#allocation9 + $0xce0] sm:$0xf0]  ;;  %v6638_v31 = vld [vmem:[#allocation9 + $0x1a4] sm:$0xf0] }
 0x106   :  { %v7057_v34 = vld [vmem:[#allocation9 + $0xec4] sm:$0xf]  ;;  %v6160_v39 = vor.u32 %v6993_v32, %v6157_v33  ;;  %3689 = vmatpush.bf16.msrb.mxu1 %v5904_v37  ;;  %v5268_v32 = vor.u32 %v6774_v22, %v5267_v19  ;;  %v5524_v33 = vor.u32 %v6838_v24, %v5523_v23  ;;  %v5235_v36 = vld [vmem:[#allocation9 + $0x588] sm:$0xf]  ;;  %v5140_v23 = vor.u32 %v6742_v16, %v5139_v15 }
 0x107   :  { %v6413_v35 = vld [vmem:[#allocation9 + $0xee0] sm:$0xf0]  ;;  %v6766_v37 = vld [vmem:[#allocation9 + $0x5a4] sm:$0xf0] }
 0x108   :  { %v6857_v13 = vld [vmem:[#allocation9 + $0x884] sm:$0xf]  ;;  %v6416_v40 = vor.u32 %v7057_v34, %v6413_v35  ;;  %3702 = vmatpush.bf16.msrb.mxu2 %v6160_v39  ;;  %v4979_v34 = vld [vmem:[#allocation9 + $0x388] sm:$0xf]  ;;  %v4724_v39 = vor.u32 %v6638_v31, %v4723_v30 }
 0x109   :  { %v5613_v38 = vld [vmem:[#allocation9 + $0x8a0] sm:$0xf0]  ;;  %v6702_v35 = vld [vmem:[#allocation9 + $0x3a4] sm:$0xf0] }
 0x10a   :  { %v6921_v41 = vld [vmem:[#allocation9 + $0xa84] sm:$0xf]  ;;  %v5616_v47 = vor.u32 %v6857_v13, %v5613_v38  ;;  %3715 = vmatpush.bf16.msrb.mxu3 %v6416_v40  ;;  %v5491_v13 = vld [vmem:[#allocation9 + $0x788] sm:$0xf]  ;;  %v4980_v40 = vor.u32 %v6702_v35, %v4979_v34 }
 0x10b   :  { %v5869_v42 = vld [vmem:[#allocation9 + $0xaa0] sm:$0xf0]  ;;  %v6830_v38 = vld [vmem:[#allocation9 + $0x7a4] sm:$0xf0] }
 0x10c   :  { %v6985_v43 = vld [vmem:[#allocation9 + $0xc84] sm:$0xf]  ;;  %v5872_v48 = vor.u32 %v6921_v41, %v5869_v42  ;;  %3677 = vmatpush.bf16.msrb.mxu0 %v5616_v47  ;;  %v4691_v41 = vld [vmem:[#allocation9 + $0x148] sm:$0xf] }
 0x10d   :  { %v6125_v44 = vld [vmem:[#allocation9 + $0xca0] sm:$0xf0]  ;;  %v6630_v42 = vld [vmem:[#allocation9 + $0x164] sm:$0xf0] }
 0x10e   :  { %v7049_v45 = vld [vmem:[#allocation9 + $0xe84] sm:$0xf]  ;;  %v6128_v51 = vor.u32 %v6985_v43, %v6125_v44  ;;  %3690 = vmatpush.bf16.msrb.mxu1 %v5872_v48  ;;  %v5236_v43 = vor.u32 %v6766_v37, %v5235_v36  ;;  %v5492_v44 = vor.u32 %v6830_v38, %v5491_v13  ;;  %v5203_v47 = vld [vmem:[#allocation9 + $0x548] sm:$0xf] }
 0x10f   :  { %v6381_v46 = vld [vmem:[#allocation9 + $0xea0] sm:$0xf0]  ;;  %v6758_v48 = vld [vmem:[#allocation9 + $0x564] sm:$0xf0] }
 0x110   :  { %v6849_v49 = vld [vmem:[#allocation9 + $0x844] sm:$0xf]  ;;  %v6384_v52 = vor.u32 %v7049_v45, %v6381_v46  ;;  %3703 = vmatpush.bf16.msrb.mxu2 %v6128_v51  ;;  %v4947_v45 = vld [vmem:[#allocation9 + $0x348] sm:$0xf]  ;;  %v4692_v51 = vor.u32 %v6630_v42, %v4691_v41 }
 0x111   :  { %v5581_v50 = vld [vmem:[#allocation9 + $0x860] sm:$0xf0]  ;;  %v6694_v46 = vld [vmem:[#allocation9 + $0x364] sm:$0xf0] }
 0x112   :  { %v6913_v54 = vld [vmem:[#allocation9 + $0xa44] sm:$0xf]  ;;  %v5584_v3 = vor.u32 %v6849_v49, %v5581_v50  ;;  %3716 = vmatpush.bf16.msrb.mxu3 %v6384_v52  ;;  %v5459_v49 = vld [vmem:[#allocation9 + $0x748] sm:$0xf]  ;;  %v4948_v52 = vor.u32 %v6694_v46, %v4947_v45 }
 0x113   :  { %v5837_v57 = vld [vmem:[#allocation9 + $0xa60] sm:$0xf0]  ;;  %v6822_v50 = vld [vmem:[#allocation9 + $0x764] sm:$0xf0] }
 0x114   :  { %v6977_v58 = vld [vmem:[#allocation9 + $0xc44] sm:$0xf]  ;;  %v5840_v4 = vor.u32 %v6913_v54, %v5837_v57  ;;  %3678 = vmatpush.bf16.msrb.mxu0 %v5584_v3  ;;  %v4659_v54 = vld [vmem:[#allocation9 + $0x108] sm:$0xf] }
 0x115   :  { %v6093_v63 = vld [vmem:[#allocation9 + $0xc60] sm:$0xf0]  ;;  %v6622_v57 = vld [vmem:[#allocation9 + $0x124] sm:$0xf0] }
 0x116   :  { %v7041_v0 = vld [vmem:[#allocation9 + $0xe44] sm:$0xf]  ;;  %v6096_v8 = vor.u32 %v6977_v58, %v6093_v63  ;;  %3691 = vmatpush.bf16.msrb.mxu1 %v5840_v4  ;;  %v5204_v58 = vor.u32 %v6758_v48, %v5203_v47  ;;  %v5460_v63 = vor.u32 %v6822_v50, %v5459_v49  ;;  %v6750_v3 = vld [vmem:[#allocation9 + $0x524] sm:$0xf0] }
 0x117   :  { %v6349_v1 = vld [vmem:[#allocation9 + $0xe60] sm:$0xf0]  ;;  %v5427_v4 = vld [vmem:[#allocation9 + $0x708] sm:$0xf] }
 0x118   :  { %v6841_v2 = vld [vmem:[#allocation9 + $0x804] sm:$0xf]  ;;  %v6352_v9 = vor.u32 %v7041_v0, %v6349_v1  ;;  %3704 = vmatpush.bf16.msrb.mxu2 %v6096_v8  ;;  %v4915_v0 = vld [vmem:[#allocation9 + $0x308] sm:$0xf] }
 0x119   :  { %v5549_v5 = vld [vmem:[#allocation9 + $0x820] sm:$0xf0]  ;;  %v6686_v1 = vld [vmem:[#allocation9 + $0x324] sm:$0xf0] }
 0x11a   :  { %v6905_v6 = vld [vmem:[#allocation9 + $0xa04] sm:$0xf]  ;;  %v5552_v20 = vor.u32 %v6841_v2, %v5549_v5  ;;  %3717 = vmatpush.bf16.msrb.mxu3 %v6352_v9  ;;  %v5171_v2 = vld [vmem:[#allocation9 + $0x508] sm:$0xf] }
 0x11b   :  { %v5805_v7 = vld [vmem:[#allocation9 + $0xa20] sm:$0xf0]  ;;  %v6814_v5 = vld [vmem:[#allocation9 + $0x724] sm:$0xf0] }
 0x11c   :  { %v6969_v10 = vld [vmem:[#allocation9 + $0xc04] sm:$0xf]  ;;  %v5808_v21 = vor.u32 %v6905_v6, %v5805_v7  ;;  %3679 = vmatpush.bf16.msrb.mxu0 %v5552_v20  ;;  %v4660_v6 = vor.u32 %v6622_v57, %v4659_v54  ;;  %v4916_v7 = vor.u32 %v6686_v1, %v4915_v0  ;;  %v4627_v8 = vld [vmem:[#allocation9 + $0xc8] sm:$0xf] }
 0x11d   :  { %v6061_v11 = vld [vmem:[#allocation9 + $0xc20] sm:$0xf0]  ;;  %v6614_v9 = vld [vmem:[#allocation9 + $0xe4] sm:$0xf0] }
 0x11e   :  { %v7033_v12 = vld [vmem:[#allocation9 + $0xe04] sm:$0xf]  ;;  %v6064_v25 = vor.u32 %v6969_v10, %v6061_v11  ;;  %3692 = vmatpush.bf16.msrb.mxu1 %v5808_v21  ;;  %v5172_v10 = vor.u32 %v6750_v3, %v5171_v2  ;;  %v5428_v11 = vor.u32 %v6814_v5, %v5427_v4  ;;  %v5395_v17 = vld [vmem:[#allocation9 + $0x6c8] sm:$0xf]  ;;  %v4628_v19 = vor.u32 %v6614_v9, %v4627_v8 }
 0x11f   :  { %v6317_v14 = vld [vmem:[#allocation9 + $0xe20] sm:$0xf0]  ;;  %3680 = vmatmul.bf16.vlgmr.msrb.gmra.mxu0 %v7402_v53  ;;  %v6806_v18 = vld [vmem:[#allocation9 + $0x6e4] sm:$0xf0] }
 0x120   :  { %v6320_v26 = vor.u32 %v7033_v12, %v6317_v14  ;;  %3705 = vmatpush.bf16.msrb.mxu2 %v6064_v25  ;;  %3724 = vmatpush.bf16.msra.mxu0 %v4756_v28  ;;  %v4883_v12 = vld [vmem:[#allocation9 + $0x2c8] sm:$0xf]  ;;  %v5396_v24 = vor.u32 %v6806_v18, %v5395_v17 }
 0x121   :  { %3693 = vmatmul.bf16.vlgmr.msrb.gmra.mxu1 %v7404_v27  ;;  %v6678_v14 = vld [vmem:[#allocation9 + $0x2e4] sm:$0xf0] }
 0x122   :  { %3718 = vmatpush.bf16.msrb.mxu3 %v6320_v26  ;;  %3737 = vmatpush.bf16.msra.mxu1 %v5012_v29  ;;  %v4884_v20 = vor.u32 %v6678_v14, %v4883_v12  ;;  %v4595_v21 = vld [vmem:[#allocation9 + $0x88] sm:$0xf] }
 0x123   :  { %3706 = vmatmul.bf16.vlgmr.msrb.gmra.mxu2 %v7406_v59  ;;  %v6606_v22 = vld [vmem:[#allocation9 + $0xa4] sm:$0xf0] }
 0x124   :  { %3750 = vmatpush.bf16.msra.mxu2 %v5268_v32  ;;  %3725 = vmatpush.bf16.msra.mxu0 %v4724_v39  ;;  %v4851_v25 = vld [vmem:[#allocation9 + $0x288] sm:$0xf]  ;;  %v4596_v32 = vor.u32 %v6606_v22, %v4595_v21 }
 0x125   :  { %3719 = vmatmul.bf16.vlgmr.msrb.gmra.mxu3 %v7408_v60  ;;  %v6670_v26 = vld [vmem:[#allocation9 + $0x2a4] sm:$0xf0] }
 0x126   :  { %3763 = vmatpush.bf16.msra.mxu3 %v5524_v33  ;;  %3738 = vmatpush.bf16.msra.mxu1 %v4980_v40  ;;  %v5107_v28 = vld [vmem:[#allocation9 + $0x488] sm:$0xf]  ;;  %v4852_v33 = vor.u32 %v6670_v26, %v4851_v25 }
 0x127   :  { %v6734_v29 = vld [vmem:[#allocation9 + $0x4a4] sm:$0xf0] }
 0x128   :  { %3751 = vmatpush.bf16.msra.mxu2 %v5236_v43  ;;  %3726 = vmatpush.bf16.msra.mxu0 %v4692_v51  ;;  %v5363_v30 = vld [vmem:[#allocation9 + $0x688] sm:$0xf]  ;;  %v5108_v36 = vor.u32 %v6734_v29, %v5107_v28 }
 0x129   :  { %v6798_v31 = vld [vmem:[#allocation9 + $0x6a4] sm:$0xf0] }
 0x12a   :  { %3764 = vmatpush.bf16.msra.mxu3 %v5492_v44  ;;  %3739 = vmatpush.bf16.msra.mxu1 %v4948_v52  ;;  %v4563_v34 = vld [vmem:[#allocation9 + $0x48] sm:$0xf]  ;;  %v5364_v37 = vor.u32 %v6798_v31, %v5363_v30 }
 0x12b   :  { %v6598_v35 = vld [vmem:[#allocation9 + $0x64] sm:$0xf0] }
 0x12c   :  { %3752 = vmatpush.bf16.msra.mxu2 %v5204_v58  ;;  %3727 = vmatpush.bf16.msra.mxu0 %v4660_v6  ;;  %v4819_v13 = vld [vmem:[#allocation9 + $0x248] sm:$0xf]  ;;  %v4564_v44 = vor.u32 %v6598_v35, %v4563_v34 }
 0x12d   :  { %v6662_v38 = vld [vmem:[#allocation9 + $0x264] sm:$0xf0] }
 0x12e   :  { %3765 = vmatpush.bf16.msra.mxu3 %v5460_v63  ;;  %3740 = vmatpush.bf16.msra.mxu1 %v4916_v7  ;;  %v5075_v39 = vld [vmem:[#allocation9 + $0x448] sm:$0xf]  ;;  %v4820_v45 = vor.u32 %v6662_v38, %v4819_v13 }
 0x12f   :  { %v6726_v40 = vld [vmem:[#allocation9 + $0x464] sm:$0xf0] }
 0x130   :  { %3753 = vmatpush.bf16.msra.mxu2 %v5172_v10  ;;  %3728 = vmatpush.bf16.msra.mxu0 %v4628_v19  ;;  %v5331_v41 = vld [vmem:[#allocation9 + $0x648] sm:$0xf]  ;;  %v5076_v49 = vor.u32 %v6726_v40, %v5075_v39 }
 0x131   :  { %v6790_v42 = vld [vmem:[#allocation9 + $0x664] sm:$0xf0] }
 0x132   :  { %3766 = vmatpush.bf16.msra.mxu3 %v5428_v11  ;;  %3741 = vmatpush.bf16.msra.mxu1 %v4884_v20  ;;  %v4531_v43 = vld [vmem:[#allocation9 + $0x8] sm:$0xf]  ;;  %v5332_v50 = vor.u32 %v6790_v42, %v5331_v41 }
 0x133   :  { %v6590_v46 = vld [vmem:[#allocation9 + $0x24] sm:$0xf0] }
 0x134   :  { %3754 = vmatpush.bf16.msra.mxu2 %v5140_v23  ;;  %3729 = vmatpush.bf16.msra.mxu0 %v4596_v32  ;;  %v4787_v47 = vld [vmem:[#allocation9 + $0x208] sm:$0xf]  ;;  %v4532_v3 = vor.u32 %v6590_v46, %v4531_v43 }
 0x135   :  { %v6654_v48 = vld [vmem:[#allocation9 + $0x224] sm:$0xf0] }
 0x136   :  { %3767 = vmatpush.bf16.msra.mxu3 %v5396_v24  ;;  %3742 = vmatpush.bf16.msra.mxu1 %v4852_v33  ;;  %v5043_v51 = vld [vmem:[#allocation9 + $0x408] sm:$0xf]  ;;  %v4788_v4 = vor.u32 %v6654_v48, %v4787_v47 }
 0x137   :  { %v6718_v52 = vld [vmem:[#allocation9 + $0x424] sm:$0xf0] }
 0x138   :  { %3755 = vmatpush.bf16.msra.mxu2 %v5108_v36  ;;  %v5299_v54 = vld [vmem:[#allocation9 + $0x608] sm:$0xf]  ;;  %3730 = vmatpush.bf16.msra.mxu0 %v4564_v44  ;;  %v5044_v8 = vor.u32 %v6718_v52, %v5043_v51 }
 0x139   :  { %v6782_v57 = vld [vmem:[#allocation9 + $0x624] sm:$0xf0] }
 0x13a   :  { %3768 = vmatpush.bf16.msra.mxu3 %v5364_v37  ;;  %v5779_v58 = vld [vmem:[#allocation9 + $0x9c8] sm:$0xf]  ;;  %3743 = vmatpush.bf16.msra.mxu1 %v4820_v45  ;;  %v5300_v9 = vor.u32 %v6782_v57, %v5299_v54 }
 0x13b   :  { %v6902_v63 = vld [vmem:[#allocation9 + $0x9e4] sm:$0xf0] }
 0x13c   :  { %v6035_v0 = vld [vmem:[#allocation9 + $0xbc8] sm:$0xf]  ;;  %3756 = vmatpush.bf16.msra.mxu2 %v5076_v49  ;;  %v5780_v10 = vor.u32 %v6902_v63, %v5779_v58  ;;  %3731 = vmatpush.bf16.msra.mxu0 %v4532_v3 }
 0x13d   :  { %v6966_v1 = vld [vmem:[#allocation9 + $0xbe4] sm:$0xf0] }
 0x13e   :  { %v6291_v2 = vld [vmem:[#allocation9 + $0xdc8] sm:$0xf]  ;;  %3769 = vmatpush.bf16.msra.mxu3 %v5332_v50  ;;  %v6036_v11 = vor.u32 %v6966_v1, %v6035_v0  ;;  %3744 = vmatpush.bf16.msra.mxu1 %v4788_v4 }
 0x13f   :  { %v7030_v5 = vld [vmem:[#allocation9 + $0xde4] sm:$0xf0]  ;;  %3732 = vmatmul.bf16.vlgmr.msra.gmra.mxu0 %v7390_v55 }
 0x140   :  { %v6547_v6 = vld [vmem:[#allocation9 + $0xfc8] sm:$0xf]  ;;  %v6292_v15 = vor.u32 %v7030_v5, %v6291_v2  ;;  %3757 = vmatpush.bf16.msra.mxu2 %v5044_v8  ;;  %3776 = vmatpush.bf16.msrb.mxu0 %v5780_v10 }
 0x141   :  { %v7094_v7 = vld [vmem:[#allocation9 + $0xfe4] sm:$0xf0]  ;;  %3745 = vmatmul.bf16.vlgmr.msra.gmra.mxu1 %v7392_v56 }
 0x142   :  { %v5747_v12 = vld [vmem:[#allocation9 + $0x988] sm:$0xf]  ;;  %v6548_v16 = vor.u32 %v7094_v7, %v6547_v6  ;;  %3770 = vmatpush.bf16.msra.mxu3 %v5300_v9  ;;  %3789 = vmatpush.bf16.msrb.mxu1 %v6036_v11 }
 0x143   :  { %v6894_v14 = vld [vmem:[#allocation9 + $0x9a4] sm:$0xf0]  ;;  %3758 = vmatmul.bf16.vlgmr.msra.gmra.mxu2 %v7394_v61 }
 0x144   :  { %v6003_v17 = vld [vmem:[#allocation9 + $0xb88] sm:$0xf]  ;;  %v5748_v23 = vor.u32 %v6894_v14, %v5747_v12  ;;  %3802 = vmatpush.bf16.msrb.mxu2 %v6292_v15 }
 0x145   :  { %v6958_v18 = vld [vmem:[#allocation9 + $0xba4] sm:$0xf0]  ;;  %3771 = vmatmul.bf16.vlgmr.msra.gmra.mxu3 %v7396_v62 }
 0x146   :  { %v6259_v19 = vld [vmem:[#allocation9 + $0xd88] sm:$0xf]  ;;  %v6004_v24 = vor.u32 %v6958_v18, %v6003_v17  ;;  %3815 = vmatpush.bf16.msrb.mxu3 %v6548_v16  ;;  %3777 = vmatpush.bf16.msrb.mxu0 %v5748_v23 }
 0x147   :  { %v7022_v20 = vld [vmem:[#allocation9 + $0xda4] sm:$0xf0] }
 0x148   :  { %v6515_v21 = vld [vmem:[#allocation9 + $0xf88] sm:$0xf]  ;;  %v6260_v28 = vor.u32 %v7022_v20, %v6259_v19  ;;  %3790 = vmatpush.bf16.msrb.mxu1 %v6004_v24 }
 0x149   :  { %v7086_v22 = vld [vmem:[#allocation9 + $0xfa4] sm:$0xf0] }
 0x14a   :  { %v5715_v25 = vld [vmem:[#allocation9 + $0x948] sm:$0xf]  ;;  %v6516_v29 = vor.u32 %v7086_v22, %v6515_v21  ;;  %3803 = vmatpush.bf16.msrb.mxu2 %v6260_v28 }
 0x14b   :  { %v6886_v26 = vld [vmem:[#allocation9 + $0x964] sm:$0xf0] }
 0x14c   :  { %v5971_v30 = vld [vmem:[#allocation9 + $0xb48] sm:$0xf]  ;;  %v5716_v36 = vor.u32 %v6886_v26, %v5715_v25  ;;  %3816 = vmatpush.bf16.msrb.mxu3 %v6516_v29 }
 0x14d   :  { %v6950_v31 = vld [vmem:[#allocation9 + $0xb64] sm:$0xf0] }
 0x14e   :  { %v6227_v32 = vld [vmem:[#allocation9 + $0xd48] sm:$0xf]  ;;  %v5972_v37 = vor.u32 %v6950_v31, %v5971_v30  ;;  %3778 = vmatpush.bf16.msrb.mxu0 %v5716_v36 }
 0x14f   :  { %v7014_v33 = vld [vmem:[#allocation9 + $0xd64] sm:$0xf0] }
 0x150   :  { %v6483_v34 = vld [vmem:[#allocation9 + $0xf48] sm:$0xf]  ;;  %v6228_v39 = vor.u32 %v7014_v33, %v6227_v32  ;;  %3791 = vmatpush.bf16.msrb.mxu1 %v5972_v37 }
 0x151   :  { %v7078_v35 = vld [vmem:[#allocation9 + $0xf64] sm:$0xf0] }
 0x152   :  { %v5683_v13 = vld [vmem:[#allocation9 + $0x908] sm:$0xf]  ;;  %v6484_v40 = vor.u32 %v7078_v35, %v6483_v34  ;;  %3804 = vmatpush.bf16.msrb.mxu2 %v6228_v39  ;;  %v6642_v39 = vld [vmem:[#allocation9 + $0x1cc] sm:$0xf] }
 0x153   :  { %v6878_v38 = vld [vmem:[#allocation9 + $0x924] sm:$0xf0] }
 0x154   :  { %v5939_v41 = vld [vmem:[#allocation9 + $0xb08] sm:$0xf]  ;;  %v5684_v47 = vor.u32 %v6878_v38, %v5683_v13  ;;  %3817 = vmatpush.bf16.msrb.mxu3 %v6484_v40  ;;  %v4757_v40 = vld [vmem:[#allocation9 + $0x1e8] sm:$0xf0] }
 0x155   :  { %v6942_v42 = vld [vmem:[#allocation9 + $0xb24] sm:$0xf0] }
 0x156   :  { %v6195_v43 = vld [vmem:[#allocation9 + $0xd08] sm:$0xf]  ;;  %v5940_v48 = vor.u32 %v6942_v42, %v5939_v41  ;;  %3779 = vmatpush.bf16.msrb.mxu0 %v5684_v47  ;;  %v6706_v41 = vld [vmem:[#allocation9 + $0x3cc] sm:$0xf] }
 0x157   :  { %v7006_v44 = vld [vmem:[#allocation9 + $0xd24] sm:$0xf0]  ;;  %v5013_v42 = vld [vmem:[#allocation9 + $0x3e8] sm:$0xf0] }
 0x158   :  { %v6451_v45 = vld [vmem:[#allocation9 + $0xf08] sm:$0xf]  ;;  %v6196_v51 = vor.u32 %v7006_v44, %v6195_v43  ;;  %3792 = vmatpush.bf16.msrb.mxu1 %v5940_v48  ;;  %v6770_v43 = vld [vmem:[#allocation9 + $0x5cc] sm:$0xf] }
 0x159   :  { %v7070_v46 = vld [vmem:[#allocation9 + $0xf24] sm:$0xf0]  ;;  %v6834_v47 = vld [vmem:[#allocation9 + $0x7cc] sm:$0xf] }
 0x15a   :  { %v5651_v49 = vld [vmem:[#allocation9 + $0x8c8] sm:$0xf]  ;;  %v6452_v52 = vor.u32 %v7070_v46, %v6451_v45  ;;  %3805 = vmatpush.bf16.msrb.mxu2 %v6196_v51  ;;  %v5269_v46 = vld [vmem:[#allocation9 + $0x5e8] sm:$0xf0]  ;;  %v4760_v51 = vor.u32 %v6642_v39, %v4757_v40 }
 0x15b   :  { %v6870_v50 = vld [vmem:[#allocation9 + $0x8e4] sm:$0xf0]  ;;  %v5525_v48 = vld [vmem:[#allocation9 + $0x7e8] sm:$0xf0] }
 0x15c   :  { %v5907_v54 = vld [vmem:[#allocation9 + $0xac8] sm:$0xf]  ;;  %v5652_v2 = vor.u32 %v6870_v50, %v5651_v49  ;;  %3818 = vmatpush.bf16.msrb.mxu3 %v6452_v52  ;;  %v5016_v52 = vor.u32 %v6706_v41, %v5013_v42  ;;  %v6610_v39 = vld [vmem:[#allocation9 + $0xcc] sm:$0xf] }
 0x15d   :  { %v6934_v57 = vld [vmem:[#allocation9 + $0xae4] sm:$0xf0]  ;;  %v4629_v40 = vld [vmem:[#allocation9 + $0xe8] sm:$0xf0] }
 0x15e   :  { %v6163_v58 = vld [vmem:[#allocation9 + $0xcc8] sm:$0xf]  ;;  %v5908_v3 = vor.u32 %v6934_v57, %v5907_v54  ;;  %3780 = vmatpush.bf16.msrb.mxu0 %v5652_v2  ;;  %v6634_v54 = vld [vmem:[#allocation9 + $0x18c] sm:$0xf] }
 0x15f   :  { %v6998_v63 = vld [vmem:[#allocation9 + $0xce4] sm:$0xf0]  ;;  %v4725_v57 = vld [vmem:[#allocation9 + $0x1a8] sm:$0xf0] }
 0x160   :  { %v6419_v0 = vld [vmem:[#allocation9 + $0xec8] sm:$0xf]  ;;  %v6164_v6 = vor.u32 %v6998_v63, %v6163_v58  ;;  %3793 = vmatpush.bf16.msrb.mxu1 %v5908_v3  ;;  %v6698_v58 = vld [vmem:[#allocation9 + $0x38c] sm:$0xf]  ;;  %v5272_v63 = vor.u32 %v6770_v43, %v5269_v46  ;;  %v7426_v3 = vld [vmem:[#allocation11] sm:$0xff]  ;;  %v3551_v46 = vpop.f32.mrf.mxu2 }
 0x161   :  { %v7062_v1 = vld [vmem:[#allocation9 + $0xee4] sm:$0xf0]  ;;  %v6762_v2 = vld [vmem:[#allocation9 + $0x58c] sm:$0xf] }
 0x162   :  { %v5619_v4 = vld [vmem:[#allocation9 + $0x888] sm:$0xf]  ;;  %v6420_v7 = vor.u32 %v7062_v1, %v6419_v0  ;;  %3806 = vmatpush.bf16.msrb.mxu2 %v6164_v6  ;;  %v5528_v0 = vor.u32 %v6834_v47, %v5525_v48  ;;  %v4981_v1 = vld [vmem:[#allocation9 + $0x3a8] sm:$0xf0]  ;;  %v3564_v47 = vpop.f32.mrf.mxu3 }
 0x163   :  { %v6862_v5 = vld [vmem:[#allocation9 + $0x8a4] sm:$0xf0]  ;;  %v5493_v6 = vld [vmem:[#allocation9 + $0x7a8] sm:$0xf0] }
 0x164   :  { %v5875_v8 = vld [vmem:[#allocation9 + $0xa88] sm:$0xf]  ;;  %v5620_v15 = vor.u32 %v6862_v5, %v5619_v4  ;;  %3819 = vmatpush.bf16.msrb.mxu3 %v6420_v7  ;;  %v5237_v4 = vld [vmem:[#allocation9 + $0x5a8] sm:$0xf0]  ;;  %v4728_v7 = vor.u32 %v6634_v54, %v4725_v57  ;;  %v4632_v57 = vor.u32 %v6610_v39, %v4629_v40 }
 0x165   :  { %v6926_v9 = vld [vmem:[#allocation9 + $0xaa4] sm:$0xf0]  ;;  %v6826_v5 = vld [vmem:[#allocation9 + $0x78c] sm:$0xf] }
 0x166   :  { %v6131_v10 = vld [vmem:[#allocation9 + $0xc88] sm:$0xf]  ;;  %v5876_v16 = vor.u32 %v6926_v9, %v5875_v8  ;;  %3781 = vmatpush.bf16.msrb.mxu0 %v5620_v15  ;;  %v4984_v8 = vor.u32 %v6698_v58, %v4981_v1  ;;  %v6626_v9 = vld [vmem:[#allocation9 + $0x14c] sm:$0xf] }
 0x167   :  { %v6990_v11 = vld [vmem:[#allocation9 + $0xca4] sm:$0xf0]  ;;  %v6690_v15 = vld [vmem:[#allocation9 + $0x34c] sm:$0xf] }
 0x168   :  { %v6387_v12 = vld [vmem:[#allocation9 + $0xe88] sm:$0xf]  ;;  %v6132_v19 = vor.u32 %v6990_v11, %v6131_v10  ;;  %3794 = vmatpush.bf16.msrb.mxu1 %v5876_v16  ;;  %v4693_v10 = vld [vmem:[#allocation9 + $0x168] sm:$0xf0]  ;;  %v940_v11 = vperm.slane %v7426_v3, 0 }
 0x169   :  { %v7054_v14 = vld [vmem:[#allocation9 + $0xea4] sm:$0xf0]  ;;  %v4949_v16 = vld [vmem:[#allocation9 + $0x368] sm:$0xf0] }
 0x16a   :  { %v5587_v17 = vld [vmem:[#allocation9 + $0x848] sm:$0xf]  ;;  %v6388_v20 = vor.u32 %v7054_v14, %v6387_v12  ;;  %3807 = vmatpush.bf16.msrb.mxu2 %v6132_v19  ;;  %v5240_v12 = vor.u32 %v6762_v2, %v5237_v4  ;;  %v5496_v14 = vor.u32 %v6826_v5, %v5493_v6  ;;  %v6818_v19 = vld [vmem:[#allocation9 + $0x74c] sm:$0xf] }
 0x16b   :  { %v6854_v18 = vld [vmem:[#allocation9 + $0x864] sm:$0xf0]  ;;  %v6674_v43 = vld [vmem:[#allocation9 + $0x2cc] sm:$0xf] }
 0x16c   :  { %v5843_v21 = vld [vmem:[#allocation9 + $0xa48] sm:$0xf]  ;;  %v5588_v29 = vor.u32 %v6854_v18, %v5587_v17  ;;  %3820 = vmatpush.bf16.msrb.mxu3 %v6388_v20  ;;  %v6754_v17 = vld [vmem:[#allocation9 + $0x54c] sm:$0xf] }
 0x16d   :  { %v6918_v22 = vld [vmem:[#allocation9 + $0xa64] sm:$0xf0]  ;;  %v5205_v18 = vld [vmem:[#allocation9 + $0x568] sm:$0xf0] }
 0x16e   :  { %v6099_v23 = vld [vmem:[#allocation9 + $0xc48] sm:$0xf]  ;;  %v5844_v30 = vor.u32 %v6918_v22, %v5843_v21  ;;  %3782 = vmatpush.bf16.msrb.mxu0 %v5588_v29  ;;  %v5461_v20 = vld [vmem:[#allocation9 + $0x768] sm:$0xf0]  ;;  %v3525_v21 = vpop.f32.mrf.mxu0  ;;  %v3538_v22 = vpop.f32.mrf.mxu1  ;;  %v5208_v29 = vor.u32 %v6754_v17, %v5205_v18 }
 0x16f   :  { %v6982_v24 = vld [vmem:[#allocation9 + $0xc64] sm:$0xf0]  ;;  %v5141_v48 = vld [vmem:[#allocation9 + $0x4e8] sm:$0xf0] }
 0x170   :  { %v6355_v25 = vld [vmem:[#allocation9 + $0xe48] sm:$0xf]  ;;  %v6100_v34 = vor.u32 %v6982_v24, %v6099_v23  ;;  %3795 = vmatpush.bf16.msrb.mxu1 %v5844_v30  ;;  %v4696_v23 = vor.u32 %v6626_v9, %v4693_v10  ;;  %v4952_v24 = vor.u32 %v6690_v15, %v4949_v16  ;;  %v5464_v30 = vor.u32 %v6818_v19, %v5461_v20  ;;  %v6666_v5 = vld [vmem:[#allocation9 + $0x28c] sm:$0xf] }
 0x171   :  { %v7046_v26 = vld [vmem:[#allocation9 + $0xe64] sm:$0xf0]  ;;  %v4853_v6 = vld [vmem:[#allocation9 + $0x2a8] sm:$0xf0] }
 0x172   :  { %v5555_v28 = vld [vmem:[#allocation9 + $0x808] sm:$0xf]  ;;  %v6356_v35 = vor.u32 %v7046_v26, %v6355_v25  ;;  %3808 = vmatpush.bf16.msrb.mxu2 %v6100_v34  ;;  %v3526_v25 = vadd.f32 %v3525_v21, %v940_v11  ;;  %v6618_v26 = vld [vmem:[#allocation9 + $0x10c] sm:$0xf]  ;;  %v3553_v21 = vpop.f32.mrf.mxu2 }
 0x173   :  { %v6846_v31 = vld [vmem:[#allocation9 + $0x824] sm:$0xf0]  ;;  %v6794_v9 = vld [vmem:[#allocation9 + $0x68c] sm:$0xf] }
 0x174   :  { %v5811_v32 = vld [vmem:[#allocation9 + $0xa08] sm:$0xf]  ;;  %v5556_v44 = vor.u32 %v6846_v31, %v5555_v28  ;;  %3821 = vmatpush.bf16.msrb.mxu3 %v6356_v35  ;;  %v4661_v28 = vld [vmem:[#allocation9 + $0x128] sm:$0xf0]  ;;  %v3539_v34 = vadd.f32 %v3538_v22, %v3526_v25  ;;  %v3566_v22 = vpop.f32.mrf.mxu3 }
 0x175   :  { %v6910_v33 = vld [vmem:[#allocation9 + $0xa24] sm:$0xf0]  ;;  %v6682_v31 = vld [vmem:[#allocation9 + $0x30c] sm:$0xf] }
 0x176   :  { %v6067_v36 = vld [vmem:[#allocation9 + $0xc08] sm:$0xf]  ;;  %v5812_v45 = vor.u32 %v6910_v33, %v5811_v32  ;;  %3783 = vmatpush.bf16.msrb.mxu0 %v5556_v44  ;;  %v4917_v32 = vld [vmem:[#allocation9 + $0x328] sm:$0xf0]  ;;  %v3540_v54 = vpop.f32.mrf.mxu1 }
 0x177   :  { %v6974_v37 = vld [vmem:[#allocation9 + $0xc24] sm:$0xf0]  ;;  %v6746_v33 = vld [vmem:[#allocation9 + $0x50c] sm:$0xf] }
 0x178   :  { %v6323_v13 = vld [vmem:[#allocation9 + $0xe08] sm:$0xf]  ;;  %v6068_v49 = vor.u32 %v6974_v37, %v6067_v36  ;;  %3796 = vmatpush.bf16.msrb.mxu1 %v5812_v45  ;;  %v5173_v35 = vld [vmem:[#allocation9 + $0x528] sm:$0xf0] }
 0x179   :  { %v7038_v38 = vld [vmem:[#allocation9 + $0xe24] sm:$0xf0]  ;;  %3784 = vmatmul.bf16.vlgmr.msrb.gmra.mxu0 %v7402_v53  ;;  %v6810_v36 = vld [vmem:[#allocation9 + $0x70c] sm:$0xf]  ;;  %v5176_v41 = vor.u32 %v6746_v33, %v5173_v35 }
 0x17a   :  { %v6324_v50 = vor.u32 %v7038_v38, %v6323_v13  ;;  %3809 = vmatpush.bf16.msrb.mxu2 %v6068_v49  ;;  %3828 = vmatpush.bf16.msra.mxu0 %v4760_v51  ;;  %v5429_v37 = vld [vmem:[#allocation9 + $0x728] sm:$0xf0]  ;;  %v4664_v13 = vor.u32 %v6618_v26, %v4661_v28  ;;  %v4920_v38 = vor.u32 %v6682_v31, %v4917_v32 }
 0x17b   :  { %3797 = vmatmul.bf16.vlgmr.msrb.gmra.mxu1 %v7404_v27  ;;  %v5432_v42 = vor.u32 %v6810_v36, %v5429_v37  ;;  %v4885_v44 = vld [vmem:[#allocation9 + $0x2e8] sm:$0xf0]  ;;  %v3552_v51 = vadd.f32 %v3551_v46, %v3539_v34 }
 0x17c   :  { %3822 = vmatpush.bf16.msrb.mxu3 %v6324_v50  ;;  %3841 = vmatpush.bf16.msra.mxu1 %v5016_v52  ;;  %v6738_v45 = vld [vmem:[#allocation9 + $0x4cc] sm:$0xf]  ;;  %v3527_v52 = vpop.f32.mrf.mxu0  ;;  %v4888_v58 = vor.u32 %v6674_v43, %v4885_v44 }
 0x17d   :  { %3810 = vmatmul.bf16.vlgmr.msrb.gmra.mxu2 %v7406_v59  ;;  %v6802_v49 = vld [vmem:[#allocation9 + $0x6cc] sm:$0xf]  ;;  %v3565_v1 = vadd.f32 %v3564_v47, %v3552_v51  ;;  %v5144_v2 = vor.u32 %v6738_v45, %v5141_v48 }
 0x17e   :  { %3854 = vmatpush.bf16.msra.mxu2 %v5272_v63  ;;  %3829 = vmatpush.bf16.msra.mxu0 %v4728_v7  ;;  %v5397_v50 = vld [vmem:[#allocation9 + $0x6e8] sm:$0xf0]  ;;  %v3590_v28 = vpop.f32.mrf.mxu1 }
 0x17f   :  { %3823 = vmatmul.bf16.vlgmr.msrb.gmra.mxu3 %v7408_v60  ;;  %v6602_v63 = vld [vmem:[#allocation9 + $0x8c] sm:$0xf]  ;;  %v5400_v4 = vor.u32 %v6802_v49, %v5397_v50 }
 0x180   :  { %3867 = vmatpush.bf16.msra.mxu3 %v5528_v0  ;;  %3842 = vmatpush.bf16.msra.mxu1 %v4984_v8  ;;  %v4597_v0 = vld [vmem:[#allocation9 + $0xa8] sm:$0xf0] }
 0x181   :  { %v6730_v7 = vld [vmem:[#allocation9 + $0x48c] sm:$0xf]  ;;  %v4600_v11 = vor.u32 %v6602_v63, %v4597_v0  ;;  %v3603_v63 = vpop.f32.mrf.mxu2  ;;  %v3616_v0 = vpop.f32.mrf.mxu3 }
 0x182   :  { %3855 = vmatpush.bf16.msra.mxu2 %v5240_v12  ;;  %3830 = vmatpush.bf16.msra.mxu0 %v4696_v23  ;;  %v5109_v8 = vld [vmem:[#allocation9 + $0x4a8] sm:$0xf0]  ;;  %v4856_v12 = vor.u32 %v6666_v5, %v4853_v6 }
 0x183   :  { %v5365_v10 = vld [vmem:[#allocation9 + $0x6a8] sm:$0xf0]  ;;  %v5112_v16 = vor.u32 %v6730_v7, %v5109_v8 }
 0x184   :  { %3868 = vmatpush.bf16.msra.mxu3 %v5496_v14  ;;  %3843 = vmatpush.bf16.msra.mxu1 %v4952_v24  ;;  %v6594_v14 = vld [vmem:[#allocation9 + $0x4c] sm:$0xf]  ;;  %v5368_v17 = vor.u32 %v6794_v9, %v5365_v10  ;;  %v3577_v26 = vpop.f32.mrf.mxu0 }
 0x185   :  { %v4565_v15 = vld [vmem:[#allocation9 + $0x68] sm:$0xf0]  ;;  %v3578_v32 = vadd.f32 %v3577_v26, %v3565_v1 }
 0x186   :  { %3856 = vmatpush.bf16.msra.mxu2 %v5208_v29  ;;  %3831 = vmatpush.bf16.msra.mxu0 %v4664_v13  ;;  %v6658_v18 = vld [vmem:[#allocation9 + $0x24c] sm:$0xf]  ;;  %v3592_v8 = vpop.f32.mrf.mxu1 }
 0x187   :  { %v4821_v19 = vld [vmem:[#allocation9 + $0x268] sm:$0xf0]  ;;  %v3591_v40 = vadd.f32 %v3590_v28, %v3578_v32 }
 0x188   :  { %3869 = vmatpush.bf16.msra.mxu3 %v5464_v30  ;;  %3844 = vmatpush.bf16.msra.mxu1 %v4920_v38  ;;  %v6722_v20 = vld [vmem:[#allocation9 + $0x44c] sm:$0xf]  ;;  %v4568_v30 = vor.u32 %v6594_v14, %v4565_v15  ;;  %v4824_v31 = vor.u32 %v6658_v18, %v4821_v19 }
 0x189   :  { %v5077_v23 = vld [vmem:[#allocation9 + $0x468] sm:$0xf0]  ;;  %v3604_v6 = vadd.f32 %v3603_v63, %v3591_v40  ;;  %v3605_v32 = vpop.f32.mrf.mxu2 }
 0x18a   :  { %3857 = vmatpush.bf16.msra.mxu2 %v5176_v41  ;;  %3832 = vmatpush.bf16.msra.mxu0 %v4632_v57  ;;  %v6786_v24 = vld [vmem:[#allocation9 + $0x64c] sm:$0xf]  ;;  %v5080_v36 = vor.u32 %v6722_v20, %v5077_v23 }
 0x18b   :  { %v5333_v25 = vld [vmem:[#allocation9 + $0x668] sm:$0xf0] }
 0x18c   :  { %3870 = vmatpush.bf16.msra.mxu3 %v5432_v42  ;;  %3845 = vmatpush.bf16.msra.mxu1 %v4888_v58  ;;  %v6586_v29 = vld [vmem:[#allocation9 + $0xc] sm:$0xf]  ;;  %v5336_v37 = vor.u32 %v6786_v24, %v5333_v25  ;;  %v3579_v7 = vpop.f32.mrf.mxu0 }
 0x18d   :  { %v4533_v33 = vld [vmem:[#allocation9 + $0x28] sm:$0xf0] }
 0x18e   :  { %3858 = vmatpush.bf16.msra.mxu2 %v5144_v2  ;;  %3833 = vmatpush.bf16.msra.mxu0 %v4600_v11  ;;  %v6650_v34 = vld [vmem:[#allocation9 + $0x20c] sm:$0xf]  ;;  %v4536_v47 = vor.u32 %v6586_v29, %v4533_v33  ;;  %v3618_v33 = vpop.f32.mrf.mxu3 }
 0x18f   :  { %v4789_v35 = vld [vmem:[#allocation9 + $0x228] sm:$0xf0] }
 0x190   :  { %3871 = vmatpush.bf16.msra.mxu3 %v5400_v4  ;;  %3846 = vmatpush.bf16.msra.mxu1 %v4856_v12  ;;  %v6714_v13 = vld [vmem:[#allocation9 + $0x40c] sm:$0xf]  ;;  %v4792_v48 = vor.u32 %v6650_v34, %v4789_v35  ;;  %v941_v34 = vperm.slane %v7426_v3, 1 }
 0x191   :  { %v5045_v38 = vld [vmem:[#allocation9 + $0x428] sm:$0xf0] }
 0x192   :  { %3859 = vmatpush.bf16.msra.mxu2 %v5112_v16  ;;  %v6778_v39 = vld [vmem:[#allocation9 + $0x60c] sm:$0xf]  ;;  %3834 = vmatpush.bf16.msra.mxu0 %v4568_v30  ;;  %v5048_v52 = vor.u32 %v6714_v13, %v5045_v38  ;;  %v7433_v16 = vadd.f32 %v3616_v0, %v3604_v6 }
 0x193   :  { %v5301_v41 = vld [vmem:[#allocation9 + $0x628] sm:$0xf0] }
 0x194   :  { %3872 = vmatpush.bf16.msra.mxu3 %v5368_v17  ;;  %v6898_v42 = vld [vmem:[#allocation9 + $0x9cc] sm:$0xf]  ;;  %3847 = vmatpush.bf16.msra.mxu1 %v4824_v31  ;;  %v5304_v54 = vor.u32 %v6778_v39, %v5301_v41 }
 0x195   :  { %v5781_v43 = vld [vmem:[#allocation9 + $0x9e8] sm:$0xf0] }
 0x196   :  { %v6962_v44 = vld [vmem:[#allocation9 + $0xbcc] sm:$0xf]  ;;  %3860 = vmatpush.bf16.msra.mxu2 %v5080_v36  ;;  %v5784_v57 = vor.u32 %v6898_v42, %v5781_v43  ;;  %3835 = vmatpush.bf16.msra.mxu0 %v4536_v47 }
 0x197   :  { %v6037_v45 = vld [vmem:[#allocation9 + $0xbe8] sm:$0xf0] }
 0x198   :  { %v7026_v46 = vld [vmem:[#allocation9 + $0xdcc] sm:$0xf]  ;;  %3873 = vmatpush.bf16.msra.mxu3 %v5336_v37  ;;  %v6040_v58 = vor.u32 %v6962_v44, %v6037_v45  ;;  %3848 = vmatpush.bf16.msra.mxu1 %v4792_v48  ;;  %v3629_v44 = vpop.f32.mrf.mxu0  ;;  %v3642_v45 = vpop.f32.mrf.mxu1 }
 0x199   :  { %v6293_v49 = vld [vmem:[#allocation9 + $0xde8] sm:$0xf0]  ;;  %3836 = vmatmul.bf16.vlgmr.msra.gmra.mxu0 %v7390_v55 }
 0x19a   :  { %v7090_v50 = vld [vmem:[#allocation9 + $0xfcc] sm:$0xf]  ;;  %v6296_v4 = vor.u32 %v7026_v46, %v6293_v49  ;;  %3861 = vmatpush.bf16.msra.mxu2 %v5048_v52  ;;  %3880 = vmatpush.bf16.msrb.mxu0 %v5784_v57  ;;  %v3630_v46 = vadd.f32 %v3629_v44, %v941_v34 }
 0x19b   :  { %v6549_v51 = vld [vmem:[#allocation9 + $0xfe8] sm:$0xf0]  ;;  %3849 = vmatmul.bf16.vlgmr.msra.gmra.mxu1 %v7392_v56 }
 0x19c   :  { %v6890_v1 = vld [vmem:[#allocation9 + $0x98c] sm:$0xf]  ;;  %v6552_v5 = vor.u32 %v7090_v50, %v6549_v51  ;;  %3874 = vmatpush.bf16.msra.mxu3 %v5304_v54  ;;  %3893 = vmatpush.bf16.msrb.mxu1 %v6040_v58  ;;  %v3643_v63 = vadd.f32 %v3642_v45, %v3630_v46 }
 0x19d   :  { %v5749_v2 = vld [vmem:[#allocation9 + $0x9a8] sm:$0xf0]  ;;  %3862 = vmatmul.bf16.vlgmr.msra.gmra.mxu2 %v7394_v61 }
 0x19e   :  { %v6954_v9 = vld [vmem:[#allocation9 + $0xb8c] sm:$0xf]  ;;  %v5752_v17 = vor.u32 %v6890_v1, %v5749_v2  ;;  %3906 = vmatpush.bf16.msrb.mxu2 %v6296_v4 }
 0x19f   :  { %v6005_v10 = vld [vmem:[#allocation9 + $0xba8] sm:$0xf0]  ;;  %3875 = vmatmul.bf16.vlgmr.msra.gmra.mxu3 %v7396_v62 }
 0x1a0   :  { %v7018_v11 = vld [vmem:[#allocation9 + $0xd8c] sm:$0xf]  ;;  %v6008_v18 = vor.u32 %v6954_v9, %v6005_v10  ;;  %3919 = vmatpush.bf16.msrb.mxu3 %v6552_v5  ;;  %3881 = vmatpush.bf16.msrb.mxu0 %v5752_v17 }
 0x1a1   :  { %v6261_v12 = vld [vmem:[#allocation9 + $0xda8] sm:$0xf0] }
 0x1a2   :  { %v7082_v14 = vld [vmem:[#allocation9 + $0xf8c] sm:$0xf]  ;;  %v6264_v21 = vor.u32 %v7018_v11, %v6261_v12  ;;  %3894 = vmatpush.bf16.msrb.mxu1 %v6008_v18 }
 0x1a3   :  { %v6517_v15 = vld [vmem:[#allocation9 + $0xfa8] sm:$0xf0] }
 0x1a4   :  { %v6882_v19 = vld [vmem:[#allocation9 + $0x94c] sm:$0xf]  ;;  %v6520_v22 = vor.u32 %v7082_v14, %v6517_v15  ;;  %3907 = vmatpush.bf16.msrb.mxu2 %v6264_v21  ;;  %v3655_v14 = vpop.f32.mrf.mxu2  ;;  %v3668_v15 = vpop.f32.mrf.mxu3 }
 0x1a5   :  { %v5717_v20 = vld [vmem:[#allocation9 + $0x968] sm:$0xf0]  ;;  %v3631_v21 = vpop.f32.mrf.mxu0 }
 0x1a6   :  { %v6946_v23 = vld [vmem:[#allocation9 + $0xb4c] sm:$0xf]  ;;  %v5720_v30 = vor.u32 %v6882_v19, %v5717_v20  ;;  %3920 = vmatpush.bf16.msrb.mxu3 %v6520_v22  ;;  %v3656_v20 = vadd.f32 %v3655_v14, %v3643_v63  ;;  %v3644_v22 = vpop.f32.mrf.mxu1  ;;  %v6703_v14 = vld [vmem:[#allocation9 + $0x3ac] sm:$0xf0] }
 0x1a7   :  { %v5973_v24 = vld [vmem:[#allocation9 + $0xb68] sm:$0xf0]  ;;  %v4699_v22 = vld [vmem:[#allocation9 + $0x150] sm:$0xf] }
 0x1a8   :  { %v7010_v25 = vld [vmem:[#allocation9 + $0xd4c] sm:$0xf]  ;;  %v5976_v31 = vor.u32 %v6946_v23, %v5973_v24  ;;  %3882 = vmatpush.bf16.msrb.mxu0 %v5720_v30 }
 0x1a9   :  { %v6229_v26 = vld [vmem:[#allocation9 + $0xd68] sm:$0xf0] }
 0x1aa   :  { %v7074_v28 = vld [vmem:[#allocation9 + $0xf4c] sm:$0xf]  ;;  %v6232_v37 = vor.u32 %v7010_v25, %v6229_v26  ;;  %3895 = vmatpush.bf16.msrb.mxu1 %v5976_v31 }
 0x1ab   :  { %v6485_v29 = vld [vmem:[#allocation9 + $0xf68] sm:$0xf0] }
 0x1ac   :  { %v6874_v35 = vld [vmem:[#allocation9 + $0x90c] sm:$0xf]  ;;  %v6488_v13 = vor.u32 %v7074_v28, %v6485_v29  ;;  %3908 = vmatpush.bf16.msrb.mxu2 %v6232_v37  ;;  %v7440_v28 = vadd.f32 %v3668_v15, %v3656_v20  ;;  %v5243_v15 = vld [vmem:[#allocation9 + $0x590] sm:$0xf] }
 0x1ad   :  { %v5685_v36 = vld [vmem:[#allocation9 + $0x928] sm:$0xf0] }
 0x1ae   :  { %v6938_v38 = vld [vmem:[#allocation9 + $0xb0c] sm:$0xf]  ;;  %v5688_v47 = vor.u32 %v6874_v35, %v5685_v36  ;;  %3921 = vmatpush.bf16.msrb.mxu3 %v6488_v13 }
 0x1af   :  { %v5941_v39 = vld [vmem:[#allocation9 + $0xb28] sm:$0xf0] }
 0x1b0   :  { %v7002_v40 = vld [vmem:[#allocation9 + $0xd0c] sm:$0xf]  ;;  %v5944_v48 = vor.u32 %v6938_v38, %v5941_v39  ;;  %3883 = vmatpush.bf16.msrb.mxu0 %v5688_v47  ;;  %v3657_v47 = vpop.f32.mrf.mxu2 }
 0x1b1   :  { %v6197_v41 = vld [vmem:[#allocation9 + $0xd28] sm:$0xf0]  ;;  %v3694_v47 = vpop.f32.mrf.mxu1 }
 0x1b2   :  { %v7066_v42 = vld [vmem:[#allocation9 + $0xf0c] sm:$0xf]  ;;  %v6200_v51 = vor.u32 %v7002_v40, %v6197_v41  ;;  %3896 = vmatpush.bf16.msrb.mxu1 %v5944_v48  ;;  %v3670_v48 = vpop.f32.mrf.mxu3 }
 0x1b3   :  { %v6453_v43 = vld [vmem:[#allocation9 + $0xf28] sm:$0xf0] }
 0x1b4   :  { %v6866_v49 = vld [vmem:[#allocation9 + $0x8cc] sm:$0xf]  ;;  %v6456_v52 = vor.u32 %v7066_v42, %v6453_v43  ;;  %3909 = vmatpush.bf16.msrb.mxu2 %v6200_v51  ;;  %v6647_v51 = vld [vmem:[#allocation9 + $0x1ec] sm:$0xf0] }
 0x1b5   :  { %v5653_v50 = vld [vmem:[#allocation9 + $0x8e8] sm:$0xf0] }
 0x1b6   :  { %v6930_v54 = vld [vmem:[#allocation9 + $0xacc] sm:$0xf]  ;;  %v5656_v4 = vor.u32 %v6866_v49, %v5653_v50  ;;  %3922 = vmatpush.bf16.msrb.mxu3 %v6456_v52  ;;  %v4763_v50 = vld [vmem:[#allocation9 + $0x1d0] sm:$0xf] }
 0x1b7   :  { %v5909_v57 = vld [vmem:[#allocation9 + $0xae8] sm:$0xf0]  ;;  %v5019_v52 = vld [vmem:[#allocation9 + $0x3d0] sm:$0xf] }
 0x1b8   :  { %v6994_v58 = vld [vmem:[#allocation9 + $0xccc] sm:$0xf]  ;;  %v5912_v5 = vor.u32 %v6930_v54, %v5909_v57  ;;  %3884 = vmatpush.bf16.msrb.mxu0 %v5656_v4  ;;  %v6711_v54 = vld [vmem:[#allocation9 + $0x3ec] sm:$0xf0] }
 0x1b9   :  { %v6165_v0 = vld [vmem:[#allocation9 + $0xce8] sm:$0xf0]  ;;  %v5275_v57 = vld [vmem:[#allocation9 + $0x5d0] sm:$0xf] }
 0x1ba   :  { %v7058_v1 = vld [vmem:[#allocation9 + $0xecc] sm:$0xf]  ;;  %v6168_v8 = vor.u32 %v6994_v58, %v6165_v0  ;;  %3897 = vmatpush.bf16.msrb.mxu1 %v5912_v5  ;;  %v6775_v0 = vld [vmem:[#allocation9 + $0x5ec] sm:$0xf0] }
 0x1bb   :  { %v6421_v2 = vld [vmem:[#allocation9 + $0xee8] sm:$0xf0] }
 0x1bc   :  { %v6858_v6 = vld [vmem:[#allocation9 + $0x88c] sm:$0xf]  ;;  %v6424_v9 = vor.u32 %v7058_v1, %v6421_v2  ;;  %3910 = vmatpush.bf16.msrb.mxu2 %v6168_v8  ;;  %v5531_v1 = vld [vmem:[#allocation9 + $0x7d0] sm:$0xf] }
 0x1bd   :  { %v5621_v7 = vld [vmem:[#allocation9 + $0x8a8] sm:$0xf0]  ;;  %v6839_v2 = vld [vmem:[#allocation9 + $0x7ec] sm:$0xf0] }
 0x1be   :  { %v6922_v10 = vld [vmem:[#allocation9 + $0xa8c] sm:$0xf]  ;;  %v5624_v23 = vor.u32 %v6858_v6, %v5621_v7  ;;  %3923 = vmatpush.bf16.msrb.mxu3 %v6424_v9  ;;  %v4764_v6 = vor.u32 %v6647_v51, %v4763_v50  ;;  %v5020_v7 = vor.u32 %v6711_v54, %v5019_v52  ;;  %v4731_v8 = vld [vmem:[#allocation9 + $0x190] sm:$0xf] }
 0x1bf   :  { %v5877_v11 = vld [vmem:[#allocation9 + $0xaa8] sm:$0xf0]  ;;  %v6639_v9 = vld [vmem:[#allocation9 + $0x1ac] sm:$0xf0] }
 0x1c0   :  { %v6986_v12 = vld [vmem:[#allocation9 + $0xc8c] sm:$0xf]  ;;  %v5880_v24 = vor.u32 %v6922_v10, %v5877_v11  ;;  %3885 = vmatpush.bf16.msrb.mxu0 %v5624_v23  ;;  %v5276_v10 = vor.u32 %v6775_v0, %v5275_v57  ;;  %v5532_v11 = vor.u32 %v6839_v2, %v5531_v1  ;;  %v4732_v20 = vor.u32 %v6639_v9, %v4731_v8  ;;  %v6631_v23 = vld [vmem:[#allocation9 + $0x16c] sm:$0xf0] }
 0x1c1   :  { %v6133_v17 = vld [vmem:[#allocation9 + $0xca8] sm:$0xf0]  ;;  %v4635_v51 = vld [vmem:[#allocation9 + $0xd0] sm:$0xf] }
 0x1c2   :  { %v7050_v18 = vld [vmem:[#allocation9 + $0xe8c] sm:$0xf]  ;;  %v6136_v29 = vor.u32 %v6986_v12, %v6133_v17  ;;  %3898 = vmatpush.bf16.msrb.mxu1 %v5880_v24  ;;  %v4987_v12 = vld [vmem:[#allocation9 + $0x390] sm:$0xf] }
 0x1c3   :  { %v6389_v19 = vld [vmem:[#allocation9 + $0xea8] sm:$0xf0]  ;;  %v6767_v17 = vld [vmem:[#allocation9 + $0x5ac] sm:$0xf0]  ;;  %v4988_v21 = vor.u32 %v6703_v14, %v4987_v12 }
 0x1c4   :  { %v6850_v25 = vld [vmem:[#allocation9 + $0x84c] sm:$0xf]  ;;  %v6392_v30 = vor.u32 %v7050_v18, %v6389_v19  ;;  %3911 = vmatpush.bf16.msrb.mxu2 %v6136_v29  ;;  %v5499_v18 = vld [vmem:[#allocation9 + $0x790] sm:$0xf]  ;;  %v5244_v24 = vor.u32 %v6767_v17, %v5243_v15  ;;  %v3707_v17 = vpop.f32.mrf.mxu2 }
 0x1c5   :  { %v5589_v26 = vld [vmem:[#allocation9 + $0x868] sm:$0xf0]  ;;  %v6831_v19 = vld [vmem:[#allocation9 + $0x7ac] sm:$0xf0] }
 0x1c6   :  { %v6914_v31 = vld [vmem:[#allocation9 + $0xa4c] sm:$0xf]  ;;  %v5592_v13 = vor.u32 %v6850_v25, %v5589_v26  ;;  %3924 = vmatpush.bf16.msrb.mxu3 %v6392_v30  ;;  %v5500_v25 = vor.u32 %v6831_v19, %v5499_v18  ;;  %v4955_v26 = vld [vmem:[#allocation9 + $0x350] sm:$0xf]  ;;  %v3720_v18 = vpop.f32.mrf.mxu3 }
 0x1c7   :  { %v5845_v32 = vld [vmem:[#allocation9 + $0xa68] sm:$0xf0]  ;;  %v6695_v29 = vld [vmem:[#allocation9 + $0x36c] sm:$0xf0] }
 0x1c8   :  { %v6978_v33 = vld [vmem:[#allocation9 + $0xc4c] sm:$0xf]  ;;  %v5848_v38 = vor.u32 %v6914_v31, %v5845_v32  ;;  %3886 = vmatpush.bf16.msrb.mxu0 %v5592_v13  ;;  %v5211_v30 = vld [vmem:[#allocation9 + $0x550] sm:$0xf] }
 0x1c9   :  { %v6101_v34 = vld [vmem:[#allocation9 + $0xc68] sm:$0xf0]  ;;  %v6759_v31 = vld [vmem:[#allocation9 + $0x56c] sm:$0xf0] }
 0x1ca   :  { %v7042_v35 = vld [vmem:[#allocation9 + $0xe4c] sm:$0xf]  ;;  %v6104_v42 = vor.u32 %v6978_v33, %v6101_v34  ;;  %3899 = vmatpush.bf16.msrb.mxu1 %v5848_v38  ;;  %v5467_v32 = vld [vmem:[#allocation9 + $0x750] sm:$0xf]  ;;  %v4348_v34 = vmul.f32 0.5, %v7433_v16  ;;  %v5212_v38 = vor.u32 %v6759_v31, %v5211_v30 }
 0x1cb   :  { %v6357_v36 = vld [vmem:[#allocation9 + $0xe68] sm:$0xf0]  ;;  %v6823_v33 = vld [vmem:[#allocation9 + $0x76c] sm:$0xf0] }
 0x1cc   :  { %v6842_v37 = vld [vmem:[#allocation9 + $0x80c] sm:$0xf]  ;;  %v6360_v43 = vor.u32 %v7042_v35, %v6357_v36  ;;  %3912 = vmatpush.bf16.msrb.mxu2 %v6104_v42  ;;  %v4700_v35 = vor.u32 %v6631_v23, %v4699_v22  ;;  %v4956_v36 = vor.u32 %v6695_v29, %v4955_v26  ;;  %v6623_v13 = vld [vmem:[#allocation9 + $0x12c] sm:$0xf0]  ;;  %7110 = vtanh.f32 %v4348_v34 }
 0x1cd   :  { %v5557_v39 = vld [vmem:[#allocation9 + $0x828] sm:$0xf0]  ;;  %v5179_v42 = vld [vmem:[#allocation9 + $0x510] sm:$0xf] }
 0x1ce   :  { %v6906_v40 = vld [vmem:[#allocation9 + $0xa0c] sm:$0xf]  ;;  %v5560_v58 = vor.u32 %v6842_v37, %v5557_v39  ;;  %3925 = vmatpush.bf16.msrb.mxu3 %v6360_v43  ;;  %v4667_v37 = vld [vmem:[#allocation9 + $0x110] sm:$0xf]  ;;  %v5468_v39 = vor.u32 %v6823_v33, %v5467_v32 }
 0x1cf   :  { %v5813_v41 = vld [vmem:[#allocation9 + $0xa28] sm:$0xf0]  ;;  %v6751_v43 = vld [vmem:[#allocation9 + $0x52c] sm:$0xf0] }
 0x1d0   :  { %v6970_v44 = vld [vmem:[#allocation9 + $0xc0c] sm:$0xf]  ;;  %v5816_v63 = vor.u32 %v6906_v40, %v5813_v41  ;;  %3887 = vmatpush.bf16.msrb.mxu0 %v5560_v58  ;;  %v4923_v40 = vld [vmem:[#allocation9 + $0x310] sm:$0xf]  ;;  %v5180_v54 = vor.u32 %v6751_v43, %v5179_v42 }
 0x1d1   :  { %v6069_v45 = vld [vmem:[#allocation9 + $0xc28] sm:$0xf0]  ;;  %v6687_v41 = vld [vmem:[#allocation9 + $0x32c] sm:$0xf0] }
 0x1d2   :  { %v7034_v46 = vld [vmem:[#allocation9 + $0xe0c] sm:$0xf]  ;;  %v6072_v4 = vor.u32 %v6970_v44, %v6069_v45  ;;  %3900 = vmatpush.bf16.msrb.mxu1 %v5816_v63  ;;  %v5435_v44 = vld [vmem:[#allocation9 + $0x710] sm:$0xf]  ;;  %v4924_v50 = vor.u32 %v6687_v41, %v4923_v40 }
 0x1d3   :  { %v6325_v49 = vld [vmem:[#allocation9 + $0xe28] sm:$0xf0]  ;;  %3888 = vmatmul.bf16.vlgmr.msrb.gmra.mxu0 %v7402_v53  ;;  %v6815_v45 = vld [vmem:[#allocation9 + $0x72c] sm:$0xf0] }
 0x1d4   :  { %v6328_v5 = vor.u32 %v7034_v46, %v6325_v49  ;;  %3913 = vmatpush.bf16.msrb.mxu2 %v6072_v4  ;;  %3932 = vmatpush.bf16.msra.mxu0 %v4764_v6  ;;  %v3681_v46 = vpop.f32.mrf.mxu0  ;;  %v4380_v48 = vld [vmem:[#allocation12] sm:$0xff]  ;;  %v4668_v49 = vor.u32 %v6623_v13, %v4667_v37  ;;  %v6615_v52 = vld [vmem:[#allocation9 + $0xec] sm:$0xf0]  ;;  %v5436_v57 = vor.u32 %v6815_v45, %v5435_v44 }
 0x1d5   :  { %3901 = vmatmul.bf16.vlgmr.msrb.gmra.mxu1 %v7404_v27  ;;  %v3682_v16 = vadd.f32 %v3681_v46, %v7440_v28  ;;  %v4891_v58 = vld [vmem:[#allocation9 + $0x2d0] sm:$0xf]  ;;  %v7448_v6 = vunpack.c.l.bf16 %v4380_v48  ;;  %v4636_v28 = vor.u32 %v6615_v52, %v4635_v51 }
 0x1d6   :  { %3926 = vmatpush.bf16.msrb.mxu3 %v6328_v5  ;;  %3945 = vmatpush.bf16.msra.mxu1 %v5020_v7  ;;  %v6679_v63 = vld [vmem:[#allocation9 + $0x2ec] sm:$0xf0] }
 0x1d7   :  { %3914 = vmatmul.bf16.vlgmr.msrb.gmra.mxu2 %v7406_v59  ;;  %v5147_v0 = vld [vmem:[#allocation9 + $0x4d0] sm:$0xf]  ;;  %v3695_v1 = vadd.f32 %v3694_v47, %v3682_v16  ;;  %v4892_v7 = vor.u32 %v6679_v63, %v4891_v58  ;;  %v4385_v26 = vperm.slane %v7448_v6, 0  ;;  %v3722_v58 = vpop.f32.mrf.mxu3 }
 0x1d8   :  { %3958 = vmatpush.bf16.msra.mxu2 %v5276_v10  ;;  %3933 = vmatpush.bf16.msra.mxu0 %v4732_v20  ;;  %v6743_v2 = vld [vmem:[#allocation9 + $0x4ec] sm:$0xf0] }
 0x1d9   :  { %3927 = vmatmul.bf16.vlgmr.msrb.gmra.mxu3 %v7408_v60  ;;  %v5403_v4 = vld [vmem:[#allocation9 + $0x6d0] sm:$0xf]  ;;  %v5148_v10 = vor.u32 %v6743_v2, %v5147_v0  ;;  %v3708_v22 = vadd.f32 %v3707_v17, %v3695_v1  ;;  %v4386_v2 = vperm.slane %v7448_v6, 2 }
 0x1da   :  { %3971 = vmatpush.bf16.msra.mxu3 %v5532_v11  ;;  %3946 = vmatpush.bf16.msra.mxu1 %v4988_v21  ;;  %v6807_v5 = vld [vmem:[#allocation9 + $0x6ec] sm:$0xf0] }
 0x1db   :  { %v4603_v8 = vld [vmem:[#allocation9 + $0x90] sm:$0xf]  ;;  %v5404_v11 = vor.u32 %v6807_v5, %v5403_v4  ;;  %v3721_v33 = vadd.f32 %v3720_v18, %v3708_v22 }
 0x1dc   :  { %3959 = vmatpush.bf16.msra.mxu2 %v5244_v24  ;;  %3934 = vmatpush.bf16.msra.mxu0 %v4700_v35  ;;  %v6607_v9 = vld [vmem:[#allocation9 + $0xac] sm:$0xf0]  ;;  %v3683_v23 = vpop.f32.mrf.mxu0  ;;  %v3696_v24 = vpop.f32.mrf.mxu1 }
 0x1dd   :  { %v4859_v12 = vld [vmem:[#allocation9 + $0x290] sm:$0xf]  ;;  %v4604_v29 = vor.u32 %v6607_v9, %v4603_v8  ;;  %v4349_v42 = vmul.f32 0.5, %v3721_v33 }
 0x1de   :  { %3972 = vmatpush.bf16.msra.mxu3 %v5500_v25  ;;  %3947 = vmatpush.bf16.msra.mxu1 %v4956_v36  ;;  %v6671_v14 = vld [vmem:[#allocation9 + $0x2ac] sm:$0xf0]  ;;  %v7111_v25 = vpop.eup %7110 }
 0x1df   :  { %v5115_v15 = vld [vmem:[#allocation9 + $0x490] sm:$0xf]  ;;  %v4860_v30 = vor.u32 %v6671_v14, %v4859_v12  ;;  %v4364_v41 = vmul.f32 0.5, %v7111_v25  ;;  %7112 = vtanh.f32 %v4349_v42  ;;  %v4401_v12 = vperm.slane %v4385_v26, 0 }
 0x1e0   :  { %3960 = vmatpush.bf16.msra.mxu2 %v5212_v38  ;;  %3935 = vmatpush.bf16.msra.mxu0 %v4668_v49  ;;  %v6735_v19 = vld [vmem:[#allocation9 + $0x4ac] sm:$0xf0] }
 0x1e1   :  { %v5371_v20 = vld [vmem:[#allocation9 + $0x690] sm:$0xf]  ;;  %v5116_v34 = vor.u32 %v6735_v19, %v5115_v15 }
 0x1e2   :  { %3973 = vmatpush.bf16.msra.mxu3 %v5468_v39  ;;  %3948 = vmatpush.bf16.msra.mxu1 %v4924_v50  ;;  %v6799_v21 = vld [vmem:[#allocation9 + $0x6ac] sm:$0xf0] }
 0x1e3   :  { %v4571_v31 = vld [vmem:[#allocation9 + $0x50] sm:$0xf]  ;;  %v5372_v35 = vor.u32 %v6799_v21, %v5371_v20 }
 0x1e4   :  { %3961 = vmatpush.bf16.msra.mxu2 %v5180_v54  ;;  %3936 = vmatpush.bf16.msra.mxu0 %v4636_v28  ;;  %v6599_v32 = vld [vmem:[#allocation9 + $0x6c] sm:$0xf0] }
 0x1e5   :  { %v4827_v36 = vld [vmem:[#allocation9 + $0x250] sm:$0xf]  ;;  %v4572_v45 = vor.u32 %v6599_v32, %v4571_v31  ;;  %v7113_v22 = vpop.eup %7112  ;;  %v4402_v32 = vperm.slane %v4386_v2, 0 }
 0x1e6   :  { %3974 = vmatpush.bf16.msra.mxu3 %v5436_v57  ;;  %3949 = vmatpush.bf16.msra.mxu1 %v4892_v7  ;;  %v6663_v37 = vld [vmem:[#allocation9 + $0x26c] sm:$0xf0]  ;;  %v3709_v57 = vpop.f32.mrf.mxu2  ;;  %v4365_v31 = vmul.f32 0.5, %v7113_v22 }
 0x1e7   :  { %v5083_v13 = vld [vmem:[#allocation9 + $0x450] sm:$0xf]  ;;  %v4828_v46 = vor.u32 %v6663_v37, %v4827_v36 }
 0x1e8   :  { %3962 = vmatpush.bf16.msra.mxu2 %v5148_v10  ;;  %v6727_v38 = vld [vmem:[#allocation9 + $0x46c] sm:$0xf0]  ;;  %3937 = vmatpush.bf16.msra.mxu0 %v4604_v29 }
 0x1e9   :  { %v5339_v39 = vld [vmem:[#allocation9 + $0x650] sm:$0xf]  ;;  %v5084_v49 = vor.u32 %v6727_v38, %v5083_v13 }
 0x1ea   :  { %3975 = vmatpush.bf16.msra.mxu3 %v5404_v11  ;;  %v6791_v40 = vld [vmem:[#allocation9 + $0x66c] sm:$0xf0]  ;;  %3950 = vmatpush.bf16.msra.mxu1 %v4860_v30  ;;  %v4372_v11 = vadd.f32 0.5, %v4364_v41 }
 0x1eb   :  { %v4539_v43 = vld [vmem:[#allocation9 + $0x10] sm:$0xf]  ;;  %v5340_v50 = vor.u32 %v6791_v40, %v5339_v39 }
 0x1ec   :  { %v6591_v44 = vld [vmem:[#allocation9 + $0x2c] sm:$0xf0]  ;;  %3963 = vmatpush.bf16.msra.mxu2 %v5116_v34  ;;  %3938 = vmatpush.bf16.msra.mxu0 %v4572_v45  ;;  %v4409_v34 = vmul.f32 %v4401_v12, %v4372_v11 }
 0x1ed   :  { %v4795_v47 = vld [vmem:[#allocation9 + $0x210] sm:$0xf]  ;;  %v4540_v28 = vor.u32 %v6591_v44, %v4539_v43 }
 0x1ee   :  { %v6655_v48 = vld [vmem:[#allocation9 + $0x22c] sm:$0xf0]  ;;  %3976 = vmatpush.bf16.msra.mxu3 %v5372_v35  ;;  %3951 = vmatpush.bf16.msra.mxu1 %v4828_v46  ;;  %v4373_v35 = vadd.f32 0.5, %v4365_v31 }
 0x1ef   :  { %v5051_v16 = vld [vmem:[#allocation9 + $0x410] sm:$0xf]  ;;  %v4796_v7 = vor.u32 %v6655_v48, %v4795_v47  ;;  %v4417_v48 = vsel %vm343_vm1, %v4409_v34, 0.0 }
 0x1f0   :  { %v6719_v51 = vld [vmem:[#allocation9 + $0x42c] sm:$0xf0]  ;;  %3964 = vmatpush.bf16.msra.mxu2 %v5084_v49  ;;  %3939 = vmatpush.bf16.msra.mxu0 %v4540_v28  ;;  %v4410_v44 = vmul.f32 %v4402_v32, %v4373_v35  ;;  %v3759_v35 = vpop.f32.mrf.mxu2 }
 0x1f1   :  { %v5307_v52 = vld [vmem:[#allocation9 + $0x610] sm:$0xf]  ;;  %v5052_v14 = vor.u32 %v6719_v51, %v5051_v16  ;;  %v942_v51 = vperm.slane %v7426_v3, 2 }
 0x1f2   :  { %v6783_v54 = vld [vmem:[#allocation9 + $0x62c] sm:$0xf0]  ;;  %3977 = vmatpush.bf16.msra.mxu3 %v5340_v50  ;;  %3952 = vmatpush.bf16.msra.mxu1 %v4796_v7  ;;  %v4418_v16 = vsel %vm343_vm1, %v4410_v44, 0.0  ;;  %v3733_v7 = vpop.f32.mrf.mxu0 }
 0x1f3   :  { %v5787_v63 = vld [vmem:[#allocation9 + $0x9d0] sm:$0xf]  ;;  %v5308_v15 = vor.u32 %v6783_v54, %v5307_v52  ;;  %3940 = vmatmul.bf16.vlgmr.msra.gmra.mxu0 %v7390_v55  ;;  %v7459_v57 = vadd.f32 %v4418_v16, %v4417_v48 }
 0x1f4   :  { %v6903_v0 = vld [vmem:[#allocation9 + $0x9ec] sm:$0xf0]  ;;  %3965 = vmatpush.bf16.msra.mxu2 %v5052_v14 }
 0x1f5   :  { %v6043_v1 = vld [vmem:[#allocation9 + $0xbd0] sm:$0xf]  ;;  %v5788_v17 = vor.u32 %v6903_v0, %v5787_v63  ;;  %3953 = vmatmul.bf16.vlgmr.msra.gmra.mxu1 %v7392_v56 }
 0x1f6   :  { %v6967_v4 = vld [vmem:[#allocation9 + $0xbec] sm:$0xf0]  ;;  %3978 = vmatpush.bf16.msra.mxu3 %v5308_v15 }
 0x1f7   :  { %v6299_v5 = vld [vmem:[#allocation9 + $0xdd0] sm:$0xf]  ;;  %v6044_v18 = vor.u32 %v6967_v4, %v6043_v1  ;;  %3984 = vmatpush.bf16.msrb.mxu0 %v5788_v17  ;;  %3966 = vmatmul.bf16.vlgmr.msra.gmra.mxu2 %v7394_v61 }
 0x1f8   :  { %v7031_v8 = vld [vmem:[#allocation9 + $0xdec] sm:$0xf0] }
 0x1f9   :  { %v6555_v9 = vld [vmem:[#allocation9 + $0xfd0] sm:$0xf]  ;;  %v6300_v23 = vor.u32 %v7031_v8, %v6299_v5  ;;  %3997 = vmatpush.bf16.msrb.mxu1 %v6044_v18  ;;  %3979 = vmatmul.bf16.vlgmr.msra.gmra.mxu3 %v7396_v62  ;;  %v3746_v8 = vpop.f32.mrf.mxu1 }
 0x1fa   :  { %v7095_v10 = vld [vmem:[#allocation9 + $0xfec] sm:$0xf0] }
 0x1fb   :  { %v5755_v19 = vld [vmem:[#allocation9 + $0x990] sm:$0xf]  ;;  %v6556_v24 = vor.u32 %v7095_v10, %v6555_v9  ;;  %4010 = vmatpush.bf16.msrb.mxu2 %v6300_v23  ;;  %v3734_v9 = vadd.f32 %v3733_v7, %v942_v51 }
 0x1fc   :  { %v6895_v20 = vld [vmem:[#allocation9 + $0x9ac] sm:$0xf0] }
 0x1fd   :  { %v6011_v21 = vld [vmem:[#allocation9 + $0xb90] sm:$0xf]  ;;  %v5756_v36 = vor.u32 %v6895_v20, %v5755_v19  ;;  %4023 = vmatpush.bf16.msrb.mxu3 %v6556_v24  ;;  %v3747_v20 = vadd.f32 %v3746_v8, %v3734_v9 }
 0x1fe   :  { %v6959_v25 = vld [vmem:[#allocation9 + $0xbac] sm:$0xf0] }
 0x1ff   :  { %v6267_v29 = vld [vmem:[#allocation9 + $0xd90] sm:$0xf]  ;;  %v6012_v37 = vor.u32 %v6959_v25, %v6011_v21  ;;  %3985 = vmatpush.bf16.msrb.mxu0 %v5756_v36  ;;  %v3772_v36 = vpop.f32.mrf.mxu3 }
 0x200   :  { %v7023_v30 = vld [vmem:[#allocation9 + $0xdac] sm:$0xf0] }
 0x201   :  { %v6523_v26 = vld [vmem:[#allocation9 + $0xf90] sm:$0xf]  ;;  %v6268_v39 = vor.u32 %v7023_v30, %v6267_v29  ;;  %3998 = vmatpush.bf16.msrb.mxu1 %v6012_v37 }
 0x202   :  { %v7087_v33 = vld [vmem:[#allocation9 + $0xfac] sm:$0xf0] }
 0x203   :  { %v5723_v13 = vld [vmem:[#allocation9 + $0x950] sm:$0xf]  ;;  %v6524_v40 = vor.u32 %v7087_v33, %v6523_v26  ;;  %4011 = vmatpush.bf16.msrb.mxu2 %v6268_v39  ;;  %v3760_v39 = vadd.f32 %v3759_v35, %v3747_v20  ;;  %v4989_v35 = vld [vmem:[#allocation9 + $0x3b0] sm:$0xf0] }
 0x204   :  { %v6887_v38 = vld [vmem:[#allocation9 + $0x96c] sm:$0xf0] }
 0x205   :  { %v5979_v41 = vld [vmem:[#allocation9 + $0xb50] sm:$0xf]  ;;  %v5724_v49 = vor.u32 %v6887_v38, %v5723_v13  ;;  %4024 = vmatpush.bf16.msrb.mxu3 %v6524_v40  ;;  %v3735_v40 = vpop.f32.mrf.mxu0 }
 0x206   :  { %v6951_v42 = vld [vmem:[#allocation9 + $0xb6c] sm:$0xf0] }
 0x207   :  { %v6235_v43 = vld [vmem:[#allocation9 + $0xd50] sm:$0xf]  ;;  %v5980_v50 = vor.u32 %v6951_v42, %v5979_v41  ;;  %3986 = vmatpush.bf16.msrb.mxu0 %v5724_v49  ;;  %v3748_v41 = vpop.f32.mrf.mxu1 }
 0x208   :  { %v7015_v45 = vld [vmem:[#allocation9 + $0xd6c] sm:$0xf0]  ;;  %v6627_v41 = vld [vmem:[#allocation9 + $0x154] sm:$0xf] }
 0x209   :  { %v6491_v46 = vld [vmem:[#allocation9 + $0xf50] sm:$0xf]  ;;  %v6236_v58 = vor.u32 %v7015_v45, %v6235_v43  ;;  %3999 = vmatpush.bf16.msrb.mxu1 %v5980_v50 }
 0x20a   :  { %v7079_v47 = vld [vmem:[#allocation9 + $0xf6c] sm:$0xf0] }
 0x20b   :  { %v5691_v52 = vld [vmem:[#allocation9 + $0x910] sm:$0xf]  ;;  %v6492_v63 = vor.u32 %v7079_v47, %v6491_v46  ;;  %4012 = vmatpush.bf16.msrb.mxu2 %v6236_v58  ;;  %v7461_v46 = vadd.f32 %v3772_v36, %v3760_v39  ;;  %v6763_v36 = vld [vmem:[#allocation9 + $0x594] sm:$0xf] }
 0x20c   :  { %v6879_v54 = vld [vmem:[#allocation9 + $0x92c] sm:$0xf0] }
 0x20d   :  { %v5947_v0 = vld [vmem:[#allocation9 + $0xb10] sm:$0xf]  ;;  %v5692_v3 = vor.u32 %v6879_v54, %v5691_v52  ;;  %4025 = vmatpush.bf16.msrb.mxu3 %v6492_v63 }
 0x20e   :  { %v6943_v1 = vld [vmem:[#allocation9 + $0xb2c] sm:$0xf0] }
 0x20f   :  { %v6203_v2 = vld [vmem:[#allocation9 + $0xd10] sm:$0xf]  ;;  %v5948_v10 = vor.u32 %v6943_v1, %v5947_v0  ;;  %3987 = vmatpush.bf16.msrb.mxu0 %v5692_v3  ;;  %v3761_v3 = vpop.f32.mrf.mxu2 }
 0x210   :  { %v7007_v4 = vld [vmem:[#allocation9 + $0xd2c] sm:$0xf0] }
 0x211   :  { %v6459_v5 = vld [vmem:[#allocation9 + $0xf10] sm:$0xf]  ;;  %v6204_v14 = vor.u32 %v7007_v4, %v6203_v2  ;;  %4000 = vmatpush.bf16.msrb.mxu1 %v5948_v10  ;;  %v3774_v10 = vpop.f32.mrf.mxu3 }
 0x212   :  { %v7071_v28 = vld [vmem:[#allocation9 + $0xf2c] sm:$0xf0] }
 0x213   :  { %v5659_v11 = vld [vmem:[#allocation9 + $0x8d0] sm:$0xf]  ;;  %v6460_v15 = vor.u32 %v7071_v28, %v6459_v5  ;;  %4013 = vmatpush.bf16.msrb.mxu2 %v6204_v14  ;;  %v4765_v14 = vld [vmem:[#allocation9 + $0x1f0] sm:$0xf0] }
 0x214   :  { %v6871_v12 = vld [vmem:[#allocation9 + $0x8ec] sm:$0xf0] }
 0x215   :  { %v5915_v17 = vld [vmem:[#allocation9 + $0xad0] sm:$0xf]  ;;  %v5660_v24 = vor.u32 %v6871_v12, %v5659_v11  ;;  %4026 = vmatpush.bf16.msrb.mxu3 %v6460_v15  ;;  %v6643_v12 = vld [vmem:[#allocation9 + $0x1d4] sm:$0xf] }
 0x216   :  { %v6935_v18 = vld [vmem:[#allocation9 + $0xaec] sm:$0xf0]  ;;  %v6707_v15 = vld [vmem:[#allocation9 + $0x3d4] sm:$0xf] }
 0x217   :  { %v6171_v19 = vld [vmem:[#allocation9 + $0xcd0] sm:$0xf]  ;;  %v5916_v25 = vor.u32 %v6935_v18, %v5915_v17  ;;  %3988 = vmatpush.bf16.msrb.mxu0 %v5660_v24  ;;  %v5021_v17 = vld [vmem:[#allocation9 + $0x3f0] sm:$0xf0] }
 0x218   :  { %v6999_v21 = vld [vmem:[#allocation9 + $0xcec] sm:$0xf0]  ;;  %v6771_v18 = vld [vmem:[#allocation9 + $0x5d4] sm:$0xf] }
 0x219   :  { %v6427_v22 = vld [vmem:[#allocation9 + $0xed0] sm:$0xf]  ;;  %v6172_v31 = vor.u32 %v6999_v21, %v6171_v19  ;;  %4001 = vmatpush.bf16.msrb.mxu1 %v5916_v25  ;;  %v5277_v21 = vld [vmem:[#allocation9 + $0x5f0] sm:$0xf0] }
 0x21a   :  { %v7063_v23 = vld [vmem:[#allocation9 + $0xeec] sm:$0xf0] }
 0x21b   :  { %v5627_v29 = vld [vmem:[#allocation9 + $0x890] sm:$0xf]  ;;  %v6428_v32 = vor.u32 %v7063_v23, %v6427_v22  ;;  %4014 = vmatpush.bf16.msrb.mxu2 %v6172_v31  ;;  %v6835_v22 = vld [vmem:[#allocation9 + $0x7d4] sm:$0xf] }
 0x21c   :  { %v6863_v30 = vld [vmem:[#allocation9 + $0x8ac] sm:$0xf0]  ;;  %v5533_v23 = vld [vmem:[#allocation9 + $0x7f0] sm:$0xf0] }
 0x21d   :  { %v5883_v26 = vld [vmem:[#allocation9 + $0xa90] sm:$0xf]  ;;  %v5628_v42 = vor.u32 %v6863_v30, %v5627_v29  ;;  %4027 = vmatpush.bf16.msrb.mxu3 %v6428_v32  ;;  %v4768_v29 = vor.u32 %v6643_v12, %v4765_v14  ;;  %v5024_v30 = vor.u32 %v6707_v15, %v5021_v17  ;;  %v6635_v31 = vld [vmem:[#allocation9 + $0x194] sm:$0xf] }
 0x21e   :  { %v6927_v33 = vld [vmem:[#allocation9 + $0xaac] sm:$0xf0]  ;;  %v4733_v32 = vld [vmem:[#allocation9 + $0x1b0] sm:$0xf0] }
 0x21f   :  { %v6139_v34 = vld [vmem:[#allocation9 + $0xc90] sm:$0xf]  ;;  %v5884_v43 = vor.u32 %v6927_v33, %v5883_v26  ;;  %3989 = vmatpush.bf16.msrb.mxu0 %v5628_v42  ;;  %v5280_v26 = vor.u32 %v6771_v18, %v5277_v21  ;;  %v5536_v33 = vor.u32 %v6835_v22, %v5533_v23  ;;  %v4736_v39 = vor.u32 %v6635_v31, %v4733_v32  ;;  %v4701_v42 = vld [vmem:[#allocation9 + $0x170] sm:$0xf0] }
 0x220   :  { %v6991_v37 = vld [vmem:[#allocation9 + $0xcac] sm:$0xf0]  ;;  %v6611_v12 = vld [vmem:[#allocation9 + $0xd4] sm:$0xf] }
 0x221   :  { %v6395_v13 = vld [vmem:[#allocation9 + $0xe90] sm:$0xf]  ;;  %v6140_v47 = vor.u32 %v6991_v37, %v6139_v34  ;;  %4002 = vmatpush.bf16.msrb.mxu1 %v5884_v43  ;;  %v6699_v34 = vld [vmem:[#allocation9 + $0x394] sm:$0xf] }
 0x222   :  { %v7055_v38 = vld [vmem:[#allocation9 + $0xeac] sm:$0xf0]  ;;  %v5245_v37 = vld [vmem:[#allocation9 + $0x5b0] sm:$0xf0]  ;;  %v4992_v40 = vor.u32 %v6699_v34, %v4989_v35  ;;  %v3811_v35 = vpop.f32.mrf.mxu2 }
 0x223   :  { %v5595_v44 = vld [vmem:[#allocation9 + $0x850] sm:$0xf]  ;;  %v6396_v48 = vor.u32 %v7055_v38, %v6395_v13  ;;  %4015 = vmatpush.bf16.msrb.mxu2 %v6140_v47  ;;  %v6827_v13 = vld [vmem:[#allocation9 + $0x794] sm:$0xf]  ;;  %v5248_v43 = vor.u32 %v6763_v36, %v5245_v37  ;;  %v3824_v36 = vpop.f32.mrf.mxu3 }
 0x224   :  { %v6855_v45 = vld [vmem:[#allocation9 + $0x86c] sm:$0xf0]  ;;  %v5501_v38 = vld [vmem:[#allocation9 + $0x7b0] sm:$0xf0] }
 0x225   :  { %v5851_v16 = vld [vmem:[#allocation9 + $0xa50] sm:$0xf]  ;;  %v5596_v63 = vor.u32 %v6855_v45, %v5595_v44  ;;  %4028 = vmatpush.bf16.msrb.mxu3 %v6396_v48  ;;  %v5504_v44 = vor.u32 %v6827_v13, %v5501_v38  ;;  %v6691_v45 = vld [vmem:[#allocation9 + $0x354] sm:$0xf] }
 0x226   :  { %v6919_v49 = vld [vmem:[#allocation9 + $0xa6c] sm:$0xf0]  ;;  %v4957_v47 = vld [vmem:[#allocation9 + $0x370] sm:$0xf0] }
 0x227   :  { %v6107_v50 = vld [vmem:[#allocation9 + $0xc50] sm:$0xf]  ;;  %v5852_v0 = vor.u32 %v6919_v49, %v5851_v16  ;;  %3990 = vmatpush.bf16.msrb.mxu0 %v5596_v63  ;;  %v6755_v48 = vld [vmem:[#allocation9 + $0x554] sm:$0xf] }
 0x228   :  { %v6983_v51 = vld [vmem:[#allocation9 + $0xc6c] sm:$0xf0]  ;;  %v5213_v16 = vld [vmem:[#allocation9 + $0x570] sm:$0xf0] }
 0x229   :  { %v6363_v52 = vld [vmem:[#allocation9 + $0xe50] sm:$0xf]  ;;  %v6108_v5 = vor.u32 %v6983_v51, %v6107_v50  ;;  %4003 = vmatpush.bf16.msrb.mxu1 %v5852_v0  ;;  %v6819_v49 = vld [vmem:[#allocation9 + $0x754] sm:$0xf]  ;;  %v4704_v51 = vor.u32 %v6627_v41, %v4701_v42  ;;  %v5216_v63 = vor.u32 %v6755_v48, %v5213_v16 }
 0x22a   :  { %v7047_v54 = vld [vmem:[#allocation9 + $0xe6c] sm:$0xf0]  ;;  %v5469_v50 = vld [vmem:[#allocation9 + $0x770] sm:$0xf0] }
 0x22b   :  { %v5563_v58 = vld [vmem:[#allocation9 + $0x810] sm:$0xf]  ;;  %v6364_v28 = vor.u32 %v7047_v54, %v6363_v52  ;;  %4016 = vmatpush.bf16.msrb.mxu2 %v6108_v5  ;;  %v4960_v52 = vor.u32 %v6691_v45, %v4957_v47  ;;  %v6619_v54 = vld [vmem:[#allocation9 + $0x114] sm:$0xf]  ;;  %v5472_v0 = vor.u32 %v6819_v49, %v5469_v50 }
 0x22c   :  { %v6847_v1 = vld [vmem:[#allocation9 + $0x82c] sm:$0xf0]  ;;  %v5181_v5 = vld [vmem:[#allocation9 + $0x530] sm:$0xf0] }
 0x22d   :  { %v5819_v2 = vld [vmem:[#allocation9 + $0xa10] sm:$0xf]  ;;  %v5564_v19 = vor.u32 %v6847_v1, %v5563_v58  ;;  %4029 = vmatpush.bf16.msrb.mxu3 %v6364_v28  ;;  %v4669_v58 = vld [vmem:[#allocation9 + $0x130] sm:$0xf0] }
 0x22e   :  { %v6911_v4 = vld [vmem:[#allocation9 + $0xa2c] sm:$0xf0]  ;;  %v6683_v1 = vld [vmem:[#allocation9 + $0x314] sm:$0xf]  ;;  %v4672_v10 = vor.u32 %v6619_v54, %v4669_v58 }
 0x22f   :  { %v6075_v7 = vld [vmem:[#allocation9 + $0xc10] sm:$0xf]  ;;  %v5820_v20 = vor.u32 %v6911_v4, %v5819_v2  ;;  %3991 = vmatpush.bf16.msrb.mxu0 %v5564_v19  ;;  %v4925_v2 = vld [vmem:[#allocation9 + $0x330] sm:$0xf0] }
 0x230   :  { %v6975_v8 = vld [vmem:[#allocation9 + $0xc2c] sm:$0xf0]  ;;  %v6747_v4 = vld [vmem:[#allocation9 + $0x514] sm:$0xf] }
 0x231   :  { %v6331_v9 = vld [vmem:[#allocation9 + $0xe10] sm:$0xf]  ;;  %v6076_v24 = vor.u32 %v6975_v8, %v6075_v7  ;;  %4004 = vmatpush.bf16.msrb.mxu1 %v5820_v20  ;;  %v6811_v28 = vld [vmem:[#allocation9 + $0x714] sm:$0xf]  ;;  %v3785_v8 = vpop.f32.mrf.mxu0  ;;  %v5184_v15 = vor.u32 %v6747_v4, %v5181_v5 }
 0x232   :  { %v7039_v11 = vld [vmem:[#allocation9 + $0xe2c] sm:$0xf0]  ;;  %3992 = vmatmul.bf16.vlgmr.msrb.gmra.mxu0 %v7402_v53  ;;  %v5437_v7 = vld [vmem:[#allocation9 + $0x730] sm:$0xf0]  ;;  %v3786_v3 = vadd.f32 %v3785_v8, %v7461_v46 }
 0x233   :  { %v6332_v25 = vor.u32 %v7039_v11, %v6331_v9  ;;  %4017 = vmatpush.bf16.msrb.mxu2 %v6076_v24  ;;  %4036 = vmatpush.bf16.msra.mxu0 %v4768_v29  ;;  %v3798_v9 = vpop.f32.mrf.mxu1  ;;  %v4928_v11 = vor.u32 %v6683_v1, %v4925_v2  ;;  %v4637_v14 = vld [vmem:[#allocation9 + $0xf0] sm:$0xf0]  ;;  %v5440_v17 = vor.u32 %v6811_v28, %v5437_v7 }
 0x234   :  { %4005 = vmatmul.bf16.vlgmr.msrb.gmra.mxu1 %v7404_v27  ;;  %v6675_v18 = vld [vmem:[#allocation9 + $0x2d4] sm:$0xf]  ;;  %v3799_v21 = vadd.f32 %v3798_v9, %v3786_v3 }
 0x235   :  { %4030 = vmatpush.bf16.msrb.mxu3 %v6332_v25  ;;  %4049 = vmatpush.bf16.msra.mxu1 %v5024_v30  ;;  %v4893_v19 = vld [vmem:[#allocation9 + $0x2f0] sm:$0xf0]  ;;  %v4640_v25 = vor.u32 %v6611_v12, %v4637_v14  ;;  %v3813_v12 = vpop.f32.mrf.mxu2  ;;  %v3826_v14 = vpop.f32.mrf.mxu3 }
 0x236   :  { %4018 = vmatmul.bf16.vlgmr.msrb.gmra.mxu2 %v7406_v59  ;;  %v6739_v20 = vld [vmem:[#allocation9 + $0x4d4] sm:$0xf]  ;;  %v4896_v29 = vor.u32 %v6675_v18, %v4893_v19  ;;  %v4387_v19 = vperm.slane %v7448_v6, 4 }
 0x237   :  { %4062 = vmatpush.bf16.msra.mxu2 %v5280_v26  ;;  %4037 = vmatpush.bf16.msra.mxu0 %v4736_v39  ;;  %v5149_v22 = vld [vmem:[#allocation9 + $0x4f0] sm:$0xf0]  ;;  %v3812_v39 = vadd.f32 %v3811_v35, %v3799_v21 }
 0x238   :  { %4031 = vmatmul.bf16.vlgmr.msrb.gmra.mxu3 %v7408_v60  ;;  %v6803_v23 = vld [vmem:[#allocation9 + $0x6d4] sm:$0xf]  ;;  %v5152_v31 = vor.u32 %v6739_v20, %v5149_v22 }
 0x239   :  { %4075 = vmatpush.bf16.msra.mxu3 %v5536_v33  ;;  %4050 = vmatpush.bf16.msra.mxu1 %v4992_v40  ;;  %v5405_v24 = vld [vmem:[#allocation9 + $0x6f0] sm:$0xf0]  ;;  %v3787_v40 = vpop.f32.mrf.mxu0  ;;  %v3825_v47 = vadd.f32 %v3824_v36, %v3812_v39 }
 0x23a   :  { %v6603_v46 = vld [vmem:[#allocation9 + $0x94] sm:$0xf]  ;;  %v5408_v32 = vor.u32 %v6803_v23, %v5405_v24 }
 0x23b   :  { %4063 = vmatpush.bf16.msra.mxu2 %v5248_v43  ;;  %4038 = vmatpush.bf16.msra.mxu0 %v4704_v51  ;;  %v4605_v30 = vld [vmem:[#allocation9 + $0xb0] sm:$0xf0]  ;;  %v3800_v41 = vpop.f32.mrf.mxu1 }
 0x23c   :  { %v6667_v26 = vld [vmem:[#allocation9 + $0x294] sm:$0xf]  ;;  %v4608_v42 = vor.u32 %v6603_v46, %v4605_v30  ;;  %v4403_v41 = vperm.slane %v4387_v19, 0 }
 0x23d   :  { %4076 = vmatpush.bf16.msra.mxu3 %v5504_v44  ;;  %4051 = vmatpush.bf16.msra.mxu1 %v4960_v52  ;;  %v4861_v33 = vld [vmem:[#allocation9 + $0x2b0] sm:$0xf0] }
 0x23e   :  { %v6731_v34 = vld [vmem:[#allocation9 + $0x494] sm:$0xf]  ;;  %v4864_v43 = vor.u32 %v6667_v26, %v4861_v33 }
 0x23f   :  { %4064 = vmatpush.bf16.msra.mxu2 %v5216_v63  ;;  %4039 = vmatpush.bf16.msra.mxu0 %v4672_v10  ;;  %v5117_v37 = vld [vmem:[#allocation9 + $0x4b0] sm:$0xf0]  ;;  %v4350_v63 = vmul.f32 0.5, %v3825_v47 }
 0x240   :  { %v6795_v13 = vld [vmem:[#allocation9 + $0x694] sm:$0xf]  ;;  %v5120_v48 = vor.u32 %v6731_v34, %v5117_v37 }
 0x241   :  { %4077 = vmatpush.bf16.msra.mxu3 %v5472_v0  ;;  %4052 = vmatpush.bf16.msra.mxu1 %v4928_v11  ;;  %v5373_v38 = vld [vmem:[#allocation9 + $0x6b0] sm:$0xf0]  ;;  %7114 = vtanh.f32 %v4350_v63 }
 0x242   :  { %v6595_v44 = vld [vmem:[#allocation9 + $0x54] sm:$0xf]  ;;  %v5376_v16 = vor.u32 %v6795_v13, %v5373_v38 }
 0x243   :  { %4065 = vmatpush.bf16.msra.mxu2 %v5184_v15  ;;  %4040 = vmatpush.bf16.msra.mxu0 %v4640_v25  ;;  %v4573_v45 = vld [vmem:[#allocation9 + $0x70] sm:$0xf0] }
 0x244   :  { %v6659_v49 = vld [vmem:[#allocation9 + $0x254] sm:$0xf]  ;;  %v4576_v2 = vor.u32 %v6595_v44, %v4573_v45 }
 0x245   :  { %4078 = vmatpush.bf16.msra.mxu3 %v5440_v17  ;;  %4053 = vmatpush.bf16.msra.mxu1 %v4896_v29  ;;  %v4829_v50 = vld [vmem:[#allocation9 + $0x270] sm:$0xf0] }
 0x246   :  { %v6723_v51 = vld [vmem:[#allocation9 + $0x454] sm:$0xf]  ;;  %v4832_v4 = vor.u32 %v6659_v49, %v4829_v50 }
 0x247   :  { %4066 = vmatpush.bf16.msra.mxu2 %v5152_v31  ;;  %v5085_v52 = vld [vmem:[#allocation9 + $0x470] sm:$0xf0]  ;;  %4041 = vmatpush.bf16.msra.mxu0 %v4608_v42  ;;  %v7115_v35 = vpop.eup %7114 }
 0x248   :  { %v6787_v54 = vld [vmem:[#allocation9 + $0x654] sm:$0xf]  ;;  %v5088_v8 = vor.u32 %v6723_v51, %v5085_v52  ;;  %v4366_v40 = vmul.f32 0.5, %v7115_v35 }
 0x249   :  { %4079 = vmatpush.bf16.msra.mxu3 %v5408_v32  ;;  %v5341_v58 = vld [vmem:[#allocation9 + $0x670] sm:$0xf0]  ;;  %4054 = vmatpush.bf16.msra.mxu1 %v4864_v43 }
 0x24a   :  { %v6587_v0 = vld [vmem:[#allocation9 + $0x14] sm:$0xf]  ;;  %v5344_v9 = vor.u32 %v6787_v54, %v5341_v58  ;;  %v4374_v44 = vadd.f32 0.5, %v4366_v40 }
 0x24b   :  { %v4541_v1 = vld [vmem:[#allocation9 + $0x30] sm:$0xf0]  ;;  %4067 = vmatpush.bf16.msra.mxu2 %v5120_v48  ;;  %4042 = vmatpush.bf16.msra.mxu0 %v4576_v2 }
 0x24c   :  { %v6651_v5 = vld [vmem:[#allocation9 + $0x214] sm:$0xf]  ;;  %v4544_v22 = vor.u32 %v6587_v0, %v4541_v1  ;;  %v4411_v58 = vmul.f32 %v4403_v41, %v4374_v44  ;;  %v3863_v44 = vpop.f32.mrf.mxu2 }
 0x24d   :  { %v4797_v28 = vld [vmem:[#allocation9 + $0x230] sm:$0xf0]  ;;  %4080 = vmatpush.bf16.msra.mxu3 %v5376_v16  ;;  %4055 = vmatpush.bf16.msra.mxu1 %v4832_v4 }
 0x24e   :  { %v6715_v7 = vld [vmem:[#allocation9 + $0x414] sm:$0xf]  ;;  %v4800_v23 = vor.u32 %v6651_v5, %v4797_v28  ;;  %v4420_v2 = vsel %vm343_vm1, %v4411_v58, 0.0  ;;  %v7474_v28 = vld [vmem:[#allocation11] sm:$0xff] }
 0x24f   :  { %v5053_v3 = vld [vmem:[#allocation9 + $0x430] sm:$0xf0]  ;;  %4068 = vmatpush.bf16.msra.mxu2 %v5088_v8  ;;  %4043 = vmatpush.bf16.msra.mxu0 %v4544_v22 }
 0x250   :  { %v6779_v10 = vld [vmem:[#allocation9 + $0x614] sm:$0xf]  ;;  %v5056_v46 = vor.u32 %v6715_v7, %v5053_v3  ;;  %v943_v7 = vperm.slane %v7474_v28, 3  ;;  %v7478_v3 = vadd.f32 %v4420_v2, %v7459_v57 }
 0x251   :  { %v5309_v11 = vld [vmem:[#allocation9 + $0x630] sm:$0xf0]  ;;  %4081 = vmatpush.bf16.msra.mxu3 %v5344_v9  ;;  %4056 = vmatpush.bf16.msra.mxu1 %v4800_v23 }
 0x252   :  { %v6899_v15 = vld [vmem:[#allocation9 + $0x9d4] sm:$0xf]  ;;  %v5312_v30 = vor.u32 %v6779_v10, %v5309_v11  ;;  %4044 = vmatmul.bf16.vlgmr.msra.gmra.mxu0 %v7390_v55 }
 0x253   :  { %v5789_v17 = vld [vmem:[#allocation9 + $0x9f0] sm:$0xf0]  ;;  %4069 = vmatpush.bf16.msra.mxu2 %v5056_v46 }
 0x254   :  { %v6963_v18 = vld [vmem:[#allocation9 + $0xbd4] sm:$0xf]  ;;  %v5792_v31 = vor.u32 %v6899_v15, %v5789_v17  ;;  %4057 = vmatmul.bf16.vlgmr.msra.gmra.mxu1 %v7392_v56 }
 0x255   :  { %v6045_v20 = vld [vmem:[#allocation9 + $0xbf0] sm:$0xf0]  ;;  %4082 = vmatpush.bf16.msra.mxu3 %v5312_v30 }
 0x256   :  { %v7027_v21 = vld [vmem:[#allocation9 + $0xdd4] sm:$0xf]  ;;  %v6048_v32 = vor.u32 %v6963_v18, %v6045_v20  ;;  %4088 = vmatpush.bf16.msrb.mxu0 %v5792_v31  ;;  %4070 = vmatmul.bf16.vlgmr.msra.gmra.mxu2 %v7394_v61  ;;  %v3837_v20 = vpop.f32.mrf.mxu0 }
 0x257   :  { %v6301_v24 = vld [vmem:[#allocation9 + $0xdf0] sm:$0xf0]  ;;  %v3838_v22 = vadd.f32 %v3837_v20, %v943_v7 }
 0x258   :  { %v7091_v25 = vld [vmem:[#allocation9 + $0xfd4] sm:$0xf]  ;;  %v6304_v36 = vor.u32 %v7027_v21, %v6301_v24  ;;  %4101 = vmatpush.bf16.msrb.mxu1 %v6048_v32  ;;  %4083 = vmatmul.bf16.vlgmr.msra.gmra.mxu3 %v7396_v62  ;;  %v3850_v21 = vpop.f32.mrf.mxu1 }
 0x259   :  { %v6557_v29 = vld [vmem:[#allocation9 + $0xff0] sm:$0xf0] }
 0x25a   :  { %v6891_v26 = vld [vmem:[#allocation9 + $0x994] sm:$0xf]  ;;  %v6560_v37 = vor.u32 %v7091_v25, %v6557_v29  ;;  %4114 = vmatpush.bf16.msrb.mxu2 %v6304_v36 }
 0x25b   :  { %v5757_v33 = vld [vmem:[#allocation9 + $0x9b0] sm:$0xf0] }
 0x25c   :  { %v6955_v34 = vld [vmem:[#allocation9 + $0xb94] sm:$0xf]  ;;  %v5760_v45 = vor.u32 %v6891_v26, %v5757_v33  ;;  %4127 = vmatpush.bf16.msrb.mxu3 %v6560_v37  ;;  %v3851_v26 = vadd.f32 %v3850_v21, %v3838_v22 }
 0x25d   :  { %v6013_v13 = vld [vmem:[#allocation9 + $0xbb0] sm:$0xf0] }
 0x25e   :  { %v7019_v38 = vld [vmem:[#allocation9 + $0xd94] sm:$0xf]  ;;  %v6016_v47 = vor.u32 %v6955_v34, %v6013_v13  ;;  %4089 = vmatpush.bf16.msrb.mxu0 %v5760_v45  ;;  %v3876_v45 = vpop.f32.mrf.mxu3 }
 0x25f   :  { %v6269_v39 = vld [vmem:[#allocation9 + $0xdb0] sm:$0xf0] }
 0x260   :  { %v7083_v42 = vld [vmem:[#allocation9 + $0xf94] sm:$0xf]  ;;  %v6272_v49 = vor.u32 %v7019_v38, %v6269_v39  ;;  %4102 = vmatpush.bf16.msrb.mxu1 %v6016_v47 }
 0x261   :  { %v6525_v43 = vld [vmem:[#allocation9 + $0xfb0] sm:$0xf0] }
 0x262   :  { %v6883_v48 = vld [vmem:[#allocation9 + $0x954] sm:$0xf]  ;;  %v6528_v50 = vor.u32 %v7083_v42, %v6525_v43  ;;  %4115 = vmatpush.bf16.msrb.mxu2 %v6272_v49  ;;  %v3864_v49 = vadd.f32 %v3863_v44, %v3851_v26  ;;  %v4995_v44 = vld [vmem:[#allocation9 + $0x398] sm:$0xf] }
 0x263   :  { %v5725_v16 = vld [vmem:[#allocation9 + $0x970] sm:$0xf0] }
 0x264   :  { %v6947_v51 = vld [vmem:[#allocation9 + $0xb54] sm:$0xf]  ;;  %v5728_v4 = vor.u32 %v6883_v48, %v5725_v16  ;;  %4128 = vmatpush.bf16.msrb.mxu3 %v6528_v50  ;;  %v3839_v50 = vpop.f32.mrf.mxu0 }
 0x265   :  { %v5981_v52 = vld [vmem:[#allocation9 + $0xb70] sm:$0xf0] }
 0x266   :  { %v7011_v54 = vld [vmem:[#allocation9 + $0xd54] sm:$0xf]  ;;  %v5984_v5 = vor.u32 %v6947_v51, %v5981_v52  ;;  %4090 = vmatpush.bf16.msrb.mxu0 %v5728_v4  ;;  %v3852_v51 = vpop.f32.mrf.mxu1 }
 0x267   :  { %v6237_v63 = vld [vmem:[#allocation9 + $0xd70] sm:$0xf0] }
 0x268   :  { %v7075_v0 = vld [vmem:[#allocation9 + $0xf54] sm:$0xf]  ;;  %v6240_v10 = vor.u32 %v7011_v54, %v6237_v63  ;;  %4103 = vmatpush.bf16.msrb.mxu1 %v5984_v5 }
 0x269   :  { %v6493_v1 = vld [vmem:[#allocation9 + $0xf70] sm:$0xf0] }
 0x26a   :  { %v6875_v8 = vld [vmem:[#allocation9 + $0x914] sm:$0xf]  ;;  %v6496_v11 = vor.u32 %v7075_v0, %v6493_v1  ;;  %4116 = vmatpush.bf16.msrb.mxu2 %v6240_v10  ;;  %v7480_v0 = vadd.f32 %v3876_v45, %v3864_v49  ;;  %v6704_v45 = vld [vmem:[#allocation9 + $0x3b4] sm:$0xf0] }
 0x26b   :  { %v5693_v9 = vld [vmem:[#allocation9 + $0x930] sm:$0xf0]  ;;  %v6832_v49 = vld [vmem:[#allocation9 + $0x7b4] sm:$0xf0]  ;;  %v4996_v51 = vor.u32 %v6704_v45, %v4995_v44 }
 0x26c   :  { %v6939_v12 = vld [vmem:[#allocation9 + $0xb14] sm:$0xf]  ;;  %v5696_v23 = vor.u32 %v6875_v8, %v5693_v9  ;;  %4129 = vmatpush.bf16.msrb.mxu3 %v6496_v11  ;;  %v6672_v44 = vld [vmem:[#allocation9 + $0x2b4] sm:$0xf0] }
 0x26d   :  { %v5949_v14 = vld [vmem:[#allocation9 + $0xb30] sm:$0xf0]  ;;  %v5123_v45 = vld [vmem:[#allocation9 + $0x498] sm:$0xf] }
 0x26e   :  { %v7003_v15 = vld [vmem:[#allocation9 + $0xd14] sm:$0xf]  ;;  %v5952_v24 = vor.u32 %v6939_v12, %v5949_v14  ;;  %4091 = vmatpush.bf16.msrb.mxu0 %v5696_v23 }
 0x26f   :  { %v6205_v17 = vld [vmem:[#allocation9 + $0xd30] sm:$0xf0] }
 0x270   :  { %v7067_v18 = vld [vmem:[#allocation9 + $0xf14] sm:$0xf]  ;;  %v6208_v29 = vor.u32 %v7003_v15, %v6205_v17  ;;  %4104 = vmatpush.bf16.msrb.mxu1 %v5952_v24  ;;  %v3865_v24 = vpop.f32.mrf.mxu2 }
 0x271   :  { %v6461_v19 = vld [vmem:[#allocation9 + $0xf30] sm:$0xf0]  ;;  %v3902_v24 = vpop.f32.mrf.mxu1 }
 0x272   :  { %v6867_v25 = vld [vmem:[#allocation9 + $0x8d4] sm:$0xf]  ;;  %v6464_v46 = vor.u32 %v7067_v18, %v6461_v19  ;;  %4117 = vmatpush.bf16.msrb.mxu2 %v6208_v29  ;;  %v4771_v29 = vld [vmem:[#allocation9 + $0x1d8] sm:$0xf] }
 0x273   :  { %v5661_v57 = vld [vmem:[#allocation9 + $0x8f0] sm:$0xf0] }
 0x274   :  { %v6931_v30 = vld [vmem:[#allocation9 + $0xad4] sm:$0xf]  ;;  %v5664_v36 = vor.u32 %v6867_v25, %v5661_v57  ;;  %4130 = vmatpush.bf16.msrb.mxu3 %v6464_v46  ;;  %v3878_v25 = vpop.f32.mrf.mxu3  ;;  %v6648_v46 = vld [vmem:[#allocation9 + $0x1f4] sm:$0xf0] }
 0x275   :  { %v5917_v31 = vld [vmem:[#allocation9 + $0xaf0] sm:$0xf0] }
 0x276   :  { %v6995_v32 = vld [vmem:[#allocation9 + $0xcd4] sm:$0xf]  ;;  %v5920_v37 = vor.u32 %v6931_v30, %v5917_v31  ;;  %4092 = vmatpush.bf16.msrb.mxu0 %v5664_v36  ;;  %v5027_v30 = vld [vmem:[#allocation9 + $0x3d8] sm:$0xf] }
 0x277   :  { %v6173_v33 = vld [vmem:[#allocation9 + $0xcf0] sm:$0xf0]  ;;  %v6712_v31 = vld [vmem:[#allocation9 + $0x3f4] sm:$0xf0] }
 0x278   :  { %v7059_v34 = vld [vmem:[#allocation9 + $0xed4] sm:$0xf]  ;;  %v6176_v39 = vor.u32 %v6995_v32, %v6173_v33  ;;  %4105 = vmatpush.bf16.msrb.mxu1 %v5920_v37  ;;  %v5283_v32 = vld [vmem:[#allocation9 + $0x5d8] sm:$0xf] }
 0x279   :  { %v6429_v35 = vld [vmem:[#allocation9 + $0xef0] sm:$0xf0]  ;;  %v6840_v36 = vld [vmem:[#allocation9 + $0x7f4] sm:$0xf0] }
 0x27a   :  { %v6859_v13 = vld [vmem:[#allocation9 + $0x894] sm:$0xf]  ;;  %v6432_v40 = vor.u32 %v7059_v34, %v6429_v35  ;;  %4118 = vmatpush.bf16.msrb.mxu2 %v6176_v39  ;;  %v6776_v34 = vld [vmem:[#allocation9 + $0x5f4] sm:$0xf0]  ;;  %v5028_v39 = vor.u32 %v6712_v31, %v5027_v30 }
 0x27b   :  { %v5629_v38 = vld [vmem:[#allocation9 + $0x8b0] sm:$0xf0]  ;;  %v5539_v35 = vld [vmem:[#allocation9 + $0x7d8] sm:$0xf] }
 0x27c   :  { %v6923_v41 = vld [vmem:[#allocation9 + $0xa94] sm:$0xf]  ;;  %v5632_v52 = vor.u32 %v6859_v13, %v5629_v38  ;;  %4131 = vmatpush.bf16.msrb.mxu3 %v6432_v40  ;;  %v4772_v38 = vor.u32 %v6648_v46, %v4771_v29  ;;  %v4739_v40 = vld [vmem:[#allocation9 + $0x198] sm:$0xf] }
 0x27d   :  { %v5885_v42 = vld [vmem:[#allocation9 + $0xab0] sm:$0xf0]  ;;  %v4643_v46 = vld [vmem:[#allocation9 + $0xd8] sm:$0xf] }
 0x27e   :  { %v6987_v43 = vld [vmem:[#allocation9 + $0xc94] sm:$0xf]  ;;  %v5888_v54 = vor.u32 %v6923_v41, %v5885_v42  ;;  %4093 = vmatpush.bf16.msrb.mxu0 %v5632_v52  ;;  %v6640_v41 = vld [vmem:[#allocation9 + $0x1b4] sm:$0xf0]  ;;  %v5284_v42 = vor.u32 %v6776_v34, %v5283_v32 }
 0x27f   :  { %v6141_v47 = vld [vmem:[#allocation9 + $0xcb0] sm:$0xf0]  ;;  %v4740_v50 = vor.u32 %v6640_v41, %v4739_v40  ;;  %v4707_v52 = vld [vmem:[#allocation9 + $0x158] sm:$0xf] }
 0x280   :  { %v7051_v48 = vld [vmem:[#allocation9 + $0xe94] sm:$0xf]  ;;  %v6144_v1 = vor.u32 %v6987_v43, %v6141_v47  ;;  %4106 = vmatpush.bf16.msrb.mxu1 %v5888_v54  ;;  %v5540_v43 = vor.u32 %v6840_v36, %v5539_v35  ;;  %v5251_v47 = vld [vmem:[#allocation9 + $0x598] sm:$0xf] }
 0x281   :  { %v6397_v16 = vld [vmem:[#allocation9 + $0xeb0] sm:$0xf0]  ;;  %v6632_v54 = vld [vmem:[#allocation9 + $0x174] sm:$0xf0] }
 0x282   :  { %v6851_v58 = vld [vmem:[#allocation9 + $0x854] sm:$0xf]  ;;  %v6400_v2 = vor.u32 %v7051_v48, %v6397_v16  ;;  %4119 = vmatpush.bf16.msrb.mxu2 %v6144_v1  ;;  %v6768_v48 = vld [vmem:[#allocation9 + $0x5b4] sm:$0xf0] }
 0x283   :  { %v5597_v63 = vld [vmem:[#allocation9 + $0x870] sm:$0xf0]  ;;  %v5507_v16 = vld [vmem:[#allocation9 + $0x798] sm:$0xf] }
 0x284   :  { %v6915_v4 = vld [vmem:[#allocation9 + $0xa54] sm:$0xf]  ;;  %v5600_v12 = vor.u32 %v6851_v58, %v5597_v63  ;;  %4132 = vmatpush.bf16.msrb.mxu3 %v6400_v2  ;;  %v5252_v58 = vor.u32 %v6768_v48, %v5251_v47  ;;  %v5508_v63 = vor.u32 %v6832_v49, %v5507_v16  ;;  %v4963_v1 = vld [vmem:[#allocation9 + $0x358] sm:$0xf]  ;;  %v3915_v47 = vpop.f32.mrf.mxu2  ;;  %v3928_v48 = vpop.f32.mrf.mxu3 }
 0x285   :  { %v5853_v5 = vld [vmem:[#allocation9 + $0xa70] sm:$0xf0]  ;;  %v6696_v2 = vld [vmem:[#allocation9 + $0x374] sm:$0xf0] }
 0x286   :  { %v6979_v7 = vld [vmem:[#allocation9 + $0xc54] sm:$0xf]  ;;  %v5856_v14 = vor.u32 %v6915_v4, %v5853_v5  ;;  %4094 = vmatpush.bf16.msrb.mxu0 %v5600_v12  ;;  %v5219_v4 = vld [vmem:[#allocation9 + $0x558] sm:$0xf] }
 0x287   :  { %v6109_v8 = vld [vmem:[#allocation9 + $0xc70] sm:$0xf0]  ;;  %v6760_v5 = vld [vmem:[#allocation9 + $0x574] sm:$0xf0] }
 0x288   :  { %v7043_v9 = vld [vmem:[#allocation9 + $0xe54] sm:$0xf]  ;;  %v6112_v19 = vor.u32 %v6979_v7, %v6109_v8  ;;  %4107 = vmatpush.bf16.msrb.mxu1 %v5856_v14  ;;  %v5475_v7 = vld [vmem:[#allocation9 + $0x758] sm:$0xf]  ;;  %v5220_v14 = vor.u32 %v6760_v5, %v5219_v4 }
 0x289   :  { %v6365_v10 = vld [vmem:[#allocation9 + $0xe70] sm:$0xf0]  ;;  %v6824_v8 = vld [vmem:[#allocation9 + $0x774] sm:$0xf0] }
 0x28a   :  { %v6843_v11 = vld [vmem:[#allocation9 + $0x814] sm:$0xf]  ;;  %v6368_v20 = vor.u32 %v7043_v9, %v6365_v10  ;;  %4120 = vmatpush.bf16.msrb.mxu2 %v6112_v19  ;;  %v4708_v9 = vor.u32 %v6632_v54, %v4707_v52  ;;  %v4964_v10 = vor.u32 %v6696_v2, %v4963_v1  ;;  %v6624_v12 = vld [vmem:[#allocation9 + $0x134] sm:$0xf0]  ;;  %v3904_v54 = vpop.f32.mrf.mxu1 }
 0x28b   :  { %v5565_v15 = vld [vmem:[#allocation9 + $0x830] sm:$0xf0]  ;;  %v5187_v19 = vld [vmem:[#allocation9 + $0x518] sm:$0xf] }
 0x28c   :  { %v6907_v17 = vld [vmem:[#allocation9 + $0xa14] sm:$0xf]  ;;  %v5568_v26 = vor.u32 %v6843_v11, %v5565_v15  ;;  %4133 = vmatpush.bf16.msrb.mxu3 %v6368_v20  ;;  %v4675_v11 = vld [vmem:[#allocation9 + $0x118] sm:$0xf]  ;;  %v5476_v15 = vor.u32 %v6824_v8, %v5475_v7 }
 0x28d   :  { %v5821_v18 = vld [vmem:[#allocation9 + $0xa30] sm:$0xf0]  ;;  %v6752_v20 = vld [vmem:[#allocation9 + $0x534] sm:$0xf0] }
 0x28e   :  { %v6971_v21 = vld [vmem:[#allocation9 + $0xc14] sm:$0xf]  ;;  %v5824_v33 = vor.u32 %v6907_v17, %v5821_v18  ;;  %4095 = vmatpush.bf16.msrb.mxu0 %v5568_v26  ;;  %v4931_v17 = vld [vmem:[#allocation9 + $0x318] sm:$0xf]  ;;  %v5188_v31 = vor.u32 %v6752_v20, %v5187_v19 }
 0x28f   :  { %v6077_v22 = vld [vmem:[#allocation9 + $0xc30] sm:$0xf0]  ;;  %v6688_v18 = vld [vmem:[#allocation9 + $0x334] sm:$0xf0] }
 0x290   :  { %v7035_v23 = vld [vmem:[#allocation9 + $0xe14] sm:$0xf]  ;;  %v6080_v37 = vor.u32 %v6971_v21, %v6077_v22  ;;  %4108 = vmatpush.bf16.msrb.mxu1 %v5824_v33  ;;  %v5443_v21 = vld [vmem:[#allocation9 + $0x718] sm:$0xf]  ;;  %v4932_v29 = vor.u32 %v6688_v18, %v4931_v17 }
 0x291   :  { %v6333_v57 = vld [vmem:[#allocation9 + $0xe30] sm:$0xf0]  ;;  %4096 = vmatmul.bf16.vlgmr.msrb.gmra.mxu0 %v7402_v53  ;;  %v6816_v22 = vld [vmem:[#allocation9 + $0x734] sm:$0xf0] }
 0x292   :  { %v6336_v13 = vor.u32 %v7035_v23, %v6333_v57  ;;  %4121 = vmatpush.bf16.msrb.mxu2 %v6080_v37  ;;  %4140 = vmatpush.bf16.msra.mxu0 %v4772_v38  ;;  %v3889_v23 = vpop.f32.mrf.mxu0  ;;  %v4676_v57 = vor.u32 %v6624_v12, %v4675_v11  ;;  %v6616_v30 = vld [vmem:[#allocation9 + $0xf4] sm:$0xf0]  ;;  %v5444_v32 = vor.u32 %v6816_v22, %v5443_v21 }
 0x293   :  { %4109 = vmatmul.bf16.vlgmr.msrb.gmra.mxu1 %v7404_v27  ;;  %v3890_v25 = vadd.f32 %v3889_v23, %v7480_v0  ;;  %v4899_v26 = vld [vmem:[#allocation9 + $0x2d8] sm:$0xf]  ;;  %v4644_v38 = vor.u32 %v6616_v30, %v4643_v46  ;;  %v3917_v30 = vpop.f32.mrf.mxu2 }
 0x294   :  { %4134 = vmatpush.bf16.msrb.mxu3 %v6336_v13  ;;  %4153 = vmatpush.bf16.msra.mxu1 %v5028_v39  ;;  %v6680_v33 = vld [vmem:[#allocation9 + $0x2f4] sm:$0xf0] }
 0x295   :  { %4122 = vmatmul.bf16.vlgmr.msrb.gmra.mxu2 %v7406_v59  ;;  %v5155_v34 = vld [vmem:[#allocation9 + $0x4d8] sm:$0xf]  ;;  %v3903_v35 = vadd.f32 %v3902_v24, %v3890_v25  ;;  %v4900_v39 = vor.u32 %v6680_v33, %v4899_v26 }
 0x296   :  { %4166 = vmatpush.bf16.msra.mxu2 %v5284_v42  ;;  %4141 = vmatpush.bf16.msra.mxu0 %v4740_v50  ;;  %v6744_v36 = vld [vmem:[#allocation9 + $0x4f4] sm:$0xf0] }
 0x297   :  { %4135 = vmatmul.bf16.vlgmr.msrb.gmra.mxu3 %v7408_v60  ;;  %v5411_v37 = vld [vmem:[#allocation9 + $0x6d8] sm:$0xf]  ;;  %v5156_v41 = vor.u32 %v6744_v36, %v5155_v34  ;;  %v4388_v34 = vperm.slane %v7448_v6, 6 }
 0x298   :  { %4179 = vmatpush.bf16.msra.mxu3 %v5540_v43  ;;  %4154 = vmatpush.bf16.msra.mxu1 %v4996_v51  ;;  %v6808_v13 = vld [vmem:[#allocation9 + $0x6f4] sm:$0xf0]  ;;  %v3916_v51 = vadd.f32 %v3915_v47, %v3903_v35 }
 0x299   :  { %v4611_v0 = vld [vmem:[#allocation9 + $0x98] sm:$0xf]  ;;  %v5412_v42 = vor.u32 %v6808_v13, %v5411_v37  ;;  %v4404_v54 = vperm.slane %v4388_v34, 0 }
 0x29a   :  { %4167 = vmatpush.bf16.msra.mxu2 %v5252_v58  ;;  %4142 = vmatpush.bf16.msra.mxu0 %v4708_v9  ;;  %v6608_v40 = vld [vmem:[#allocation9 + $0xb4] sm:$0xf0]  ;;  %v3891_v52 = vpop.f32.mrf.mxu0  ;;  %v3929_v4 = vadd.f32 %v3928_v48, %v3916_v51 }
 0x29b   :  { %v4867_v43 = vld [vmem:[#allocation9 + $0x298] sm:$0xf]  ;;  %v4612_v58 = vor.u32 %v6608_v40, %v4611_v0 }
 0x29c   :  { %4180 = vmatpush.bf16.msra.mxu3 %v5508_v63  ;;  %4155 = vmatpush.bf16.msra.mxu1 %v4964_v10  ;;  %v6736_v16 = vld [vmem:[#allocation9 + $0x4b4] sm:$0xf0]  ;;  %v4868_v63 = vor.u32 %v6672_v44, %v4867_v43 }
 0x29d   :  { %v5379_v49 = vld [vmem:[#allocation9 + $0x698] sm:$0xf]  ;;  %v5124_v5 = vor.u32 %v6736_v16, %v5123_v45 }
 0x29e   :  { %4168 = vmatpush.bf16.msra.mxu2 %v5220_v14  ;;  %4143 = vmatpush.bf16.msra.mxu0 %v4676_v57  ;;  %v6800_v50 = vld [vmem:[#allocation9 + $0x6b4] sm:$0xf0] }
 0x29f   :  { %v4579_v1 = vld [vmem:[#allocation9 + $0x58] sm:$0xf]  ;;  %v5380_v7 = vor.u32 %v6800_v50, %v5379_v49 }
 0x2a0   :  { %4181 = vmatpush.bf16.msra.mxu3 %v5476_v15  ;;  %4156 = vmatpush.bf16.msra.mxu1 %v4932_v29  ;;  %v6600_v2 = vld [vmem:[#allocation9 + $0x74] sm:$0xf0]  ;;  %v4351_v15 = vmul.f32 0.5, %v3929_v4 }
 0x2a1   :  { %v4835_v8 = vld [vmem:[#allocation9 + $0x258] sm:$0xf]  ;;  %v4580_v19 = vor.u32 %v6600_v2, %v4579_v1 }
 0x2a2   :  { %4169 = vmatpush.bf16.msra.mxu2 %v5188_v31  ;;  %4144 = vmatpush.bf16.msra.mxu0 %v4644_v38  ;;  %v6664_v9 = vld [vmem:[#allocation9 + $0x274] sm:$0xf0]  ;;  %7116 = vtanh.f32 %v4351_v15  ;;  %v3930_v31 = vpop.f32.mrf.mxu3  ;;  %v3941_v34 = vpop.f32.mrf.mxu0 }
 0x2a3   :  { %v5091_v10 = vld [vmem:[#allocation9 + $0x458] sm:$0xf]  ;;  %v4836_v20 = vor.u32 %v6664_v9, %v4835_v8 }
 0x2a4   :  { %4182 = vmatpush.bf16.msra.mxu3 %v5444_v32  ;;  %4157 = vmatpush.bf16.msra.mxu1 %v4900_v39  ;;  %v6728_v11 = vld [vmem:[#allocation9 + $0x474] sm:$0xf0] }
 0x2a5   :  { %v5347_v12 = vld [vmem:[#allocation9 + $0x658] sm:$0xf]  ;;  %v5092_v24 = vor.u32 %v6728_v11, %v5091_v10 }
 0x2a6   :  { %4170 = vmatpush.bf16.msra.mxu2 %v5156_v41  ;;  %v6792_v14 = vld [vmem:[#allocation9 + $0x674] sm:$0xf0]  ;;  %4145 = vmatpush.bf16.msra.mxu0 %v4612_v58 }
 0x2a7   :  { %v4547_v17 = vld [vmem:[#allocation9 + $0x18] sm:$0xf]  ;;  %v5348_v25 = vor.u32 %v6792_v14, %v5347_v12 }
 0x2a8   :  { %4183 = vmatpush.bf16.msra.mxu3 %v5412_v42  ;;  %v6592_v18 = vld [vmem:[#allocation9 + $0x34] sm:$0xf0]  ;;  %4158 = vmatpush.bf16.msra.mxu1 %v4868_v63  ;;  %v7117_v48 = vpop.eup %7116 }
 0x2a9   :  { %v4803_v21 = vld [vmem:[#allocation9 + $0x218] sm:$0xf]  ;;  %v4548_v37 = vor.u32 %v6592_v18, %v4547_v17  ;;  %v4367_v52 = vmul.f32 0.5, %v7117_v48 }
 0x2aa   :  { %v6656_v22 = vld [vmem:[#allocation9 + $0x234] sm:$0xf0]  ;;  %4171 = vmatpush.bf16.msra.mxu2 %v5124_v5  ;;  %4146 = vmatpush.bf16.msra.mxu0 %v4580_v19 }
 0x2ab   :  { %v5059_v23 = vld [vmem:[#allocation9 + $0x418] sm:$0xf]  ;;  %v4804_v13 = vor.u32 %v6656_v22, %v4803_v21  ;;  %v4375_v1 = vadd.f32 0.5, %v4367_v52  ;;  %v944_v22 = vperm.slane %v7474_v28, 4 }
 0x2ac   :  { %4184 = vmatpush.bf16.msra.mxu3 %v5380_v7  ;;  %v6720_v57 = vld [vmem:[#allocation9 + $0x434] sm:$0xf0]  ;;  %4159 = vmatpush.bf16.msra.mxu1 %v4836_v20 }
 0x2ad   :  { %v5315_v29 = vld [vmem:[#allocation9 + $0x618] sm:$0xf]  ;;  %v5060_v40 = vor.u32 %v6720_v57, %v5059_v23  ;;  %v4412_v14 = vmul.f32 %v4404_v54, %v4375_v1  ;;  %v3942_v28 = vadd.f32 %v3941_v34, %v944_v22 }
 0x2ae   :  { %v6784_v46 = vld [vmem:[#allocation9 + $0x634] sm:$0xf0]  ;;  %4172 = vmatpush.bf16.msra.mxu2 %v5092_v24  ;;  %4147 = vmatpush.bf16.msra.mxu0 %v4548_v37 }
 0x2af   :  { %v5795_v32 = vld [vmem:[#allocation9 + $0x9d8] sm:$0xf]  ;;  %v5316_v41 = vor.u32 %v6784_v46, %v5315_v29  ;;  %v4422_v19 = vsel %vm343_vm1, %v4412_v14, 0.0 }
 0x2b0   :  { %v6904_v26 = vld [vmem:[#allocation9 + $0x9f4] sm:$0xf0]  ;;  %4185 = vmatpush.bf16.msra.mxu3 %v5348_v25  ;;  %4160 = vmatpush.bf16.msra.mxu1 %v4804_v13  ;;  %v7495_v31 = vadd.f32 %v4422_v19, %v7478_v3 }
 0x2b1   :  { %v6051_v33 = vld [vmem:[#allocation9 + $0xbd8] sm:$0xf]  ;;  %v5796_v42 = vor.u32 %v6904_v26, %v5795_v32  ;;  %4148 = vmatmul.bf16.vlgmr.msra.gmra.mxu0 %v7390_v55 }
 0x2b2   :  { %v6968_v35 = vld [vmem:[#allocation9 + $0xbf4] sm:$0xf0]  ;;  %4173 = vmatpush.bf16.msra.mxu2 %v5060_v40 }
 0x2b3   :  { %v6307_v36 = vld [vmem:[#allocation9 + $0xdd8] sm:$0xf]  ;;  %v6052_v43 = vor.u32 %v6968_v35, %v6051_v33  ;;  %4192 = vmatpush.bf16.msrb.mxu0 %v5796_v42  ;;  %4161 = vmatmul.bf16.vlgmr.msra.gmra.mxu1 %v7392_v56  ;;  %v3954_v35 = vpop.f32.mrf.mxu1 }
 0x2b4   :  { %v7032_v38 = vld [vmem:[#allocation9 + $0xdf4] sm:$0xf0]  ;;  %4186 = vmatpush.bf16.msra.mxu3 %v5316_v41  ;;  %v3955_v42 = vadd.f32 %v3954_v35, %v3942_v28 }
 0x2b5   :  { %v6563_v39 = vld [vmem:[#allocation9 + $0xfd8] sm:$0xf]  ;;  %v6308_v6 = vor.u32 %v7032_v38, %v6307_v36  ;;  %4205 = vmatpush.bf16.msrb.mxu1 %v6052_v43  ;;  %4174 = vmatmul.bf16.vlgmr.msra.gmra.mxu2 %v7394_v61 }
 0x2b6   :  { %v7096_v0 = vld [vmem:[#allocation9 + $0xff4] sm:$0xf0] }
 0x2b7   :  { %v5763_v44 = vld [vmem:[#allocation9 + $0x998] sm:$0xf]  ;;  %v6564_v16 = vor.u32 %v7096_v0, %v6563_v39  ;;  %4218 = vmatpush.bf16.msrb.mxu2 %v6308_v6  ;;  %4187 = vmatmul.bf16.vlgmr.msra.gmra.mxu3 %v7396_v62 }
 0x2b8   :  { %v6896_v45 = vld [vmem:[#allocation9 + $0x9b4] sm:$0xf0] }
 0x2b9   :  { %v6019_v47 = vld [vmem:[#allocation9 + $0xb98] sm:$0xf]  ;;  %v5764_v2 = vor.u32 %v6896_v45, %v5763_v44  ;;  %4231 = vmatpush.bf16.msrb.mxu3 %v6564_v16 }
 0x2ba   :  { %v6960_v49 = vld [vmem:[#allocation9 + $0xbb4] sm:$0xf0] }
 0x2bb   :  { %v6275_v50 = vld [vmem:[#allocation9 + $0xd98] sm:$0xf]  ;;  %v6020_v4 = vor.u32 %v6960_v49, %v6019_v47  ;;  %4193 = vmatpush.bf16.msrb.mxu0 %v5764_v2 }
 0x2bc   :  { %v7024_v51 = vld [vmem:[#allocation9 + $0xdb4] sm:$0xf0] }
 0x2bd   :  { %v6531_v58 = vld [vmem:[#allocation9 + $0xf98] sm:$0xf]  ;;  %v6276_v8 = vor.u32 %v7024_v51, %v6275_v50  ;;  %4206 = vmatpush.bf16.msrb.mxu1 %v6020_v4 }
 0x2be   :  { %v7088_v63 = vld [vmem:[#allocation9 + $0xfb4] sm:$0xf0] }
 0x2bf   :  { %v5731_v5 = vld [vmem:[#allocation9 + $0x958] sm:$0xf]  ;;  %v6532_v9 = vor.u32 %v7088_v63, %v6531_v58  ;;  %4219 = vmatpush.bf16.msrb.mxu2 %v6276_v8  ;;  %v3967_v58 = vpop.f32.mrf.mxu2  ;;  %v3980_v63 = vpop.f32.mrf.mxu3 }
 0x2c0   :  { %v6888_v7 = vld [vmem:[#allocation9 + $0x974] sm:$0xf0]  ;;  %v3956_v8 = vpop.f32.mrf.mxu1 }
 0x2c1   :  { %v5987_v10 = vld [vmem:[#allocation9 + $0xb58] sm:$0xf]  ;;  %v5732_v20 = vor.u32 %v6888_v7, %v5731_v5  ;;  %4232 = vmatpush.bf16.msrb.mxu3 %v6532_v9  ;;  %v3968_v5 = vadd.f32 %v3967_v58, %v3955_v42  ;;  %v3943_v7 = vpop.f32.mrf.mxu0  ;;  %v5285_v42 = vld [vmem:[#allocation9 + $0x5f8] sm:$0xf0] }
 0x2c2   :  { %v6952_v11 = vld [vmem:[#allocation9 + $0xb74] sm:$0xf0]  ;;  %v6764_v58 = vld [vmem:[#allocation9 + $0x59c] sm:$0xf] }
 0x2c3   :  { %v6243_v12 = vld [vmem:[#allocation9 + $0xd58] sm:$0xf]  ;;  %v5988_v21 = vor.u32 %v6952_v11, %v5987_v10  ;;  %4194 = vmatpush.bf16.msrb.mxu0 %v5732_v20  ;;  %v7497_v14 = vadd.f32 %v3980_v63, %v3968_v5  ;;  %v5253_v63 = vld [vmem:[#allocation9 + $0x5b8] sm:$0xf0] }
 0x2c4   :  { %v7016_v15 = vld [vmem:[#allocation9 + $0xd74] sm:$0xf0]  ;;  %v6628_v7 = vld [vmem:[#allocation9 + $0x15c] sm:$0xf] }
 0x2c5   :  { %v6499_v17 = vld [vmem:[#allocation9 + $0xf58] sm:$0xf]  ;;  %v6244_v25 = vor.u32 %v7016_v15, %v6243_v12  ;;  %4207 = vmatpush.bf16.msrb.mxu1 %v5988_v21  ;;  %v4709_v8 = vld [vmem:[#allocation9 + $0x178] sm:$0xf0] }
 0x2c6   :  { %v7080_v18 = vld [vmem:[#allocation9 + $0xf74] sm:$0xf0] }
 0x2c7   :  { %v5699_v23 = vld [vmem:[#allocation9 + $0x918] sm:$0xf]  ;;  %v6500_v57 = vor.u32 %v7080_v18, %v6499_v17  ;;  %4220 = vmatpush.bf16.msrb.mxu2 %v6244_v25  ;;  %v3969_v28 = vpop.f32.mrf.mxu2 }
 0x2c8   :  { %v6880_v24 = vld [vmem:[#allocation9 + $0x934] sm:$0xf0] }
 0x2c9   :  { %v5955_v29 = vld [vmem:[#allocation9 + $0xb18] sm:$0xf]  ;;  %v5700_v36 = vor.u32 %v6880_v24, %v5699_v23  ;;  %4233 = vmatpush.bf16.msrb.mxu3 %v6500_v57 }
 0x2ca   :  { %v6944_v46 = vld [vmem:[#allocation9 + $0xb34] sm:$0xf0] }
 0x2cb   :  { %v6211_v30 = vld [vmem:[#allocation9 + $0xd18] sm:$0xf]  ;;  %v5956_v37 = vor.u32 %v6944_v46, %v5955_v29  ;;  %4195 = vmatpush.bf16.msrb.mxu0 %v5700_v36  ;;  %v3982_v36 = vpop.f32.mrf.mxu3 }
 0x2cc   :  { %v7008_v32 = vld [vmem:[#allocation9 + $0xd34] sm:$0xf0] }
 0x2cd   :  { %v6467_v26 = vld [vmem:[#allocation9 + $0xf18] sm:$0xf]  ;;  %v6212_v39 = vor.u32 %v7008_v32, %v6211_v30  ;;  %4208 = vmatpush.bf16.msrb.mxu1 %v5956_v37 }
 0x2ce   :  { %v7072_v33 = vld [vmem:[#allocation9 + $0xf34] sm:$0xf0] }
 0x2cf   :  { %v5667_v13 = vld [vmem:[#allocation9 + $0x8d8] sm:$0xf]  ;;  %v6468_v0 = vor.u32 %v7072_v33, %v6467_v26  ;;  %4221 = vmatpush.bf16.msrb.mxu2 %v6212_v39  ;;  %v6708_v39 = vld [vmem:[#allocation9 + $0x3dc] sm:$0xf] }
 0x2d0   :  { %v6872_v38 = vld [vmem:[#allocation9 + $0x8f4] sm:$0xf0] }
 0x2d1   :  { %v5923_v40 = vld [vmem:[#allocation9 + $0xad8] sm:$0xf]  ;;  %v5668_v47 = vor.u32 %v6872_v38, %v5667_v13  ;;  %4234 = vmatpush.bf16.msrb.mxu3 %v6468_v0  ;;  %v6644_v13 = vld [vmem:[#allocation9 + $0x1dc] sm:$0xf] }
 0x2d2   :  { %v6936_v41 = vld [vmem:[#allocation9 + $0xaf4] sm:$0xf0]  ;;  %v4773_v38 = vld [vmem:[#allocation9 + $0x1f8] sm:$0xf0] }
 0x2d3   :  { %v6179_v3 = vld [vmem:[#allocation9 + $0xcd8] sm:$0xf]  ;;  %v5924_v48 = vor.u32 %v6936_v41, %v5923_v40  ;;  %4196 = vmatpush.bf16.msrb.mxu0 %v5668_v47  ;;  %v5029_v0 = vld [vmem:[#allocation9 + $0x3f8] sm:$0xf0] }
 0x2d4   :  { %v7000_v43 = vld [vmem:[#allocation9 + $0xcf4] sm:$0xf0]  ;;  %v6772_v40 = vld [vmem:[#allocation9 + $0x5dc] sm:$0xf] }
 0x2d5   :  { %v6435_v44 = vld [vmem:[#allocation9 + $0xed8] sm:$0xf]  ;;  %v6180_v49 = vor.u32 %v7000_v43, %v6179_v3  ;;  %4209 = vmatpush.bf16.msrb.mxu1 %v5924_v48  ;;  %v6836_v43 = vld [vmem:[#allocation9 + $0x7dc] sm:$0xf]  ;;  %v4776_v48 = vor.u32 %v6644_v13, %v4773_v38 }
 0x2d6   :  { %v7064_v45 = vld [vmem:[#allocation9 + $0xef4] sm:$0xf0]  ;;  %v4645_v13 = vld [vmem:[#allocation9 + $0xf8] sm:$0xf0] }
 0x2d7   :  { %v5635_v6 = vld [vmem:[#allocation9 + $0x898] sm:$0xf]  ;;  %v6436_v50 = vor.u32 %v7064_v45, %v6435_v44  ;;  %4222 = vmatpush.bf16.msrb.mxu2 %v6180_v49  ;;  %v5541_v44 = vld [vmem:[#allocation9 + $0x7f8] sm:$0xf0] }
 0x2d8   :  { %v6864_v16 = vld [vmem:[#allocation9 + $0x8b4] sm:$0xf0]  ;;  %v4741_v49 = vld [vmem:[#allocation9 + $0x1b8] sm:$0xf0] }
 0x2d9   :  { %v5891_v51 = vld [vmem:[#allocation9 + $0xa98] sm:$0xf]  ;;  %v5636_v9 = vor.u32 %v6864_v16, %v5635_v6  ;;  %4235 = vmatpush.bf16.msrb.mxu3 %v6436_v50  ;;  %v5032_v6 = vor.u32 %v6708_v39, %v5029_v0  ;;  %v6636_v16 = vld [vmem:[#allocation9 + $0x19c] sm:$0xf]  ;;  %v5288_v50 = vor.u32 %v6772_v40, %v5285_v42 }
 0x2da   :  { %v6928_v52 = vld [vmem:[#allocation9 + $0xab4] sm:$0xf0]  ;;  %v6676_v0 = vld [vmem:[#allocation9 + $0x2dc] sm:$0xf] }
 0x2db   :  { %v6147_v54 = vld [vmem:[#allocation9 + $0xc98] sm:$0xf]  ;;  %v5892_v10 = vor.u32 %v6928_v52, %v5891_v51  ;;  %4197 = vmatpush.bf16.msrb.mxu0 %v5636_v9  ;;  %v5544_v51 = vor.u32 %v6836_v43, %v5541_v44  ;;  %v6700_v52 = vld [vmem:[#allocation9 + $0x39c] sm:$0xf]  ;;  %v5256_v9 = vor.u32 %v6764_v58, %v5253_v63 }
 0x2dc   :  { %v6992_v1 = vld [vmem:[#allocation9 + $0xcb4] sm:$0xf0]  ;;  %v4901_v40 = vld [vmem:[#allocation9 + $0x2f8] sm:$0xf0] }
 0x2dd   :  { %v6403_v2 = vld [vmem:[#allocation9 + $0xe98] sm:$0xf]  ;;  %v6148_v15 = vor.u32 %v6992_v1, %v6147_v54  ;;  %4210 = vmatpush.bf16.msrb.mxu1 %v5892_v10  ;;  %v4997_v54 = vld [vmem:[#allocation9 + $0x3b8] sm:$0xf0] }
 0x2de   :  { %v7056_v4 = vld [vmem:[#allocation9 + $0xeb4] sm:$0xf0]  ;;  %v6828_v1 = vld [vmem:[#allocation9 + $0x79c] sm:$0xf]  ;;  %v5000_v5 = vor.u32 %v6700_v52, %v4997_v54  ;;  %v4019_v52 = vpop.f32.mrf.mxu2  ;;  %v4032_v54 = vpop.f32.mrf.mxu3 }
 0x2df   :  { %v5603_v11 = vld [vmem:[#allocation9 + $0x858] sm:$0xf]  ;;  %v6404_v17 = vor.u32 %v7056_v4, %v6403_v2  ;;  %4223 = vmatpush.bf16.msrb.mxu2 %v6148_v15  ;;  %v5509_v2 = vld [vmem:[#allocation9 + $0x7b8] sm:$0xf0]  ;;  %v4744_v4 = vor.u32 %v6636_v16, %v4741_v49 }
 0x2e0   :  { %v6856_v12 = vld [vmem:[#allocation9 + $0x874] sm:$0xf0]  ;;  %v5512_v10 = vor.u32 %v6828_v1, %v5509_v2  ;;  %v6756_v15 = vld [vmem:[#allocation9 + $0x55c] sm:$0xf] }
 0x2e1   :  { %v5859_v18 = vld [vmem:[#allocation9 + $0xa58] sm:$0xf]  ;;  %v5604_v25 = vor.u32 %v6856_v12, %v5603_v11  ;;  %4236 = vmatpush.bf16.msrb.mxu3 %v6404_v17  ;;  %v6692_v11 = vld [vmem:[#allocation9 + $0x35c] sm:$0xf] }
 0x2e2   :  { %v6920_v19 = vld [vmem:[#allocation9 + $0xa74] sm:$0xf0]  ;;  %v4965_v12 = vld [vmem:[#allocation9 + $0x378] sm:$0xf0] }
 0x2e3   :  { %v6115_v20 = vld [vmem:[#allocation9 + $0xc58] sm:$0xf]  ;;  %v5860_v57 = vor.u32 %v6920_v19, %v5859_v18  ;;  %4198 = vmatpush.bf16.msrb.mxu0 %v5604_v25  ;;  %v5221_v17 = vld [vmem:[#allocation9 + $0x578] sm:$0xf0] }
 0x2e4   :  { %v6984_v21 = vld [vmem:[#allocation9 + $0xc74] sm:$0xf0]  ;;  %v6820_v18 = vld [vmem:[#allocation9 + $0x75c] sm:$0xf] }
 0x2e5   :  { %v6371_v22 = vld [vmem:[#allocation9 + $0xe58] sm:$0xf]  ;;  %v6116_v32 = vor.u32 %v6984_v21, %v6115_v20  ;;  %4211 = vmatpush.bf16.msrb.mxu1 %v5860_v57  ;;  %v5477_v19 = vld [vmem:[#allocation9 + $0x778] sm:$0xf0]  ;;  %v4712_v20 = vor.u32 %v6628_v7, %v4709_v8  ;;  %v4968_v21 = vor.u32 %v6692_v11, %v4965_v12 }
 0x2e6   :  { %v7048_v23 = vld [vmem:[#allocation9 + $0xe74] sm:$0xf0]  ;;  %v5480_v25 = vor.u32 %v6820_v18, %v5477_v19  ;;  %v6684_v57 = vld [vmem:[#allocation9 + $0x31c] sm:$0xf] }
 0x2e7   :  { %v5571_v24 = vld [vmem:[#allocation9 + $0x818] sm:$0xf]  ;;  %v6372_v26 = vor.u32 %v7048_v23, %v6371_v22  ;;  %4224 = vmatpush.bf16.msrb.mxu2 %v6116_v32  ;;  %v6620_v22 = vld [vmem:[#allocation9 + $0x11c] sm:$0xf] }
 0x2e8   :  { %v6848_v29 = vld [vmem:[#allocation9 + $0x834] sm:$0xf0]  ;;  %v4677_v23 = vld [vmem:[#allocation9 + $0x138] sm:$0xf0] }
 0x2e9   :  { %v5827_v46 = vld [vmem:[#allocation9 + $0xa18] sm:$0xf]  ;;  %v5572_v41 = vor.u32 %v6848_v29, %v5571_v24  ;;  %4237 = vmatpush.bf16.msrb.mxu3 %v6372_v26  ;;  %v5224_v24 = vor.u32 %v6756_v15, %v5221_v17  ;;  %v4933_v29 = vld [vmem:[#allocation9 + $0x338] sm:$0xf0]  ;;  %v4680_v28 = vor.u32 %v6620_v22, %v4677_v23 }
 0x2ea   :  { %v6912_v30 = vld [vmem:[#allocation9 + $0xa34] sm:$0xf0]  ;;  %v6812_v32 = vld [vmem:[#allocation9 + $0x71c] sm:$0xf]  ;;  %v4936_v36 = vor.u32 %v6684_v57, %v4933_v29  ;;  %v7127_v57 = vld [vmem:[#allocation12] sm:$0xff] }
 0x2eb   :  { %v6083_v33 = vld [vmem:[#allocation9 + $0xc18] sm:$0xf]  ;;  %v5828_v3 = vor.u32 %v6912_v30, %v5827_v46  ;;  %4199 = vmatpush.bf16.msrb.mxu0 %v5572_v41  ;;  %v6748_v46 = vld [vmem:[#allocation9 + $0x51c] sm:$0xf]  ;;  %v7504_v29 = vunpack.c.h.bf16 %v7127_v57 }
 0x2ec   :  { %v6976_v34 = vld [vmem:[#allocation9 + $0xc34] sm:$0xf0]  ;;  %v5189_v30 = vld [vmem:[#allocation9 + $0x538] sm:$0xf0] }
 0x2ed   :  { %v6339_v35 = vld [vmem:[#allocation9 + $0xe18] sm:$0xf]  ;;  %v6084_v45 = vor.u32 %v6976_v34, %v6083_v33  ;;  %4212 = vmatpush.bf16.msrb.mxu1 %v5828_v3  ;;  %v5445_v26 = vld [vmem:[#allocation9 + $0x738] sm:$0xf0]  ;;  %v3993_v33 = vpop.f32.mrf.mxu0  ;;  %v4006_v34 = vpop.f32.mrf.mxu1  ;;  %v5192_v38 = vor.u32 %v6748_v46, %v5189_v30 }
 0x2ee   :  { %v7040_v37 = vld [vmem:[#allocation9 + $0xe34] sm:$0xf0]  ;;  %4200 = vmatmul.bf16.vlgmr.msrb.gmra.mxu0 %v7402_v53  ;;  %v5448_v39 = vor.u32 %v6812_v32, %v5445_v26  ;;  %v6740_v41 = vld [vmem:[#allocation9 + $0x4dc] sm:$0xf] }
 0x2ef   :  { %v6340_v47 = vor.u32 %v7040_v37, %v6339_v35  ;;  %4225 = vmatpush.bf16.msrb.mxu2 %v6084_v45  ;;  %4244 = vmatpush.bf16.msra.mxu0 %v4776_v48  ;;  %v3994_v35 = vadd.f32 %v3993_v33, %v7497_v14  ;;  %v6612_v37 = vld [vmem:[#allocation9 + $0xdc] sm:$0xf] }
 0x2f0   :  { %4213 = vmatmul.bf16.vlgmr.msrb.gmra.mxu1 %v7404_v27  ;;  %v5157_v42 = vld [vmem:[#allocation9 + $0x4f8] sm:$0xf0]  ;;  %v4648_v45 = vor.u32 %v6612_v37, %v4645_v13  ;;  %v4021_v13 = vpop.f32.mrf.mxu2 }
 0x2f1   :  { %4238 = vmatpush.bf16.msrb.mxu3 %v6340_v47  ;;  %4257 = vmatpush.bf16.msra.mxu1 %v5032_v6  ;;  %v4007_v3 = vadd.f32 %v4006_v34, %v3994_v35  ;;  %v6804_v43 = vld [vmem:[#allocation9 + $0x6dc] sm:$0xf]  ;;  %v4904_v47 = vor.u32 %v6676_v0, %v4901_v40  ;;  %v5160_v6 = vor.u32 %v6740_v41, %v5157_v42 }
 0x2f2   :  { %4226 = vmatmul.bf16.vlgmr.msrb.gmra.mxu2 %v7406_v59  ;;  %v5413_v44 = vld [vmem:[#allocation9 + $0x6f8] sm:$0xf0] }
 0x2f3   :  { %4270 = vmatpush.bf16.msra.mxu2 %v5288_v50  ;;  %4245 = vmatpush.bf16.msra.mxu0 %v4744_v4  ;;  %v6604_v14 = vld [vmem:[#allocation9 + $0x9c] sm:$0xf]  ;;  %v5416_v16 = vor.u32 %v6804_v43, %v5413_v44  ;;  %v4020_v2 = vadd.f32 %v4019_v52, %v4007_v3  ;;  %v4389_v43 = vperm.slane %v7504_v29, 0 }
 0x2f4   :  { %4239 = vmatmul.bf16.vlgmr.msrb.gmra.mxu3 %v7408_v60  ;;  %v4613_v48 = vld [vmem:[#allocation9 + $0xb8] sm:$0xf0] }
 0x2f5   :  { %4283 = vmatpush.bf16.msra.mxu3 %v5544_v51  ;;  %4258 = vmatpush.bf16.msra.mxu1 %v5000_v5  ;;  %v6668_v49 = vld [vmem:[#allocation9 + $0x29c] sm:$0xf]  ;;  %v3995_v4 = vpop.f32.mrf.mxu0  ;;  %v4008_v5 = vpop.f32.mrf.mxu1  ;;  %v4616_v7 = vor.u32 %v6604_v14, %v4613_v48  ;;  %v4033_v11 = vadd.f32 %v4032_v54, %v4020_v2 }
 0x2f6   :  { %v4869_v50 = vld [vmem:[#allocation9 + $0x2b8] sm:$0xf0] }
 0x2f7   :  { %4271 = vmatpush.bf16.msra.mxu2 %v5256_v9  ;;  %4246 = vmatpush.bf16.msra.mxu0 %v4712_v20  ;;  %v6732_v51 = vld [vmem:[#allocation9 + $0x49c] sm:$0xf]  ;;  %v4872_v8 = vor.u32 %v6668_v49, %v4869_v50  ;;  %v4352_v23 = vmul.f32 0.5, %v4033_v11 }
 0x2f8   :  { %v5125_v58 = vld [vmem:[#allocation9 + $0x4b8] sm:$0xf0] }
 0x2f9   :  { %4284 = vmatpush.bf16.msra.mxu3 %v5512_v10  ;;  %4259 = vmatpush.bf16.msra.mxu1 %v4968_v21  ;;  %v6796_v63 = vld [vmem:[#allocation9 + $0x69c] sm:$0xf]  ;;  %v5128_v12 = vor.u32 %v6732_v51, %v5125_v58  ;;  %7118 = vtanh.f32 %v4352_v23 }
 0x2fa   :  { %v5381_v1 = vld [vmem:[#allocation9 + $0x6b8] sm:$0xf0] }
 0x2fb   :  { %4272 = vmatpush.bf16.msra.mxu2 %v5224_v24  ;;  %4247 = vmatpush.bf16.msra.mxu0 %v4680_v28  ;;  %v6596_v9 = vld [vmem:[#allocation9 + $0x5c] sm:$0xf]  ;;  %v5384_v15 = vor.u32 %v6796_v63, %v5381_v1 }
 0x2fc   :  { %v4581_v10 = vld [vmem:[#allocation9 + $0x78] sm:$0xf0] }
 0x2fd   :  { %4285 = vmatpush.bf16.msra.mxu3 %v5480_v25  ;;  %4260 = vmatpush.bf16.msra.mxu1 %v4936_v36  ;;  %v6660_v17 = vld [vmem:[#allocation9 + $0x25c] sm:$0xf]  ;;  %v4584_v46 = vor.u32 %v6596_v9, %v4581_v10 }
 0x2fe   :  { %v4837_v18 = vld [vmem:[#allocation9 + $0x278] sm:$0xf0] }
 0x2ff   :  { %4273 = vmatpush.bf16.msra.mxu2 %v5192_v38  ;;  %4248 = vmatpush.bf16.msra.mxu0 %v4648_v45  ;;  %v6724_v19 = vld [vmem:[#allocation9 + $0x45c] sm:$0xf]  ;;  %v4840_v30 = vor.u32 %v6660_v17, %v4837_v18  ;;  %v4034_v38 = vpop.f32.mrf.mxu3  ;;  %v7119_v54 = vpop.eup %7118 }
 0x300   :  { %v5093_v20 = vld [vmem:[#allocation9 + $0x478] sm:$0xf0]  ;;  %v4368_v5 = vmul.f32 0.5, %v7119_v54 }
 0x301   :  { %4286 = vmatpush.bf16.msra.mxu3 %v5448_v39  ;;  %4261 = vmatpush.bf16.msra.mxu1 %v4904_v47  ;;  %v6788_v21 = vld [vmem:[#allocation9 + $0x65c] sm:$0xf]  ;;  %v5096_v34 = vor.u32 %v6724_v19, %v5093_v20 }
 0x302   :  { %v5349_v22 = vld [vmem:[#allocation9 + $0x678] sm:$0xf0]  ;;  %v4376_v10 = vadd.f32 0.5, %v4368_v5  ;;  %v4071_v5 = vpop.f32.mrf.mxu2 }
 0x303   :  { %4274 = vmatpush.bf16.msra.mxu2 %v5160_v6  ;;  %v6588_v24 = vld [vmem:[#allocation9 + $0x1c] sm:$0xf]  ;;  %4249 = vmatpush.bf16.msra.mxu0 %v4616_v7  ;;  %v5352_v35 = vor.u32 %v6788_v21, %v5349_v22  ;;  %v4405_v7 = vperm.slane %v4389_v43, 0 }
 0x304   :  { %v4549_v25 = vld [vmem:[#allocation9 + $0x38] sm:$0xf0] }
 0x305   :  { %4287 = vmatpush.bf16.msra.mxu3 %v5416_v16  ;;  %4262 = vmatpush.bf16.msra.mxu1 %v4872_v8  ;;  %v6652_v32 = vld [vmem:[#allocation9 + $0x21c] sm:$0xf]  ;;  %v4552_v44 = vor.u32 %v6588_v24, %v4549_v25  ;;  %v4413_v23 = vmul.f32 %v4405_v7, %v4376_v10 }
 0x306   :  { %v4805_v26 = vld [vmem:[#allocation9 + $0x238] sm:$0xf0] }
 0x307   :  { %v6716_v33 = vld [vmem:[#allocation9 + $0x41c] sm:$0xf]  ;;  %4275 = vmatpush.bf16.msra.mxu2 %v5128_v12  ;;  %4250 = vmatpush.bf16.msra.mxu0 %v4584_v46  ;;  %v4808_v45 = vor.u32 %v6652_v32, %v4805_v26  ;;  %v7511_v32 = vld [vmem:[#allocation11] sm:$0xff]  ;;  %v4084_v7 = vpop.f32.mrf.mxu3 }
 0x308   :  { %v5061_v28 = vld [vmem:[#allocation9 + $0x438] sm:$0xf0]  ;;  %v945_v26 = vperm.slane %v7511_v32, 5 }
 0x309   :  { %4288 = vmatpush.bf16.msra.mxu3 %v5384_v15  ;;  %v6780_v36 = vld [vmem:[#allocation9 + $0x61c] sm:$0xf]  ;;  %4263 = vmatpush.bf16.msra.mxu1 %v4840_v30  ;;  %v5064_v48 = vor.u32 %v6716_v33, %v5061_v28 }
 0x30a   :  { %v5317_v37 = vld [vmem:[#allocation9 + $0x638] sm:$0xf0] }
 0x30b   :  { %v6900_v39 = vld [vmem:[#allocation9 + $0x9dc] sm:$0xf]  ;;  %4276 = vmatpush.bf16.msra.mxu2 %v5096_v34  ;;  %v5320_v6 = vor.u32 %v6780_v36, %v5317_v37  ;;  %4251 = vmatpush.bf16.msra.mxu0 %v4552_v44 }
 0x30c   :  { %v5797_v0 = vld [vmem:[#allocation9 + $0x9f8] sm:$0xf0] }
 0x30d   :  { %v6964_v40 = vld [vmem:[#allocation9 + $0xbdc] sm:$0xf]  ;;  %4289 = vmatpush.bf16.msra.mxu3 %v5352_v35  ;;  %v5800_v16 = vor.u32 %v6900_v39, %v5797_v0  ;;  %4264 = vmatpush.bf16.msra.mxu1 %v4808_v45  ;;  %v4045_v39 = vpop.f32.mrf.mxu0  ;;  %v4058_v0 = vpop.f32.mrf.mxu1 }
 0x30e   :  { %v6053_v41 = vld [vmem:[#allocation9 + $0xbf8] sm:$0xf0]  ;;  %4252 = vmatmul.bf16.vlgmr.msra.gmra.mxu0 %v7390_v55  ;;  %v4424_v55 = vsel %vm343_vm1, %v4413_v23, 0.0 }
 0x30f   :  { %v7028_v3 = vld [vmem:[#allocation9 + $0xddc] sm:$0xf]  ;;  %v6056_v49 = vor.u32 %v6964_v40, %v6053_v41  ;;  %4277 = vmatpush.bf16.msra.mxu2 %v5064_v48  ;;  %4296 = vmatpush.bf16.msrb.mxu0 %v5800_v16  ;;  %v4046_v40 = vadd.f32 %v4045_v39, %v945_v26 }
 0x310   :  { %v6309_v42 = vld [vmem:[#allocation9 + $0xdf8] sm:$0xf0]  ;;  %4265 = vmatmul.bf16.vlgmr.msra.gmra.mxu1 %v7392_v56 }
 0x311   :  { %v7092_v47 = vld [vmem:[#allocation9 + $0xfdc] sm:$0xf]  ;;  %v6312_v58 = vor.u32 %v7028_v3, %v6309_v42  ;;  %4290 = vmatpush.bf16.msra.mxu3 %v5320_v6  ;;  %4309 = vmatpush.bf16.msrb.mxu1 %v6056_v49  ;;  %v4059_v48 = vadd.f32 %v4058_v0, %v4046_v40 }
 0x312   :  { %v6565_v14 = vld [vmem:[#allocation9 + $0xff8] sm:$0xf0]  ;;  %4278 = vmatmul.bf16.vlgmr.msra.gmra.mxu2 %v7394_v61 }
 0x313   :  { %v6892_v50 = vld [vmem:[#allocation9 + $0x99c] sm:$0xf]  ;;  %v6568_v63 = vor.u32 %v7092_v47, %v6565_v14  ;;  %4322 = vmatpush.bf16.msrb.mxu2 %v6312_v58 }
 0x314   :  { %v5765_v51 = vld [vmem:[#allocation9 + $0x9b8] sm:$0xf0]  ;;  %4291 = vmatmul.bf16.vlgmr.msra.gmra.mxu3 %v7396_v62  ;;  %v7516_v62 = vadd.f32 %v4424_v55, %v7495_v31 }
 0x315   :  { %v6956_v52 = vld [vmem:[#allocation9 + $0xb9c] sm:$0xf]  ;;  %v5768_v11 = vor.u32 %v6892_v50, %v5765_v51  ;;  %4335 = vmatpush.bf16.msrb.mxu3 %v6568_v63 }
 0x316   :  { %v6021_v1 = vld [vmem:[#allocation9 + $0xbb8] sm:$0xf0] }
 0x317   :  { %v7020_v2 = vld [vmem:[#allocation9 + $0xd9c] sm:$0xf]  ;;  %v6024_v12 = vor.u32 %v6956_v52, %v6021_v1  ;;  %4297 = vmatpush.bf16.msrb.mxu0 %v5768_v11  ;;  %v4072_v11 = vadd.f32 %v4071_v5, %v4059_v48 }
 0x318   :  { %v6277_v4 = vld [vmem:[#allocation9 + $0xdb8] sm:$0xf0] }
 0x319   :  { %v7084_v8 = vld [vmem:[#allocation9 + $0xf9c] sm:$0xf]  ;;  %v6280_v18 = vor.u32 %v7020_v2, %v6277_v4  ;;  %4310 = vmatpush.bf16.msrb.mxu1 %v6024_v12  ;;  %v4047_v12 = vpop.f32.mrf.mxu0 }
 0x31a   :  { %v6533_v9 = vld [vmem:[#allocation9 + $0xfb8] sm:$0xf0] }
 0x31b   :  { %v6884_v15 = vld [vmem:[#allocation9 + $0x95c] sm:$0xf]  ;;  %v6536_v19 = vor.u32 %v7084_v8, %v6533_v9  ;;  %4323 = vmatpush.bf16.msrb.mxu2 %v6280_v18 }
 0x31c   :  { %v5733_v17 = vld [vmem:[#allocation9 + $0x978] sm:$0xf0] }
 0x31d   :  { %v6948_v20 = vld [vmem:[#allocation9 + $0xb5c] sm:$0xf]  ;;  %v5736_v46 = vor.u32 %v6884_v15, %v5733_v17  ;;  %4336 = vmatpush.bf16.msrb.mxu3 %v6536_v19  ;;  %v4060_v15 = vpop.f32.mrf.mxu1 }
 0x31e   :  { %v5989_v21 = vld [vmem:[#allocation9 + $0xb78] sm:$0xf0] }
 0x31f   :  { %v7012_v22 = vld [vmem:[#allocation9 + $0xd5c] sm:$0xf]  ;;  %v5992_v30 = vor.u32 %v6948_v20, %v5989_v21  ;;  %4298 = vmatpush.bf16.msrb.mxu0 %v5736_v46  ;;  %v4085_v21 = vadd.f32 %v4084_v7, %v4072_v11 }
 0x320   :  { %v6245_v24 = vld [vmem:[#allocation9 + $0xd78] sm:$0xf0] }
 0x321   :  { %v7076_v25 = vld [vmem:[#allocation9 + $0xf5c] sm:$0xf]  ;;  %v6248_v56 = vor.u32 %v7012_v22, %v6245_v24  ;;  %4311 = vmatpush.bf16.msrb.mxu1 %v5992_v30 }
 0x322   :  { %v6501_v57 = vld [vmem:[#allocation9 + $0xf78] sm:$0xf0] }
 0x323   :  { %v6876_v33 = vld [vmem:[#allocation9 + $0x91c] sm:$0xf]  ;;  %v6504_v35 = vor.u32 %v7076_v25, %v6501_v57  ;;  %4324 = vmatpush.bf16.msrb.mxu2 %v6248_v56 }
 0x324   :  { %v5701_v34 = vld [vmem:[#allocation9 + $0x938] sm:$0xf0] }
 0x325   :  { %v6940_v28 = vld [vmem:[#allocation9 + $0xb1c] sm:$0xf]  ;;  %v5704_v41 = vor.u32 %v6876_v33, %v5701_v34  ;;  %4337 = vmatpush.bf16.msrb.mxu3 %v6504_v35 }
 0x326   :  { %v5957_v61 = vld [vmem:[#allocation9 + $0xb38] sm:$0xf0] }
 0x327   :  { %v7004_v36 = vld [vmem:[#allocation9 + $0xd1c] sm:$0xf]  ;;  %v5960_v3 = vor.u32 %v6940_v28, %v5957_v61  ;;  %4299 = vmatpush.bf16.msrb.mxu0 %v5704_v41 }
 0x328   :  { %v6213_v37 = vld [vmem:[#allocation9 + $0xd38] sm:$0xf0] }
 0x329   :  { %v7068_v13 = vld [vmem:[#allocation9 + $0xf1c] sm:$0xf]  ;;  %v6216_v44 = vor.u32 %v7004_v36, %v6213_v37  ;;  %4312 = vmatpush.bf16.msrb.mxu1 %v5960_v3 }
 0x32a   :  { %v6469_v38 = vld [vmem:[#allocation9 + $0xf38] sm:$0xf0] }
 0x32b   :  { %v6868_v42 = vld [vmem:[#allocation9 + $0x8dc] sm:$0xf]  ;;  %v6472_v45 = vor.u32 %v7068_v13, %v6469_v38  ;;  %4325 = vmatpush.bf16.msrb.mxu2 %v6216_v44  ;;  %v4073_v13 = vpop.f32.mrf.mxu2  ;;  %v4086_v38 = vpop.f32.mrf.mxu3 }
 0x32c   :  { %v5669_v43 = vld [vmem:[#allocation9 + $0x8f8] sm:$0xf0]  ;;  %v4097_v44 = vpop.f32.mrf.mxu0 }
 0x32d   :  { %v6932_v47 = vld [vmem:[#allocation9 + $0xadc] sm:$0xf]  ;;  %v5672_v50 = vor.u32 %v6868_v42, %v5669_v43  ;;  %4338 = vmatpush.bf16.msrb.mxu3 %v6472_v45  ;;  %v4110_v45 = vpop.f32.mrf.mxu1 }
 0x32e   :  { %v5925_v14 = vld [vmem:[#allocation9 + $0xaf8] sm:$0xf0] }
 0x32f   :  { %v6996_v31 = vld [vmem:[#allocation9 + $0xcdc] sm:$0xf]  ;;  %v5928_v51 = vor.u32 %v6932_v47, %v5925_v14  ;;  %4300 = vmatpush.bf16.msrb.mxu0 %v5672_v50  ;;  %v4098_v47 = vadd.f32 %v4097_v44, %v4085_v21 }
 0x330   :  { %v6181_v6 = vld [vmem:[#allocation9 + $0xcf8] sm:$0xf0] }
 0x331   :  { %v7060_v16 = vld [vmem:[#allocation9 + $0xedc] sm:$0xf]  ;;  %v6184_v58 = vor.u32 %v6996_v31, %v6181_v6  ;;  %4313 = vmatpush.bf16.msrb.mxu1 %v5928_v51  ;;  %v4111_v14 = vadd.f32 %v4110_v45, %v4098_v47 }
 0x332   :  { %v6437_v49 = vld [vmem:[#allocation9 + $0xef8] sm:$0xf0] }
 0x333   :  { %v6860_v52 = vld [vmem:[#allocation9 + $0x89c] sm:$0xf]  ;;  %v6440_v63 = vor.u32 %v7060_v16, %v6437_v49  ;;  %4326 = vmatpush.bf16.msrb.mxu2 %v6184_v58  ;;  %v4123_v31 = vpop.f32.mrf.mxu2  ;;  %v4136_v48 = vpop.f32.mrf.mxu3 }
 0x334   :  { %v5637_v54 = vld [vmem:[#allocation9 + $0x8b8] sm:$0xf0]  ;;  %v4124_v6 = vadd.f32 %v4123_v31, %v4111_v14  ;;  %v4099_v16 = vpop.f32.mrf.mxu0 }
 0x335   :  { %v6924_v1 = vld [vmem:[#allocation9 + $0xa9c] sm:$0xf]  ;;  %v5640_v17 = vor.u32 %v6860_v52, %v5637_v54  ;;  %4339 = vmatpush.bf16.msrb.mxu3 %v6440_v63  ;;  %v4112_v49 = vpop.f32.mrf.mxu1 }
 0x336   :  { %v5893_v2 = vld [vmem:[#allocation9 + $0xab8] sm:$0xf0]  ;;  %v4137_v50 = vadd.f32 %v4136_v48, %v4124_v6 }
 0x337   :  { %v6988_v4 = vld [vmem:[#allocation9 + $0xc9c] sm:$0xf]  ;;  %v5896_v18 = vor.u32 %v6924_v1, %v5893_v2  ;;  %4301 = vmatpush.bf16.msrb.mxu0 %v5640_v17  ;;  %v946_v1 = vperm.slane %v7511_v32, 6 }
 0x338   :  { %v6149_v8 = vld [vmem:[#allocation9 + $0xcb8] sm:$0xf0]  ;;  %v4353_v51 = vmul.f32 0.5, %v4137_v50 }
 0x339   :  { %v7052_v9 = vld [vmem:[#allocation9 + $0xe9c] sm:$0xf]  ;;  %v6152_v22 = vor.u32 %v6988_v4, %v6149_v8  ;;  %4314 = vmatpush.bf16.msrb.mxu1 %v5896_v18 }
 0x33a   :  { %v6405_v10 = vld [vmem:[#allocation9 + $0xeb8] sm:$0xf0]  ;;  %7120 = vtanh.f32 %v4353_v51 }
 0x33b   :  { %v6852_v19 = vld [vmem:[#allocation9 + $0x85c] sm:$0xf]  ;;  %v6408_v23 = vor.u32 %v7052_v9, %v6405_v10  ;;  %4327 = vmatpush.bf16.msrb.mxu2 %v6152_v22  ;;  %v4125_v52 = vpop.f32.mrf.mxu2 }
 0x33c   :  { %v5605_v20 = vld [vmem:[#allocation9 + $0x878] sm:$0xf0]  ;;  %v4149_v5 = vpop.f32.mrf.mxu0 }
 0x33d   :  { %v6916_v24 = vld [vmem:[#allocation9 + $0xa5c] sm:$0xf]  ;;  %v5608_v33 = vor.u32 %v6852_v19, %v5605_v20  ;;  %4340 = vmatpush.bf16.msrb.mxu3 %v6408_v23  ;;  %v4162_v7 = vpop.f32.mrf.mxu1  ;;  %v4150_v8 = vadd.f32 %v4149_v5, %v946_v1 }
 0x33e   :  { %v5861_v25 = vld [vmem:[#allocation9 + $0xa78] sm:$0xf0] }
 0x33f   :  { %v6980_v57 = vld [vmem:[#allocation9 + $0xc5c] sm:$0xf]  ;;  %v5864_v34 = vor.u32 %v6916_v24, %v5861_v25  ;;  %4302 = vmatpush.bf16.msrb.mxu0 %v5608_v33  ;;  %v4163_v9 = vadd.f32 %v4162_v7, %v4150_v8 }
 0x340   :  { %v6117_v46 = vld [vmem:[#allocation9 + $0xc78] sm:$0xf0]  ;;  %v7121_v54 = vpop.eup %7120 }
 0x341   :  { %v7044_v30 = vld [vmem:[#allocation9 + $0xe5c] sm:$0xf]  ;;  %v6120_v35 = vor.u32 %v6980_v57, %v6117_v46  ;;  %4315 = vmatpush.bf16.msrb.mxu1 %v5864_v34 }
 0x342   :  { %v6373_v26 = vld [vmem:[#allocation9 + $0xe78] sm:$0xf0] }
 0x343   :  { %v6844_v55 = vld [vmem:[#allocation9 + $0x81c] sm:$0xf]  ;;  %v6376_v28 = vor.u32 %v7044_v30, %v6373_v26  ;;  %4328 = vmatpush.bf16.msrb.mxu2 %v6120_v35  ;;  %v4175_v10 = vpop.f32.mrf.mxu2 }
 0x344   :  { %v5573_v56 = vld [vmem:[#allocation9 + $0x838] sm:$0xf0]  ;;  %v4176_v12 = vadd.f32 %v4175_v10, %v4163_v9  ;;  %v4151_v15 = vpop.f32.mrf.mxu0  ;;  %v7105_v10 = vld [vmem:[#allocation3] ss:$0 sm:$0xff] }
 0x345   :  { %v6908_v61 = vld [vmem:[#allocation9 + $0xa1c] sm:$0xf]  ;;  %v5576_v41 = vor.u32 %v6844_v55, %v5573_v56  ;;  %4341 = vmatpush.bf16.msrb.mxu3 %v6376_v28  ;;  %v4164_v17 = vpop.f32.mrf.mxu1  ;;  %v4391_v56 = vperm.slane %v7504_v29, 4 }
 0x346   :  { %v5829_v36 = vld [vmem:[#allocation9 + $0xa38] sm:$0xf0] }
 0x347   :  { %v6972_v37 = vld [vmem:[#allocation9 + $0xc1c] sm:$0xf]  ;;  %v5832_v3 = vor.u32 %v6908_v61, %v5829_v36  ;;  %4303 = vmatpush.bf16.msrb.mxu0 %v5576_v41  ;;  %v4407_v61 = vperm.slane %v4391_v56, 0 }
 0x348   :  { %v6085_v39 = vld [vmem:[#allocation9 + $0xc38] sm:$0xf0] }
 0x349   :  { %v7036_v0 = vld [vmem:[#allocation9 + $0xe1c] sm:$0xf]  ;;  %v6088_v42 = vor.u32 %v6972_v37, %v6085_v39  ;;  %4316 = vmatpush.bf16.msrb.mxu1 %v5832_v3 }
 0x34a   :  { %v6341_v40 = vld [vmem:[#allocation9 + $0xe38] sm:$0xf0]  ;;  %4304 = vmatmul.bf16.vlgmr.msrb.gmra.mxu0 %v7402_v53  ;;  %v4138_v53 = vpop.f32.mrf.mxu3 }
 0x34b   :  { %v6344_v43 = vor.u32 %v7036_v0, %v6341_v40  ;;  %4329 = vmatpush.bf16.msrb.mxu2 %v6088_v42  ;;  %v4177_v19 = vpop.f32.mrf.mxu2 }
 0x34c   :  { %4317 = vmatmul.bf16.vlgmr.msrb.gmra.mxu1 %v7404_v27  ;;  %v4390_v27 = vperm.slane %v7504_v29, 2 }
 0x34d   :  { %4342 = vmatpush.bf16.msrb.mxu3 %v6344_v43  ;;  %v947_v43 = vperm.slane %v7511_v32, 7 }
 0x34e   :  { %4330 = vmatmul.bf16.vlgmr.msrb.gmra.mxu2 %v7406_v59  ;;  %v4369_v59 = vmul.f32 0.5, %v7121_v54  ;;  %v4406_v58 = vperm.slane %v4390_v27, 0 }
 0x350   :  { %4343 = vmatmul.bf16.vlgmr.msrb.gmra.mxu3 %v7408_v60  ;;  %v4377_v60 = vadd.f32 0.5, %v4369_v59 }
 0x352   :  { %v4414_v63 = vmul.f32 %v4406_v58, %v4377_v60  ;;  %v4188_v11 = vpop.f32.mrf.mxu3 }
 0x353   :  { %v4189_v18 = vadd.f32 %v4188_v11, %v4176_v12 }
 0x354   :  { %v4426_v2 = vsel %vm343_vm1, %v4414_v63, 0.0  ;;  %v4392_v63 = vperm.slane %v7504_v29, 6 }
 0x355   :  { %v4427_v4 = vadd.f32 %v4426_v2, %v7516_v62 }
 0x35a   :  { %v4190_v20 = vpop.f32.mrf.mxu3 }
 0x36b   :  { %v4201_v21 = vpop.f32.mrf.mxu0 }
 0x36c   :  { %v4202_v23 = vadd.f32 %v4201_v21, %v4189_v18 }
 0x36d   :  { %v4214_v22 = vpop.f32.mrf.mxu1 }
 0x36e   :  { %v4215_v24 = vadd.f32 %v4214_v22, %v4202_v23 }
 0x373   :  { %v4203_v62 = vpop.f32.mrf.mxu0 }
 0x375   :  { %v4227_v25 = vpop.f32.mrf.mxu2  ;;  %v4216_v30 = vpop.f32.mrf.mxu1 }
 0x376   :  { %v4228_v46 = vadd.f32 %v4227_v25, %v4215_v24 }
 0x377   :  { %v4240_v57 = vpop.f32.mrf.mxu3 }
 0x378   :  { %v4241_v26 = vadd.f32 %v4240_v57, %v4228_v46 }
 0x37a   :  { %v4354_v33 = vmul.f32 0.5, %v4241_v26 }
 0x37c   :  { %7122 = vtanh.f32 %v4354_v33 }
 0x37d   :  { %v4229_v34 = vpop.f32.mrf.mxu2 }
 0x37f   :  { %v4242_v55 = vpop.f32.mrf.mxu3 }
 0x382   :  { %v7123_v35 = vpop.eup %7122 }
 0x383   :  { %v4370_v28 = vmul.f32 0.5, %v7123_v35 }
 0x385   :  { %v4378_v36 = vadd.f32 0.5, %v4370_v28 }
 0x387   :  { %v4415_v37 = vmul.f32 %v4407_v61, %v4378_v36 }
 0x389   :  { %v4428_v13 = vsel %vm343_vm1, %v4415_v37, 0.0 }
 0x38a   :  { %v4429_v38 = vadd.f32 %v4428_v13, %v4427_v4  ;;  %v4408_v4 = vperm.slane %v4392_v63, 0 }
 0x38b   :  { %v4253_v39 = vpop.f32.mrf.mxu0 }
 0x38c   :  { %v4254_v47 = vadd.f32 %v4253_v39, %v947_v43 }
 0x38d   :  { %v4266_v0 = vpop.f32.mrf.mxu1 }
 0x38e   :  { %v4267_v14 = vadd.f32 %v4266_v0, %v4254_v47 }
 0x393   :  { %v4255_v3 = vpop.f32.mrf.mxu0 }
 0x395   :  { %v4279_v40 = vpop.f32.mrf.mxu2  ;;  %v4268_v42 = vpop.f32.mrf.mxu1 }
 0x396   :  { %v4280_v31 = vadd.f32 %v4279_v40, %v4267_v14 }
 0x397   :  { %v4292_v41 = vpop.f32.mrf.mxu3 }
 0x398   :  { %v4293_v48 = vadd.f32 %v4292_v41, %v4280_v31 }
 0x39d   :  { %v4281_v44 = vpop.f32.mrf.mxu2 }
 0x39f   :  { %v4294_v45 = vpop.f32.mrf.mxu3 }
 0x3c7   :  { %v4305_v6 = vpop.f32.mrf.mxu0 }
 0x3c8   :  { %v4306_v49 = vadd.f32 %v4305_v6, %v4293_v48 }
 0x3c9   :  { %v4318_v16 = vpop.f32.mrf.mxu1 }
 0x3ca   :  { %v4319_v50 = vadd.f32 %v4318_v16, %v4306_v49 }
 0x3cf   :  { %v4307_v27 = vpop.f32.mrf.mxu0 }
 0x3d1   :  { %v4331_v51 = vpop.f32.mrf.mxu2  ;;  %v4320_v54 = vpop.f32.mrf.mxu1 }
 0x3d2   :  { %v4332_v53 = vadd.f32 %v4331_v51, %v4319_v50 }
 0x3d3   :  { %v4344_v52 = vpop.f32.mrf.mxu3 }
 0x3d4   :  { %v4345_v59 = vadd.f32 %v4344_v52, %v4332_v53 }
 0x3d6   :  { %v4355_v58 = vmul.f32 0.5, %v4345_v59 }
 0x3d8   :  { %7124 = vtanh.f32 %v4355_v58 }
 0x3d9   :  { %v4333_v60 = vpop.f32.mrf.mxu2 }
 0x3db   :  { %v4346_v32 = vpop.f32.mrf.mxu3 }
 0x3de   :  { %v7125_v1 = vpop.eup %7124 }
 0x3df   :  { %v4371_v2 = vmul.f32 0.5, %v7125_v1 }
 0x3e1   :  { %v4379_v5 = vadd.f32 0.5, %v4371_v2 }
 0x3e3   :  { %v4416_v7 = vmul.f32 %v4408_v4, %v4379_v5 }
 0x3e5   :  { %v4430_v8 = vsel %vm343_vm1, %v4416_v7, 0.0 }
 0x3e6   :  { %v4431_v9 = vadd.f32 %v4430_v8, %v4429_v38 }
 0x3e8   :  { %4432 = vadd.xlane.f32.xlu0 %v4431_v9 }
 0x45b   :  { %v4433_v11 = vpop.xlane.xlu0 %4432 }
 0x45c   :  { %v4438_v12 = vadd.f32 %v7105_v10, %v4433_v11 }
 0x45e   :  { %4440 = vst.msk [vmem:[%s7541_s7] sm:$0x3] %vm4439_vm4, %v4438_v12 }
 0x45f   :  { %4445 = vsyncpa [#allocation5], 1 }
 0x460   :  { %4446 = vsyncpa [#allocation7], 1 }
 0x461   :  { %4447 = vsyncpa [#allocation10], 1 }
 0x462   :  { %4448 = vsyncpa [#allocation13], 1 }

// kernel: tpu_custom_call.1
= control target key start
LH: loop header
LB: loop body
LE: loop exit
PB: predicated region body
PF: predicated region fallthrough
CT: control target
= control target key end

     0   :  { %s7534_s0 = inlined_call_operand.hbm [shape: f32[2,32], index: 0, kind: input, shape index: {}]   ;;  %s7535_s1 = inlined_call_operand.hbm [shape: bf16[32,1024], index: 1, kind: input, shape index: {}]   ;;  %s7536_s2 = inlined_call_operand.hbm [shape: f32[1,1024], index: 2, kind: input, shape index: {}]   ;;  %s7537_s3 = inlined_call_operand.hbm [shape: bf16[1024,1024], index: 3, kind: input, shape index: {}]   ;;  %s7538_s4 = inlined_call_operand.hbm [shape: f32[1,1024], index: 4, kind: input, shape index: {}]   ;;  %s7539_s5 = inlined_call_operand.hbm [shape: bf16[1,1024], index: 5, kind: input, shape index: {}]   ;;  %s7540_s6 = inlined_call_operand.<no memory space> [shape: f32[1,1], index: 6, kind: input, shape index: {}]   ;;  %s7541_s7 = inlined_call_operand.vmem [shape: f32[2,1], index: 7, kind: output, shape index: {}]  }
   0x1   :  { %v12_v0 = vstv %s7540_s6 }
   0x2   :  { %13 = vst [vmem:[#allocation3] sm:$0x1] %v12_v0 }
   0x3   :  { %14 = vsyncpa [#allocation5], 0 }
   0x4   :  { %15 = vsyncpa [#allocation7], 0 }
   0x5   :  { %16 = vsyncpa [#allocation10], 0  ;;  %s33_s28 = sshll.u32 %s7535_s1, 4  ;;  %s34_s28 = int_to_ptr.hbm [resolvable:$true] %s33_s28 }
   0x6   :  { %17 = vsyncpa [#allocation13], 0  ;;  %s7281_s29 = smov [#allocation6]   ;;  %s57_s10 = sshll.u32 %s7537_s3, 4  ;;  %s58_s10 = int_to_ptr.hbm [resolvable:$true] %s57_s10 }
   0x7   :  { %s35_s30 = sshll.u32 %s7281_s29, 4  ;;  %s7282_s11 = smov 512   ;;  %s36_s30 = int_to_ptr.vmem [resolvable:$true] %s35_s30 }
   0x8   :  { %s7283_s12 = smov 32   ;;  %s7284_s6 = smov [#allocation9]  }
   0x9   :  { %41 = dma.hbm_to_vmem [thread:$0]  %s34_s28, 2048, %s36_s30, [#allocation7], %s7282_s11, %s7282_s11, %s7283_s12  }
   0xa   :  { %s59_s13 = sshll.u32 %s7284_s6, 4  ;;  %s23_s16 = sshll.u32 %s7534_s0, 4  ;;  %s60_s13 = int_to_ptr.vmem [resolvable:$true] %s59_s13  ;;  %s24_s16 = int_to_ptr.hbm [resolvable:$true] %s23_s16 }
   0xb   :  { %65 = dma.hbm_to_vmem [thread:$0]  %s58_s10, 65536, %s60_s13, [#allocation10], %s7282_s11, %s7282_s11, %s7283_s12  }
   0xc   :  { %s47_s18 = sshll.u32 %s7536_s2, 4  ;;  %s7285_s19 = smov [#allocation4]   ;;  %s48_s18 = int_to_ptr.hbm [resolvable:$true] %s47_s18 }
   0xd   :  { %s25_s20 = sshll.u32 %s7285_s19, 4  ;;  %s7286_s3 = smov [#allocation8]   ;;  %s26_s20 = int_to_ptr.vmem [resolvable:$true] %s25_s20 }
   0xe   :  { %28 = dma.hbm_to_vmem [thread:$0]  %s24_s16, 32, %s26_s20, [#allocation5]  }
   0xf   :  { %s49_s21 = sshll.u32 %s7286_s3, 4  ;;  %s71_s24 = sshll.u32 %s7538_s4, 4  ;;  %s50_s21 = int_to_ptr.vmem [resolvable:$true] %s49_s21  ;;  %s72_s24 = int_to_ptr.hbm [resolvable:$true] %s71_s24 }
  0x10   :  { %52 = dma.hbm_to_vmem [thread:$0]  %s48_s18, 128, %s50_s21, [#allocation7]  }
  0x11   :  { %s82_s26 = sshll.u32 %s7539_s5, 4  ;;  %s7287_s27 = smov [#allocation11]   ;;  %s83_s26 = int_to_ptr.hbm [resolvable:$true] %s82_s26 }
  0x12   :  { %s73_s2 = sshll.u32 %s7287_s27, 4  ;;  %s7288_s28 = smov [#allocation12]   ;;  %s74_s2 = int_to_ptr.vmem [resolvable:$true] %s73_s2 }
  0x13   :  { %76 = dma.hbm_to_vmem [thread:$0]  %s72_s24, 128, %s74_s2, [#allocation10]  }
  0x14   :  { %s84_s29 = sshll.u32 %s7288_s28, 4  ;;  %s85_s29 = int_to_ptr.vmem [resolvable:$true] %s84_s29 }
  0x15   :  { %87 = dma.hbm_to_vmem [thread:$0]  %s83_s26, 128, %s85_s29, [#allocation13]  }
  0x16   :  { %7273 = dma.done.wait [#allocation5], 32  }
  0x17   :  { %7274 = vsyncadd [#allocation5], 4294967264 }
  0x18   :  { %7275 = dma.done.wait [#allocation7], 2176  }
  0x19   :  { %7276 = vsyncadd [#allocation7], 4294965120 }
  0x1a   :  { %7277 = dma.done.wait [#allocation10], 65664  }
  0x1b   :  { %7278 = vsyncadd [#allocation10], 4294901632 }
  0x1c   :  { %7279 = dma.done.wait [#allocation13], 128  }
  0x1d   :  { %7280 = vsyncadd [#allocation13], 4294967168  ;;  %vm221_vm0 = vcmask 261120   ;;  %v4483_v1 = vld [vmem:[#allocation6 + $0x40] sm:$0xf]  ;;  %vm343_vm1 = vcmask 1041408  }
  0x1e   :  { %v6581_v2 = vld [vmem:[#allocation6 + $0x5c] sm:$0xf0]  ;;  %v6577_v3 = vld [vmem:[#allocation6 + $0x44] sm:$0xf]  ;;  %v4491_v6 = vld [vmem:[#allocation6 + $0x48] sm:$0xf] }
  0x1f   :  { %v4484_v4 = vor.u32 %v6581_v2, %v4483_v1  ;;  %v4485_v5 = vld [vmem:[#allocation6 + $0x60] sm:$0xf0]  ;;  %v6582_v7 = vld [vmem:[#allocation6 + $0x64] sm:$0xf0]  ;;  %v6578_v10 = vld [vmem:[#allocation6 + $0x4c] sm:$0xf] }
  0x20   :  { %v4488_v8 = vor.u32 %v6577_v3, %v4485_v5  ;;  %v4492_v9 = vor.u32 %v6582_v7, %v4491_v6  ;;  %v4493_v11 = vld [vmem:[#allocation6 + $0x68] sm:$0xf0]  ;;  %v4451_v12 = vld [vmem:[#allocation6] sm:$0xf]  ;;  %v6569_v15 = vld [vmem:[#allocation6 + $0x4] sm:$0xf] }
  0x21   :  { %231 = vmatpush.bf16.msra.mxu0 %v4484_v4  ;;  %v4496_v13 = vor.u32 %v6578_v10, %v4493_v11  ;;  %v6573_v14 = vld [vmem:[#allocation6 + $0x1c] sm:$0xf0]  ;;  %v4453_v16 = vld [vmem:[#allocation6 + $0x20] sm:$0xf0]  ;;  %v4459_v19 = vld [vmem:[#allocation6 + $0x8] sm:$0xf] }
  0x22   :  { %244 = vmatpush.bf16.msra.mxu1 %v4488_v8  ;;  %257 = vmatpush.bf16.msra.mxu2 %v4492_v9  ;;  %v4452_v17 = vor.u32 %v6573_v14, %v4451_v12  ;;  %v4456_v18 = vor.u32 %v6569_v15, %v4453_v16  ;;  %v6574_v20 = vld [vmem:[#allocation6 + $0x24] sm:$0xf0]  ;;  %v6570_v21 = vld [vmem:[#allocation6 + $0xc] sm:$0xf]  ;;  %v121_v24 = vld [vmem:[#allocation4] sm:$0x3] }
  0x23   :  { %270 = vmatpush.bf16.msra.mxu3 %v4496_v13  ;;  %v4460_v22 = vor.u32 %v6574_v20, %v4459_v19  ;;  %v4461_v23 = vld [vmem:[#allocation6 + $0x28] sm:$0xf0]  ;;  %v4507_v25 = vld [vmem:[#allocation6 + $0x58] sm:$0xf]  ;;  %v7350_v27 = vpack.c.bf16 %v121_v24, %v121_v24  ;;  %v6580_v29 = vld [vmem:[#allocation6 + $0x5c] sm:$0xf] }
  0x24   :  { %v4464_v26 = vor.u32 %v6570_v21, %v4461_v23  ;;  %v6584_v28 = vld [vmem:[#allocation6 + $0x74] sm:$0xf0]  ;;  %v4509_v30 = vld [vmem:[#allocation6 + $0x78] sm:$0xf0]  ;;  %v6579_v37 = vld [vmem:[#allocation6 + $0x54] sm:$0xf] }
  0x25   :  { %232 = vmatpush.bf16.msra.mxu0 %v4452_v17  ;;  %v4508_v31 = vor.u32 %v6584_v28, %v4507_v25  ;;  %v4512_v32 = vor.u32 %v6580_v29, %v4509_v30  ;;  %v4475_v33 = vld [vmem:[#allocation6 + $0x18] sm:$0xf]  ;;  %v6572_v35 = vld [vmem:[#allocation6 + $0x1c] sm:$0xf]  ;;  %v4501_v38 = vld [vmem:[#allocation6 + $0x70] sm:$0xf0] }
  0x26   :  { %v6576_v34 = vld [vmem:[#allocation6 + $0x34] sm:$0xf0]  ;;  %245 = vmatpush.bf16.msra.mxu1 %v4456_v18  ;;  %258 = vmatpush.bf16.msra.mxu2 %v4460_v22  ;;  %v4477_v36 = vld [vmem:[#allocation6 + $0x38] sm:$0xf0]  ;;  %v4504_v40 = vor.u32 %v6579_v37, %v4501_v38  ;;  %v4499_v41 = vld [vmem:[#allocation6 + $0x50] sm:$0xf] }
  0x27   :  { %271 = vmatpush.bf16.msra.mxu3 %v4464_v26  ;;  %v4476_v39 = vor.u32 %v6576_v34, %v4475_v33  ;;  %v6583_v42 = vld [vmem:[#allocation6 + $0x6c] sm:$0xf0]  ;;  %v6571_v43 = vld [vmem:[#allocation6 + $0x14] sm:$0xf]  ;;  %v4480_v44 = vor.u32 %v6572_v35, %v4477_v36  ;;  %v4747_v49 = vld [vmem:[#allocation9 + $0x1c0] sm:$0xf] }
  0x28   :  { %4513 = vmatmul.msk.bf16.vlgmr.msra.gmra.mxu0 %vm221_vm0, %v7350_v27  ;;  %v4500_v45 = vor.u32 %v6583_v42, %v4499_v41  ;;  %v4469_v46 = vld [vmem:[#allocation6 + $0x30] sm:$0xf0]  ;;  %v4467_v47 = vld [vmem:[#allocation6 + $0x10] sm:$0xf]  ;;  %v6645_v50 = vld [vmem:[#allocation9 + $0x1dc] sm:$0xf0] }
  0x29   :  { %v6575_v48 = vld [vmem:[#allocation6 + $0x2c] sm:$0xf0]  ;;  %4514 = vmatmul.msk.bf16.vlgmr.msra.gmra.mxu1 %vm221_vm0, %v7350_v27  ;;  %4515 = vmatmul.msk.bf16.vlgmr.msra.gmra.mxu2 %vm221_vm0, %v7350_v27  ;;  %v5003_v51 = vld [vmem:[#allocation9 + $0x3c0] sm:$0xf]  ;;  %v4472_v52 = vor.u32 %v6571_v43, %v4469_v46  ;;  %v4748_v62 = vor.u32 %v6645_v50, %v4747_v49  ;;  %vm345_vm2 = vcmask 1045508   ;;  %vm347_vm3 = vcmask 1043456  }
  0x2a   :  { %309 = vmatpush.bf16.msrb.mxu2 %v4508_v31  ;;  %4516 = vmatmul.msk.bf16.vlgmr.msra.gmra.mxu3 %vm221_vm0, %v7350_v27  ;;  %v6709_v53 = vld [vmem:[#allocation9 + $0x3dc] sm:$0xf0]  ;;  %v4468_v56 = vor.u32 %v6575_v48, %v4467_v47  ;;  %vm4439_vm4 = vcmask 1024  }
  0x2b   :  { %322 = vmatpush.bf16.msrb.mxu3 %v4512_v32  ;;  %296 = vmatpush.bf16.msrb.mxu1 %v4504_v40  ;;  %v5259_v54 = vld [vmem:[#allocation9 + $0x5c0] sm:$0xf]  ;;  %v5004_v57 = vor.u32 %v6709_v53, %v5003_v51 }
  0x2c   :  { %v6773_v55 = vld [vmem:[#allocation9 + $0x5dc] sm:$0xf0]  ;;  %283 = vmatpush.bf16.msrb.mxu0 %v4500_v45 }
  0x2d   :  { %v5260_v58 = vor.u32 %v6773_v55, %v5259_v54  ;;  %v5515_v59 = vld [vmem:[#allocation9 + $0x7c0] sm:$0xf] }
  0x2e   :  { %310 = vmatpush.bf16.msrb.mxu2 %v4476_v39  ;;  %v6837_v60 = vld [vmem:[#allocation9 + $0x7dc] sm:$0xf0] }
  0x2f   :  { %v4715_v61 = vld [vmem:[#allocation9 + $0x180] sm:$0xf]  ;;  %323 = vmatpush.bf16.msrb.mxu3 %v4480_v44  ;;  %v5516_v63 = vor.u32 %v6837_v60, %v5515_v59  ;;  %297 = vmatpush.bf16.msrb.mxu1 %v4472_v52 }
  0x30   :  { %v6637_v0 = vld [vmem:[#allocation9 + $0x19c] sm:$0xf0]  ;;  %284 = vmatpush.bf16.msrb.mxu0 %v4468_v56 }
  0x31   :  { %v4971_v1 = vld [vmem:[#allocation9 + $0x380] sm:$0xf]  ;;  %v4716_v13 = vor.u32 %v6637_v0, %v4715_v61 }
  0x32   :  { %v6701_v2 = vld [vmem:[#allocation9 + $0x39c] sm:$0xf0]  ;;  %3542 = vmatpush.bf16.msra.mxu2 %v5260_v58 }
  0x33   :  { %v5227_v3 = vld [vmem:[#allocation9 + $0x580] sm:$0xf]  ;;  %3555 = vmatpush.bf16.msra.mxu3 %v5516_v63  ;;  %3529 = vmatpush.bf16.msra.mxu1 %v5004_v57  ;;  %v4972_v8 = vor.u32 %v6701_v2, %v4971_v1 }
  0x34   :  { %v6765_v4 = vld [vmem:[#allocation9 + $0x59c] sm:$0xf0]  ;;  %3516 = vmatpush.bf16.msra.mxu0 %v4748_v62 }
  0x35   :  { %v5483_v5 = vld [vmem:[#allocation9 + $0x780] sm:$0xf]  ;;  %v5228_v6 = vor.u32 %v6765_v4, %v5227_v3 }
  0x36   :  { %v6829_v7 = vld [vmem:[#allocation9 + $0x79c] sm:$0xf0] }
  0x37   :  { %v5484_v9 = vor.u32 %v6829_v7, %v5483_v5  ;;  %v4939_v10 = vld [vmem:[#allocation9 + $0x340] sm:$0xf]  ;;  %3543 = vmatpush.bf16.msra.mxu2 %v5228_v6  ;;  %3530 = vmatpush.bf16.msra.mxu1 %v4972_v8 }
  0x38   :  { %v6693_v11 = vld [vmem:[#allocation9 + $0x35c] sm:$0xf0]  ;;  %3517 = vmatpush.bf16.msra.mxu0 %v4716_v13 }
  0x39   :  { %v5195_v12 = vld [vmem:[#allocation9 + $0x540] sm:$0xf]  ;;  %3556 = vmatpush.bf16.msra.mxu3 %v5484_v9  ;;  %v4940_v21 = vor.u32 %v6693_v11, %v4939_v10  ;;  %4517 = vmatmul.msk.bf16.vlgmr.msrb.gmra.mxu0 %vm221_vm0, %v7350_v27 }
  0x3a   :  { %v6757_v14 = vld [vmem:[#allocation9 + $0x55c] sm:$0xf0]  ;;  %4519 = vmatmul.msk.bf16.vlgmr.msrb.gmra.mxu2 %vm221_vm0, %v7350_v27  ;;  %4518 = vmatmul.msk.bf16.vlgmr.msrb.gmra.mxu1 %vm221_vm0, %v7350_v27 }
  0x3b   :  { %v5451_v15 = vld [vmem:[#allocation9 + $0x740] sm:$0xf]  ;;  %v5196_v17 = vor.u32 %v6757_v14, %v5195_v12  ;;  %3531 = vmatpush.bf16.msra.mxu1 %v4940_v21  ;;  %4520 = vmatmul.msk.bf16.vlgmr.msrb.gmra.mxu3 %vm221_vm0, %v7350_v27 }
  0x3c   :  { %v6821_v16 = vld [vmem:[#allocation9 + $0x75c] sm:$0xf0] }
  0x3d   :  { %v5452_v18 = vor.u32 %v6821_v16, %v5451_v15  ;;  %v4683_v19 = vld [vmem:[#allocation9 + $0x140] sm:$0xf]  ;;  %3544 = vmatpush.bf16.msra.mxu2 %v5196_v17 }
  0x3e   :  { %v6629_v20 = vld [vmem:[#allocation9 + $0x15c] sm:$0xf0] }
  0x3f   :  { %v4907_v22 = vld [vmem:[#allocation9 + $0x300] sm:$0xf]  ;;  %v4684_v29 = vor.u32 %v6629_v20, %v4683_v19  ;;  %3557 = vmatpush.bf16.msra.mxu3 %v5452_v18 }
  0x40   :  { %v6685_v23 = vld [vmem:[#allocation9 + $0x31c] sm:$0xf0] }
  0x41   :  { %v5163_v24 = vld [vmem:[#allocation9 + $0x500] sm:$0xf]  ;;  %v4908_v32 = vor.u32 %v6685_v23, %v4907_v22  ;;  %3518 = vmatpush.bf16.msra.mxu0 %v4684_v29 }
  0x42   :  { %v6749_v25 = vld [vmem:[#allocation9 + $0x51c] sm:$0xf0] }
  0x43   :  { %v5419_v26 = vld [vmem:[#allocation9 + $0x700] sm:$0xf]  ;;  %v5164_v33 = vor.u32 %v6749_v25, %v5163_v24  ;;  %3532 = vmatpush.bf16.msra.mxu1 %v4908_v32 }
  0x44   :  { %v6813_v28 = vld [vmem:[#allocation9 + $0x71c] sm:$0xf0] }
  0x45   :  { %v4651_v30 = vld [vmem:[#allocation9 + $0x100] sm:$0xf]  ;;  %v5420_v35 = vor.u32 %v6813_v28, %v5419_v26  ;;  %3545 = vmatpush.bf16.msra.mxu2 %v5164_v33 }
  0x46   :  { %v6621_v31 = vld [vmem:[#allocation9 + $0x11c] sm:$0xf0] }
  0x47   :  { %v4875_v34 = vld [vmem:[#allocation9 + $0x2c0] sm:$0xf]  ;;  %v4652_v41 = vor.u32 %v6621_v31, %v4651_v30  ;;  %3558 = vmatpush.bf16.msra.mxu3 %v5420_v35 }
  0x48   :  { %v6677_v36 = vld [vmem:[#allocation9 + $0x2dc] sm:$0xf0] }
  0x49   :  { %v5131_v37 = vld [vmem:[#allocation9 + $0x4c0] sm:$0xf]  ;;  %v4876_v44 = vor.u32 %v6677_v36, %v4875_v34  ;;  %3519 = vmatpush.bf16.msra.mxu0 %v4652_v41 }
  0x4a   :  { %v6741_v38 = vld [vmem:[#allocation9 + $0x4dc] sm:$0xf0] }
  0x4b   :  { %v5387_v39 = vld [vmem:[#allocation9 + $0x6c0] sm:$0xf]  ;;  %v5132_v45 = vor.u32 %v6741_v38, %v5131_v37  ;;  %3533 = vmatpush.bf16.msra.mxu1 %v4876_v44 }
  0x4c   :  { %v6805_v40 = vld [vmem:[#allocation9 + $0x6dc] sm:$0xf0] }
  0x4d   :  { %v4619_v42 = vld [vmem:[#allocation9 + $0xc0] sm:$0xf]  ;;  %v5388_v47 = vor.u32 %v6805_v40, %v5387_v39  ;;  %3546 = vmatpush.bf16.msra.mxu2 %v5132_v45 }
  0x4e   :  { %v6613_v43 = vld [vmem:[#allocation9 + $0xdc] sm:$0xf0] }
  0x4f   :  { %v4843_v46 = vld [vmem:[#allocation9 + $0x280] sm:$0xf]  ;;  %v4620_v53 = vor.u32 %v6613_v43, %v4619_v42  ;;  %3559 = vmatpush.bf16.msra.mxu3 %v5388_v47 }
  0x50   :  { %v6669_v48 = vld [vmem:[#allocation9 + $0x29c] sm:$0xf0] }
  0x51   :  { %v5099_v49 = vld [vmem:[#allocation9 + $0x480] sm:$0xf]  ;;  %v4844_v55 = vor.u32 %v6669_v48, %v4843_v46  ;;  %3520 = vmatpush.bf16.msra.mxu0 %v4620_v53 }
  0x52   :  { %v6733_v50 = vld [vmem:[#allocation9 + $0x49c] sm:$0xf0] }
  0x53   :  { %v5355_v51 = vld [vmem:[#allocation9 + $0x680] sm:$0xf]  ;;  %v5100_v56 = vor.u32 %v6733_v50, %v5099_v49  ;;  %3534 = vmatpush.bf16.msra.mxu1 %v4844_v55 }
  0x54   :  { %v6797_v52 = vld [vmem:[#allocation9 + $0x69c] sm:$0xf0] }
  0x55   :  { %v4587_v27 = vld [vmem:[#allocation9 + $0x80] sm:$0xf]  ;;  %v5356_v57 = vor.u32 %v6797_v52, %v5355_v51  ;;  %3547 = vmatpush.bf16.msra.mxu2 %v5100_v56 }
  0x56   :  { %v6605_v54 = vld [vmem:[#allocation9 + $0x9c] sm:$0xf0] }
  0x57   :  { %v4588_v58 = vor.u32 %v6605_v54, %v4587_v27  ;;  %3560 = vmatpush.bf16.msra.mxu3 %v5356_v57  ;;  %v4555_v59 = vld [vmem:[#allocation9 + $0x40] sm:$0xf] }
  0x58   :  { %v6597_v60 = vld [vmem:[#allocation9 + $0x5c] sm:$0xf0] }
  0x59   :  { %3521 = vmatpush.bf16.msra.mxu0 %v4588_v58  ;;  %v4811_v61 = vld [vmem:[#allocation9 + $0x240] sm:$0xf]  ;;  %v4556_v62 = vor.u32 %v6597_v60, %v4555_v59 }
  0x5a   :  { %v6661_v63 = vld [vmem:[#allocation9 + $0x25c] sm:$0xf0] }
  0x5b   :  { %v5067_v0 = vld [vmem:[#allocation9 + $0x440] sm:$0xf]  ;;  %v4812_v1 = vor.u32 %v6661_v63, %v4811_v61 }
  0x5c   :  { %v6725_v2 = vld [vmem:[#allocation9 + $0x45c] sm:$0xf0] }
  0x5d   :  { %v5323_v3 = vld [vmem:[#allocation9 + $0x640] sm:$0xf]  ;;  %3522 = vmatpush.bf16.msra.mxu0 %v4556_v62  ;;  %v5068_v5 = vor.u32 %v6725_v2, %v5067_v0  ;;  %3535 = vmatpush.bf16.msra.mxu1 %v4812_v1 }
  0x5e   :  { %v6789_v4 = vld [vmem:[#allocation9 + $0x65c] sm:$0xf0] }
  0x5f   :  { %v5324_v6 = vor.u32 %v6789_v4, %v5323_v3  ;;  %v4523_v7 = vld [vmem:[#allocation9] sm:$0xf]  ;;  %3548 = vmatpush.bf16.msra.mxu2 %v5068_v5 }
  0x60   :  { %v6589_v8 = vld [vmem:[#allocation9 + $0x1c] sm:$0xf0] }
  0x61   :  { %v4779_v9 = vld [vmem:[#allocation9 + $0x200] sm:$0xf]  ;;  %3561 = vmatpush.bf16.msra.mxu3 %v5324_v6  ;;  %v4524_v10 = vor.u32 %v6589_v8, %v4523_v7 }
  0x62   :  { %v6653_v11 = vld [vmem:[#allocation9 + $0x21c] sm:$0xf0] }
  0x63   :  { %v5035_v12 = vld [vmem:[#allocation9 + $0x400] sm:$0xf]  ;;  %v4780_v13 = vor.u32 %v6653_v11, %v4779_v9  ;;  %3523 = vmatpush.bf16.msra.mxu0 %v4524_v10 }
  0x64   :  { %v6717_v14 = vld [vmem:[#allocation9 + $0x41c] sm:$0xf0] }
  0x65   :  { %v5036_v15 = vor.u32 %v6717_v14, %v5035_v12  ;;  %v5291_v16 = vld [vmem:[#allocation9 + $0x600] sm:$0xf]  ;;  %3536 = vmatpush.bf16.msra.mxu1 %v4780_v13  ;;  %v7368_v13 = vld [vmem:[#allocation8] sm:$0xff] }
  0x66   :  { %v6781_v17 = vld [vmem:[#allocation9 + $0x61c] sm:$0xf0] }
  0x67   :  { %v5771_v18 = vld [vmem:[#allocation9 + $0x9c0] sm:$0xf]  ;;  %3549 = vmatpush.bf16.msra.mxu2 %v5036_v15  ;;  %v5292_v20 = vor.u32 %v6781_v17, %v5291_v16 }
  0x68   :  { %v6901_v19 = vld [vmem:[#allocation9 + $0x9dc] sm:$0xf0] }
  0x69   :  { %v5772_v21 = vor.u32 %v6901_v19, %v5771_v18  ;;  %v6027_v22 = vld [vmem:[#allocation9 + $0xbc0] sm:$0xf]  ;;  %3562 = vmatpush.bf16.msra.mxu3 %v5292_v20 }
  0x6a   :  { %v6965_v23 = vld [vmem:[#allocation9 + $0xbdc] sm:$0xf0] }
  0x6b   :  { %v6028_v24 = vor.u32 %v6965_v23, %v6027_v22  ;;  %v6283_v25 = vld [vmem:[#allocation9 + $0xdc0] sm:$0xf]  ;;  %3568 = vmatpush.bf16.msrb.mxu0 %v5772_v21 }
  0x6c   :  { %v7029_v26 = vld [vmem:[#allocation9 + $0xddc] sm:$0xf0] }
  0x6d   :  { %v6284_v28 = vor.u32 %v7029_v26, %v6283_v25  ;;  %v6539_v29 = vld [vmem:[#allocation9 + $0xfc0] sm:$0xf]  ;;  %3581 = vmatpush.bf16.msrb.mxu1 %v6028_v24  ;;  %v366_v24 = vperm.slane %v7368_v13, 1  ;;  %v367_v25 = vperm.slane %v7368_v13, 2  ;;  %v368_v26 = vperm.slane %v7368_v13, 3 }
  0x6e   :  { %v7093_v30 = vld [vmem:[#allocation9 + $0xfdc] sm:$0xf0] }
  0x6f   :  { %v5739_v31 = vld [vmem:[#allocation9 + $0x980] sm:$0xf]  ;;  %v6540_v32 = vor.u32 %v7093_v30, %v6539_v29  ;;  %3594 = vmatpush.bf16.msrb.mxu2 %v6284_v28 }
  0x70   :  { %v6893_v33 = vld [vmem:[#allocation9 + $0x99c] sm:$0xf0] }
  0x71   :  { %v5995_v34 = vld [vmem:[#allocation9 + $0xb80] sm:$0xf]  ;;  %v5740_v36 = vor.u32 %v6893_v33, %v5739_v31  ;;  %3607 = vmatpush.bf16.msrb.mxu3 %v6540_v32 }
  0x72   :  { %v6957_v35 = vld [vmem:[#allocation9 + $0xb9c] sm:$0xf0] }
  0x73   :  { %v5996_v37 = vor.u32 %v6957_v35, %v5995_v34  ;;  %v6251_v38 = vld [vmem:[#allocation9 + $0xd80] sm:$0xf]  ;;  %3569 = vmatpush.bf16.msrb.mxu0 %v5740_v36 }
  0x74   :  { %v7021_v39 = vld [vmem:[#allocation9 + $0xd9c] sm:$0xf0] }
  0x75   :  { %v6507_v40 = vld [vmem:[#allocation9 + $0xf80] sm:$0xf]  ;;  %v6252_v41 = vor.u32 %v7021_v39, %v6251_v38  ;;  %3582 = vmatpush.bf16.msrb.mxu1 %v5996_v37 }
  0x76   :  { %v7085_v42 = vld [vmem:[#allocation9 + $0xf9c] sm:$0xf0] }
  0x77   :  { %v5707_v43 = vld [vmem:[#allocation9 + $0x940] sm:$0xf]  ;;  %v6508_v45 = vor.u32 %v7085_v42, %v6507_v40  ;;  %3595 = vmatpush.bf16.msrb.mxu2 %v6252_v41 }
  0x78   :  { %v6885_v44 = vld [vmem:[#allocation9 + $0x95c] sm:$0xf0] }
  0x79   :  { %v5708_v46 = vor.u32 %v6885_v44, %v5707_v43  ;;  %v5963_v47 = vld [vmem:[#allocation9 + $0xb40] sm:$0xf]  ;;  %3608 = vmatpush.bf16.msrb.mxu3 %v6508_v45  ;;  %v365_v43 = vperm.slane %v7368_v13, 0  ;;  %v373_v44 = vrot.slane %v366_v24, 6 }
  0x7a   :  { %v6949_v48 = vld [vmem:[#allocation9 + $0xb5c] sm:$0xf0] }
  0x7b   :  { %v6219_v49 = vld [vmem:[#allocation9 + $0xd40] sm:$0xf]  ;;  %v5964_v50 = vor.u32 %v6949_v48, %v5963_v47  ;;  %3570 = vmatpush.bf16.msrb.mxu0 %v5708_v46  ;;  %v374_v46 = vrot.slane %v367_v25, 4  ;;  %v375_v47 = vrot.slane %v368_v26, 2 }
  0x7c   :  { %v7013_v51 = vld [vmem:[#allocation9 + $0xd5c] sm:$0xf0] }
  0x7d   :  { %v6475_v52 = vld [vmem:[#allocation9 + $0xf40] sm:$0xf]  ;;  %v6220_v27 = vor.u32 %v7013_v51, %v6219_v49  ;;  %3583 = vmatpush.bf16.msrb.mxu1 %v5964_v50 }
  0x7e   :  { %v7077_v53 = vld [vmem:[#allocation9 + $0xf5c] sm:$0xf0] }
  0x7f   :  { %v5675_v54 = vld [vmem:[#allocation9 + $0x900] sm:$0xf]  ;;  %v6476_v57 = vor.u32 %v7077_v53, %v6475_v52  ;;  %3596 = vmatpush.bf16.msrb.mxu2 %v6220_v27 }
  0x80   :  { %v6877_v55 = vld [vmem:[#allocation9 + $0x91c] sm:$0xf0] }
  0x81   :  { %v5931_v56 = vld [vmem:[#allocation9 + $0xb00] sm:$0xf]  ;;  %v5676_v61 = vor.u32 %v6877_v55, %v5675_v54  ;;  %3609 = vmatpush.bf16.msrb.mxu3 %v6476_v57 }
  0x82   :  { %v6941_v58 = vld [vmem:[#allocation9 + $0xb1c] sm:$0xf0] }
  0x83   :  { %v6187_v59 = vld [vmem:[#allocation9 + $0xd00] sm:$0xf]  ;;  %v5932_v0 = vor.u32 %v6941_v58, %v5931_v56  ;;  %3571 = vmatpush.bf16.msrb.mxu0 %v5676_v61 }
  0x84   :  { %v7005_v60 = vld [vmem:[#allocation9 + $0xd1c] sm:$0xf0] }
  0x85   :  { %v6443_v62 = vld [vmem:[#allocation9 + $0xf00] sm:$0xf]  ;;  %v6188_v1 = vor.u32 %v7005_v60, %v6187_v59  ;;  %3584 = vmatpush.bf16.msrb.mxu1 %v5932_v0 }
  0x86   :  { %v7069_v63 = vld [vmem:[#allocation9 + $0xf1c] sm:$0xf0] }
  0x87   :  { %v5643_v2 = vld [vmem:[#allocation9 + $0x8c0] sm:$0xf]  ;;  %v6444_v5 = vor.u32 %v7069_v63, %v6443_v62  ;;  %3597 = vmatpush.bf16.msrb.mxu2 %v6188_v1  ;;  %v379_v62 = vsel %vm343_vm1, %v365_v43, %v373_v44  ;;  %v380_v63 = vsel %vm345_vm2, %v374_v46, %v375_v47  ;;  %v6641_v44 = vld [vmem:[#allocation9 + $0x1c4] sm:$0xf] }
  0x88   :  { %v6869_v3 = vld [vmem:[#allocation9 + $0x8dc] sm:$0xf0]  ;;  %v6705_v46 = vld [vmem:[#allocation9 + $0x3c4] sm:$0xf] }
  0x89   :  { %v5899_v4 = vld [vmem:[#allocation9 + $0xac0] sm:$0xf]  ;;  %v5644_v9 = vor.u32 %v6869_v3, %v5643_v2  ;;  %3610 = vmatpush.bf16.msrb.mxu3 %v6444_v5  ;;  %v5005_v47 = vld [vmem:[#allocation9 + $0x3e0] sm:$0xf0] }
  0x8a   :  { %v6933_v6 = vld [vmem:[#allocation9 + $0xadc] sm:$0xf0] }
  0x8b   :  { %v6155_v7 = vld [vmem:[#allocation9 + $0xcc0] sm:$0xf]  ;;  %v5900_v12 = vor.u32 %v6933_v6, %v5899_v4  ;;  %3572 = vmatpush.bf16.msrb.mxu0 %v5644_v9 }
  0x8c   :  { %v6997_v8 = vld [vmem:[#allocation9 + $0xcdc] sm:$0xf0] }
  0x8d   :  { %v6411_v10 = vld [vmem:[#allocation9 + $0xec0] sm:$0xf]  ;;  %v6156_v14 = vor.u32 %v6997_v8, %v6155_v7  ;;  %3585 = vmatpush.bf16.msrb.mxu1 %v5900_v12  ;;  %v381_v7 = vsel %vm347_vm3, %v379_v62, %v380_v63 }
  0x8e   :  { %v7061_v11 = vld [vmem:[#allocation9 + $0xedc] sm:$0xf0] }
  0x8f   :  { %v5611_v15 = vld [vmem:[#allocation9 + $0x880] sm:$0xf]  ;;  %v6412_v17 = vor.u32 %v7061_v11, %v6411_v10  ;;  %3598 = vmatpush.bf16.msrb.mxu2 %v6156_v14  ;;  %v370_v14 = vperm.slane %v7368_v13, 5 }
  0x90   :  { %v6861_v16 = vld [vmem:[#allocation9 + $0x89c] sm:$0xf0] }
  0x91   :  { %v5867_v18 = vld [vmem:[#allocation9 + $0xa80] sm:$0xf]  ;;  %v5612_v20 = vor.u32 %v6861_v16, %v5611_v15  ;;  %3611 = vmatpush.bf16.msrb.mxu3 %v6412_v17  ;;  %v371_v15 = vperm.slane %v7368_v13, 6  ;;  %v372_v16 = vperm.slane %v7368_v13, 7 }
  0x92   :  { %v6925_v19 = vld [vmem:[#allocation9 + $0xa9c] sm:$0xf0] }
  0x93   :  { %v6123_v21 = vld [vmem:[#allocation9 + $0xc80] sm:$0xf]  ;;  %v5868_v28 = vor.u32 %v6925_v19, %v5867_v18  ;;  %3573 = vmatpush.bf16.msrb.mxu0 %v5612_v20  ;;  %v369_v20 = vperm.slane %v7368_v13, 4 }
  0x94   :  { %v6989_v22 = vld [vmem:[#allocation9 + $0xc9c] sm:$0xf0] }
  0x95   :  { %v6379_v23 = vld [vmem:[#allocation9 + $0xe80] sm:$0xf]  ;;  %v6124_v30 = vor.u32 %v6989_v22, %v6123_v21  ;;  %3586 = vmatpush.bf16.msrb.mxu1 %v5868_v28  ;;  %v376_v21 = vrot.slane %v370_v14, 6  ;;  %v377_v22 = vrot.slane %v371_v15, 4  ;;  %v6689_v14 = vld [vmem:[#allocation9 + $0x344] sm:$0xf] }
  0x96   :  { %v7053_v29 = vld [vmem:[#allocation9 + $0xe9c] sm:$0xf0] }
  0x97   :  { %v5579_v31 = vld [vmem:[#allocation9 + $0x840] sm:$0xf]  ;;  %v6380_v34 = vor.u32 %v7053_v29, %v6379_v23  ;;  %3599 = vmatpush.bf16.msrb.mxu2 %v6124_v30  ;;  %v378_v23 = vrot.slane %v372_v16, 2  ;;  %v382_v28 = vsel %vm343_vm1, %v369_v20, %v376_v21  ;;  %v6817_v21 = vld [vmem:[#allocation9 + $0x744] sm:$0xf] }
  0x98   :  { %v6853_v32 = vld [vmem:[#allocation9 + $0x85c] sm:$0xf0] }
  0x99   :  { %v5835_v33 = vld [vmem:[#allocation9 + $0xa40] sm:$0xf]  ;;  %v5580_v39 = vor.u32 %v6853_v32, %v5579_v31  ;;  %3612 = vmatpush.bf16.msrb.mxu3 %v6380_v34  ;;  %v383_v29 = vsel %vm345_vm2, %v377_v22, %v378_v23  ;;  %v5453_v22 = vld [vmem:[#allocation9 + $0x760] sm:$0xf0] }
  0x9a   :  { %v6917_v35 = vld [vmem:[#allocation9 + $0xa5c] sm:$0xf0]  ;;  %v384_v13 = vsel %vm347_vm3, %v382_v28, %v383_v29  ;;  %v5456_v29 = vor.u32 %v6817_v21, %v5453_v22  ;;  %v4525_v22 = vld [vmem:[#allocation9 + $0x20] sm:$0xf0] }
  0x9b   :  { %v6091_v36 = vld [vmem:[#allocation9 + $0xc40] sm:$0xf]  ;;  %v5836_v45 = vor.u32 %v6917_v35, %v5835_v33  ;;  %3574 = vmatpush.bf16.msrb.mxu0 %v5580_v39 }
  0x9c   :  { %v6981_v37 = vld [vmem:[#allocation9 + $0xc5c] sm:$0xf0] }
  0x9d   :  { %v6347_v40 = vld [vmem:[#allocation9 + $0xe40] sm:$0xf]  ;;  %v6092_v48 = vor.u32 %v6981_v37, %v6091_v36  ;;  %3587 = vmatpush.bf16.msrb.mxu1 %v5836_v45  ;;  %v4749_v45 = vld [vmem:[#allocation9 + $0x1e0] sm:$0xf0] }
  0x9e   :  { %v7045_v41 = vld [vmem:[#allocation9 + $0xe5c] sm:$0xf0] }
  0x9f   :  { %v5547_v49 = vld [vmem:[#allocation9 + $0x800] sm:$0xf]  ;;  %v6348_v51 = vor.u32 %v7045_v41, %v6347_v40  ;;  %3600 = vmatpush.bf16.msrb.mxu2 %v6092_v48  ;;  %v6769_v48 = vld [vmem:[#allocation9 + $0x5c4] sm:$0xf] }
  0xa0   :  { %v6845_v50 = vld [vmem:[#allocation9 + $0x81c] sm:$0xf0] }
  0xa1   :  { %v5803_v52 = vld [vmem:[#allocation9 + $0xa00] sm:$0xf]  ;;  %v5548_v54 = vor.u32 %v6845_v50, %v5547_v49  ;;  %3613 = vmatpush.bf16.msrb.mxu3 %v6348_v51  ;;  %v5261_v49 = vld [vmem:[#allocation9 + $0x5e0] sm:$0xf0] }
  0xa2   :  { %v6909_v53 = vld [vmem:[#allocation9 + $0xa1c] sm:$0xf0]  ;;  %v6833_v50 = vld [vmem:[#allocation9 + $0x7c4] sm:$0xf]  ;;  %v5264_v63 = vor.u32 %v6769_v48, %v5261_v49 }
  0xa3   :  { %v6059_v27 = vld [vmem:[#allocation9 + $0xc00] sm:$0xf]  ;;  %v5804_v59 = vor.u32 %v6909_v53, %v5803_v52  ;;  %3575 = vmatpush.bf16.msrb.mxu0 %v5548_v54  ;;  %v5517_v51 = vld [vmem:[#allocation9 + $0x7e0] sm:$0xf0] }
  0xa4   :  { %v6973_v55 = vld [vmem:[#allocation9 + $0xc1c] sm:$0xf0]  ;;  %v4717_v54 = vld [vmem:[#allocation9 + $0x1a0] sm:$0xf0] }
  0xa5   :  { %v234_v38 = vpop.f32.mrf.mxu0  ;;  %v6315_v56 = vld [vmem:[#allocation9 + $0xe00] sm:$0xf]  ;;  %v6060_v60 = vor.u32 %v6973_v55, %v6059_v27  ;;  %3588 = vmatpush.bf16.msrb.mxu1 %v5804_v59  ;;  %v6633_v27 = vld [vmem:[#allocation9 + $0x184] sm:$0xf]  ;;  %v4752_v59 = vor.u32 %v6641_v44, %v4749_v45 }
  0xa6   :  { %v247_v42 = vpop.f32.mrf.mxu1  ;;  %v7037_v57 = vld [vmem:[#allocation9 + $0xe1c] sm:$0xf0]  ;;  %v5133_v44 = vld [vmem:[#allocation9 + $0x4e0] sm:$0xf0] }
  0xa7   :  { %v337_v58 = vrot.slane %v247_v42, 6  ;;  %v6316_v0 = vor.u32 %v7037_v57, %v6315_v56  ;;  %3601 = vmatpush.bf16.msrb.mxu2 %v6060_v60  ;;  %v5008_v60 = vor.u32 %v6705_v46, %v5005_v47  ;;  %v6801_v45 = vld [vmem:[#allocation9 + $0x6c4] sm:$0xf] }
  0xa8   :  { %v5389_v46 = vld [vmem:[#allocation9 + $0x6e0] sm:$0xf0] }
  0xa9   :  { %v344_v4 = vsel %vm343_vm1, %v234_v38, %v337_v58  ;;  %3614 = vmatpush.bf16.msrb.mxu3 %v6316_v0  ;;  %v5520_v0 = vor.u32 %v6833_v50, %v5517_v51  ;;  %v6601_v51 = vld [vmem:[#allocation9 + $0x84] sm:$0xf] }
  0xac   :  { %v260_v61 = vpop.f32.mrf.mxu2 }
  0xad   :  { %v338_v1 = vrot.slane %v260_v61, 4  ;;  %v273_v2 = vpop.f32.mrf.mxu3  ;;  %v236_v3 = vpop.f32.mrf.mxu0 }
  0xae   :  { %v339_v5 = vrot.slane %v273_v2, 2  ;;  %v249_v6 = vpop.f32.mrf.mxu1  ;;  %v4973_v2 = vld [vmem:[#allocation9 + $0x3a0] sm:$0xf0] }
  0xaf   :  { %v6761_v3 = vld [vmem:[#allocation9 + $0x584] sm:$0xf] }
  0xb0   :  { %v346_v8 = vsel %vm345_vm2, %v338_v1, %v339_v5  ;;  %v6697_v1 = vld [vmem:[#allocation9 + $0x384] sm:$0xf] }
  0xb1   :  { %v348_v9 = vsel %vm347_vm3, %v344_v4, %v346_v8  ;;  %v5229_v4 = vld [vmem:[#allocation9 + $0x5a0] sm:$0xf0] }
  0xb2   :  { %v387_v10 = vadd.f32 %v381_v7, %v348_v9  ;;  %v6825_v5 = vld [vmem:[#allocation9 + $0x784] sm:$0xf]  ;;  %v5232_v15 = vor.u32 %v6761_v3, %v5229_v4 }
  0xb3   :  { %v5485_v6 = vld [vmem:[#allocation9 + $0x7a0] sm:$0xf0] }
  0xb4   :  { %v389_v11 = vmul.f32 0.5, %v387_v10  ;;  %v262_v12 = vpop.f32.mrf.mxu2  ;;  %v6625_v8 = vld [vmem:[#allocation9 + $0x144] sm:$0xf]  ;;  %v4720_v10 = vor.u32 %v6633_v27, %v4717_v54  ;;  %v5488_v16 = vor.u32 %v6825_v5, %v5485_v6 }
  0xb5   :  { %v275_v17 = vpop.f32.mrf.mxu3  ;;  %v4685_v12 = vld [vmem:[#allocation9 + $0x160] sm:$0xf0] }
  0xb6   :  { %v286_v18 = vpop.f32.mrf.mxu0  ;;  %7106 = vtanh.f32 %v389_v11  ;;  %v4976_v11 = vor.u32 %v6697_v1, %v4973_v2  ;;  %v4941_v17 = vld [vmem:[#allocation9 + $0x360] sm:$0xf0]  ;;  %v4688_v23 = vor.u32 %v6625_v8, %v4685_v12 }
  0xb7   :  { %v299_v19 = vpop.f32.mrf.mxu1  ;;  %v4845_v1 = vld [vmem:[#allocation9 + $0x2a0] sm:$0xf0] }
  0xb8   :  { %v340_v24 = vrot.slane %v299_v19, 6  ;;  %v5197_v19 = vld [vmem:[#allocation9 + $0x560] sm:$0xf0] }
  0xb9   :  { %v6729_v2 = vld [vmem:[#allocation9 + $0x484] sm:$0xf] }
  0xba   :  { %v349_v35 = vsel %vm343_vm1, %v286_v18, %v340_v24  ;;  %v6753_v18 = vld [vmem:[#allocation9 + $0x544] sm:$0xf]  ;;  %v4944_v24 = vor.u32 %v6689_v14, %v4941_v17 }
  0xbb   :  { %v5200_v28 = vor.u32 %v6753_v18, %v5197_v19  ;;  %v5101_v3 = vld [vmem:[#allocation9 + $0x4a0] sm:$0xf0] }
  0xbc   :  { %v7107_v25 = vpop.eup %7106  ;;  %v6793_v4 = vld [vmem:[#allocation9 + $0x684] sm:$0xf] }
  0xbd   :  { %v312_v26 = vpop.f32.mrf.mxu2  ;;  %v393_v30 = vmul.f32 0.5, %v7107_v25  ;;  %v6617_v25 = vld [vmem:[#allocation9 + $0x104] sm:$0xf] }
  0xbe   :  { %v341_v31 = vrot.slane %v312_v26, 4  ;;  %v325_v32 = vpop.f32.mrf.mxu3  ;;  %v288_v33 = vpop.f32.mrf.mxu0  ;;  %v4653_v26 = vld [vmem:[#allocation9 + $0x120] sm:$0xf0] }
  0xbf   :  { %v342_v34 = vrot.slane %v325_v32, 2  ;;  %v301_v36 = vpop.f32.mrf.mxu1  ;;  %v395_v37 = vadd.f32 0.5, %v393_v30  ;;  %v6681_v30 = vld [vmem:[#allocation9 + $0x304] sm:$0xf] }
  0xc0   :  { %v6745_v32 = vld [vmem:[#allocation9 + $0x504] sm:$0xf] }
  0xc1   :  { %v350_v38 = vsel %vm345_vm2, %v341_v31, %v342_v34  ;;  %399 = vst [vmem:[#allocation1] ss:$4 sm:$0xff] %v395_v37  ;;  %v4909_v31 = vld [vmem:[#allocation9 + $0x320] sm:$0xf0]  ;;  %v4656_v37 = vor.u32 %v6617_v25, %v4653_v26 }
  0xc2   :  { %v351_v39 = vsel %vm347_vm3, %v349_v35, %v350_v38  ;;  %v5165_v33 = vld [vmem:[#allocation9 + $0x520] sm:$0xf0] }
  0xc3   :  { %v388_v40 = vadd.f32 %v384_v13, %v351_v39  ;;  %v6809_v34 = vld [vmem:[#allocation9 + $0x704] sm:$0xf]  ;;  %v4912_v13 = vor.u32 %v6681_v30, %v4909_v31 }
  0xc4   :  { %v5421_v35 = vld [vmem:[#allocation9 + $0x720] sm:$0xf0] }
  0xc5   :  { %v390_v41 = vmul.f32 0.5, %v388_v40  ;;  %v314_v42 = vpop.f32.mrf.mxu2  ;;  %v6609_v36 = vld [vmem:[#allocation9 + $0xc4] sm:$0xf] }
  0xc6   :  { %v327_v43 = vpop.f32.mrf.mxu3  ;;  %v4621_v38 = vld [vmem:[#allocation9 + $0xe0] sm:$0xf0]  ;;  %v5424_v42 = vor.u32 %v6809_v34, %v5421_v35 }
  0xc7   :  { %7108 = vtanh.f32 %v390_v41  ;;  %v6673_v39 = vld [vmem:[#allocation9 + $0x2c4] sm:$0xf]  ;;  %v5168_v41 = vor.u32 %v6745_v32, %v5165_v33  ;;  %v4624_v49 = vor.u32 %v6609_v36, %v4621_v38 }
  0xc8   :  { %v402_v52 = vld.sshfl [vmem:[#allocation1] sm:$0xff pattern:$0x73625140]  ;;  %v403_v53 = vld.sshfl [vmem:[#allocation1 + $0x8] sm:$0xff pattern:$0x73625140] }
  0xc9   :  { %v7390_v55 = vpack.c.bf16 %v402_v52, %v402_v52  ;;  %v7392_v56 = vpack.c.bf16 %v403_v53, %v403_v53  ;;  %v404_v57 = vld.sshfl [vmem:[#allocation1 + $0x10] sm:$0xff pattern:$0x73625140]  ;;  %v405_v58 = vld.sshfl [vmem:[#allocation1 + $0x18] sm:$0xff pattern:$0x73625140] }
  0xca   :  { %v7394_v61 = vpack.c.bf16 %v404_v57, %v404_v57  ;;  %v7396_v62 = vpack.c.bf16 %v405_v58, %v405_v58  ;;  %v4877_v40 = vld [vmem:[#allocation9 + $0x2e0] sm:$0xf0] }
  0xcb   :  { %3524 = vmatmul.bf16.vlgmr.msra.gmra.mxu0 %v7390_v55  ;;  %3537 = vmatmul.bf16.vlgmr.msra.gmra.mxu1 %v7392_v56  ;;  %v6737_v43 = vld [vmem:[#allocation9 + $0x4c4] sm:$0xf]  ;;  %v4880_v50 = vor.u32 %v6673_v39, %v4877_v40 }
  0xcc   :  { %3550 = vmatmul.bf16.vlgmr.msra.gmra.mxu2 %v7394_v61  ;;  %3563 = vmatmul.bf16.vlgmr.msra.gmra.mxu3 %v7396_v62  ;;  %v4589_v52 = vld [vmem:[#allocation9 + $0xa0] sm:$0xf0]  ;;  %v5136_v58 = vor.u32 %v6737_v43, %v5133_v44 }
  0xcd   :  { %v7109_v7 = vpop.eup %7108  ;;  %3620 = vmatpush.bf16.msra.mxu0 %v4752_v59  ;;  %3633 = vmatpush.bf16.msra.mxu1 %v5008_v60  ;;  %v5357_v5 = vld [vmem:[#allocation9 + $0x6a0] sm:$0xf0]  ;;  %v4592_v6 = vor.u32 %v6601_v51, %v4589_v52 }
  0xce   :  { %v394_v9 = vmul.f32 0.5, %v7109_v7  ;;  %3646 = vmatpush.bf16.msra.mxu2 %v5264_v63  ;;  %3659 = vmatpush.bf16.msra.mxu3 %v5520_v0  ;;  %v5392_v63 = vor.u32 %v6801_v45, %v5389_v46  ;;  %v6665_v0 = vld [vmem:[#allocation9 + $0x284] sm:$0xf] }
  0xcf   :  { %v4848_v7 = vor.u32 %v6665_v0, %v4845_v1  ;;  %v6593_v8 = vld [vmem:[#allocation9 + $0x44] sm:$0xf] }
  0xd0   :  { %v396_v20 = vadd.f32 0.5, %v394_v9  ;;  %v4557_v9 = vld [vmem:[#allocation9 + $0x60] sm:$0xf0] }
  0xd1   :  { %3621 = vmatpush.bf16.msra.mxu0 %v4720_v10  ;;  %3634 = vmatpush.bf16.msra.mxu1 %v4976_v11  ;;  %v5104_v10 = vor.u32 %v6729_v2, %v5101_v3  ;;  %v5360_v11 = vor.u32 %v6793_v4, %v5357_v5  ;;  %v6657_v12 = vld [vmem:[#allocation9 + $0x244] sm:$0xf] }
  0xd2   :  { %401 = vst [vmem:[#allocation1 + $0x20] ss:$4 sm:$0xff] %v396_v20  ;;  %3647 = vmatpush.bf16.msra.mxu2 %v5232_v15  ;;  %3660 = vmatpush.bf16.msra.mxu3 %v5488_v16  ;;  %v4813_v14 = vld [vmem:[#allocation9 + $0x260] sm:$0xf0]  ;;  %v4560_v20 = vor.u32 %v6593_v8, %v4557_v9 }
  0xd3   :  { %v6721_v15 = vld [vmem:[#allocation9 + $0x444] sm:$0xf]  ;;  %v4816_v21 = vor.u32 %v6657_v12, %v4813_v14 }
  0xd4   :  { %v5069_v16 = vld [vmem:[#allocation9 + $0x460] sm:$0xf0] }
  0xd5   :  { %3622 = vmatpush.bf16.msra.mxu0 %v4688_v23  ;;  %3635 = vmatpush.bf16.msra.mxu1 %v4944_v24  ;;  %v6785_v17 = vld [vmem:[#allocation9 + $0x644] sm:$0xf]  ;;  %v5072_v25 = vor.u32 %v6721_v15, %v5069_v16 }
  0xd6   :  { %3648 = vmatpush.bf16.msra.mxu2 %v5200_v28  ;;  %3661 = vmatpush.bf16.msra.mxu3 %v5456_v29  ;;  %v5325_v18 = vld [vmem:[#allocation9 + $0x660] sm:$0xf0] }
  0xd7   :  { %v6585_v19 = vld [vmem:[#allocation9 + $0x4] sm:$0xf]  ;;  %v5328_v26 = vor.u32 %v6785_v17, %v5325_v18 }
  0xd8   :  { %v6649_v23 = vld [vmem:[#allocation9 + $0x204] sm:$0xf] }
  0xd9   :  { %v406_v47 = vld.sshfl [vmem:[#allocation1 + $0x20] sm:$0xff pattern:$0x73625140]  ;;  %v407_v48 = vld.sshfl [vmem:[#allocation1 + $0x28] sm:$0xff pattern:$0x73625140]  ;;  %3623 = vmatpush.bf16.msra.mxu0 %v4656_v37  ;;  %3636 = vmatpush.bf16.msra.mxu1 %v4912_v13  ;;  %v4528_v37 = vor.u32 %v6585_v19, %v4525_v22 }
  0xda   :  { %v7402_v53 = vpack.c.bf16 %v406_v47, %v406_v47  ;;  %v7404_v27 = vpack.c.bf16 %v407_v48, %v407_v48  ;;  %v408_v54 = vld.sshfl [vmem:[#allocation1 + $0x30] sm:$0xff pattern:$0x73625140]  ;;  %v409_v57 = vld.sshfl [vmem:[#allocation1 + $0x38] sm:$0xff pattern:$0x73625140]  ;;  %3649 = vmatpush.bf16.msra.mxu2 %v5168_v41  ;;  %3662 = vmatpush.bf16.msra.mxu3 %v5424_v42 }
  0xdb   :  { %v7406_v59 = vpack.c.bf16 %v408_v54, %v408_v54  ;;  %v7408_v60 = vpack.c.bf16 %v409_v57, %v409_v57  ;;  %v4781_v24 = vld [vmem:[#allocation9 + $0x220] sm:$0xf0] }
  0xdc   :  { %3576 = vmatmul.bf16.vlgmr.msrb.gmra.mxu0 %v7402_v53  ;;  %3589 = vmatmul.bf16.vlgmr.msrb.gmra.mxu1 %v7404_v27  ;;  %v6713_v28 = vld [vmem:[#allocation9 + $0x404] sm:$0xf]  ;;  %v4784_v13 = vor.u32 %v6649_v23, %v4781_v24 }
  0xdd   :  { %3602 = vmatmul.bf16.vlgmr.msrb.gmra.mxu2 %v7406_v59  ;;  %3615 = vmatmul.bf16.vlgmr.msrb.gmra.mxu3 %v7408_v60  ;;  %v5037_v29 = vld [vmem:[#allocation9 + $0x420] sm:$0xf0] }
  0xde   :  { %3624 = vmatpush.bf16.msra.mxu0 %v4624_v49  ;;  %3637 = vmatpush.bf16.msra.mxu1 %v4880_v50  ;;  %v6777_v30 = vld [vmem:[#allocation9 + $0x604] sm:$0xf]  ;;  %v5040_v41 = vor.u32 %v6713_v28, %v5037_v29 }
  0xdf   :  { %3650 = vmatpush.bf16.msra.mxu2 %v5136_v58  ;;  %3663 = vmatpush.bf16.msra.mxu3 %v5392_v63  ;;  %v5293_v31 = vld [vmem:[#allocation9 + $0x620] sm:$0xf0] }
  0xe0   :  { %v6897_v32 = vld [vmem:[#allocation9 + $0x9c4] sm:$0xf]  ;;  %v5296_v42 = vor.u32 %v6777_v30, %v5293_v31 }
  0xe1   :  { %v5773_v33 = vld [vmem:[#allocation9 + $0x9e0] sm:$0xf0] }
  0xe2   :  { %3625 = vmatpush.bf16.msra.mxu0 %v4592_v6  ;;  %3638 = vmatpush.bf16.msra.mxu1 %v4848_v7  ;;  %v6961_v34 = vld [vmem:[#allocation9 + $0xbc4] sm:$0xf]  ;;  %v5776_v43 = vor.u32 %v6897_v32, %v5773_v33 }
  0xe3   :  { %3651 = vmatpush.bf16.msra.mxu2 %v5104_v10  ;;  %3664 = vmatpush.bf16.msra.mxu3 %v5360_v11  ;;  %v6029_v35 = vld [vmem:[#allocation9 + $0xbe0] sm:$0xf0] }
  0xe4   :  { %v7025_v36 = vld [vmem:[#allocation9 + $0xdc4] sm:$0xf]  ;;  %v6032_v44 = vor.u32 %v6961_v34, %v6029_v35 }
  0xe5   :  { %v6285_v38 = vld [vmem:[#allocation9 + $0xde0] sm:$0xf0] }
  0xe6   :  { %3626 = vmatpush.bf16.msra.mxu0 %v4560_v20  ;;  %3639 = vmatpush.bf16.msra.mxu1 %v4816_v21  ;;  %v7089_v39 = vld [vmem:[#allocation9 + $0xfc4] sm:$0xf]  ;;  %v6288_v47 = vor.u32 %v7025_v36, %v6285_v38 }
  0xe7   :  { %v6541_v40 = vld [vmem:[#allocation9 + $0xfe0] sm:$0xf0]  ;;  %3652 = vmatpush.bf16.msra.mxu2 %v5072_v25  ;;  %3665 = vmatpush.bf16.msra.mxu3 %v5328_v26 }
  0xe8   :  { %v6889_v45 = vld [vmem:[#allocation9 + $0x984] sm:$0xf]  ;;  %v6544_v48 = vor.u32 %v7089_v39, %v6541_v40 }
  0xe9   :  { %v5741_v46 = vld [vmem:[#allocation9 + $0x9a0] sm:$0xf0] }
  0xea   :  { %v6953_v49 = vld [vmem:[#allocation9 + $0xb84] sm:$0xf]  ;;  %3627 = vmatpush.bf16.msra.mxu0 %v4528_v37  ;;  %3640 = vmatpush.bf16.msra.mxu1 %v4784_v13  ;;  %v5744_v58 = vor.u32 %v6889_v45, %v5741_v46 }
  0xeb   :  { %v5997_v50 = vld [vmem:[#allocation9 + $0xba0] sm:$0xf0]  ;;  %3653 = vmatpush.bf16.msra.mxu2 %v5040_v41  ;;  %3666 = vmatpush.bf16.msra.mxu3 %v5296_v42 }
  0xec   :  { %v7017_v51 = vld [vmem:[#allocation9 + $0xd84] sm:$0xf]  ;;  %v6000_v63 = vor.u32 %v6953_v49, %v5997_v50 }
  0xed   :  { %v6253_v52 = vld [vmem:[#allocation9 + $0xda0] sm:$0xf0]  ;;  %3628 = vmatmul.bf16.vlgmr.msra.gmra.mxu0 %v7390_v55  ;;  %3641 = vmatmul.bf16.vlgmr.msra.gmra.mxu1 %v7392_v56 }
  0xee   :  { %v7081_v54 = vld [vmem:[#allocation9 + $0xf84] sm:$0xf]  ;;  %3672 = vmatpush.bf16.msrb.mxu0 %v5776_v43  ;;  %3685 = vmatpush.bf16.msrb.mxu1 %v6032_v44  ;;  %v6256_v2 = vor.u32 %v7017_v51, %v6253_v52 }
  0xef   :  { %v6509_v57 = vld [vmem:[#allocation9 + $0xfa0] sm:$0xf0]  ;;  %3698 = vmatpush.bf16.msrb.mxu2 %v6288_v47  ;;  %3711 = vmatpush.bf16.msrb.mxu3 %v6544_v48 }
  0xf0   :  { %v6881_v0 = vld [vmem:[#allocation9 + $0x944] sm:$0xf]  ;;  %v6512_v3 = vor.u32 %v7081_v54, %v6509_v57  ;;  %3654 = vmatmul.bf16.vlgmr.msra.gmra.mxu2 %v7394_v61  ;;  %3667 = vmatmul.bf16.vlgmr.msra.gmra.mxu3 %v7396_v62 }
  0xf1   :  { %v5709_v1 = vld [vmem:[#allocation9 + $0x960] sm:$0xf0] }
  0xf2   :  { %v6945_v4 = vld [vmem:[#allocation9 + $0xb44] sm:$0xf]  ;;  %3673 = vmatpush.bf16.msrb.mxu0 %v5744_v58  ;;  %3686 = vmatpush.bf16.msrb.mxu1 %v6000_v63  ;;  %v5712_v10 = vor.u32 %v6881_v0, %v5709_v1 }
  0xf3   :  { %v5965_v5 = vld [vmem:[#allocation9 + $0xb60] sm:$0xf0]  ;;  %3699 = vmatpush.bf16.msrb.mxu2 %v6256_v2  ;;  %3712 = vmatpush.bf16.msrb.mxu3 %v6512_v3 }
  0xf4   :  { %v7009_v6 = vld [vmem:[#allocation9 + $0xd44] sm:$0xf]  ;;  %v5968_v11 = vor.u32 %v6945_v4, %v5965_v5 }
  0xf5   :  { %v6221_v7 = vld [vmem:[#allocation9 + $0xd60] sm:$0xf0] }
  0xf6   :  { %v7073_v8 = vld [vmem:[#allocation9 + $0xf44] sm:$0xf]  ;;  %v6224_v15 = vor.u32 %v7009_v6, %v6221_v7  ;;  %3674 = vmatpush.bf16.msrb.mxu0 %v5712_v10  ;;  %3687 = vmatpush.bf16.msrb.mxu1 %v5968_v11 }
  0xf7   :  { %v6477_v9 = vld [vmem:[#allocation9 + $0xf60] sm:$0xf0] }
  0xf8   :  { %v6873_v12 = vld [vmem:[#allocation9 + $0x904] sm:$0xf]  ;;  %v6480_v16 = vor.u32 %v7073_v8, %v6477_v9  ;;  %3700 = vmatpush.bf16.msrb.mxu2 %v6224_v15  ;;  %v4755_v15 = vld [vmem:[#allocation9 + $0x1c8] sm:$0xf] }
  0xf9   :  { %v5677_v14 = vld [vmem:[#allocation9 + $0x920] sm:$0xf0] }
  0xfa   :  { %v6937_v17 = vld [vmem:[#allocation9 + $0xb04] sm:$0xf]  ;;  %v5680_v23 = vor.u32 %v6873_v12, %v5677_v14  ;;  %3713 = vmatpush.bf16.msrb.mxu3 %v6480_v16  ;;  %v6646_v16 = vld [vmem:[#allocation9 + $0x1e4] sm:$0xf0] }
  0xfb   :  { %v5933_v18 = vld [vmem:[#allocation9 + $0xb20] sm:$0xf0] }
  0xfc   :  { %v7001_v19 = vld [vmem:[#allocation9 + $0xd04] sm:$0xf]  ;;  %v5936_v24 = vor.u32 %v6937_v17, %v5933_v18  ;;  %3675 = vmatpush.bf16.msrb.mxu0 %v5680_v23  ;;  %v5011_v17 = vld [vmem:[#allocation9 + $0x3c8] sm:$0xf] }
  0xfd   :  { %v6189_v20 = vld [vmem:[#allocation9 + $0xd20] sm:$0xf0]  ;;  %v6710_v18 = vld [vmem:[#allocation9 + $0x3e4] sm:$0xf0] }
  0xfe   :  { %v7065_v21 = vld [vmem:[#allocation9 + $0xf04] sm:$0xf]  ;;  %v6192_v28 = vor.u32 %v7001_v19, %v6189_v20  ;;  %3688 = vmatpush.bf16.msrb.mxu1 %v5936_v24  ;;  %v5267_v19 = vld [vmem:[#allocation9 + $0x5c8] sm:$0xf] }
  0xff   :  { %v6445_v22 = vld [vmem:[#allocation9 + $0xf20] sm:$0xf0]  ;;  %v5523_v23 = vld [vmem:[#allocation9 + $0x7c8] sm:$0xf] }
 0x100   :  { %v6865_v25 = vld [vmem:[#allocation9 + $0x8c4] sm:$0xf]  ;;  %v6448_v29 = vor.u32 %v7065_v21, %v6445_v22  ;;  %3701 = vmatpush.bf16.msrb.mxu2 %v6192_v28  ;;  %v6774_v22 = vld [vmem:[#allocation9 + $0x5e4] sm:$0xf0]  ;;  %v4756_v28 = vor.u32 %v6646_v16, %v4755_v15 }
 0x101   :  { %v5645_v26 = vld [vmem:[#allocation9 + $0x8e0] sm:$0xf0]  ;;  %v6838_v24 = vld [vmem:[#allocation9 + $0x7e4] sm:$0xf0] }
 0x102   :  { %v6929_v30 = vld [vmem:[#allocation9 + $0xac4] sm:$0xf]  ;;  %v5648_v36 = vor.u32 %v6865_v25, %v5645_v26  ;;  %3714 = vmatpush.bf16.msrb.mxu3 %v6448_v29  ;;  %v5012_v29 = vor.u32 %v6710_v18, %v5011_v17  ;;  %v5139_v15 = vld [vmem:[#allocation9 + $0x4c8] sm:$0xf] }
 0x103   :  { %v5901_v31 = vld [vmem:[#allocation9 + $0xae0] sm:$0xf0]  ;;  %v6742_v16 = vld [vmem:[#allocation9 + $0x4e4] sm:$0xf0] }
 0x104   :  { %v6993_v32 = vld [vmem:[#allocation9 + $0xcc4] sm:$0xf]  ;;  %v5904_v37 = vor.u32 %v6929_v30, %v5901_v31  ;;  %3676 = vmatpush.bf16.msrb.mxu0 %v5648_v36  ;;  %v4723_v30 = vld [vmem:[#allocation9 + $0x188] sm:$0xf] }
 0x105   :  { %v6157_v33 = vld [vmem:[#allocation9 + $0xce0] sm:$0xf0]  ;;  %v6638_v31 = vld [vmem:[#allocation9 + $0x1a4] sm:$0xf0] }
 0x106   :  { %v7057_v34 = vld [vmem:[#allocation9 + $0xec4] sm:$0xf]  ;;  %v6160_v39 = vor.u32 %v6993_v32, %v6157_v33  ;;  %3689 = vmatpush.bf16.msrb.mxu1 %v5904_v37  ;;  %v5268_v32 = vor.u32 %v6774_v22, %v5267_v19  ;;  %v5524_v33 = vor.u32 %v6838_v24, %v5523_v23  ;;  %v5235_v36 = vld [vmem:[#allocation9 + $0x588] sm:$0xf]  ;;  %v5140_v23 = vor.u32 %v6742_v16, %v5139_v15 }
 0x107   :  { %v6413_v35 = vld [vmem:[#allocation9 + $0xee0] sm:$0xf0]  ;;  %v6766_v37 = vld [vmem:[#allocation9 + $0x5a4] sm:$0xf0] }
 0x108   :  { %v6857_v13 = vld [vmem:[#allocation9 + $0x884] sm:$0xf]  ;;  %v6416_v40 = vor.u32 %v7057_v34, %v6413_v35  ;;  %3702 = vmatpush.bf16.msrb.mxu2 %v6160_v39  ;;  %v4979_v34 = vld [vmem:[#allocation9 + $0x388] sm:$0xf]  ;;  %v4724_v39 = vor.u32 %v6638_v31, %v4723_v30 }
 0x109   :  { %v5613_v38 = vld [vmem:[#allocation9 + $0x8a0] sm:$0xf0]  ;;  %v6702_v35 = vld [vmem:[#allocation9 + $0x3a4] sm:$0xf0] }
 0x10a   :  { %v6921_v41 = vld [vmem:[#allocation9 + $0xa84] sm:$0xf]  ;;  %v5616_v47 = vor.u32 %v6857_v13, %v5613_v38  ;;  %3715 = vmatpush.bf16.msrb.mxu3 %v6416_v40  ;;  %v5491_v13 = vld [vmem:[#allocation9 + $0x788] sm:$0xf]  ;;  %v4980_v40 = vor.u32 %v6702_v35, %v4979_v34 }
 0x10b   :  { %v5869_v42 = vld [vmem:[#allocation9 + $0xaa0] sm:$0xf0]  ;;  %v6830_v38 = vld [vmem:[#allocation9 + $0x7a4] sm:$0xf0] }
 0x10c   :  { %v6985_v43 = vld [vmem:[#allocation9 + $0xc84] sm:$0xf]  ;;  %v5872_v48 = vor.u32 %v6921_v41, %v5869_v42  ;;  %3677 = vmatpush.bf16.msrb.mxu0 %v5616_v47  ;;  %v4691_v41 = vld [vmem:[#allocation9 + $0x148] sm:$0xf] }
 0x10d   :  { %v6125_v44 = vld [vmem:[#allocation9 + $0xca0] sm:$0xf0]  ;;  %v6630_v42 = vld [vmem:[#allocation9 + $0x164] sm:$0xf0] }
 0x10e   :  { %v7049_v45 = vld [vmem:[#allocation9 + $0xe84] sm:$0xf]  ;;  %v6128_v51 = vor.u32 %v6985_v43, %v6125_v44  ;;  %3690 = vmatpush.bf16.msrb.mxu1 %v5872_v48  ;;  %v5236_v43 = vor.u32 %v6766_v37, %v5235_v36  ;;  %v5492_v44 = vor.u32 %v6830_v38, %v5491_v13  ;;  %v5203_v47 = vld [vmem:[#allocation9 + $0x548] sm:$0xf] }
 0x10f   :  { %v6381_v46 = vld [vmem:[#allocation9 + $0xea0] sm:$0xf0]  ;;  %v6758_v48 = vld [vmem:[#allocation9 + $0x564] sm:$0xf0] }
 0x110   :  { %v6849_v49 = vld [vmem:[#allocation9 + $0x844] sm:$0xf]  ;;  %v6384_v52 = vor.u32 %v7049_v45, %v6381_v46  ;;  %3703 = vmatpush.bf16.msrb.mxu2 %v6128_v51  ;;  %v4947_v45 = vld [vmem:[#allocation9 + $0x348] sm:$0xf]  ;;  %v4692_v51 = vor.u32 %v6630_v42, %v4691_v41 }
 0x111   :  { %v5581_v50 = vld [vmem:[#allocation9 + $0x860] sm:$0xf0]  ;;  %v6694_v46 = vld [vmem:[#allocation9 + $0x364] sm:$0xf0] }
 0x112   :  { %v6913_v54 = vld [vmem:[#allocation9 + $0xa44] sm:$0xf]  ;;  %v5584_v3 = vor.u32 %v6849_v49, %v5581_v50  ;;  %3716 = vmatpush.bf16.msrb.mxu3 %v6384_v52  ;;  %v5459_v49 = vld [vmem:[#allocation9 + $0x748] sm:$0xf]  ;;  %v4948_v52 = vor.u32 %v6694_v46, %v4947_v45 }
 0x113   :  { %v5837_v57 = vld [vmem:[#allocation9 + $0xa60] sm:$0xf0]  ;;  %v6822_v50 = vld [vmem:[#allocation9 + $0x764] sm:$0xf0] }
 0x114   :  { %v6977_v58 = vld [vmem:[#allocation9 + $0xc44] sm:$0xf]  ;;  %v5840_v4 = vor.u32 %v6913_v54, %v5837_v57  ;;  %3678 = vmatpush.bf16.msrb.mxu0 %v5584_v3  ;;  %v4659_v54 = vld [vmem:[#allocation9 + $0x108] sm:$0xf] }
 0x115   :  { %v6093_v63 = vld [vmem:[#allocation9 + $0xc60] sm:$0xf0]  ;;  %v6622_v57 = vld [vmem:[#allocation9 + $0x124] sm:$0xf0] }
 0x116   :  { %v7041_v0 = vld [vmem:[#allocation9 + $0xe44] sm:$0xf]  ;;  %v6096_v8 = vor.u32 %v6977_v58, %v6093_v63  ;;  %3691 = vmatpush.bf16.msrb.mxu1 %v5840_v4  ;;  %v5204_v58 = vor.u32 %v6758_v48, %v5203_v47  ;;  %v5460_v63 = vor.u32 %v6822_v50, %v5459_v49  ;;  %v6750_v3 = vld [vmem:[#allocation9 + $0x524] sm:$0xf0] }
 0x117   :  { %v6349_v1 = vld [vmem:[#allocation9 + $0xe60] sm:$0xf0]  ;;  %v5427_v4 = vld [vmem:[#allocation9 + $0x708] sm:$0xf] }
 0x118   :  { %v6841_v2 = vld [vmem:[#allocation9 + $0x804] sm:$0xf]  ;;  %v6352_v9 = vor.u32 %v7041_v0, %v6349_v1  ;;  %3704 = vmatpush.bf16.msrb.mxu2 %v6096_v8  ;;  %v4915_v0 = vld [vmem:[#allocation9 + $0x308] sm:$0xf] }
 0x119   :  { %v5549_v5 = vld [vmem:[#allocation9 + $0x820] sm:$0xf0]  ;;  %v6686_v1 = vld [vmem:[#allocation9 + $0x324] sm:$0xf0] }
 0x11a   :  { %v6905_v6 = vld [vmem:[#allocation9 + $0xa04] sm:$0xf]  ;;  %v5552_v20 = vor.u32 %v6841_v2, %v5549_v5  ;;  %3717 = vmatpush.bf16.msrb.mxu3 %v6352_v9  ;;  %v5171_v2 = vld [vmem:[#allocation9 + $0x508] sm:$0xf] }
 0x11b   :  { %v5805_v7 = vld [vmem:[#allocation9 + $0xa20] sm:$0xf0]  ;;  %v6814_v5 = vld [vmem:[#allocation9 + $0x724] sm:$0xf0] }
 0x11c   :  { %v6969_v10 = vld [vmem:[#allocation9 + $0xc04] sm:$0xf]  ;;  %v5808_v21 = vor.u32 %v6905_v6, %v5805_v7  ;;  %3679 = vmatpush.bf16.msrb.mxu0 %v5552_v20  ;;  %v4660_v6 = vor.u32 %v6622_v57, %v4659_v54  ;;  %v4916_v7 = vor.u32 %v6686_v1, %v4915_v0  ;;  %v4627_v8 = vld [vmem:[#allocation9 + $0xc8] sm:$0xf] }
 0x11d   :  { %v6061_v11 = vld [vmem:[#allocation9 + $0xc20] sm:$0xf0]  ;;  %v6614_v9 = vld [vmem:[#allocation9 + $0xe4] sm:$0xf0] }
 0x11e   :  { %v7033_v12 = vld [vmem:[#allocation9 + $0xe04] sm:$0xf]  ;;  %v6064_v25 = vor.u32 %v6969_v10, %v6061_v11  ;;  %3692 = vmatpush.bf16.msrb.mxu1 %v5808_v21  ;;  %v5172_v10 = vor.u32 %v6750_v3, %v5171_v2  ;;  %v5428_v11 = vor.u32 %v6814_v5, %v5427_v4  ;;  %v5395_v17 = vld [vmem:[#allocation9 + $0x6c8] sm:$0xf]  ;;  %v4628_v19 = vor.u32 %v6614_v9, %v4627_v8 }
 0x11f   :  { %v6317_v14 = vld [vmem:[#allocation9 + $0xe20] sm:$0xf0]  ;;  %3680 = vmatmul.bf16.vlgmr.msrb.gmra.mxu0 %v7402_v53  ;;  %v6806_v18 = vld [vmem:[#allocation9 + $0x6e4] sm:$0xf0] }
 0x120   :  { %v6320_v26 = vor.u32 %v7033_v12, %v6317_v14  ;;  %3705 = vmatpush.bf16.msrb.mxu2 %v6064_v25  ;;  %3724 = vmatpush.bf16.msra.mxu0 %v4756_v28  ;;  %v4883_v12 = vld [vmem:[#allocation9 + $0x2c8] sm:$0xf]  ;;  %v5396_v24 = vor.u32 %v6806_v18, %v5395_v17 }
 0x121   :  { %3693 = vmatmul.bf16.vlgmr.msrb.gmra.mxu1 %v7404_v27  ;;  %v6678_v14 = vld [vmem:[#allocation9 + $0x2e4] sm:$0xf0] }
 0x122   :  { %3718 = vmatpush.bf16.msrb.mxu3 %v6320_v26  ;;  %3737 = vmatpush.bf16.msra.mxu1 %v5012_v29  ;;  %v4884_v20 = vor.u32 %v6678_v14, %v4883_v12  ;;  %v4595_v21 = vld [vmem:[#allocation9 + $0x88] sm:$0xf] }
 0x123   :  { %3706 = vmatmul.bf16.vlgmr.msrb.gmra.mxu2 %v7406_v59  ;;  %v6606_v22 = vld [vmem:[#allocation9 + $0xa4] sm:$0xf0] }
 0x124   :  { %3750 = vmatpush.bf16.msra.mxu2 %v5268_v32  ;;  %3725 = vmatpush.bf16.msra.mxu0 %v4724_v39  ;;  %v4851_v25 = vld [vmem:[#allocation9 + $0x288] sm:$0xf]  ;;  %v4596_v32 = vor.u32 %v6606_v22, %v4595_v21 }
 0x125   :  { %3719 = vmatmul.bf16.vlgmr.msrb.gmra.mxu3 %v7408_v60  ;;  %v6670_v26 = vld [vmem:[#allocation9 + $0x2a4] sm:$0xf0] }
 0x126   :  { %3763 = vmatpush.bf16.msra.mxu3 %v5524_v33  ;;  %3738 = vmatpush.bf16.msra.mxu1 %v4980_v40  ;;  %v5107_v28 = vld [vmem:[#allocation9 + $0x488] sm:$0xf]  ;;  %v4852_v33 = vor.u32 %v6670_v26, %v4851_v25 }
 0x127   :  { %v6734_v29 = vld [vmem:[#allocation9 + $0x4a4] sm:$0xf0] }
 0x128   :  { %3751 = vmatpush.bf16.msra.mxu2 %v5236_v43  ;;  %3726 = vmatpush.bf16.msra.mxu0 %v4692_v51  ;;  %v5363_v30 = vld [vmem:[#allocation9 + $0x688] sm:$0xf]  ;;  %v5108_v36 = vor.u32 %v6734_v29, %v5107_v28 }
 0x129   :  { %v6798_v31 = vld [vmem:[#allocation9 + $0x6a4] sm:$0xf0] }
 0x12a   :  { %3764 = vmatpush.bf16.msra.mxu3 %v5492_v44  ;;  %3739 = vmatpush.bf16.msra.mxu1 %v4948_v52  ;;  %v4563_v34 = vld [vmem:[#allocation9 + $0x48] sm:$0xf]  ;;  %v5364_v37 = vor.u32 %v6798_v31, %v5363_v30 }
 0x12b   :  { %v6598_v35 = vld [vmem:[#allocation9 + $0x64] sm:$0xf0] }
 0x12c   :  { %3752 = vmatpush.bf16.msra.mxu2 %v5204_v58  ;;  %3727 = vmatpush.bf16.msra.mxu0 %v4660_v6  ;;  %v4819_v13 = vld [vmem:[#allocation9 + $0x248] sm:$0xf]  ;;  %v4564_v44 = vor.u32 %v6598_v35, %v4563_v34 }
 0x12d   :  { %v6662_v38 = vld [vmem:[#allocation9 + $0x264] sm:$0xf0] }
 0x12e   :  { %3765 = vmatpush.bf16.msra.mxu3 %v5460_v63  ;;  %3740 = vmatpush.bf16.msra.mxu1 %v4916_v7  ;;  %v5075_v39 = vld [vmem:[#allocation9 + $0x448] sm:$0xf]  ;;  %v4820_v45 = vor.u32 %v6662_v38, %v4819_v13 }
 0x12f   :  { %v6726_v40 = vld [vmem:[#allocation9 + $0x464] sm:$0xf0] }
 0x130   :  { %3753 = vmatpush.bf16.msra.mxu2 %v5172_v10  ;;  %3728 = vmatpush.bf16.msra.mxu0 %v4628_v19  ;;  %v5331_v41 = vld [vmem:[#allocation9 + $0x648] sm:$0xf]  ;;  %v5076_v49 = vor.u32 %v6726_v40, %v5075_v39 }
 0x131   :  { %v6790_v42 = vld [vmem:[#allocation9 + $0x664] sm:$0xf0] }
 0x132   :  { %3766 = vmatpush.bf16.msra.mxu3 %v5428_v11  ;;  %3741 = vmatpush.bf16.msra.mxu1 %v4884_v20  ;;  %v4531_v43 = vld [vmem:[#allocation9 + $0x8] sm:$0xf]  ;;  %v5332_v50 = vor.u32 %v6790_v42, %v5331_v41 }
 0x133   :  { %v6590_v46 = vld [vmem:[#allocation9 + $0x24] sm:$0xf0] }
 0x134   :  { %3754 = vmatpush.bf16.msra.mxu2 %v5140_v23  ;;  %3729 = vmatpush.bf16.msra.mxu0 %v4596_v32  ;;  %v4787_v47 = vld [vmem:[#allocation9 + $0x208] sm:$0xf]  ;;  %v4532_v3 = vor.u32 %v6590_v46, %v4531_v43 }
 0x135   :  { %v6654_v48 = vld [vmem:[#allocation9 + $0x224] sm:$0xf0] }
 0x136   :  { %3767 = vmatpush.bf16.msra.mxu3 %v5396_v24  ;;  %3742 = vmatpush.bf16.msra.mxu1 %v4852_v33  ;;  %v5043_v51 = vld [vmem:[#allocation9 + $0x408] sm:$0xf]  ;;  %v4788_v4 = vor.u32 %v6654_v48, %v4787_v47 }
 0x137   :  { %v6718_v52 = vld [vmem:[#allocation9 + $0x424] sm:$0xf0] }
 0x138   :  { %3755 = vmatpush.bf16.msra.mxu2 %v5108_v36  ;;  %v5299_v54 = vld [vmem:[#allocation9 + $0x608] sm:$0xf]  ;;  %3730 = vmatpush.bf16.msra.mxu0 %v4564_v44  ;;  %v5044_v8 = vor.u32 %v6718_v52, %v5043_v51 }
 0x139   :  { %v6782_v57 = vld [vmem:[#allocation9 + $0x624] sm:$0xf0] }
 0x13a   :  { %3768 = vmatpush.bf16.msra.mxu3 %v5364_v37  ;;  %v5779_v58 = vld [vmem:[#allocation9 + $0x9c8] sm:$0xf]  ;;  %3743 = vmatpush.bf16.msra.mxu1 %v4820_v45  ;;  %v5300_v9 = vor.u32 %v6782_v57, %v5299_v54 }
 0x13b   :  { %v6902_v63 = vld [vmem:[#allocation9 + $0x9e4] sm:$0xf0] }
 0x13c   :  { %v6035_v0 = vld [vmem:[#allocation9 + $0xbc8] sm:$0xf]  ;;  %3756 = vmatpush.bf16.msra.mxu2 %v5076_v49  ;;  %v5780_v10 = vor.u32 %v6902_v63, %v5779_v58  ;;  %3731 = vmatpush.bf16.msra.mxu0 %v4532_v3 }
 0x13d   :  { %v6966_v1 = vld [vmem:[#allocation9 + $0xbe4] sm:$0xf0] }
 0x13e   :  { %v6291_v2 = vld [vmem:[#allocation9 + $0xdc8] sm:$0xf]  ;;  %3769 = vmatpush.bf16.msra.mxu3 %v5332_v50  ;;  %v6036_v11 = vor.u32 %v6966_v1, %v6035_v0  ;;  %3744 = vmatpush.bf16.msra.mxu1 %v4788_v4 }
 0x13f   :  { %v7030_v5 = vld [vmem:[#allocation9 + $0xde4] sm:$0xf0]  ;;  %3732 = vmatmul.bf16.vlgmr.msra.gmra.mxu0 %v7390_v55 }
 0x140   :  { %v6547_v6 = vld [vmem:[#allocation9 + $0xfc8] sm:$0xf]  ;;  %v6292_v15 = vor.u32 %v7030_v5, %v6291_v2  ;;  %3757 = vmatpush.bf16.msra.mxu2 %v5044_v8  ;;  %3776 = vmatpush.bf16.msrb.mxu0 %v5780_v10 }
 0x141   :  { %v7094_v7 = vld [vmem:[#allocation9 + $0xfe4] sm:$0xf0]  ;;  %3745 = vmatmul.bf16.vlgmr.msra.gmra.mxu1 %v7392_v56 }
 0x142   :  { %v5747_v12 = vld [vmem:[#allocation9 + $0x988] sm:$0xf]  ;;  %v6548_v16 = vor.u32 %v7094_v7, %v6547_v6  ;;  %3770 = vmatpush.bf16.msra.mxu3 %v5300_v9  ;;  %3789 = vmatpush.bf16.msrb.mxu1 %v6036_v11 }
 0x143   :  { %v6894_v14 = vld [vmem:[#allocation9 + $0x9a4] sm:$0xf0]  ;;  %3758 = vmatmul.bf16.vlgmr.msra.gmra.mxu2 %v7394_v61 }
 0x144   :  { %v6003_v17 = vld [vmem:[#allocation9 + $0xb88] sm:$0xf]  ;;  %v5748_v23 = vor.u32 %v6894_v14, %v5747_v12  ;;  %3802 = vmatpush.bf16.msrb.mxu2 %v6292_v15 }
 0x145   :  { %v6958_v18 = vld [vmem:[#allocation9 + $0xba4] sm:$0xf0]  ;;  %3771 = vmatmul.bf16.vlgmr.msra.gmra.mxu3 %v7396_v62 }
 0x146   :  { %v6259_v19 = vld [vmem:[#allocation9 + $0xd88] sm:$0xf]  ;;  %v6004_v24 = vor.u32 %v6958_v18, %v6003_v17  ;;  %3815 = vmatpush.bf16.msrb.mxu3 %v6548_v16  ;;  %3777 = vmatpush.bf16.msrb.mxu0 %v5748_v23 }
 0x147   :  { %v7022_v20 = vld [vmem:[#allocation9 + $0xda4] sm:$0xf0] }
 0x148   :  { %v6515_v21 = vld [vmem:[#allocation9 + $0xf88] sm:$0xf]  ;;  %v6260_v28 = vor.u32 %v7022_v20, %v6259_v19  ;;  %3790 = vmatpush.bf16.msrb.mxu1 %v6004_v24 }
 0x149   :  { %v7086_v22 = vld [vmem:[#allocation9 + $0xfa4] sm:$0xf0] }
 0x14a   :  { %v5715_v25 = vld [vmem:[#allocation9 + $0x948] sm:$0xf]  ;;  %v6516_v29 = vor.u32 %v7086_v22, %v6515_v21  ;;  %3803 = vmatpush.bf16.msrb.mxu2 %v6260_v28 }
 0x14b   :  { %v6886_v26 = vld [vmem:[#allocation9 + $0x964] sm:$0xf0] }
 0x14c   :  { %v5971_v30 = vld [vmem:[#allocation9 + $0xb48] sm:$0xf]  ;;  %v5716_v36 = vor.u32 %v6886_v26, %v5715_v25  ;;  %3816 = vmatpush.bf16.msrb.mxu3 %v6516_v29 }
 0x14d   :  { %v6950_v31 = vld [vmem:[#allocation9 + $0xb64] sm:$0xf0] }
 0x14e   :  { %v6227_v32 = vld [vmem:[#allocation9 + $0xd48] sm:$0xf]  ;;  %v5972_v37 = vor.u32 %v6950_v31, %v5971_v30  ;;  %3778 = vmatpush.bf16.msrb.mxu0 %v5716_v36 }
 0x14f   :  { %v7014_v33 = vld [vmem:[#allocation9 + $0xd64] sm:$0xf0] }
 0x150   :  { %v6483_v34 = vld [vmem:[#allocation9 + $0xf48] sm:$0xf]  ;;  %v6228_v39 = vor.u32 %v7014_v33, %v6227_v32  ;;  %3791 = vmatpush.bf16.msrb.mxu1 %v5972_v37 }
 0x151   :  { %v7078_v35 = vld [vmem:[#allocation9 + $0xf64] sm:$0xf0] }
 0x152   :  { %v5683_v13 = vld [vmem:[#allocation9 + $0x908] sm:$0xf]  ;;  %v6484_v40 = vor.u32 %v7078_v35, %v6483_v34  ;;  %3804 = vmatpush.bf16.msrb.mxu2 %v6228_v39  ;;  %v6642_v39 = vld [vmem:[#allocation9 + $0x1cc] sm:$0xf] }
 0x153   :  { %v6878_v38 = vld [vmem:[#allocation9 + $0x924] sm:$0xf0] }
 0x154   :  { %v5939_v41 = vld [vmem:[#allocation9 + $0xb08] sm:$0xf]  ;;  %v5684_v47 = vor.u32 %v6878_v38, %v5683_v13  ;;  %3817 = vmatpush.bf16.msrb.mxu3 %v6484_v40  ;;  %v4757_v40 = vld [vmem:[#allocation9 + $0x1e8] sm:$0xf0] }
 0x155   :  { %v6942_v42 = vld [vmem:[#allocation9 + $0xb24] sm:$0xf0] }
 0x156   :  { %v6195_v43 = vld [vmem:[#allocation9 + $0xd08] sm:$0xf]  ;;  %v5940_v48 = vor.u32 %v6942_v42, %v5939_v41  ;;  %3779 = vmatpush.bf16.msrb.mxu0 %v5684_v47  ;;  %v6706_v41 = vld [vmem:[#allocation9 + $0x3cc] sm:$0xf] }
 0x157   :  { %v7006_v44 = vld [vmem:[#allocation9 + $0xd24] sm:$0xf0]  ;;  %v5013_v42 = vld [vmem:[#allocation9 + $0x3e8] sm:$0xf0] }
 0x158   :  { %v6451_v45 = vld [vmem:[#allocation9 + $0xf08] sm:$0xf]  ;;  %v6196_v51 = vor.u32 %v7006_v44, %v6195_v43  ;;  %3792 = vmatpush.bf16.msrb.mxu1 %v5940_v48  ;;  %v6770_v43 = vld [vmem:[#allocation9 + $0x5cc] sm:$0xf] }
 0x159   :  { %v7070_v46 = vld [vmem:[#allocation9 + $0xf24] sm:$0xf0]  ;;  %v6834_v47 = vld [vmem:[#allocation9 + $0x7cc] sm:$0xf] }
 0x15a   :  { %v5651_v49 = vld [vmem:[#allocation9 + $0x8c8] sm:$0xf]  ;;  %v6452_v52 = vor.u32 %v7070_v46, %v6451_v45  ;;  %3805 = vmatpush.bf16.msrb.mxu2 %v6196_v51  ;;  %v5269_v46 = vld [vmem:[#allocation9 + $0x5e8] sm:$0xf0]  ;;  %v4760_v51 = vor.u32 %v6642_v39, %v4757_v40 }
 0x15b   :  { %v6870_v50 = vld [vmem:[#allocation9 + $0x8e4] sm:$0xf0]  ;;  %v5525_v48 = vld [vmem:[#allocation9 + $0x7e8] sm:$0xf0] }
 0x15c   :  { %v5907_v54 = vld [vmem:[#allocation9 + $0xac8] sm:$0xf]  ;;  %v5652_v2 = vor.u32 %v6870_v50, %v5651_v49  ;;  %3818 = vmatpush.bf16.msrb.mxu3 %v6452_v52  ;;  %v5016_v52 = vor.u32 %v6706_v41, %v5013_v42  ;;  %v6610_v39 = vld [vmem:[#allocation9 + $0xcc] sm:$0xf] }
 0x15d   :  { %v6934_v57 = vld [vmem:[#allocation9 + $0xae4] sm:$0xf0]  ;;  %v4629_v40 = vld [vmem:[#allocation9 + $0xe8] sm:$0xf0] }
 0x15e   :  { %v6163_v58 = vld [vmem:[#allocation9 + $0xcc8] sm:$0xf]  ;;  %v5908_v3 = vor.u32 %v6934_v57, %v5907_v54  ;;  %3780 = vmatpush.bf16.msrb.mxu0 %v5652_v2  ;;  %v6634_v54 = vld [vmem:[#allocation9 + $0x18c] sm:$0xf] }
 0x15f   :  { %v6998_v63 = vld [vmem:[#allocation9 + $0xce4] sm:$0xf0]  ;;  %v4725_v57 = vld [vmem:[#allocation9 + $0x1a8] sm:$0xf0] }
 0x160   :  { %v6419_v0 = vld [vmem:[#allocation9 + $0xec8] sm:$0xf]  ;;  %v6164_v6 = vor.u32 %v6998_v63, %v6163_v58  ;;  %3793 = vmatpush.bf16.msrb.mxu1 %v5908_v3  ;;  %v6698_v58 = vld [vmem:[#allocation9 + $0x38c] sm:$0xf]  ;;  %v5272_v63 = vor.u32 %v6770_v43, %v5269_v46  ;;  %v7426_v3 = vld [vmem:[#allocation11] sm:$0xff]  ;;  %v3551_v46 = vpop.f32.mrf.mxu2 }
 0x161   :  { %v7062_v1 = vld [vmem:[#allocation9 + $0xee4] sm:$0xf0]  ;;  %v6762_v2 = vld [vmem:[#allocation9 + $0x58c] sm:$0xf] }
 0x162   :  { %v5619_v4 = vld [vmem:[#allocation9 + $0x888] sm:$0xf]  ;;  %v6420_v7 = vor.u32 %v7062_v1, %v6419_v0  ;;  %3806 = vmatpush.bf16.msrb.mxu2 %v6164_v6  ;;  %v5528_v0 = vor.u32 %v6834_v47, %v5525_v48  ;;  %v4981_v1 = vld [vmem:[#allocation9 + $0x3a8] sm:$0xf0]  ;;  %v3564_v47 = vpop.f32.mrf.mxu3 }
 0x163   :  { %v6862_v5 = vld [vmem:[#allocation9 + $0x8a4] sm:$0xf0]  ;;  %v5493_v6 = vld [vmem:[#allocation9 + $0x7a8] sm:$0xf0] }
 0x164   :  { %v5875_v8 = vld [vmem:[#allocation9 + $0xa88] sm:$0xf]  ;;  %v5620_v15 = vor.u32 %v6862_v5, %v5619_v4  ;;  %3819 = vmatpush.bf16.msrb.mxu3 %v6420_v7  ;;  %v5237_v4 = vld [vmem:[#allocation9 + $0x5a8] sm:$0xf0]  ;;  %v4728_v7 = vor.u32 %v6634_v54, %v4725_v57  ;;  %v4632_v57 = vor.u32 %v6610_v39, %v4629_v40 }
 0x165   :  { %v6926_v9 = vld [vmem:[#allocation9 + $0xaa4] sm:$0xf0]  ;;  %v6826_v5 = vld [vmem:[#allocation9 + $0x78c] sm:$0xf] }
 0x166   :  { %v6131_v10 = vld [vmem:[#allocation9 + $0xc88] sm:$0xf]  ;;  %v5876_v16 = vor.u32 %v6926_v9, %v5875_v8  ;;  %3781 = vmatpush.bf16.msrb.mxu0 %v5620_v15  ;;  %v4984_v8 = vor.u32 %v6698_v58, %v4981_v1  ;;  %v6626_v9 = vld [vmem:[#allocation9 + $0x14c] sm:$0xf] }
 0x167   :  { %v6990_v11 = vld [vmem:[#allocation9 + $0xca4] sm:$0xf0]  ;;  %v6690_v15 = vld [vmem:[#allocation9 + $0x34c] sm:$0xf] }
 0x168   :  { %v6387_v12 = vld [vmem:[#allocation9 + $0xe88] sm:$0xf]  ;;  %v6132_v19 = vor.u32 %v6990_v11, %v6131_v10  ;;  %3794 = vmatpush.bf16.msrb.mxu1 %v5876_v16  ;;  %v4693_v10 = vld [vmem:[#allocation9 + $0x168] sm:$0xf0]  ;;  %v940_v11 = vperm.slane %v7426_v3, 0 }
 0x169   :  { %v7054_v14 = vld [vmem:[#allocation9 + $0xea4] sm:$0xf0]  ;;  %v4949_v16 = vld [vmem:[#allocation9 + $0x368] sm:$0xf0] }
 0x16a   :  { %v5587_v17 = vld [vmem:[#allocation9 + $0x848] sm:$0xf]  ;;  %v6388_v20 = vor.u32 %v7054_v14, %v6387_v12  ;;  %3807 = vmatpush.bf16.msrb.mxu2 %v6132_v19  ;;  %v5240_v12 = vor.u32 %v6762_v2, %v5237_v4  ;;  %v5496_v14 = vor.u32 %v6826_v5, %v5493_v6  ;;  %v6818_v19 = vld [vmem:[#allocation9 + $0x74c] sm:$0xf] }
 0x16b   :  { %v6854_v18 = vld [vmem:[#allocation9 + $0x864] sm:$0xf0]  ;;  %v6674_v43 = vld [vmem:[#allocation9 + $0x2cc] sm:$0xf] }
 0x16c   :  { %v5843_v21 = vld [vmem:[#allocation9 + $0xa48] sm:$0xf]  ;;  %v5588_v29 = vor.u32 %v6854_v18, %v5587_v17  ;;  %3820 = vmatpush.bf16.msrb.mxu3 %v6388_v20  ;;  %v6754_v17 = vld [vmem:[#allocation9 + $0x54c] sm:$0xf] }
 0x16d   :  { %v6918_v22 = vld [vmem:[#allocation9 + $0xa64] sm:$0xf0]  ;;  %v5205_v18 = vld [vmem:[#allocation9 + $0x568] sm:$0xf0] }
 0x16e   :  { %v6099_v23 = vld [vmem:[#allocation9 + $0xc48] sm:$0xf]  ;;  %v5844_v30 = vor.u32 %v6918_v22, %v5843_v21  ;;  %3782 = vmatpush.bf16.msrb.mxu0 %v5588_v29  ;;  %v5461_v20 = vld [vmem:[#allocation9 + $0x768] sm:$0xf0]  ;;  %v3525_v21 = vpop.f32.mrf.mxu0  ;;  %v3538_v22 = vpop.f32.mrf.mxu1  ;;  %v5208_v29 = vor.u32 %v6754_v17, %v5205_v18 }
 0x16f   :  { %v6982_v24 = vld [vmem:[#allocation9 + $0xc64] sm:$0xf0]  ;;  %v5141_v48 = vld [vmem:[#allocation9 + $0x4e8] sm:$0xf0] }
 0x170   :  { %v6355_v25 = vld [vmem:[#allocation9 + $0xe48] sm:$0xf]  ;;  %v6100_v34 = vor.u32 %v6982_v24, %v6099_v23  ;;  %3795 = vmatpush.bf16.msrb.mxu1 %v5844_v30  ;;  %v4696_v23 = vor.u32 %v6626_v9, %v4693_v10  ;;  %v4952_v24 = vor.u32 %v6690_v15, %v4949_v16  ;;  %v5464_v30 = vor.u32 %v6818_v19, %v5461_v20  ;;  %v6666_v5 = vld [vmem:[#allocation9 + $0x28c] sm:$0xf] }
 0x171   :  { %v7046_v26 = vld [vmem:[#allocation9 + $0xe64] sm:$0xf0]  ;;  %v4853_v6 = vld [vmem:[#allocation9 + $0x2a8] sm:$0xf0] }
 0x172   :  { %v5555_v28 = vld [vmem:[#allocation9 + $0x808] sm:$0xf]  ;;  %v6356_v35 = vor.u32 %v7046_v26, %v6355_v25  ;;  %3808 = vmatpush.bf16.msrb.mxu2 %v6100_v34  ;;  %v3526_v25 = vadd.f32 %v3525_v21, %v940_v11  ;;  %v6618_v26 = vld [vmem:[#allocation9 + $0x10c] sm:$0xf]  ;;  %v3553_v21 = vpop.f32.mrf.mxu2 }
 0x173   :  { %v6846_v31 = vld [vmem:[#allocation9 + $0x824] sm:$0xf0]  ;;  %v6794_v9 = vld [vmem:[#allocation9 + $0x68c] sm:$0xf] }
 0x174   :  { %v5811_v32 = vld [vmem:[#allocation9 + $0xa08] sm:$0xf]  ;;  %v5556_v44 = vor.u32 %v6846_v31, %v5555_v28  ;;  %3821 = vmatpush.bf16.msrb.mxu3 %v6356_v35  ;;  %v4661_v28 = vld [vmem:[#allocation9 + $0x128] sm:$0xf0]  ;;  %v3539_v34 = vadd.f32 %v3538_v22, %v3526_v25  ;;  %v3566_v22 = vpop.f32.mrf.mxu3 }
 0x175   :  { %v6910_v33 = vld [vmem:[#allocation9 + $0xa24] sm:$0xf0]  ;;  %v6682_v31 = vld [vmem:[#allocation9 + $0x30c] sm:$0xf] }
 0x176   :  { %v6067_v36 = vld [vmem:[#allocation9 + $0xc08] sm:$0xf]  ;;  %v5812_v45 = vor.u32 %v6910_v33, %v5811_v32  ;;  %3783 = vmatpush.bf16.msrb.mxu0 %v5556_v44  ;;  %v4917_v32 = vld [vmem:[#allocation9 + $0x328] sm:$0xf0]  ;;  %v3540_v54 = vpop.f32.mrf.mxu1 }
 0x177   :  { %v6974_v37 = vld [vmem:[#allocation9 + $0xc24] sm:$0xf0]  ;;  %v6746_v33 = vld [vmem:[#allocation9 + $0x50c] sm:$0xf] }
 0x178   :  { %v6323_v13 = vld [vmem:[#allocation9 + $0xe08] sm:$0xf]  ;;  %v6068_v49 = vor.u32 %v6974_v37, %v6067_v36  ;;  %3796 = vmatpush.bf16.msrb.mxu1 %v5812_v45  ;;  %v5173_v35 = vld [vmem:[#allocation9 + $0x528] sm:$0xf0] }
 0x179   :  { %v7038_v38 = vld [vmem:[#allocation9 + $0xe24] sm:$0xf0]  ;;  %3784 = vmatmul.bf16.vlgmr.msrb.gmra.mxu0 %v7402_v53  ;;  %v6810_v36 = vld [vmem:[#allocation9 + $0x70c] sm:$0xf]  ;;  %v5176_v41 = vor.u32 %v6746_v33, %v5173_v35 }
 0x17a   :  { %v6324_v50 = vor.u32 %v7038_v38, %v6323_v13  ;;  %3809 = vmatpush.bf16.msrb.mxu2 %v6068_v49  ;;  %3828 = vmatpush.bf16.msra.mxu0 %v4760_v51  ;;  %v5429_v37 = vld [vmem:[#allocation9 + $0x728] sm:$0xf0]  ;;  %v4664_v13 = vor.u32 %v6618_v26, %v4661_v28  ;;  %v4920_v38 = vor.u32 %v6682_v31, %v4917_v32 }
 0x17b   :  { %3797 = vmatmul.bf16.vlgmr.msrb.gmra.mxu1 %v7404_v27  ;;  %v5432_v42 = vor.u32 %v6810_v36, %v5429_v37  ;;  %v4885_v44 = vld [vmem:[#allocation9 + $0x2e8] sm:$0xf0]  ;;  %v3552_v51 = vadd.f32 %v3551_v46, %v3539_v34 }
 0x17c   :  { %3822 = vmatpush.bf16.msrb.mxu3 %v6324_v50  ;;  %3841 = vmatpush.bf16.msra.mxu1 %v5016_v52  ;;  %v6738_v45 = vld [vmem:[#allocation9 + $0x4cc] sm:$0xf]  ;;  %v3527_v52 = vpop.f32.mrf.mxu0  ;;  %v4888_v58 = vor.u32 %v6674_v43, %v4885_v44 }
 0x17d   :  { %3810 = vmatmul.bf16.vlgmr.msrb.gmra.mxu2 %v7406_v59  ;;  %v6802_v49 = vld [vmem:[#allocation9 + $0x6cc] sm:$0xf]  ;;  %v3565_v1 = vadd.f32 %v3564_v47, %v3552_v51  ;;  %v5144_v2 = vor.u32 %v6738_v45, %v5141_v48 }
 0x17e   :  { %3854 = vmatpush.bf16.msra.mxu2 %v5272_v63  ;;  %3829 = vmatpush.bf16.msra.mxu0 %v4728_v7  ;;  %v5397_v50 = vld [vmem:[#allocation9 + $0x6e8] sm:$0xf0]  ;;  %v3590_v28 = vpop.f32.mrf.mxu1 }
 0x17f   :  { %3823 = vmatmul.bf16.vlgmr.msrb.gmra.mxu3 %v7408_v60  ;;  %v6602_v63 = vld [vmem:[#allocation9 + $0x8c] sm:$0xf]  ;;  %v5400_v4 = vor.u32 %v6802_v49, %v5397_v50 }
 0x180   :  { %3867 = vmatpush.bf16.msra.mxu3 %v5528_v0  ;;  %3842 = vmatpush.bf16.msra.mxu1 %v4984_v8  ;;  %v4597_v0 = vld [vmem:[#allocation9 + $0xa8] sm:$0xf0] }
 0x181   :  { %v6730_v7 = vld [vmem:[#allocation9 + $0x48c] sm:$0xf]  ;;  %v4600_v11 = vor.u32 %v6602_v63, %v4597_v0  ;;  %v3603_v63 = vpop.f32.mrf.mxu2  ;;  %v3616_v0 = vpop.f32.mrf.mxu3 }
 0x182   :  { %3855 = vmatpush.bf16.msra.mxu2 %v5240_v12  ;;  %3830 = vmatpush.bf16.msra.mxu0 %v4696_v23  ;;  %v5109_v8 = vld [vmem:[#allocation9 + $0x4a8] sm:$0xf0]  ;;  %v4856_v12 = vor.u32 %v6666_v5, %v4853_v6 }
 0x183   :  { %v5365_v10 = vld [vmem:[#allocation9 + $0x6a8] sm:$0xf0]  ;;  %v5112_v16 = vor.u32 %v6730_v7, %v5109_v8 }
 0x184   :  { %3868 = vmatpush.bf16.msra.mxu3 %v5496_v14  ;;  %3843 = vmatpush.bf16.msra.mxu1 %v4952_v24  ;;  %v6594_v14 = vld [vmem:[#allocation9 + $0x4c] sm:$0xf]  ;;  %v5368_v17 = vor.u32 %v6794_v9, %v5365_v10  ;;  %v3577_v26 = vpop.f32.mrf.mxu0 }
 0x185   :  { %v4565_v15 = vld [vmem:[#allocation9 + $0x68] sm:$0xf0]  ;;  %v3578_v32 = vadd.f32 %v3577_v26, %v3565_v1 }
 0x186   :  { %3856 = vmatpush.bf16.msra.mxu2 %v5208_v29  ;;  %3831 = vmatpush.bf16.msra.mxu0 %v4664_v13  ;;  %v6658_v18 = vld [vmem:[#allocation9 + $0x24c] sm:$0xf]  ;;  %v3592_v8 = vpop.f32.mrf.mxu1 }
 0x187   :  { %v4821_v19 = vld [vmem:[#allocation9 + $0x268] sm:$0xf0]  ;;  %v3591_v40 = vadd.f32 %v3590_v28, %v3578_v32 }
 0x188   :  { %3869 = vmatpush.bf16.msra.mxu3 %v5464_v30  ;;  %3844 = vmatpush.bf16.msra.mxu1 %v4920_v38  ;;  %v6722_v20 = vld [vmem:[#allocation9 + $0x44c] sm:$0xf]  ;;  %v4568_v30 = vor.u32 %v6594_v14, %v4565_v15  ;;  %v4824_v31 = vor.u32 %v6658_v18, %v4821_v19 }
 0x189   :  { %v5077_v23 = vld [vmem:[#allocation9 + $0x468] sm:$0xf0]  ;;  %v3604_v6 = vadd.f32 %v3603_v63, %v3591_v40  ;;  %v3605_v32 = vpop.f32.mrf.mxu2 }
 0x18a   :  { %3857 = vmatpush.bf16.msra.mxu2 %v5176_v41  ;;  %3832 = vmatpush.bf16.msra.mxu0 %v4632_v57  ;;  %v6786_v24 = vld [vmem:[#allocation9 + $0x64c] sm:$0xf]  ;;  %v5080_v36 = vor.u32 %v6722_v20, %v5077_v23 }
 0x18b   :  { %v5333_v25 = vld [vmem:[#allocation9 + $0x668] sm:$0xf0] }
 0x18c   :  { %3870 = vmatpush.bf16.msra.mxu3 %v5432_v42  ;;  %3845 = vmatpush.bf16.msra.mxu1 %v4888_v58  ;;  %v6586_v29 = vld [vmem:[#allocation9 + $0xc] sm:$0xf]  ;;  %v5336_v37 = vor.u32 %v6786_v24, %v5333_v25  ;;  %v3579_v7 = vpop.f32.mrf.mxu0 }
 0x18d   :  { %v4533_v33 = vld [vmem:[#allocation9 + $0x28] sm:$0xf0] }
 0x18e   :  { %3858 = vmatpush.bf16.msra.mxu2 %v5144_v2  ;;  %3833 = vmatpush.bf16.msra.mxu0 %v4600_v11  ;;  %v6650_v34 = vld [vmem:[#allocation9 + $0x20c] sm:$0xf]  ;;  %v4536_v47 = vor.u32 %v6586_v29, %v4533_v33  ;;  %v3618_v33 = vpop.f32.mrf.mxu3 }
 0x18f   :  { %v4789_v35 = vld [vmem:[#allocation9 + $0x228] sm:$0xf0] }
 0x190   :  { %3871 = vmatpush.bf16.msra.mxu3 %v5400_v4  ;;  %3846 = vmatpush.bf16.msra.mxu1 %v4856_v12  ;;  %v6714_v13 = vld [vmem:[#allocation9 + $0x40c] sm:$0xf]  ;;  %v4792_v48 = vor.u32 %v6650_v34, %v4789_v35  ;;  %v941_v34 = vperm.slane %v7426_v3, 1 }
 0x191   :  { %v5045_v38 = vld [vmem:[#allocation9 + $0x428] sm:$0xf0] }
 0x192   :  { %3859 = vmatpush.bf16.msra.mxu2 %v5112_v16  ;;  %v6778_v39 = vld [vmem:[#allocation9 + $0x60c] sm:$0xf]  ;;  %3834 = vmatpush.bf16.msra.mxu0 %v4568_v30  ;;  %v5048_v52 = vor.u32 %v6714_v13, %v5045_v38  ;;  %v7433_v16 = vadd.f32 %v3616_v0, %v3604_v6 }
 0x193   :  { %v5301_v41 = vld [vmem:[#allocation9 + $0x628] sm:$0xf0] }
 0x194   :  { %3872 = vmatpush.bf16.msra.mxu3 %v5368_v17  ;;  %v6898_v42 = vld [vmem:[#allocation9 + $0x9cc] sm:$0xf]  ;;  %3847 = vmatpush.bf16.msra.mxu1 %v4824_v31  ;;  %v5304_v54 = vor.u32 %v6778_v39, %v5301_v41 }
 0x195   :  { %v5781_v43 = vld [vmem:[#allocation9 + $0x9e8] sm:$0xf0] }
 0x196   :  { %v6962_v44 = vld [vmem:[#allocation9 + $0xbcc] sm:$0xf]  ;;  %3860 = vmatpush.bf16.msra.mxu2 %v5080_v36  ;;  %v5784_v57 = vor.u32 %v6898_v42, %v5781_v43  ;;  %3835 = vmatpush.bf16.msra.mxu0 %v4536_v47 }
 0x197   :  { %v6037_v45 = vld [vmem:[#allocation9 + $0xbe8] sm:$0xf0] }
 0x198   :  { %v7026_v46 = vld [vmem:[#allocation9 + $0xdcc] sm:$0xf]  ;;  %3873 = vmatpush.bf16.msra.mxu3 %v5336_v37  ;;  %v6040_v58 = vor.u32 %v6962_v44, %v6037_v45  ;;  %3848 = vmatpush.bf16.msra.mxu1 %v4792_v48  ;;  %v3629_v44 = vpop.f32.mrf.mxu0  ;;  %v3642_v45 = vpop.f32.mrf.mxu1 }
 0x199   :  { %v6293_v49 = vld [vmem:[#allocation9 + $0xde8] sm:$0xf0]  ;;  %3836 = vmatmul.bf16.vlgmr.msra.gmra.mxu0 %v7390_v55 }
 0x19a   :  { %v7090_v50 = vld [vmem:[#allocation9 + $0xfcc] sm:$0xf]  ;;  %v6296_v4 = vor.u32 %v7026_v46, %v6293_v49  ;;  %3861 = vmatpush.bf16.msra.mxu2 %v5048_v52  ;;  %3880 = vmatpush.bf16.msrb.mxu0 %v5784_v57  ;;  %v3630_v46 = vadd.f32 %v3629_v44, %v941_v34 }
 0x19b   :  { %v6549_v51 = vld [vmem:[#allocation9 + $0xfe8] sm:$0xf0]  ;;  %3849 = vmatmul.bf16.vlgmr.msra.gmra.mxu1 %v7392_v56 }
 0x19c   :  { %v6890_v1 = vld [vmem:[#allocation9 + $0x98c] sm:$0xf]  ;;  %v6552_v5 = vor.u32 %v7090_v50, %v6549_v51  ;;  %3874 = vmatpush.bf16.msra.mxu3 %v5304_v54  ;;  %3893 = vmatpush.bf16.msrb.mxu1 %v6040_v58  ;;  %v3643_v63 = vadd.f32 %v3642_v45, %v3630_v46 }
 0x19d   :  { %v5749_v2 = vld [vmem:[#allocation9 + $0x9a8] sm:$0xf0]  ;;  %3862 = vmatmul.bf16.vlgmr.msra.gmra.mxu2 %v7394_v61 }
 0x19e   :  { %v6954_v9 = vld [vmem:[#allocation9 + $0xb8c] sm:$0xf]  ;;  %v5752_v17 = vor.u32 %v6890_v1, %v5749_v2  ;;  %3906 = vmatpush.bf16.msrb.mxu2 %v6296_v4 }
 0x19f   :  { %v6005_v10 = vld [vmem:[#allocation9 + $0xba8] sm:$0xf0]  ;;  %3875 = vmatmul.bf16.vlgmr.msra.gmra.mxu3 %v7396_v62 }
 0x1a0   :  { %v7018_v11 = vld [vmem:[#allocation9 + $0xd8c] sm:$0xf]  ;;  %v6008_v18 = vor.u32 %v6954_v9, %v6005_v10  ;;  %3919 = vmatpush.bf16.msrb.mxu3 %v6552_v5  ;;  %3881 = vmatpush.bf16.msrb.mxu0 %v5752_v17 }
 0x1a1   :  { %v6261_v12 = vld [vmem:[#allocation9 + $0xda8] sm:$0xf0] }
 0x1a2   :  { %v7082_v14 = vld [vmem:[#allocation9 + $0xf8c] sm:$0xf]  ;;  %v6264_v21 = vor.u32 %v7018_v11, %v6261_v12  ;;  %3894 = vmatpush.bf16.msrb.mxu1 %v6008_v18 }
 0x1a3   :  { %v6517_v15 = vld [vmem:[#allocation9 + $0xfa8] sm:$0xf0] }
 0x1a4   :  { %v6882_v19 = vld [vmem:[#allocation9 + $0x94c] sm:$0xf]  ;;  %v6520_v22 = vor.u32 %v7082_v14, %v6517_v15  ;;  %3907 = vmatpush.bf16.msrb.mxu2 %v6264_v21  ;;  %v3655_v14 = vpop.f32.mrf.mxu2  ;;  %v3668_v15 = vpop.f32.mrf.mxu3 }
 0x1a5   :  { %v5717_v20 = vld [vmem:[#allocation9 + $0x968] sm:$0xf0]  ;;  %v3631_v21 = vpop.f32.mrf.mxu0 }
 0x1a6   :  { %v6946_v23 = vld [vmem:[#allocation9 + $0xb4c] sm:$0xf]  ;;  %v5720_v30 = vor.u32 %v6882_v19, %v5717_v20  ;;  %3920 = vmatpush.bf16.msrb.mxu3 %v6520_v22  ;;  %v3656_v20 = vadd.f32 %v3655_v14, %v3643_v63  ;;  %v3644_v22 = vpop.f32.mrf.mxu1  ;;  %v6703_v14 = vld [vmem:[#allocation9 + $0x3ac] sm:$0xf0] }
 0x1a7   :  { %v5973_v24 = vld [vmem:[#allocation9 + $0xb68] sm:$0xf0]  ;;  %v4699_v22 = vld [vmem:[#allocation9 + $0x150] sm:$0xf] }
 0x1a8   :  { %v7010_v25 = vld [vmem:[#allocation9 + $0xd4c] sm:$0xf]  ;;  %v5976_v31 = vor.u32 %v6946_v23, %v5973_v24  ;;  %3882 = vmatpush.bf16.msrb.mxu0 %v5720_v30 }
 0x1a9   :  { %v6229_v26 = vld [vmem:[#allocation9 + $0xd68] sm:$0xf0] }
 0x1aa   :  { %v7074_v28 = vld [vmem:[#allocation9 + $0xf4c] sm:$0xf]  ;;  %v6232_v37 = vor.u32 %v7010_v25, %v6229_v26  ;;  %3895 = vmatpush.bf16.msrb.mxu1 %v5976_v31 }
 0x1ab   :  { %v6485_v29 = vld [vmem:[#allocation9 + $0xf68] sm:$0xf0] }
 0x1ac   :  { %v6874_v35 = vld [vmem:[#allocation9 + $0x90c] sm:$0xf]  ;;  %v6488_v13 = vor.u32 %v7074_v28, %v6485_v29  ;;  %3908 = vmatpush.bf16.msrb.mxu2 %v6232_v37  ;;  %v7440_v28 = vadd.f32 %v3668_v15, %v3656_v20  ;;  %v5243_v15 = vld [vmem:[#allocation9 + $0x590] sm:$0xf] }
 0x1ad   :  { %v5685_v36 = vld [vmem:[#allocation9 + $0x928] sm:$0xf0] }
 0x1ae   :  { %v6938_v38 = vld [vmem:[#allocation9 + $0xb0c] sm:$0xf]  ;;  %v5688_v47 = vor.u32 %v6874_v35, %v5685_v36  ;;  %3921 = vmatpush.bf16.msrb.mxu3 %v6488_v13 }
 0x1af   :  { %v5941_v39 = vld [vmem:[#allocation9 + $0xb28] sm:$0xf0] }
 0x1b0   :  { %v7002_v40 = vld [vmem:[#allocation9 + $0xd0c] sm:$0xf]  ;;  %v5944_v48 = vor.u32 %v6938_v38, %v5941_v39  ;;  %3883 = vmatpush.bf16.msrb.mxu0 %v5688_v47  ;;  %v3657_v47 = vpop.f32.mrf.mxu2 }
 0x1b1   :  { %v6197_v41 = vld [vmem:[#allocation9 + $0xd28] sm:$0xf0]  ;;  %v3694_v47 = vpop.f32.mrf.mxu1 }
 0x1b2   :  { %v7066_v42 = vld [vmem:[#allocation9 + $0xf0c] sm:$0xf]  ;;  %v6200_v51 = vor.u32 %v7002_v40, %v6197_v41  ;;  %3896 = vmatpush.bf16.msrb.mxu1 %v5944_v48  ;;  %v3670_v48 = vpop.f32.mrf.mxu3 }
 0x1b3   :  { %v6453_v43 = vld [vmem:[#allocation9 + $0xf28] sm:$0xf0] }
 0x1b4   :  { %v6866_v49 = vld [vmem:[#allocation9 + $0x8cc] sm:$0xf]  ;;  %v6456_v52 = vor.u32 %v7066_v42, %v6453_v43  ;;  %3909 = vmatpush.bf16.msrb.mxu2 %v6200_v51  ;;  %v6647_v51 = vld [vmem:[#allocation9 + $0x1ec] sm:$0xf0] }
 0x1b5   :  { %v5653_v50 = vld [vmem:[#allocation9 + $0x8e8] sm:$0xf0] }
 0x1b6   :  { %v6930_v54 = vld [vmem:[#allocation9 + $0xacc] sm:$0xf]  ;;  %v5656_v4 = vor.u32 %v6866_v49, %v5653_v50  ;;  %3922 = vmatpush.bf16.msrb.mxu3 %v6456_v52  ;;  %v4763_v50 = vld [vmem:[#allocation9 + $0x1d0] sm:$0xf] }
 0x1b7   :  { %v5909_v57 = vld [vmem:[#allocation9 + $0xae8] sm:$0xf0]  ;;  %v5019_v52 = vld [vmem:[#allocation9 + $0x3d0] sm:$0xf] }
 0x1b8   :  { %v6994_v58 = vld [vmem:[#allocation9 + $0xccc] sm:$0xf]  ;;  %v5912_v5 = vor.u32 %v6930_v54, %v5909_v57  ;;  %3884 = vmatpush.bf16.msrb.mxu0 %v5656_v4  ;;  %v6711_v54 = vld [vmem:[#allocation9 + $0x3ec] sm:$0xf0] }
 0x1b9   :  { %v6165_v0 = vld [vmem:[#allocation9 + $0xce8] sm:$0xf0]  ;;  %v5275_v57 = vld [vmem:[#allocation9 + $0x5d0] sm:$0xf] }
 0x1ba   :  { %v7058_v1 = vld [vmem:[#allocation9 + $0xecc] sm:$0xf]  ;;  %v6168_v8 = vor.u32 %v6994_v58, %v6165_v0  ;;  %3897 = vmatpush.bf16.msrb.mxu1 %v5912_v5  ;;  %v6775_v0 = vld [vmem:[#allocation9 + $0x5ec] sm:$0xf0] }
 0x1bb   :  { %v6421_v2 = vld [vmem:[#allocation9 + $0xee8] sm:$0xf0] }
 0x1bc   :  { %v6858_v6 = vld [vmem:[#allocation9 + $0x88c] sm:$0xf]  ;;  %v6424_v9 = vor.u32 %v7058_v1, %v6421_v2  ;;  %3910 = vmatpush.bf16.msrb.mxu2 %v6168_v8  ;;  %v5531_v1 = vld [vmem:[#allocation9 + $0x7d0] sm:$0xf] }
 0x1bd   :  { %v5621_v7 = vld [vmem:[#allocation9 + $0x8a8] sm:$0xf0]  ;;  %v6839_v2 = vld [vmem:[#allocation9 + $0x7ec] sm:$0xf0] }
 0x1be   :  { %v6922_v10 = vld [vmem:[#allocation9 + $0xa8c] sm:$0xf]  ;;  %v5624_v23 = vor.u32 %v6858_v6, %v5621_v7  ;;  %3923 = vmatpush.bf16.msrb.mxu3 %v6424_v9  ;;  %v4764_v6 = vor.u32 %v6647_v51, %v4763_v50  ;;  %v5020_v7 = vor.u32 %v6711_v54, %v5019_v52  ;;  %v4731_v8 = vld [vmem:[#allocation9 + $0x190] sm:$0xf] }
 0x1bf   :  { %v5877_v11 = vld [vmem:[#allocation9 + $0xaa8] sm:$0xf0]  ;;  %v6639_v9 = vld [vmem:[#allocation9 + $0x1ac] sm:$0xf0] }
 0x1c0   :  { %v6986_v12 = vld [vmem:[#allocation9 + $0xc8c] sm:$0xf]  ;;  %v5880_v24 = vor.u32 %v6922_v10, %v5877_v11  ;;  %3885 = vmatpush.bf16.msrb.mxu0 %v5624_v23  ;;  %v5276_v10 = vor.u32 %v6775_v0, %v5275_v57  ;;  %v5532_v11 = vor.u32 %v6839_v2, %v5531_v1  ;;  %v4732_v20 = vor.u32 %v6639_v9, %v4731_v8  ;;  %v6631_v23 = vld [vmem:[#allocation9 + $0x16c] sm:$0xf0] }
 0x1c1   :  { %v6133_v17 = vld [vmem:[#allocation9 + $0xca8] sm:$0xf0]  ;;  %v4635_v51 = vld [vmem:[#allocation9 + $0xd0] sm:$0xf] }
 0x1c2   :  { %v7050_v18 = vld [vmem:[#allocation9 + $0xe8c] sm:$0xf]  ;;  %v6136_v29 = vor.u32 %v6986_v12, %v6133_v17  ;;  %3898 = vmatpush.bf16.msrb.mxu1 %v5880_v24  ;;  %v4987_v12 = vld [vmem:[#allocation9 + $0x390] sm:$0xf] }
 0x1c3   :  { %v6389_v19 = vld [vmem:[#allocation9 + $0xea8] sm:$0xf0]  ;;  %v6767_v17 = vld [vmem:[#allocation9 + $0x5ac] sm:$0xf0]  ;;  %v4988_v21 = vor.u32 %v6703_v14, %v4987_v12 }
 0x1c4   :  { %v6850_v25 = vld [vmem:[#allocation9 + $0x84c] sm:$0xf]  ;;  %v6392_v30 = vor.u32 %v7050_v18, %v6389_v19  ;;  %3911 = vmatpush.bf16.msrb.mxu2 %v6136_v29  ;;  %v5499_v18 = vld [vmem:[#allocation9 + $0x790] sm:$0xf]  ;;  %v5244_v24 = vor.u32 %v6767_v17, %v5243_v15  ;;  %v3707_v17 = vpop.f32.mrf.mxu2 }
 0x1c5   :  { %v5589_v26 = vld [vmem:[#allocation9 + $0x868] sm:$0xf0]  ;;  %v6831_v19 = vld [vmem:[#allocation9 + $0x7ac] sm:$0xf0] }
 0x1c6   :  { %v6914_v31 = vld [vmem:[#allocation9 + $0xa4c] sm:$0xf]  ;;  %v5592_v13 = vor.u32 %v6850_v25, %v5589_v26  ;;  %3924 = vmatpush.bf16.msrb.mxu3 %v6392_v30  ;;  %v5500_v25 = vor.u32 %v6831_v19, %v5499_v18  ;;  %v4955_v26 = vld [vmem:[#allocation9 + $0x350] sm:$0xf]  ;;  %v3720_v18 = vpop.f32.mrf.mxu3 }
 0x1c7   :  { %v5845_v32 = vld [vmem:[#allocation9 + $0xa68] sm:$0xf0]  ;;  %v6695_v29 = vld [vmem:[#allocation9 + $0x36c] sm:$0xf0] }
 0x1c8   :  { %v6978_v33 = vld [vmem:[#allocation9 + $0xc4c] sm:$0xf]  ;;  %v5848_v38 = vor.u32 %v6914_v31, %v5845_v32  ;;  %3886 = vmatpush.bf16.msrb.mxu0 %v5592_v13  ;;  %v5211_v30 = vld [vmem:[#allocation9 + $0x550] sm:$0xf] }
 0x1c9   :  { %v6101_v34 = vld [vmem:[#allocation9 + $0xc68] sm:$0xf0]  ;;  %v6759_v31 = vld [vmem:[#allocation9 + $0x56c] sm:$0xf0] }
 0x1ca   :  { %v7042_v35 = vld [vmem:[#allocation9 + $0xe4c] sm:$0xf]  ;;  %v6104_v42 = vor.u32 %v6978_v33, %v6101_v34  ;;  %3899 = vmatpush.bf16.msrb.mxu1 %v5848_v38  ;;  %v5467_v32 = vld [vmem:[#allocation9 + $0x750] sm:$0xf]  ;;  %v4348_v34 = vmul.f32 0.5, %v7433_v16  ;;  %v5212_v38 = vor.u32 %v6759_v31, %v5211_v30 }
 0x1cb   :  { %v6357_v36 = vld [vmem:[#allocation9 + $0xe68] sm:$0xf0]  ;;  %v6823_v33 = vld [vmem:[#allocation9 + $0x76c] sm:$0xf0] }
 0x1cc   :  { %v6842_v37 = vld [vmem:[#allocation9 + $0x80c] sm:$0xf]  ;;  %v6360_v43 = vor.u32 %v7042_v35, %v6357_v36  ;;  %3912 = vmatpush.bf16.msrb.mxu2 %v6104_v42  ;;  %v4700_v35 = vor.u32 %v6631_v23, %v4699_v22  ;;  %v4956_v36 = vor.u32 %v6695_v29, %v4955_v26  ;;  %v6623_v13 = vld [vmem:[#allocation9 + $0x12c] sm:$0xf0]  ;;  %7110 = vtanh.f32 %v4348_v34 }
 0x1cd   :  { %v5557_v39 = vld [vmem:[#allocation9 + $0x828] sm:$0xf0]  ;;  %v5179_v42 = vld [vmem:[#allocation9 + $0x510] sm:$0xf] }
 0x1ce   :  { %v6906_v40 = vld [vmem:[#allocation9 + $0xa0c] sm:$0xf]  ;;  %v5560_v58 = vor.u32 %v6842_v37, %v5557_v39  ;;  %3925 = vmatpush.bf16.msrb.mxu3 %v6360_v43  ;;  %v4667_v37 = vld [vmem:[#allocation9 + $0x110] sm:$0xf]  ;;  %v5468_v39 = vor.u32 %v6823_v33, %v5467_v32 }
 0x1cf   :  { %v5813_v41 = vld [vmem:[#allocation9 + $0xa28] sm:$0xf0]  ;;  %v6751_v43 = vld [vmem:[#allocation9 + $0x52c] sm:$0xf0] }
 0x1d0   :  { %v6970_v44 = vld [vmem:[#allocation9 + $0xc0c] sm:$0xf]  ;;  %v5816_v63 = vor.u32 %v6906_v40, %v5813_v41  ;;  %3887 = vmatpush.bf16.msrb.mxu0 %v5560_v58  ;;  %v4923_v40 = vld [vmem:[#allocation9 + $0x310] sm:$0xf]  ;;  %v5180_v54 = vor.u32 %v6751_v43, %v5179_v42 }
 0x1d1   :  { %v6069_v45 = vld [vmem:[#allocation9 + $0xc28] sm:$0xf0]  ;;  %v6687_v41 = vld [vmem:[#allocation9 + $0x32c] sm:$0xf0] }
 0x1d2   :  { %v7034_v46 = vld [vmem:[#allocation9 + $0xe0c] sm:$0xf]  ;;  %v6072_v4 = vor.u32 %v6970_v44, %v6069_v45  ;;  %3900 = vmatpush.bf16.msrb.mxu1 %v5816_v63  ;;  %v5435_v44 = vld [vmem:[#allocation9 + $0x710] sm:$0xf]  ;;  %v4924_v50 = vor.u32 %v6687_v41, %v4923_v40 }
 0x1d3   :  { %v6325_v49 = vld [vmem:[#allocation9 + $0xe28] sm:$0xf0]  ;;  %3888 = vmatmul.bf16.vlgmr.msrb.gmra.mxu0 %v7402_v53  ;;  %v6815_v45 = vld [vmem:[#allocation9 + $0x72c] sm:$0xf0] }
 0x1d4   :  { %v6328_v5 = vor.u32 %v7034_v46, %v6325_v49  ;;  %3913 = vmatpush.bf16.msrb.mxu2 %v6072_v4  ;;  %3932 = vmatpush.bf16.msra.mxu0 %v4764_v6  ;;  %v3681_v46 = vpop.f32.mrf.mxu0  ;;  %v4380_v48 = vld [vmem:[#allocation12] sm:$0xff]  ;;  %v4668_v49 = vor.u32 %v6623_v13, %v4667_v37  ;;  %v6615_v52 = vld [vmem:[#allocation9 + $0xec] sm:$0xf0]  ;;  %v5436_v57 = vor.u32 %v6815_v45, %v5435_v44 }
 0x1d5   :  { %3901 = vmatmul.bf16.vlgmr.msrb.gmra.mxu1 %v7404_v27  ;;  %v3682_v16 = vadd.f32 %v3681_v46, %v7440_v28  ;;  %v4891_v58 = vld [vmem:[#allocation9 + $0x2d0] sm:$0xf]  ;;  %v7448_v6 = vunpack.c.l.bf16 %v4380_v48  ;;  %v4636_v28 = vor.u32 %v6615_v52, %v4635_v51 }
 0x1d6   :  { %3926 = vmatpush.bf16.msrb.mxu3 %v6328_v5  ;;  %3945 = vmatpush.bf16.msra.mxu1 %v5020_v7  ;;  %v6679_v63 = vld [vmem:[#allocation9 + $0x2ec] sm:$0xf0] }
 0x1d7   :  { %3914 = vmatmul.bf16.vlgmr.msrb.gmra.mxu2 %v7406_v59  ;;  %v5147_v0 = vld [vmem:[#allocation9 + $0x4d0] sm:$0xf]  ;;  %v3695_v1 = vadd.f32 %v3694_v47, %v3682_v16  ;;  %v4892_v7 = vor.u32 %v6679_v63, %v4891_v58  ;;  %v4385_v26 = vperm.slane %v7448_v6, 0  ;;  %v3722_v58 = vpop.f32.mrf.mxu3 }
 0x1d8   :  { %3958 = vmatpush.bf16.msra.mxu2 %v5276_v10  ;;  %3933 = vmatpush.bf16.msra.mxu0 %v4732_v20  ;;  %v6743_v2 = vld [vmem:[#allocation9 + $0x4ec] sm:$0xf0] }
 0x1d9   :  { %3927 = vmatmul.bf16.vlgmr.msrb.gmra.mxu3 %v7408_v60  ;;  %v5403_v4 = vld [vmem:[#allocation9 + $0x6d0] sm:$0xf]  ;;  %v5148_v10 = vor.u32 %v6743_v2, %v5147_v0  ;;  %v3708_v22 = vadd.f32 %v3707_v17, %v3695_v1  ;;  %v4386_v2 = vperm.slane %v7448_v6, 2 }
 0x1da   :  { %3971 = vmatpush.bf16.msra.mxu3 %v5532_v11  ;;  %3946 = vmatpush.bf16.msra.mxu1 %v4988_v21  ;;  %v6807_v5 = vld [vmem:[#allocation9 + $0x6ec] sm:$0xf0] }
 0x1db   :  { %v4603_v8 = vld [vmem:[#allocation9 + $0x90] sm:$0xf]  ;;  %v5404_v11 = vor.u32 %v6807_v5, %v5403_v4  ;;  %v3721_v33 = vadd.f32 %v3720_v18, %v3708_v22 }
 0x1dc   :  { %3959 = vmatpush.bf16.msra.mxu2 %v5244_v24  ;;  %3934 = vmatpush.bf16.msra.mxu0 %v4700_v35  ;;  %v6607_v9 = vld [vmem:[#allocation9 + $0xac] sm:$0xf0]  ;;  %v3683_v23 = vpop.f32.mrf.mxu0  ;;  %v3696_v24 = vpop.f32.mrf.mxu1 }
 0x1dd   :  { %v4859_v12 = vld [vmem:[#allocation9 + $0x290] sm:$0xf]  ;;  %v4604_v29 = vor.u32 %v6607_v9, %v4603_v8  ;;  %v4349_v42 = vmul.f32 0.5, %v3721_v33 }
 0x1de   :  { %3972 = vmatpush.bf16.msra.mxu3 %v5500_v25  ;;  %3947 = vmatpush.bf16.msra.mxu1 %v4956_v36  ;;  %v6671_v14 = vld [vmem:[#allocation9 + $0x2ac] sm:$0xf0]  ;;  %v7111_v25 = vpop.eup %7110 }
 0x1df   :  { %v5115_v15 = vld [vmem:[#allocation9 + $0x490] sm:$0xf]  ;;  %v4860_v30 = vor.u32 %v6671_v14, %v4859_v12  ;;  %v4364_v41 = vmul.f32 0.5, %v7111_v25  ;;  %7112 = vtanh.f32 %v4349_v42  ;;  %v4401_v12 = vperm.slane %v4385_v26, 0 }
 0x1e0   :  { %3960 = vmatpush.bf16.msra.mxu2 %v5212_v38  ;;  %3935 = vmatpush.bf16.msra.mxu0 %v4668_v49  ;;  %v6735_v19 = vld [vmem:[#allocation9 + $0x4ac] sm:$0xf0] }
 0x1e1   :  { %v5371_v20 = vld [vmem:[#allocation9 + $0x690] sm:$0xf]  ;;  %v5116_v34 = vor.u32 %v6735_v19, %v5115_v15 }
 0x1e2   :  { %3973 = vmatpush.bf16.msra.mxu3 %v5468_v39  ;;  %3948 = vmatpush.bf16.msra.mxu1 %v4924_v50  ;;  %v6799_v21 = vld [vmem:[#allocation9 + $0x6ac] sm:$0xf0] }
 0x1e3   :  { %v4571_v31 = vld [vmem:[#allocation9 + $0x50] sm:$0xf]  ;;  %v5372_v35 = vor.u32 %v6799_v21, %v5371_v20 }
 0x1e4   :  { %3961 = vmatpush.bf16.msra.mxu2 %v5180_v54  ;;  %3936 = vmatpush.bf16.msra.mxu0 %v4636_v28  ;;  %v6599_v32 = vld [vmem:[#allocation9 + $0x6c] sm:$0xf0] }
 0x1e5   :  { %v4827_v36 = vld [vmem:[#allocation9 + $0x250] sm:$0xf]  ;;  %v4572_v45 = vor.u32 %v6599_v32, %v4571_v31  ;;  %v7113_v22 = vpop.eup %7112  ;;  %v4402_v32 = vperm.slane %v4386_v2, 0 }
 0x1e6   :  { %3974 = vmatpush.bf16.msra.mxu3 %v5436_v57  ;;  %3949 = vmatpush.bf16.msra.mxu1 %v4892_v7  ;;  %v6663_v37 = vld [vmem:[#allocation9 + $0x26c] sm:$0xf0]  ;;  %v3709_v57 = vpop.f32.mrf.mxu2  ;;  %v4365_v31 = vmul.f32 0.5, %v7113_v22 }
 0x1e7   :  { %v5083_v13 = vld [vmem:[#allocation9 + $0x450] sm:$0xf]  ;;  %v4828_v46 = vor.u32 %v6663_v37, %v4827_v36 }
 0x1e8   :  { %3962 = vmatpush.bf16.msra.mxu2 %v5148_v10  ;;  %v6727_v38 = vld [vmem:[#allocation9 + $0x46c] sm:$0xf0]  ;;  %3937 = vmatpush.bf16.msra.mxu0 %v4604_v29 }
 0x1e9   :  { %v5339_v39 = vld [vmem:[#allocation9 + $0x650] sm:$0xf]  ;;  %v5084_v49 = vor.u32 %v6727_v38, %v5083_v13 }
 0x1ea   :  { %3975 = vmatpush.bf16.msra.mxu3 %v5404_v11  ;;  %v6791_v40 = vld [vmem:[#allocation9 + $0x66c] sm:$0xf0]  ;;  %3950 = vmatpush.bf16.msra.mxu1 %v4860_v30  ;;  %v4372_v11 = vadd.f32 0.5, %v4364_v41 }
 0x1eb   :  { %v4539_v43 = vld [vmem:[#allocation9 + $0x10] sm:$0xf]  ;;  %v5340_v50 = vor.u32 %v6791_v40, %v5339_v39 }
 0x1ec   :  { %v6591_v44 = vld [vmem:[#allocation9 + $0x2c] sm:$0xf0]  ;;  %3963 = vmatpush.bf16.msra.mxu2 %v5116_v34  ;;  %3938 = vmatpush.bf16.msra.mxu0 %v4572_v45  ;;  %v4409_v34 = vmul.f32 %v4401_v12, %v4372_v11 }
 0x1ed   :  { %v4795_v47 = vld [vmem:[#allocation9 + $0x210] sm:$0xf]  ;;  %v4540_v28 = vor.u32 %v6591_v44, %v4539_v43 }
 0x1ee   :  { %v6655_v48 = vld [vmem:[#allocation9 + $0x22c] sm:$0xf0]  ;;  %3976 = vmatpush.bf16.msra.mxu3 %v5372_v35  ;;  %3951 = vmatpush.bf16.msra.mxu1 %v4828_v46  ;;  %v4373_v35 = vadd.f32 0.5, %v4365_v31 }
 0x1ef   :  { %v5051_v16 = vld [vmem:[#allocation9 + $0x410] sm:$0xf]  ;;  %v4796_v7 = vor.u32 %v6655_v48, %v4795_v47  ;;  %v4417_v48 = vsel %vm343_vm1, %v4409_v34, 0.0 }
 0x1f0   :  { %v6719_v51 = vld [vmem:[#allocation9 + $0x42c] sm:$0xf0]  ;;  %3964 = vmatpush.bf16.msra.mxu2 %v5084_v49  ;;  %3939 = vmatpush.bf16.msra.mxu0 %v4540_v28  ;;  %v4410_v44 = vmul.f32 %v4402_v32, %v4373_v35  ;;  %v3759_v35 = vpop.f32.mrf.mxu2 }
 0x1f1   :  { %v5307_v52 = vld [vmem:[#allocation9 + $0x610] sm:$0xf]  ;;  %v5052_v14 = vor.u32 %v6719_v51, %v5051_v16  ;;  %v942_v51 = vperm.slane %v7426_v3, 2 }
 0x1f2   :  { %v6783_v54 = vld [vmem:[#allocation9 + $0x62c] sm:$0xf0]  ;;  %3977 = vmatpush.bf16.msra.mxu3 %v5340_v50  ;;  %3952 = vmatpush.bf16.msra.mxu1 %v4796_v7  ;;  %v4418_v16 = vsel %vm343_vm1, %v4410_v44, 0.0  ;;  %v3733_v7 = vpop.f32.mrf.mxu0 }
 0x1f3   :  { %v5787_v63 = vld [vmem:[#allocation9 + $0x9d0] sm:$0xf]  ;;  %v5308_v15 = vor.u32 %v6783_v54, %v5307_v52  ;;  %3940 = vmatmul.bf16.vlgmr.msra.gmra.mxu0 %v7390_v55  ;;  %v7459_v57 = vadd.f32 %v4418_v16, %v4417_v48 }
 0x1f4   :  { %v6903_v0 = vld [vmem:[#allocation9 + $0x9ec] sm:$0xf0]  ;;  %3965 = vmatpush.bf16.msra.mxu2 %v5052_v14 }
 0x1f5   :  { %v6043_v1 = vld [vmem:[#allocation9 + $0xbd0] sm:$0xf]  ;;  %v5788_v17 = vor.u32 %v6903_v0, %v5787_v63  ;;  %3953 = vmatmul.bf16.vlgmr.msra.gmra.mxu1 %v7392_v56 }
 0x1f6   :  { %v6967_v4 = vld [vmem:[#allocation9 + $0xbec] sm:$0xf0]  ;;  %3978 = vmatpush.bf16.msra.mxu3 %v5308_v15 }
 0x1f7   :  { %v6299_v5 = vld [vmem:[#allocation9 + $0xdd0] sm:$0xf]  ;;  %v6044_v18 = vor.u32 %v6967_v4, %v6043_v1  ;;  %3984 = vmatpush.bf16.msrb.mxu0 %v5788_v17  ;;  %3966 = vmatmul.bf16.vlgmr.msra.gmra.mxu2 %v7394_v61 }
 0x1f8   :  { %v7031_v8 = vld [vmem:[#allocation9 + $0xdec] sm:$0xf0] }
 0x1f9   :  { %v6555_v9 = vld [vmem:[#allocation9 + $0xfd0] sm:$0xf]  ;;  %v6300_v23 = vor.u32 %v7031_v8, %v6299_v5  ;;  %3997 = vmatpush.bf16.msrb.mxu1 %v6044_v18  ;;  %3979 = vmatmul.bf16.vlgmr.msra.gmra.mxu3 %v7396_v62  ;;  %v3746_v8 = vpop.f32.mrf.mxu1 }
 0x1fa   :  { %v7095_v10 = vld [vmem:[#allocation9 + $0xfec] sm:$0xf0] }
 0x1fb   :  { %v5755_v19 = vld [vmem:[#allocation9 + $0x990] sm:$0xf]  ;;  %v6556_v24 = vor.u32 %v7095_v10, %v6555_v9  ;;  %4010 = vmatpush.bf16.msrb.mxu2 %v6300_v23  ;;  %v3734_v9 = vadd.f32 %v3733_v7, %v942_v51 }
 0x1fc   :  { %v6895_v20 = vld [vmem:[#allocation9 + $0x9ac] sm:$0xf0] }
 0x1fd   :  { %v6011_v21 = vld [vmem:[#allocation9 + $0xb90] sm:$0xf]  ;;  %v5756_v36 = vor.u32 %v6895_v20, %v5755_v19  ;;  %4023 = vmatpush.bf16.msrb.mxu3 %v6556_v24  ;;  %v3747_v20 = vadd.f32 %v3746_v8, %v3734_v9 }
 0x1fe   :  { %v6959_v25 = vld [vmem:[#allocation9 + $0xbac] sm:$0xf0] }
 0x1ff   :  { %v6267_v29 = vld [vmem:[#allocation9 + $0xd90] sm:$0xf]  ;;  %v6012_v37 = vor.u32 %v6959_v25, %v6011_v21  ;;  %3985 = vmatpush.bf16.msrb.mxu0 %v5756_v36  ;;  %v3772_v36 = vpop.f32.mrf.mxu3 }
 0x200   :  { %v7023_v30 = vld [vmem:[#allocation9 + $0xdac] sm:$0xf0] }
 0x201   :  { %v6523_v26 = vld [vmem:[#allocation9 + $0xf90] sm:$0xf]  ;;  %v6268_v39 = vor.u32 %v7023_v30, %v6267_v29  ;;  %3998 = vmatpush.bf16.msrb.mxu1 %v6012_v37 }
 0x202   :  { %v7087_v33 = vld [vmem:[#allocation9 + $0xfac] sm:$0xf0] }
 0x203   :  { %v5723_v13 = vld [vmem:[#allocation9 + $0x950] sm:$0xf]  ;;  %v6524_v40 = vor.u32 %v7087_v33, %v6523_v26  ;;  %4011 = vmatpush.bf16.msrb.mxu2 %v6268_v39  ;;  %v3760_v39 = vadd.f32 %v3759_v35, %v3747_v20  ;;  %v4989_v35 = vld [vmem:[#allocation9 + $0x3b0] sm:$0xf0] }
 0x204   :  { %v6887_v38 = vld [vmem:[#allocation9 + $0x96c] sm:$0xf0] }
 0x205   :  { %v5979_v41 = vld [vmem:[#allocation9 + $0xb50] sm:$0xf]  ;;  %v5724_v49 = vor.u32 %v6887_v38, %v5723_v13  ;;  %4024 = vmatpush.bf16.msrb.mxu3 %v6524_v40  ;;  %v3735_v40 = vpop.f32.mrf.mxu0 }
 0x206   :  { %v6951_v42 = vld [vmem:[#allocation9 + $0xb6c] sm:$0xf0] }
 0x207   :  { %v6235_v43 = vld [vmem:[#allocation9 + $0xd50] sm:$0xf]  ;;  %v5980_v50 = vor.u32 %v6951_v42, %v5979_v41  ;;  %3986 = vmatpush.bf16.msrb.mxu0 %v5724_v49  ;;  %v3748_v41 = vpop.f32.mrf.mxu1 }
 0x208   :  { %v7015_v45 = vld [vmem:[#allocation9 + $0xd6c] sm:$0xf0]  ;;  %v6627_v41 = vld [vmem:[#allocation9 + $0x154] sm:$0xf] }
 0x209   :  { %v6491_v46 = vld [vmem:[#allocation9 + $0xf50] sm:$0xf]  ;;  %v6236_v58 = vor.u32 %v7015_v45, %v6235_v43  ;;  %3999 = vmatpush.bf16.msrb.mxu1 %v5980_v50 }
 0x20a   :  { %v7079_v47 = vld [vmem:[#allocation9 + $0xf6c] sm:$0xf0] }
 0x20b   :  { %v5691_v52 = vld [vmem:[#allocation9 + $0x910] sm:$0xf]  ;;  %v6492_v63 = vor.u32 %v7079_v47, %v6491_v46  ;;  %4012 = vmatpush.bf16.msrb.mxu2 %v6236_v58  ;;  %v7461_v46 = vadd.f32 %v3772_v36, %v3760_v39  ;;  %v6763_v36 = vld [vmem:[#allocation9 + $0x594] sm:$0xf] }
 0x20c   :  { %v6879_v54 = vld [vmem:[#allocation9 + $0x92c] sm:$0xf0] }
 0x20d   :  { %v5947_v0 = vld [vmem:[#allocation9 + $0xb10] sm:$0xf]  ;;  %v5692_v3 = vor.u32 %v6879_v54, %v5691_v52  ;;  %4025 = vmatpush.bf16.msrb.mxu3 %v6492_v63 }
 0x20e   :  { %v6943_v1 = vld [vmem:[#allocation9 + $0xb2c] sm:$0xf0] }
 0x20f   :  { %v6203_v2 = vld [vmem:[#allocation9 + $0xd10] sm:$0xf]  ;;  %v5948_v10 = vor.u32 %v6943_v1, %v5947_v0  ;;  %3987 = vmatpush.bf16.msrb.mxu0 %v5692_v3  ;;  %v3761_v3 = vpop.f32.mrf.mxu2 }
 0x210   :  { %v7007_v4 = vld [vmem:[#allocation9 + $0xd2c] sm:$0xf0] }
 0x211   :  { %v6459_v5 = vld [vmem:[#allocation9 + $0xf10] sm:$0xf]  ;;  %v6204_v14 = vor.u32 %v7007_v4, %v6203_v2  ;;  %4000 = vmatpush.bf16.msrb.mxu1 %v5948_v10  ;;  %v3774_v10 = vpop.f32.mrf.mxu3 }
 0x212   :  { %v7071_v28 = vld [vmem:[#allocation9 + $0xf2c] sm:$0xf0] }
 0x213   :  { %v5659_v11 = vld [vmem:[#allocation9 + $0x8d0] sm:$0xf]  ;;  %v6460_v15 = vor.u32 %v7071_v28, %v6459_v5  ;;  %4013 = vmatpush.bf16.msrb.mxu2 %v6204_v14  ;;  %v4765_v14 = vld [vmem:[#allocation9 + $0x1f0] sm:$0xf0] }
 0x214   :  { %v6871_v12 = vld [vmem:[#allocation9 + $0x8ec] sm:$0xf0] }
 0x215   :  { %v5915_v17 = vld [vmem:[#allocation9 + $0xad0] sm:$0xf]  ;;  %v5660_v24 = vor.u32 %v6871_v12, %v5659_v11  ;;  %4026 = vmatpush.bf16.msrb.mxu3 %v6460_v15  ;;  %v6643_v12 = vld [vmem:[#allocation9 + $0x1d4] sm:$0xf] }
 0x216   :  { %v6935_v18 = vld [vmem:[#allocation9 + $0xaec] sm:$0xf0]  ;;  %v6707_v15 = vld [vmem:[#allocation9 + $0x3d4] sm:$0xf] }
 0x217   :  { %v6171_v19 = vld [vmem:[#allocation9 + $0xcd0] sm:$0xf]  ;;  %v5916_v25 = vor.u32 %v6935_v18, %v5915_v17  ;;  %3988 = vmatpush.bf16.msrb.mxu0 %v5660_v24  ;;  %v5021_v17 = vld [vmem:[#allocation9 + $0x3f0] sm:$0xf0] }
 0x218   :  { %v6999_v21 = vld [vmem:[#allocation9 + $0xcec] sm:$0xf0]  ;;  %v6771_v18 = vld [vmem:[#allocation9 + $0x5d4] sm:$0xf] }
 0x219   :  { %v6427_v22 = vld [vmem:[#allocation9 + $0xed0] sm:$0xf]  ;;  %v6172_v31 = vor.u32 %v6999_v21, %v6171_v19  ;;  %4001 = vmatpush.bf16.msrb.mxu1 %v5916_v25  ;;  %v5277_v21 = vld [vmem:[#allocation9 + $0x5f0] sm:$0xf0] }
 0x21a   :  { %v7063_v23 = vld [vmem:[#allocation9 + $0xeec] sm:$0xf0] }
 0x21b   :  { %v5627_v29 = vld [vmem:[#allocation9 + $0x890] sm:$0xf]  ;;  %v6428_v32 = vor.u32 %v7063_v23, %v6427_v22  ;;  %4014 = vmatpush.bf16.msrb.mxu2 %v6172_v31  ;;  %v6835_v22 = vld [vmem:[#allocation9 + $0x7d4] sm:$0xf] }
 0x21c   :  { %v6863_v30 = vld [vmem:[#allocation9 + $0x8ac] sm:$0xf0]  ;;  %v5533_v23 = vld [vmem:[#allocation9 + $0x7f0] sm:$0xf0] }
 0x21d   :  { %v5883_v26 = vld [vmem:[#allocation9 + $0xa90] sm:$0xf]  ;;  %v5628_v42 = vor.u32 %v6863_v30, %v5627_v29  ;;  %4027 = vmatpush.bf16.msrb.mxu3 %v6428_v32  ;;  %v4768_v29 = vor.u32 %v6643_v12, %v4765_v14  ;;  %v5024_v30 = vor.u32 %v6707_v15, %v5021_v17  ;;  %v6635_v31 = vld [vmem:[#allocation9 + $0x194] sm:$0xf] }
 0x21e   :  { %v6927_v33 = vld [vmem:[#allocation9 + $0xaac] sm:$0xf0]  ;;  %v4733_v32 = vld [vmem:[#allocation9 + $0x1b0] sm:$0xf0] }
 0x21f   :  { %v6139_v34 = vld [vmem:[#allocation9 + $0xc90] sm:$0xf]  ;;  %v5884_v43 = vor.u32 %v6927_v33, %v5883_v26  ;;  %3989 = vmatpush.bf16.msrb.mxu0 %v5628_v42  ;;  %v5280_v26 = vor.u32 %v6771_v18, %v5277_v21  ;;  %v5536_v33 = vor.u32 %v6835_v22, %v5533_v23  ;;  %v4736_v39 = vor.u32 %v6635_v31, %v4733_v32  ;;  %v4701_v42 = vld [vmem:[#allocation9 + $0x170] sm:$0xf0] }
 0x220   :  { %v6991_v37 = vld [vmem:[#allocation9 + $0xcac] sm:$0xf0]  ;;  %v6611_v12 = vld [vmem:[#allocation9 + $0xd4] sm:$0xf] }
 0x221   :  { %v6395_v13 = vld [vmem:[#allocation9 + $0xe90] sm:$0xf]  ;;  %v6140_v47 = vor.u32 %v6991_v37, %v6139_v34  ;;  %4002 = vmatpush.bf16.msrb.mxu1 %v5884_v43  ;;  %v6699_v34 = vld [vmem:[#allocation9 + $0x394] sm:$0xf] }
 0x222   :  { %v7055_v38 = vld [vmem:[#allocation9 + $0xeac] sm:$0xf0]  ;;  %v5245_v37 = vld [vmem:[#allocation9 + $0x5b0] sm:$0xf0]  ;;  %v4992_v40 = vor.u32 %v6699_v34, %v4989_v35  ;;  %v3811_v35 = vpop.f32.mrf.mxu2 }
 0x223   :  { %v5595_v44 = vld [vmem:[#allocation9 + $0x850] sm:$0xf]  ;;  %v6396_v48 = vor.u32 %v7055_v38, %v6395_v13  ;;  %4015 = vmatpush.bf16.msrb.mxu2 %v6140_v47  ;;  %v6827_v13 = vld [vmem:[#allocation9 + $0x794] sm:$0xf]  ;;  %v5248_v43 = vor.u32 %v6763_v36, %v5245_v37  ;;  %v3824_v36 = vpop.f32.mrf.mxu3 }
 0x224   :  { %v6855_v45 = vld [vmem:[#allocation9 + $0x86c] sm:$0xf0]  ;;  %v5501_v38 = vld [vmem:[#allocation9 + $0x7b0] sm:$0xf0] }
 0x225   :  { %v5851_v16 = vld [vmem:[#allocation9 + $0xa50] sm:$0xf]  ;;  %v5596_v63 = vor.u32 %v6855_v45, %v5595_v44  ;;  %4028 = vmatpush.bf16.msrb.mxu3 %v6396_v48  ;;  %v5504_v44 = vor.u32 %v6827_v13, %v5501_v38  ;;  %v6691_v45 = vld [vmem:[#allocation9 + $0x354] sm:$0xf] }
 0x226   :  { %v6919_v49 = vld [vmem:[#allocation9 + $0xa6c] sm:$0xf0]  ;;  %v4957_v47 = vld [vmem:[#allocation9 + $0x370] sm:$0xf0] }
 0x227   :  { %v6107_v50 = vld [vmem:[#allocation9 + $0xc50] sm:$0xf]  ;;  %v5852_v0 = vor.u32 %v6919_v49, %v5851_v16  ;;  %3990 = vmatpush.bf16.msrb.mxu0 %v5596_v63  ;;  %v6755_v48 = vld [vmem:[#allocation9 + $0x554] sm:$0xf] }
 0x228   :  { %v6983_v51 = vld [vmem:[#allocation9 + $0xc6c] sm:$0xf0]  ;;  %v5213_v16 = vld [vmem:[#allocation9 + $0x570] sm:$0xf0] }
 0x229   :  { %v6363_v52 = vld [vmem:[#allocation9 + $0xe50] sm:$0xf]  ;;  %v6108_v5 = vor.u32 %v6983_v51, %v6107_v50  ;;  %4003 = vmatpush.bf16.msrb.mxu1 %v5852_v0  ;;  %v6819_v49 = vld [vmem:[#allocation9 + $0x754] sm:$0xf]  ;;  %v4704_v51 = vor.u32 %v6627_v41, %v4701_v42  ;;  %v5216_v63 = vor.u32 %v6755_v48, %v5213_v16 }
 0x22a   :  { %v7047_v54 = vld [vmem:[#allocation9 + $0xe6c] sm:$0xf0]  ;;  %v5469_v50 = vld [vmem:[#allocation9 + $0x770] sm:$0xf0] }
 0x22b   :  { %v5563_v58 = vld [vmem:[#allocation9 + $0x810] sm:$0xf]  ;;  %v6364_v28 = vor.u32 %v7047_v54, %v6363_v52  ;;  %4016 = vmatpush.bf16.msrb.mxu2 %v6108_v5  ;;  %v4960_v52 = vor.u32 %v6691_v45, %v4957_v47  ;;  %v6619_v54 = vld [vmem:[#allocation9 + $0x114] sm:$0xf]  ;;  %v5472_v0 = vor.u32 %v6819_v49, %v5469_v50 }
 0x22c   :  { %v6847_v1 = vld [vmem:[#allocation9 + $0x82c] sm:$0xf0]  ;;  %v5181_v5 = vld [vmem:[#allocation9 + $0x530] sm:$0xf0] }
 0x22d   :  { %v5819_v2 = vld [vmem:[#allocation9 + $0xa10] sm:$0xf]  ;;  %v5564_v19 = vor.u32 %v6847_v1, %v5563_v58  ;;  %4029 = vmatpush.bf16.msrb.mxu3 %v6364_v28  ;;  %v4669_v58 = vld [vmem:[#allocation9 + $0x130] sm:$0xf0] }
 0x22e   :  { %v6911_v4 = vld [vmem:[#allocation9 + $0xa2c] sm:$0xf0]  ;;  %v6683_v1 = vld [vmem:[#allocation9 + $0x314] sm:$0xf]  ;;  %v4672_v10 = vor.u32 %v6619_v54, %v4669_v58 }
 0x22f   :  { %v6075_v7 = vld [vmem:[#allocation9 + $0xc10] sm:$0xf]  ;;  %v5820_v20 = vor.u32 %v6911_v4, %v5819_v2  ;;  %3991 = vmatpush.bf16.msrb.mxu0 %v5564_v19  ;;  %v4925_v2 = vld [vmem:[#allocation9 + $0x330] sm:$0xf0] }
 0x230   :  { %v6975_v8 = vld [vmem:[#allocation9 + $0xc2c] sm:$0xf0]  ;;  %v6747_v4 = vld [vmem:[#allocation9 + $0x514] sm:$0xf] }
 0x231   :  { %v6331_v9 = vld [vmem:[#allocation9 + $0xe10] sm:$0xf]  ;;  %v6076_v24 = vor.u32 %v6975_v8, %v6075_v7  ;;  %4004 = vmatpush.bf16.msrb.mxu1 %v5820_v20  ;;  %v6811_v28 = vld [vmem:[#allocation9 + $0x714] sm:$0xf]  ;;  %v3785_v8 = vpop.f32.mrf.mxu0  ;;  %v5184_v15 = vor.u32 %v6747_v4, %v5181_v5 }
 0x232   :  { %v7039_v11 = vld [vmem:[#allocation9 + $0xe2c] sm:$0xf0]  ;;  %3992 = vmatmul.bf16.vlgmr.msrb.gmra.mxu0 %v7402_v53  ;;  %v5437_v7 = vld [vmem:[#allocation9 + $0x730] sm:$0xf0]  ;;  %v3786_v3 = vadd.f32 %v3785_v8, %v7461_v46 }
 0x233   :  { %v6332_v25 = vor.u32 %v7039_v11, %v6331_v9  ;;  %4017 = vmatpush.bf16.msrb.mxu2 %v6076_v24  ;;  %4036 = vmatpush.bf16.msra.mxu0 %v4768_v29  ;;  %v3798_v9 = vpop.f32.mrf.mxu1  ;;  %v4928_v11 = vor.u32 %v6683_v1, %v4925_v2  ;;  %v4637_v14 = vld [vmem:[#allocation9 + $0xf0] sm:$0xf0]  ;;  %v5440_v17 = vor.u32 %v6811_v28, %v5437_v7 }
 0x234   :  { %4005 = vmatmul.bf16.vlgmr.msrb.gmra.mxu1 %v7404_v27  ;;  %v6675_v18 = vld [vmem:[#allocation9 + $0x2d4] sm:$0xf]  ;;  %v3799_v21 = vadd.f32 %v3798_v9, %v3786_v3 }
 0x235   :  { %4030 = vmatpush.bf16.msrb.mxu3 %v6332_v25  ;;  %4049 = vmatpush.bf16.msra.mxu1 %v5024_v30  ;;  %v4893_v19 = vld [vmem:[#allocation9 + $0x2f0] sm:$0xf0]  ;;  %v4640_v25 = vor.u32 %v6611_v12, %v4637_v14  ;;  %v3813_v12 = vpop.f32.mrf.mxu2  ;;  %v3826_v14 = vpop.f32.mrf.mxu3 }
 0x236   :  { %4018 = vmatmul.bf16.vlgmr.msrb.gmra.mxu2 %v7406_v59  ;;  %v6739_v20 = vld [vmem:[#allocation9 + $0x4d4] sm:$0xf]  ;;  %v4896_v29 = vor.u32 %v6675_v18, %v4893_v19  ;;  %v4387_v19 = vperm.slane %v7448_v6, 4 }
 0x237   :  { %4062 = vmatpush.bf16.msra.mxu2 %v5280_v26  ;;  %4037 = vmatpush.bf16.msra.mxu0 %v4736_v39  ;;  %v5149_v22 = vld [vmem:[#allocation9 + $0x4f0] sm:$0xf0]  ;;  %v3812_v39 = vadd.f32 %v3811_v35, %v3799_v21 }
 0x238   :  { %4031 = vmatmul.bf16.vlgmr.msrb.gmra.mxu3 %v7408_v60  ;;  %v6803_v23 = vld [vmem:[#allocation9 + $0x6d4] sm:$0xf]  ;;  %v5152_v31 = vor.u32 %v6739_v20, %v5149_v22 }
 0x239   :  { %4075 = vmatpush.bf16.msra.mxu3 %v5536_v33  ;;  %4050 = vmatpush.bf16.msra.mxu1 %v4992_v40  ;;  %v5405_v24 = vld [vmem:[#allocation9 + $0x6f0] sm:$0xf0]  ;;  %v3787_v40 = vpop.f32.mrf.mxu0  ;;  %v3825_v47 = vadd.f32 %v3824_v36, %v3812_v39 }
 0x23a   :  { %v6603_v46 = vld [vmem:[#allocation9 + $0x94] sm:$0xf]  ;;  %v5408_v32 = vor.u32 %v6803_v23, %v5405_v24 }
 0x23b   :  { %4063 = vmatpush.bf16.msra.mxu2 %v5248_v43  ;;  %4038 = vmatpush.bf16.msra.mxu0 %v4704_v51  ;;  %v4605_v30 = vld [vmem:[#allocation9 + $0xb0] sm:$0xf0]  ;;  %v3800_v41 = vpop.f32.mrf.mxu1 }
 0x23c   :  { %v6667_v26 = vld [vmem:[#allocation9 + $0x294] sm:$0xf]  ;;  %v4608_v42 = vor.u32 %v6603_v46, %v4605_v30  ;;  %v4403_v41 = vperm.slane %v4387_v19, 0 }
 0x23d   :  { %4076 = vmatpush.bf16.msra.mxu3 %v5504_v44  ;;  %4051 = vmatpush.bf16.msra.mxu1 %v4960_v52  ;;  %v4861_v33 = vld [vmem:[#allocation9 + $0x2b0] sm:$0xf0] }
 0x23e   :  { %v6731_v34 = vld [vmem:[#allocation9 + $0x494] sm:$0xf]  ;;  %v4864_v43 = vor.u32 %v6667_v26, %v4861_v33 }
 0x23f   :  { %4064 = vmatpush.bf16.msra.mxu2 %v5216_v63  ;;  %4039 = vmatpush.bf16.msra.mxu0 %v4672_v10  ;;  %v5117_v37 = vld [vmem:[#allocation9 + $0x4b0] sm:$0xf0]  ;;  %v4350_v63 = vmul.f32 0.5, %v3825_v47 }
 0x240   :  { %v6795_v13 = vld [vmem:[#allocation9 + $0x694] sm:$0xf]  ;;  %v5120_v48 = vor.u32 %v6731_v34, %v5117_v37 }
 0x241   :  { %4077 = vmatpush.bf16.msra.mxu3 %v5472_v0  ;;  %4052 = vmatpush.bf16.msra.mxu1 %v4928_v11  ;;  %v5373_v38 = vld [vmem:[#allocation9 + $0x6b0] sm:$0xf0]  ;;  %7114 = vtanh.f32 %v4350_v63 }
 0x242   :  { %v6595_v44 = vld [vmem:[#allocation9 + $0x54] sm:$0xf]  ;;  %v5376_v16 = vor.u32 %v6795_v13, %v5373_v38 }
 0x243   :  { %4065 = vmatpush.bf16.msra.mxu2 %v5184_v15  ;;  %4040 = vmatpush.bf16.msra.mxu0 %v4640_v25  ;;  %v4573_v45 = vld [vmem:[#allocation9 + $0x70] sm:$0xf0] }
 0x244   :  { %v6659_v49 = vld [vmem:[#allocation9 + $0x254] sm:$0xf]  ;;  %v4576_v2 = vor.u32 %v6595_v44, %v4573_v45 }
 0x245   :  { %4078 = vmatpush.bf16.msra.mxu3 %v5440_v17  ;;  %4053 = vmatpush.bf16.msra.mxu1 %v4896_v29  ;;  %v4829_v50 = vld [vmem:[#allocation9 + $0x270] sm:$0xf0] }
 0x246   :  { %v6723_v51 = vld [vmem:[#allocation9 + $0x454] sm:$0xf]  ;;  %v4832_v4 = vor.u32 %v6659_v49, %v4829_v50 }
 0x247   :  { %4066 = vmatpush.bf16.msra.mxu2 %v5152_v31  ;;  %v5085_v52 = vld [vmem:[#allocation9 + $0x470] sm:$0xf0]  ;;  %4041 = vmatpush.bf16.msra.mxu0 %v4608_v42  ;;  %v7115_v35 = vpop.eup %7114 }
 0x248   :  { %v6787_v54 = vld [vmem:[#allocation9 + $0x654] sm:$0xf]  ;;  %v5088_v8 = vor.u32 %v6723_v51, %v5085_v52  ;;  %v4366_v40 = vmul.f32 0.5, %v7115_v35 }
 0x249   :  { %4079 = vmatpush.bf16.msra.mxu3 %v5408_v32  ;;  %v5341_v58 = vld [vmem:[#allocation9 + $0x670] sm:$0xf0]  ;;  %4054 = vmatpush.bf16.msra.mxu1 %v4864_v43 }
 0x24a   :  { %v6587_v0 = vld [vmem:[#allocation9 + $0x14] sm:$0xf]  ;;  %v5344_v9 = vor.u32 %v6787_v54, %v5341_v58  ;;  %v4374_v44 = vadd.f32 0.5, %v4366_v40 }
 0x24b   :  { %v4541_v1 = vld [vmem:[#allocation9 + $0x30] sm:$0xf0]  ;;  %4067 = vmatpush.bf16.msra.mxu2 %v5120_v48  ;;  %4042 = vmatpush.bf16.msra.mxu0 %v4576_v2 }
 0x24c   :  { %v6651_v5 = vld [vmem:[#allocation9 + $0x214] sm:$0xf]  ;;  %v4544_v22 = vor.u32 %v6587_v0, %v4541_v1  ;;  %v4411_v58 = vmul.f32 %v4403_v41, %v4374_v44  ;;  %v3863_v44 = vpop.f32.mrf.mxu2 }
 0x24d   :  { %v4797_v28 = vld [vmem:[#allocation9 + $0x230] sm:$0xf0]  ;;  %4080 = vmatpush.bf16.msra.mxu3 %v5376_v16  ;;  %4055 = vmatpush.bf16.msra.mxu1 %v4832_v4 }
 0x24e   :  { %v6715_v7 = vld [vmem:[#allocation9 + $0x414] sm:$0xf]  ;;  %v4800_v23 = vor.u32 %v6651_v5, %v4797_v28  ;;  %v4420_v2 = vsel %vm343_vm1, %v4411_v58, 0.0  ;;  %v7474_v28 = vld [vmem:[#allocation11] sm:$0xff] }
 0x24f   :  { %v5053_v3 = vld [vmem:[#allocation9 + $0x430] sm:$0xf0]  ;;  %4068 = vmatpush.bf16.msra.mxu2 %v5088_v8  ;;  %4043 = vmatpush.bf16.msra.mxu0 %v4544_v22 }
 0x250   :  { %v6779_v10 = vld [vmem:[#allocation9 + $0x614] sm:$0xf]  ;;  %v5056_v46 = vor.u32 %v6715_v7, %v5053_v3  ;;  %v943_v7 = vperm.slane %v7474_v28, 3  ;;  %v7478_v3 = vadd.f32 %v4420_v2, %v7459_v57 }
 0x251   :  { %v5309_v11 = vld [vmem:[#allocation9 + $0x630] sm:$0xf0]  ;;  %4081 = vmatpush.bf16.msra.mxu3 %v5344_v9  ;;  %4056 = vmatpush.bf16.msra.mxu1 %v4800_v23 }
 0x252   :  { %v6899_v15 = vld [vmem:[#allocation9 + $0x9d4] sm:$0xf]  ;;  %v5312_v30 = vor.u32 %v6779_v10, %v5309_v11  ;;  %4044 = vmatmul.bf16.vlgmr.msra.gmra.mxu0 %v7390_v55 }
 0x253   :  { %v5789_v17 = vld [vmem:[#allocation9 + $0x9f0] sm:$0xf0]  ;;  %4069 = vmatpush.bf16.msra.mxu2 %v5056_v46 }
 0x254   :  { %v6963_v18 = vld [vmem:[#allocation9 + $0xbd4] sm:$0xf]  ;;  %v5792_v31 = vor.u32 %v6899_v15, %v5789_v17  ;;  %4057 = vmatmul.bf16.vlgmr.msra.gmra.mxu1 %v7392_v56 }
 0x255   :  { %v6045_v20 = vld [vmem:[#allocation9 + $0xbf0] sm:$0xf0]  ;;  %4082 = vmatpush.bf16.msra.mxu3 %v5312_v30 }
 0x256   :  { %v7027_v21 = vld [vmem:[#allocation9 + $0xdd4] sm:$0xf]  ;;  %v6048_v32 = vor.u32 %v6963_v18, %v6045_v20  ;;  %4088 = vmatpush.bf16.msrb.mxu0 %v5792_v31  ;;  %4070 = vmatmul.bf16.vlgmr.msra.gmra.mxu2 %v7394_v61  ;;  %v3837_v20 = vpop.f32.mrf.mxu0 }
 0x257   :  { %v6301_v24 = vld [vmem:[#allocation9 + $0xdf0] sm:$0xf0]  ;;  %v3838_v22 = vadd.f32 %v3837_v20, %v943_v7 }
 0x258   :  { %v7091_v25 = vld [vmem:[#allocation9 + $0xfd4] sm:$0xf]  ;;  %v6304_v36 = vor.u32 %v7027_v21, %v6301_v24  ;;  %4101 = vmatpush.bf16.msrb.mxu1 %v6048_v32  ;;  %4083 = vmatmul.bf16.vlgmr.msra.gmra.mxu3 %v7396_v62  ;;  %v3850_v21 = vpop.f32.mrf.mxu1 }
 0x259   :  { %v6557_v29 = vld [vmem:[#allocation9 + $0xff0] sm:$0xf0] }
 0x25a   :  { %v6891_v26 = vld [vmem:[#allocation9 + $0x994] sm:$0xf]  ;;  %v6560_v37 = vor.u32 %v7091_v25, %v6557_v29  ;;  %4114 = vmatpush.bf16.msrb.mxu2 %v6304_v36 }
 0x25b   :  { %v5757_v33 = vld [vmem:[#allocation9 + $0x9b0] sm:$0xf0] }
 0x25c   :  { %v6955_v34 = vld [vmem:[#allocation9 + $0xb94] sm:$0xf]  ;;  %v5760_v45 = vor.u32 %v6891_v26, %v5757_v33  ;;  %4127 = vmatpush.bf16.msrb.mxu3 %v6560_v37  ;;  %v3851_v26 = vadd.f32 %v3850_v21, %v3838_v22 }
 0x25d   :  { %v6013_v13 = vld [vmem:[#allocation9 + $0xbb0] sm:$0xf0] }
 0x25e   :  { %v7019_v38 = vld [vmem:[#allocation9 + $0xd94] sm:$0xf]  ;;  %v6016_v47 = vor.u32 %v6955_v34, %v6013_v13  ;;  %4089 = vmatpush.bf16.msrb.mxu0 %v5760_v45  ;;  %v3876_v45 = vpop.f32.mrf.mxu3 }
 0x25f   :  { %v6269_v39 = vld [vmem:[#allocation9 + $0xdb0] sm:$0xf0] }
 0x260   :  { %v7083_v42 = vld [vmem:[#allocation9 + $0xf94] sm:$0xf]  ;;  %v6272_v49 = vor.u32 %v7019_v38, %v6269_v39  ;;  %4102 = vmatpush.bf16.msrb.mxu1 %v6016_v47 }
 0x261   :  { %v6525_v43 = vld [vmem:[#allocation9 + $0xfb0] sm:$0xf0] }
 0x262   :  { %v6883_v48 = vld [vmem:[#allocation9 + $0x954] sm:$0xf]  ;;  %v6528_v50 = vor.u32 %v7083_v42, %v6525_v43  ;;  %4115 = vmatpush.bf16.msrb.mxu2 %v6272_v49  ;;  %v3864_v49 = vadd.f32 %v3863_v44, %v3851_v26  ;;  %v4995_v44 = vld [vmem:[#allocation9 + $0x398] sm:$0xf] }
 0x263   :  { %v5725_v16 = vld [vmem:[#allocation9 + $0x970] sm:$0xf0] }
 0x264   :  { %v6947_v51 = vld [vmem:[#allocation9 + $0xb54] sm:$0xf]  ;;  %v5728_v4 = vor.u32 %v6883_v48, %v5725_v16  ;;  %4128 = vmatpush.bf16.msrb.mxu3 %v6528_v50  ;;  %v3839_v50 = vpop.f32.mrf.mxu0 }
 0x265   :  { %v5981_v52 = vld [vmem:[#allocation9 + $0xb70] sm:$0xf0] }
 0x266   :  { %v7011_v54 = vld [vmem:[#allocation9 + $0xd54] sm:$0xf]  ;;  %v5984_v5 = vor.u32 %v6947_v51, %v5981_v52  ;;  %4090 = vmatpush.bf16.msrb.mxu0 %v5728_v4  ;;  %v3852_v51 = vpop.f32.mrf.mxu1 }
 0x267   :  { %v6237_v63 = vld [vmem:[#allocation9 + $0xd70] sm:$0xf0] }
 0x268   :  { %v7075_v0 = vld [vmem:[#allocation9 + $0xf54] sm:$0xf]  ;;  %v6240_v10 = vor.u32 %v7011_v54, %v6237_v63  ;;  %4103 = vmatpush.bf16.msrb.mxu1 %v5984_v5 }
 0x269   :  { %v6493_v1 = vld [vmem:[#allocation9 + $0xf70] sm:$0xf0] }
 0x26a   :  { %v6875_v8 = vld [vmem:[#allocation9 + $0x914] sm:$0xf]  ;;  %v6496_v11 = vor.u32 %v7075_v0, %v6493_v1  ;;  %4116 = vmatpush.bf16.msrb.mxu2 %v6240_v10  ;;  %v7480_v0 = vadd.f32 %v3876_v45, %v3864_v49  ;;  %v6704_v45 = vld [vmem:[#allocation9 + $0x3b4] sm:$0xf0] }
 0x26b   :  { %v5693_v9 = vld [vmem:[#allocation9 + $0x930] sm:$0xf0]  ;;  %v6832_v49 = vld [vmem:[#allocation9 + $0x7b4] sm:$0xf0]  ;;  %v4996_v51 = vor.u32 %v6704_v45, %v4995_v44 }
 0x26c   :  { %v6939_v12 = vld [vmem:[#allocation9 + $0xb14] sm:$0xf]  ;;  %v5696_v23 = vor.u32 %v6875_v8, %v5693_v9  ;;  %4129 = vmatpush.bf16.msrb.mxu3 %v6496_v11  ;;  %v6672_v44 = vld [vmem:[#allocation9 + $0x2b4] sm:$0xf0] }
 0x26d   :  { %v5949_v14 = vld [vmem:[#allocation9 + $0xb30] sm:$0xf0]  ;;  %v5123_v45 = vld [vmem:[#allocation9 + $0x498] sm:$0xf] }
 0x26e   :  { %v7003_v15 = vld [vmem:[#allocation9 + $0xd14] sm:$0xf]  ;;  %v5952_v24 = vor.u32 %v6939_v12, %v5949_v14  ;;  %4091 = vmatpush.bf16.msrb.mxu0 %v5696_v23 }
 0x26f   :  { %v6205_v17 = vld [vmem:[#allocation9 + $0xd30] sm:$0xf0] }
 0x270   :  { %v7067_v18 = vld [vmem:[#allocation9 + $0xf14] sm:$0xf]  ;;  %v6208_v29 = vor.u32 %v7003_v15, %v6205_v17  ;;  %4104 = vmatpush.bf16.msrb.mxu1 %v5952_v24  ;;  %v3865_v24 = vpop.f32.mrf.mxu2 }
 0x271   :  { %v6461_v19 = vld [vmem:[#allocation9 + $0xf30] sm:$0xf0]  ;;  %v3902_v24 = vpop.f32.mrf.mxu1 }
 0x272   :  { %v6867_v25 = vld [vmem:[#allocation9 + $0x8d4] sm:$0xf]  ;;  %v6464_v46 = vor.u32 %v7067_v18, %v6461_v19  ;;  %4117 = vmatpush.bf16.msrb.mxu2 %v6208_v29  ;;  %v4771_v29 = vld [vmem:[#allocation9 + $0x1d8] sm:$0xf] }
 0x273   :  { %v5661_v57 = vld [vmem:[#allocation9 + $0x8f0] sm:$0xf0] }
 0x274   :  { %v6931_v30 = vld [vmem:[#allocation9 + $0xad4] sm:$0xf]  ;;  %v5664_v36 = vor.u32 %v6867_v25, %v5661_v57  ;;  %4130 = vmatpush.bf16.msrb.mxu3 %v6464_v46  ;;  %v3878_v25 = vpop.f32.mrf.mxu3  ;;  %v6648_v46 = vld [vmem:[#allocation9 + $0x1f4] sm:$0xf0] }
 0x275   :  { %v5917_v31 = vld [vmem:[#allocation9 + $0xaf0] sm:$0xf0] }
 0x276   :  { %v6995_v32 = vld [vmem:[#allocation9 + $0xcd4] sm:$0xf]  ;;  %v5920_v37 = vor.u32 %v6931_v30, %v5917_v31  ;;  %4092 = vmatpush.bf16.msrb.mxu0 %v5664_v36  ;;  %v5027_v30 = vld [vmem:[#allocation9 + $0x3d8] sm:$0xf] }
 0x277   :  { %v6173_v33 = vld [vmem:[#allocation9 + $0xcf0] sm:$0xf0]  ;;  %v6712_v31 = vld [vmem:[#allocation9 + $0x3f4] sm:$0xf0] }
 0x278   :  { %v7059_v34 = vld [vmem:[#allocation9 + $0xed4] sm:$0xf]  ;;  %v6176_v39 = vor.u32 %v6995_v32, %v6173_v33  ;;  %4105 = vmatpush.bf16.msrb.mxu1 %v5920_v37  ;;  %v5283_v32 = vld [vmem:[#allocation9 + $0x5d8] sm:$0xf] }
 0x279   :  { %v6429_v35 = vld [vmem:[#allocation9 + $0xef0] sm:$0xf0]  ;;  %v6840_v36 = vld [vmem:[#allocation9 + $0x7f4] sm:$0xf0] }
 0x27a   :  { %v6859_v13 = vld [vmem:[#allocation9 + $0x894] sm:$0xf]  ;;  %v6432_v40 = vor.u32 %v7059_v34, %v6429_v35  ;;  %4118 = vmatpush.bf16.msrb.mxu2 %v6176_v39  ;;  %v6776_v34 = vld [vmem:[#allocation9 + $0x5f4] sm:$0xf0]  ;;  %v5028_v39 = vor.u32 %v6712_v31, %v5027_v30 }
 0x27b   :  { %v5629_v38 = vld [vmem:[#allocation9 + $0x8b0] sm:$0xf0]  ;;  %v5539_v35 = vld [vmem:[#allocation9 + $0x7d8] sm:$0xf] }
 0x27c   :  { %v6923_v41 = vld [vmem:[#allocation9 + $0xa94] sm:$0xf]  ;;  %v5632_v52 = vor.u32 %v6859_v13, %v5629_v38  ;;  %4131 = vmatpush.bf16.msrb.mxu3 %v6432_v40  ;;  %v4772_v38 = vor.u32 %v6648_v46, %v4771_v29  ;;  %v4739_v40 = vld [vmem:[#allocation9 + $0x198] sm:$0xf] }
 0x27d   :  { %v5885_v42 = vld [vmem:[#allocation9 + $0xab0] sm:$0xf0]  ;;  %v4643_v46 = vld [vmem:[#allocation9 + $0xd8] sm:$0xf] }
 0x27e   :  { %v6987_v43 = vld [vmem:[#allocation9 + $0xc94] sm:$0xf]  ;;  %v5888_v54 = vor.u32 %v6923_v41, %v5885_v42  ;;  %4093 = vmatpush.bf16.msrb.mxu0 %v5632_v52  ;;  %v6640_v41 = vld [vmem:[#allocation9 + $0x1b4] sm:$0xf0]  ;;  %v5284_v42 = vor.u32 %v6776_v34, %v5283_v32 }
 0x27f   :  { %v6141_v47 = vld [vmem:[#allocation9 + $0xcb0] sm:$0xf0]  ;;  %v4740_v50 = vor.u32 %v6640_v41, %v4739_v40  ;;  %v4707_v52 = vld [vmem:[#allocation9 + $0x158] sm:$0xf] }
 0x280   :  { %v7051_v48 = vld [vmem:[#allocation9 + $0xe94] sm:$0xf]  ;;  %v6144_v1 = vor.u32 %v6987_v43, %v6141_v47  ;;  %4106 = vmatpush.bf16.msrb.mxu1 %v5888_v54  ;;  %v5540_v43 = vor.u32 %v6840_v36, %v5539_v35  ;;  %v5251_v47 = vld [vmem:[#allocation9 + $0x598] sm:$0xf] }
 0x281   :  { %v6397_v16 = vld [vmem:[#allocation9 + $0xeb0] sm:$0xf0]  ;;  %v6632_v54 = vld [vmem:[#allocation9 + $0x174] sm:$0xf0] }
 0x282   :  { %v6851_v58 = vld [vmem:[#allocation9 + $0x854] sm:$0xf]  ;;  %v6400_v2 = vor.u32 %v7051_v48, %v6397_v16  ;;  %4119 = vmatpush.bf16.msrb.mxu2 %v6144_v1  ;;  %v6768_v48 = vld [vmem:[#allocation9 + $0x5b4] sm:$0xf0] }
 0x283   :  { %v5597_v63 = vld [vmem:[#allocation9 + $0x870] sm:$0xf0]  ;;  %v5507_v16 = vld [vmem:[#allocation9 + $0x798] sm:$0xf] }
 0x284   :  { %v6915_v4 = vld [vmem:[#allocation9 + $0xa54] sm:$0xf]  ;;  %v5600_v12 = vor.u32 %v6851_v58, %v5597_v63  ;;  %4132 = vmatpush.bf16.msrb.mxu3 %v6400_v2  ;;  %v5252_v58 = vor.u32 %v6768_v48, %v5251_v47  ;;  %v5508_v63 = vor.u32 %v6832_v49, %v5507_v16  ;;  %v4963_v1 = vld [vmem:[#allocation9 + $0x358] sm:$0xf]  ;;  %v3915_v47 = vpop.f32.mrf.mxu2  ;;  %v3928_v48 = vpop.f32.mrf.mxu3 }
 0x285   :  { %v5853_v5 = vld [vmem:[#allocation9 + $0xa70] sm:$0xf0]  ;;  %v6696_v2 = vld [vmem:[#allocation9 + $0x374] sm:$0xf0] }
 0x286   :  { %v6979_v7 = vld [vmem:[#allocation9 + $0xc54] sm:$0xf]  ;;  %v5856_v14 = vor.u32 %v6915_v4, %v5853_v5  ;;  %4094 = vmatpush.bf16.msrb.mxu0 %v5600_v12  ;;  %v5219_v4 = vld [vmem:[#allocation9 + $0x558] sm:$0xf] }
 0x287   :  { %v6109_v8 = vld [vmem:[#allocation9 + $0xc70] sm:$0xf0]  ;;  %v6760_v5 = vld [vmem:[#allocation9 + $0x574] sm:$0xf0] }
 0x288   :  { %v7043_v9 = vld [vmem:[#allocation9 + $0xe54] sm:$0xf]  ;;  %v6112_v19 = vor.u32 %v6979_v7, %v6109_v8  ;;  %4107 = vmatpush.bf16.msrb.mxu1 %v5856_v14  ;;  %v5475_v7 = vld [vmem:[#allocation9 + $0x758] sm:$0xf]  ;;  %v5220_v14 = vor.u32 %v6760_v5, %v5219_v4 }
 0x289   :  { %v6365_v10 = vld [vmem:[#allocation9 + $0xe70] sm:$0xf0]  ;;  %v6824_v8 = vld [vmem:[#allocation9 + $0x774] sm:$0xf0] }
 0x28a   :  { %v6843_v11 = vld [vmem:[#allocation9 + $0x814] sm:$0xf]  ;;  %v6368_v20 = vor.u32 %v7043_v9, %v6365_v10  ;;  %4120 = vmatpush.bf16.msrb.mxu2 %v6112_v19  ;;  %v4708_v9 = vor.u32 %v6632_v54, %v4707_v52  ;;  %v4964_v10 = vor.u32 %v6696_v2, %v4963_v1  ;;  %v6624_v12 = vld [vmem:[#allocation9 + $0x134] sm:$0xf0]  ;;  %v3904_v54 = vpop.f32.mrf.mxu1 }
 0x28b   :  { %v5565_v15 = vld [vmem:[#allocation9 + $0x830] sm:$0xf0]  ;;  %v5187_v19 = vld [vmem:[#allocation9 + $0x518] sm:$0xf] }
 0x28c   :  { %v6907_v17 = vld [vmem:[#allocation9 + $0xa14] sm:$0xf]  ;;  %v5568_v26 = vor.u32 %v6843_v11, %v5565_v15  ;;  %4133 = vmatpush.bf16.msrb.mxu3 %v6368_v20  ;;  %v4675_v11 = vld [vmem:[#allocation9 + $0x118] sm:$0xf]  ;;  %v5476_v15 = vor.u32 %v6824_v8, %v5475_v7 }
 0x28d   :  { %v5821_v18 = vld [vmem:[#allocation9 + $0xa30] sm:$0xf0]  ;;  %v6752_v20 = vld [vmem:[#allocation9 + $0x534] sm:$0xf0] }
 0x28e   :  { %v6971_v21 = vld [vmem:[#allocation9 + $0xc14] sm:$0xf]  ;;  %v5824_v33 = vor.u32 %v6907_v17, %v5821_v18  ;;  %4095 = vmatpush.bf16.msrb.mxu0 %v5568_v26  ;;  %v4931_v17 = vld [vmem:[#allocation9 + $0x318] sm:$0xf]  ;;  %v5188_v31 = vor.u32 %v6752_v20, %v5187_v19 }
 0x28f   :  { %v6077_v22 = vld [vmem:[#allocation9 + $0xc30] sm:$0xf0]  ;;  %v6688_v18 = vld [vmem:[#allocation9 + $0x334] sm:$0xf0] }
 0x290   :  { %v7035_v23 = vld [vmem:[#allocation9 + $0xe14] sm:$0xf]  ;;  %v6080_v37 = vor.u32 %v6971_v21, %v6077_v22  ;;  %4108 = vmatpush.bf16.msrb.mxu1 %v5824_v33  ;;  %v5443_v21 = vld [vmem:[#allocation9 + $0x718] sm:$0xf]  ;;  %v4932_v29 = vor.u32 %v6688_v18, %v4931_v17 }
 0x291   :  { %v6333_v57 = vld [vmem:[#allocation9 + $0xe30] sm:$0xf0]  ;;  %4096 = vmatmul.bf16.vlgmr.msrb.gmra.mxu0 %v7402_v53  ;;  %v6816_v22 = vld [vmem:[#allocation9 + $0x734] sm:$0xf0] }
 0x292   :  { %v6336_v13 = vor.u32 %v7035_v23, %v6333_v57  ;;  %4121 = vmatpush.bf16.msrb.mxu2 %v6080_v37  ;;  %4140 = vmatpush.bf16.msra.mxu0 %v4772_v38  ;;  %v3889_v23 = vpop.f32.mrf.mxu0  ;;  %v4676_v57 = vor.u32 %v6624_v12, %v4675_v11  ;;  %v6616_v30 = vld [vmem:[#allocation9 + $0xf4] sm:$0xf0]  ;;  %v5444_v32 = vor.u32 %v6816_v22, %v5443_v21 }
 0x293   :  { %4109 = vmatmul.bf16.vlgmr.msrb.gmra.mxu1 %v7404_v27  ;;  %v3890_v25 = vadd.f32 %v3889_v23, %v7480_v0  ;;  %v4899_v26 = vld [vmem:[#allocation9 + $0x2d8] sm:$0xf]  ;;  %v4644_v38 = vor.u32 %v6616_v30, %v4643_v46  ;;  %v3917_v30 = vpop.f32.mrf.mxu2 }
 0x294   :  { %4134 = vmatpush.bf16.msrb.mxu3 %v6336_v13  ;;  %4153 = vmatpush.bf16.msra.mxu1 %v5028_v39  ;;  %v6680_v33 = vld [vmem:[#allocation9 + $0x2f4] sm:$0xf0] }
 0x295   :  { %4122 = vmatmul.bf16.vlgmr.msrb.gmra.mxu2 %v7406_v59  ;;  %v5155_v34 = vld [vmem:[#allocation9 + $0x4d8] sm:$0xf]  ;;  %v3903_v35 = vadd.f32 %v3902_v24, %v3890_v25  ;;  %v4900_v39 = vor.u32 %v6680_v33, %v4899_v26 }
 0x296   :  { %4166 = vmatpush.bf16.msra.mxu2 %v5284_v42  ;;  %4141 = vmatpush.bf16.msra.mxu0 %v4740_v50  ;;  %v6744_v36 = vld [vmem:[#allocation9 + $0x4f4] sm:$0xf0] }
 0x297   :  { %4135 = vmatmul.bf16.vlgmr.msrb.gmra.mxu3 %v7408_v60  ;;  %v5411_v37 = vld [vmem:[#allocation9 + $0x6d8] sm:$0xf]  ;;  %v5156_v41 = vor.u32 %v6744_v36, %v5155_v34  ;;  %v4388_v34 = vperm.slane %v7448_v6, 6 }
 0x298   :  { %4179 = vmatpush.bf16.msra.mxu3 %v5540_v43  ;;  %4154 = vmatpush.bf16.msra.mxu1 %v4996_v51  ;;  %v6808_v13 = vld [vmem:[#allocation9 + $0x6f4] sm:$0xf0]  ;;  %v3916_v51 = vadd.f32 %v3915_v47, %v3903_v35 }
 0x299   :  { %v4611_v0 = vld [vmem:[#allocation9 + $0x98] sm:$0xf]  ;;  %v5412_v42 = vor.u32 %v6808_v13, %v5411_v37  ;;  %v4404_v54 = vperm.slane %v4388_v34, 0 }
 0x29a   :  { %4167 = vmatpush.bf16.msra.mxu2 %v5252_v58  ;;  %4142 = vmatpush.bf16.msra.mxu0 %v4708_v9  ;;  %v6608_v40 = vld [vmem:[#allocation9 + $0xb4] sm:$0xf0]  ;;  %v3891_v52 = vpop.f32.mrf.mxu0  ;;  %v3929_v4 = vadd.f32 %v3928_v48, %v3916_v51 }
 0x29b   :  { %v4867_v43 = vld [vmem:[#allocation9 + $0x298] sm:$0xf]  ;;  %v4612_v58 = vor.u32 %v6608_v40, %v4611_v0 }
 0x29c   :  { %4180 = vmatpush.bf16.msra.mxu3 %v5508_v63  ;;  %4155 = vmatpush.bf16.msra.mxu1 %v4964_v10  ;;  %v6736_v16 = vld [vmem:[#allocation9 + $0x4b4] sm:$0xf0]  ;;  %v4868_v63 = vor.u32 %v6672_v44, %v4867_v43 }
 0x29d   :  { %v5379_v49 = vld [vmem:[#allocation9 + $0x698] sm:$0xf]  ;;  %v5124_v5 = vor.u32 %v6736_v16, %v5123_v45 }
 0x29e   :  { %4168 = vmatpush.bf16.msra.mxu2 %v5220_v14  ;;  %4143 = vmatpush.bf16.msra.mxu0 %v4676_v57  ;;  %v6800_v50 = vld [vmem:[#allocation9 + $0x6b4] sm:$0xf0] }
 0x29f   :  { %v4579_v1 = vld [vmem:[#allocation9 + $0x58] sm:$0xf]  ;;  %v5380_v7 = vor.u32 %v6800_v50, %v5379_v49 }
 0x2a0   :  { %4181 = vmatpush.bf16.msra.mxu3 %v5476_v15  ;;  %4156 = vmatpush.bf16.msra.mxu1 %v4932_v29  ;;  %v6600_v2 = vld [vmem:[#allocation9 + $0x74] sm:$0xf0]  ;;  %v4351_v15 = vmul.f32 0.5, %v3929_v4 }
 0x2a1   :  { %v4835_v8 = vld [vmem:[#allocation9 + $0x258] sm:$0xf]  ;;  %v4580_v19 = vor.u32 %v6600_v2, %v4579_v1 }
 0x2a2   :  { %4169 = vmatpush.bf16.msra.mxu2 %v5188_v31  ;;  %4144 = vmatpush.bf16.msra.mxu0 %v4644_v38  ;;  %v6664_v9 = vld [vmem:[#allocation9 + $0x274] sm:$0xf0]  ;;  %7116 = vtanh.f32 %v4351_v15  ;;  %v3930_v31 = vpop.f32.mrf.mxu3  ;;  %v3941_v34 = vpop.f32.mrf.mxu0 }
 0x2a3   :  { %v5091_v10 = vld [vmem:[#allocation9 + $0x458] sm:$0xf]  ;;  %v4836_v20 = vor.u32 %v6664_v9, %v4835_v8 }
 0x2a4   :  { %4182 = vmatpush.bf16.msra.mxu3 %v5444_v32  ;;  %4157 = vmatpush.bf16.msra.mxu1 %v4900_v39  ;;  %v6728_v11 = vld [vmem:[#allocation9 + $0x474] sm:$0xf0] }
 0x2a5   :  { %v5347_v12 = vld [vmem:[#allocation9 + $0x658] sm:$0xf]  ;;  %v5092_v24 = vor.u32 %v6728_v11, %v5091_v10 }
 0x2a6   :  { %4170 = vmatpush.bf16.msra.mxu2 %v5156_v41  ;;  %v6792_v14 = vld [vmem:[#allocation9 + $0x674] sm:$0xf0]  ;;  %4145 = vmatpush.bf16.msra.mxu0 %v4612_v58 }
 0x2a7   :  { %v4547_v17 = vld [vmem:[#allocation9 + $0x18] sm:$0xf]  ;;  %v5348_v25 = vor.u32 %v6792_v14, %v5347_v12 }
 0x2a8   :  { %4183 = vmatpush.bf16.msra.mxu3 %v5412_v42  ;;  %v6592_v18 = vld [vmem:[#allocation9 + $0x34] sm:$0xf0]  ;;  %4158 = vmatpush.bf16.msra.mxu1 %v4868_v63  ;;  %v7117_v48 = vpop.eup %7116 }
 0x2a9   :  { %v4803_v21 = vld [vmem:[#allocation9 + $0x218] sm:$0xf]  ;;  %v4548_v37 = vor.u32 %v6592_v18, %v4547_v17  ;;  %v4367_v52 = vmul.f32 0.5, %v7117_v48 }
 0x2aa   :  { %v6656_v22 = vld [vmem:[#allocation9 + $0x234] sm:$0xf0]  ;;  %4171 = vmatpush.bf16.msra.mxu2 %v5124_v5  ;;  %4146 = vmatpush.bf16.msra.mxu0 %v4580_v19 }
 0x2ab   :  { %v5059_v23 = vld [vmem:[#allocation9 + $0x418] sm:$0xf]  ;;  %v4804_v13 = vor.u32 %v6656_v22, %v4803_v21  ;;  %v4375_v1 = vadd.f32 0.5, %v4367_v52  ;;  %v944_v22 = vperm.slane %v7474_v28, 4 }
 0x2ac   :  { %4184 = vmatpush.bf16.msra.mxu3 %v5380_v7  ;;  %v6720_v57 = vld [vmem:[#allocation9 + $0x434] sm:$0xf0]  ;;  %4159 = vmatpush.bf16.msra.mxu1 %v4836_v20 }
 0x2ad   :  { %v5315_v29 = vld [vmem:[#allocation9 + $0x618] sm:$0xf]  ;;  %v5060_v40 = vor.u32 %v6720_v57, %v5059_v23  ;;  %v4412_v14 = vmul.f32 %v4404_v54, %v4375_v1  ;;  %v3942_v28 = vadd.f32 %v3941_v34, %v944_v22 }
 0x2ae   :  { %v6784_v46 = vld [vmem:[#allocation9 + $0x634] sm:$0xf0]  ;;  %4172 = vmatpush.bf16.msra.mxu2 %v5092_v24  ;;  %4147 = vmatpush.bf16.msra.mxu0 %v4548_v37 }
 0x2af   :  { %v5795_v32 = vld [vmem:[#allocation9 + $0x9d8] sm:$0xf]  ;;  %v5316_v41 = vor.u32 %v6784_v46, %v5315_v29  ;;  %v4422_v19 = vsel %vm343_vm1, %v4412_v14, 0.0 }
 0x2b0   :  { %v6904_v26 = vld [vmem:[#allocation9 + $0x9f4] sm:$0xf0]  ;;  %4185 = vmatpush.bf16.msra.mxu3 %v5348_v25  ;;  %4160 = vmatpush.bf16.msra.mxu1 %v4804_v13  ;;  %v7495_v31 = vadd.f32 %v4422_v19, %v7478_v3 }
 0x2b1   :  { %v6051_v33 = vld [vmem:[#allocation9 + $0xbd8] sm:$0xf]  ;;  %v5796_v42 = vor.u32 %v6904_v26, %v5795_v32  ;;  %4148 = vmatmul.bf16.vlgmr.msra.gmra.mxu0 %v7390_v55 }
 0x2b2   :  { %v6968_v35 = vld [vmem:[#allocation9 + $0xbf4] sm:$0xf0]  ;;  %4173 = vmatpush.bf16.msra.mxu2 %v5060_v40 }
 0x2b3   :  { %v6307_v36 = vld [vmem:[#allocation9 + $0xdd8] sm:$0xf]  ;;  %v6052_v43 = vor.u32 %v6968_v35, %v6051_v33  ;;  %4192 = vmatpush.bf16.msrb.mxu0 %v5796_v42  ;;  %4161 = vmatmul.bf16.vlgmr.msra.gmra.mxu1 %v7392_v56  ;;  %v3954_v35 = vpop.f32.mrf.mxu1 }
 0x2b4   :  { %v7032_v38 = vld [vmem:[#allocation9 + $0xdf4] sm:$0xf0]  ;;  %4186 = vmatpush.bf16.msra.mxu3 %v5316_v41  ;;  %v3955_v42 = vadd.f32 %v3954_v35, %v3942_v28 }
 0x2b5   :  { %v6563_v39 = vld [vmem:[#allocation9 + $0xfd8] sm:$0xf]  ;;  %v6308_v6 = vor.u32 %v7032_v38, %v6307_v36  ;;  %4205 = vmatpush.bf16.msrb.mxu1 %v6052_v43  ;;  %4174 = vmatmul.bf16.vlgmr.msra.gmra.mxu2 %v7394_v61 }
 0x2b6   :  { %v7096_v0 = vld [vmem:[#allocation9 + $0xff4] sm:$0xf0] }
 0x2b7   :  { %v5763_v44 = vld [vmem:[#allocation9 + $0x998] sm:$0xf]  ;;  %v6564_v16 = vor.u32 %v7096_v0, %v6563_v39  ;;  %4218 = vmatpush.bf16.msrb.mxu2 %v6308_v6  ;;  %4187 = vmatmul.bf16.vlgmr.msra.gmra.mxu3 %v7396_v62 }
 0x2b8   :  { %v6896_v45 = vld [vmem:[#allocation9 + $0x9b4] sm:$0xf0] }
 0x2b9   :  { %v6019_v47 = vld [vmem:[#allocation9 + $0xb98] sm:$0xf]  ;;  %v5764_v2 = vor.u32 %v6896_v45, %v5763_v44  ;;  %4231 = vmatpush.bf16.msrb.mxu3 %v6564_v16 }
 0x2ba   :  { %v6960_v49 = vld [vmem:[#allocation9 + $0xbb4] sm:$0xf0] }
 0x2bb   :  { %v6275_v50 = vld [vmem:[#allocation9 + $0xd98] sm:$0xf]  ;;  %v6020_v4 = vor.u32 %v6960_v49, %v6019_v47  ;;  %4193 = vmatpush.bf16.msrb.mxu0 %v5764_v2 }
 0x2bc   :  { %v7024_v51 = vld [vmem:[#allocation9 + $0xdb4] sm:$0xf0] }
 0x2bd   :  { %v6531_v58 = vld [vmem:[#allocation9 + $0xf98] sm:$0xf]  ;;  %v6276_v8 = vor.u32 %v7024_v51, %v6275_v50  ;;  %4206 = vmatpush.bf16.msrb.mxu1 %v6020_v4 }
 0x2be   :  { %v7088_v63 = vld [vmem:[#allocation9 + $0xfb4] sm:$0xf0] }
 0x2bf   :  { %v5731_v5 = vld [vmem:[#allocation9 + $0x958] sm:$0xf]  ;;  %v6532_v9 = vor.u32 %v7088_v63, %v6531_v58  ;;  %4219 = vmatpush.bf16.msrb.mxu2 %v6276_v8  ;;  %v3967_v58 = vpop.f32.mrf.mxu2  ;;  %v3980_v63 = vpop.f32.mrf.mxu3 }
 0x2c0   :  { %v6888_v7 = vld [vmem:[#allocation9 + $0x974] sm:$0xf0]  ;;  %v3956_v8 = vpop.f32.mrf.mxu1 }
 0x2c1   :  { %v5987_v10 = vld [vmem:[#allocation9 + $0xb58] sm:$0xf]  ;;  %v5732_v20 = vor.u32 %v6888_v7, %v5731_v5  ;;  %4232 = vmatpush.bf16.msrb.mxu3 %v6532_v9  ;;  %v3968_v5 = vadd.f32 %v3967_v58, %v3955_v42  ;;  %v3943_v7 = vpop.f32.mrf.mxu0  ;;  %v5285_v42 = vld [vmem:[#allocation9 + $0x5f8] sm:$0xf0] }
 0x2c2   :  { %v6952_v11 = vld [vmem:[#allocation9 + $0xb74] sm:$0xf0]  ;;  %v6764_v58 = vld [vmem:[#allocation9 + $0x59c] sm:$0xf] }
 0x2c3   :  { %v6243_v12 = vld [vmem:[#allocation9 + $0xd58] sm:$0xf]  ;;  %v5988_v21 = vor.u32 %v6952_v11, %v5987_v10  ;;  %4194 = vmatpush.bf16.msrb.mxu0 %v5732_v20  ;;  %v7497_v14 = vadd.f32 %v3980_v63, %v3968_v5  ;;  %v5253_v63 = vld [vmem:[#allocation9 + $0x5b8] sm:$0xf0] }
 0x2c4   :  { %v7016_v15 = vld [vmem:[#allocation9 + $0xd74] sm:$0xf0]  ;;  %v6628_v7 = vld [vmem:[#allocation9 + $0x15c] sm:$0xf] }
 0x2c5   :  { %v6499_v17 = vld [vmem:[#allocation9 + $0xf58] sm:$0xf]  ;;  %v6244_v25 = vor.u32 %v7016_v15, %v6243_v12  ;;  %4207 = vmatpush.bf16.msrb.mxu1 %v5988_v21  ;;  %v4709_v8 = vld [vmem:[#allocation9 + $0x178] sm:$0xf0] }
 0x2c6   :  { %v7080_v18 = vld [vmem:[#allocation9 + $0xf74] sm:$0xf0] }
 0x2c7   :  { %v5699_v23 = vld [vmem:[#allocation9 + $0x918] sm:$0xf]  ;;  %v6500_v57 = vor.u32 %v7080_v18, %v6499_v17  ;;  %4220 = vmatpush.bf16.msrb.mxu2 %v6244_v25  ;;  %v3969_v28 = vpop.f32.mrf.mxu2 }
 0x2c8   :  { %v6880_v24 = vld [vmem:[#allocation9 + $0x934] sm:$0xf0] }
 0x2c9   :  { %v5955_v29 = vld [vmem:[#allocation9 + $0xb18] sm:$0xf]  ;;  %v5700_v36 = vor.u32 %v6880_v24, %v5699_v23  ;;  %4233 = vmatpush.bf16.msrb.mxu3 %v6500_v57 }
 0x2ca   :  { %v6944_v46 = vld [vmem:[#allocation9 + $0xb34] sm:$0xf0] }
 0x2cb   :  { %v6211_v30 = vld [vmem:[#allocation9 + $0xd18] sm:$0xf]  ;;  %v5956_v37 = vor.u32 %v6944_v46, %v5955_v29  ;;  %4195 = vmatpush.bf16.msrb.mxu0 %v5700_v36  ;;  %v3982_v36 = vpop.f32.mrf.mxu3 }
 0x2cc   :  { %v7008_v32 = vld [vmem:[#allocation9 + $0xd34] sm:$0xf0] }
 0x2cd   :  { %v6467_v26 = vld [vmem:[#allocation9 + $0xf18] sm:$0xf]  ;;  %v6212_v39 = vor.u32 %v7008_v32, %v6211_v30  ;;  %4208 = vmatpush.bf16.msrb.mxu1 %v5956_v37 }
 0x2ce   :  { %v7072_v33 = vld [vmem:[#allocation9 + $0xf34] sm:$0xf0] }
 0x2cf   :  { %v5667_v13 = vld [vmem:[#allocation9 + $0x8d8] sm:$0xf]  ;;  %v6468_v0 = vor.u32 %v7072_v33, %v6467_v26  ;;  %4221 = vmatpush.bf16.msrb.mxu2 %v6212_v39  ;;  %v6708_v39 = vld [vmem:[#allocation9 + $0x3dc] sm:$0xf] }
 0x2d0   :  { %v6872_v38 = vld [vmem:[#allocation9 + $0x8f4] sm:$0xf0] }
 0x2d1   :  { %v5923_v40 = vld [vmem:[#allocation9 + $0xad8] sm:$0xf]  ;;  %v5668_v47 = vor.u32 %v6872_v38, %v5667_v13  ;;  %4234 = vmatpush.bf16.msrb.mxu3 %v6468_v0  ;;  %v6644_v13 = vld [vmem:[#allocation9 + $0x1dc] sm:$0xf] }
 0x2d2   :  { %v6936_v41 = vld [vmem:[#allocation9 + $0xaf4] sm:$0xf0]  ;;  %v4773_v38 = vld [vmem:[#allocation9 + $0x1f8] sm:$0xf0] }
 0x2d3   :  { %v6179_v3 = vld [vmem:[#allocation9 + $0xcd8] sm:$0xf]  ;;  %v5924_v48 = vor.u32 %v6936_v41, %v5923_v40  ;;  %4196 = vmatpush.bf16.msrb.mxu0 %v5668_v47  ;;  %v5029_v0 = vld [vmem:[#allocation9 + $0x3f8] sm:$0xf0] }
 0x2d4   :  { %v7000_v43 = vld [vmem:[#allocation9 + $0xcf4] sm:$0xf0]  ;;  %v6772_v40 = vld [vmem:[#allocation9 + $0x5dc] sm:$0xf] }
 0x2d5   :  { %v6435_v44 = vld [vmem:[#allocation9 + $0xed8] sm:$0xf]  ;;  %v6180_v49 = vor.u32 %v7000_v43, %v6179_v3  ;;  %4209 = vmatpush.bf16.msrb.mxu1 %v5924_v48  ;;  %v6836_v43 = vld [vmem:[#allocation9 + $0x7dc] sm:$0xf]  ;;  %v4776_v48 = vor.u32 %v6644_v13, %v4773_v38 }
 0x2d6   :  { %v7064_v45 = vld [vmem:[#allocation9 + $0xef4] sm:$0xf0]  ;;  %v4645_v13 = vld [vmem:[#allocation9 + $0xf8] sm:$0xf0] }
 0x2d7   :  { %v5635_v6 = vld [vmem:[#allocation9 + $0x898] sm:$0xf]  ;;  %v6436_v50 = vor.u32 %v7064_v45, %v6435_v44  ;;  %4222 = vmatpush.bf16.msrb.mxu2 %v6180_v49  ;;  %v5541_v44 = vld [vmem:[#allocation9 + $0x7f8] sm:$0xf0] }
 0x2d8   :  { %v6864_v16 = vld [vmem:[#allocation9 + $0x8b4] sm:$0xf0]  ;;  %v4741_v49 = vld [vmem:[#allocation9 + $0x1b8] sm:$0xf0] }
 0x2d9   :  { %v5891_v51 = vld [vmem:[#allocation9 + $0xa98] sm:$0xf]  ;;  %v5636_v9 = vor.u32 %v6864_v16, %v5635_v6  ;;  %4235 = vmatpush.bf16.msrb.mxu3 %v6436_v50  ;;  %v5032_v6 = vor.u32 %v6708_v39, %v5029_v0  ;;  %v6636_v16 = vld [vmem:[#allocation9 + $0x19c] sm:$0xf]  ;;  %v5288_v50 = vor.u32 %v6772_v40, %v5285_v42 }
 0x2da   :  { %v6928_v52 = vld [vmem:[#allocation9 + $0xab4] sm:$0xf0]  ;;  %v6676_v0 = vld [vmem:[#allocation9 + $0x2dc] sm:$0xf] }
 0x2db   :  { %v6147_v54 = vld [vmem:[#allocation9 + $0xc98] sm:$0xf]  ;;  %v5892_v10 = vor.u32 %v6928_v52, %v5891_v51  ;;  %4197 = vmatpush.bf16.msrb.mxu0 %v5636_v9  ;;  %v5544_v51 = vor.u32 %v6836_v43, %v5541_v44  ;;  %v6700_v52 = vld [vmem:[#allocation9 + $0x39c] sm:$0xf]  ;;  %v5256_v9 = vor.u32 %v6764_v58, %v5253_v63 }
 0x2dc   :  { %v6992_v1 = vld [vmem:[#allocation9 + $0xcb4] sm:$0xf0]  ;;  %v4901_v40 = vld [vmem:[#allocation9 + $0x2f8] sm:$0xf0] }
 0x2dd   :  { %v6403_v2 = vld [vmem:[#allocation9 + $0xe98] sm:$0xf]  ;;  %v6148_v15 = vor.u32 %v6992_v1, %v6147_v54  ;;  %4210 = vmatpush.bf16.msrb.mxu1 %v5892_v10  ;;  %v4997_v54 = vld [vmem:[#allocation9 + $0x3b8] sm:$0xf0] }
 0x2de   :  { %v7056_v4 = vld [vmem:[#allocation9 + $0xeb4] sm:$0xf0]  ;;  %v6828_v1 = vld [vmem:[#allocation9 + $0x79c] sm:$0xf]  ;;  %v5000_v5 = vor.u32 %v6700_v52, %v4997_v54  ;;  %v4019_v52 = vpop.f32.mrf.mxu2  ;;  %v4032_v54 = vpop.f32.mrf.mxu3 }
 0x2df   :  { %v5603_v11 = vld [vmem:[#allocation9 + $0x858] sm:$0xf]  ;;  %v6404_v17 = vor.u32 %v7056_v4, %v6403_v2  ;;  %4223 = vmatpush.bf16.msrb.mxu2 %v6148_v15  ;;  %v5509_v2 = vld [vmem:[#allocation9 + $0x7b8] sm:$0xf0]  ;;  %v4744_v4 = vor.u32 %v6636_v16, %v4741_v49 }
 0x2e0   :  { %v6856_v12 = vld [vmem:[#allocation9 + $0x874] sm:$0xf0]  ;;  %v5512_v10 = vor.u32 %v6828_v1, %v5509_v2  ;;  %v6756_v15 = vld [vmem:[#allocation9 + $0x55c] sm:$0xf] }
 0x2e1   :  { %v5859_v18 = vld [vmem:[#allocation9 + $0xa58] sm:$0xf]  ;;  %v5604_v25 = vor.u32 %v6856_v12, %v5603_v11  ;;  %4236 = vmatpush.bf16.msrb.mxu3 %v6404_v17  ;;  %v6692_v11 = vld [vmem:[#allocation9 + $0x35c] sm:$0xf] }
 0x2e2   :  { %v6920_v19 = vld [vmem:[#allocation9 + $0xa74] sm:$0xf0]  ;;  %v4965_v12 = vld [vmem:[#allocation9 + $0x378] sm:$0xf0] }
 0x2e3   :  { %v6115_v20 = vld [vmem:[#allocation9 + $0xc58] sm:$0xf]  ;;  %v5860_v57 = vor.u32 %v6920_v19, %v5859_v18  ;;  %4198 = vmatpush.bf16.msrb.mxu0 %v5604_v25  ;;  %v5221_v17 = vld [vmem:[#allocation9 + $0x578] sm:$0xf0] }
 0x2e4   :  { %v6984_v21 = vld [vmem:[#allocation9 + $0xc74] sm:$0xf0]  ;;  %v6820_v18 = vld [vmem:[#allocation9 + $0x75c] sm:$0xf] }
 0x2e5   :  { %v6371_v22 = vld [vmem:[#allocation9 + $0xe58] sm:$0xf]  ;;  %v6116_v32 = vor.u32 %v6984_v21, %v6115_v20  ;;  %4211 = vmatpush.bf16.msrb.mxu1 %v5860_v57  ;;  %v5477_v19 = vld [vmem:[#allocation9 + $0x778] sm:$0xf0]  ;;  %v4712_v20 = vor.u32 %v6628_v7, %v4709_v8  ;;  %v4968_v21 = vor.u32 %v6692_v11, %v4965_v12 }
 0x2e6   :  { %v7048_v23 = vld [vmem:[#allocation9 + $0xe74] sm:$0xf0]  ;;  %v5480_v25 = vor.u32 %v6820_v18, %v5477_v19  ;;  %v6684_v57 = vld [vmem:[#allocation9 + $0x31c] sm:$0xf] }
 0x2e7   :  { %v5571_v24 = vld [vmem:[#allocation9 + $0x818] sm:$0xf]  ;;  %v6372_v26 = vor.u32 %v7048_v23, %v6371_v22  ;;  %4224 = vmatpush.bf16.msrb.mxu2 %v6116_v32  ;;  %v6620_v22 = vld [vmem:[#allocation9 + $0x11c] sm:$0xf] }
 0x2e8   :  { %v6848_v29 = vld [vmem:[#allocation9 + $0x834] sm:$0xf0]  ;;  %v4677_v23 = vld [vmem:[#allocation9 + $0x138] sm:$0xf0] }
 0x2e9   :  { %v5827_v46 = vld [vmem:[#allocation9 + $0xa18] sm:$0xf]  ;;  %v5572_v41 = vor.u32 %v6848_v29, %v5571_v24  ;;  %4237 = vmatpush.bf16.msrb.mxu3 %v6372_v26  ;;  %v5224_v24 = vor.u32 %v6756_v15, %v5221_v17  ;;  %v4933_v29 = vld [vmem:[#allocation9 + $0x338] sm:$0xf0]  ;;  %v4680_v28 = vor.u32 %v6620_v22, %v4677_v23 }
 0x2ea   :  { %v6912_v30 = vld [vmem:[#allocation9 + $0xa34] sm:$0xf0]  ;;  %v6812_v32 = vld [vmem:[#allocation9 + $0x71c] sm:$0xf]  ;;  %v4936_v36 = vor.u32 %v6684_v57, %v4933_v29  ;;  %v7127_v57 = vld [vmem:[#allocation12] sm:$0xff] }
 0x2eb   :  { %v6083_v33 = vld [vmem:[#allocation9 + $0xc18] sm:$0xf]  ;;  %v5828_v3 = vor.u32 %v6912_v30, %v5827_v46  ;;  %4199 = vmatpush.bf16.msrb.mxu0 %v5572_v41  ;;  %v6748_v46 = vld [vmem:[#allocation9 + $0x51c] sm:$0xf]  ;;  %v7504_v29 = vunpack.c.h.bf16 %v7127_v57 }
 0x2ec   :  { %v6976_v34 = vld [vmem:[#allocation9 + $0xc34] sm:$0xf0]  ;;  %v5189_v30 = vld [vmem:[#allocation9 + $0x538] sm:$0xf0] }
 0x2ed   :  { %v6339_v35 = vld [vmem:[#allocation9 + $0xe18] sm:$0xf]  ;;  %v6084_v45 = vor.u32 %v6976_v34, %v6083_v33  ;;  %4212 = vmatpush.bf16.msrb.mxu1 %v5828_v3  ;;  %v5445_v26 = vld [vmem:[#allocation9 + $0x738] sm:$0xf0]  ;;  %v3993_v33 = vpop.f32.mrf.mxu0  ;;  %v4006_v34 = vpop.f32.mrf.mxu1  ;;  %v5192_v38 = vor.u32 %v6748_v46, %v5189_v30 }
 0x2ee   :  { %v7040_v37 = vld [vmem:[#allocation9 + $0xe34] sm:$0xf0]  ;;  %4200 = vmatmul.bf16.vlgmr.msrb.gmra.mxu0 %v7402_v53  ;;  %v5448_v39 = vor.u32 %v6812_v32, %v5445_v26  ;;  %v6740_v41 = vld [vmem:[#allocation9 + $0x4dc] sm:$0xf] }
 0x2ef   :  { %v6340_v47 = vor.u32 %v7040_v37, %v6339_v35  ;;  %4225 = vmatpush.bf16.msrb.mxu2 %v6084_v45  ;;  %4244 = vmatpush.bf16.msra.mxu0 %v4776_v48  ;;  %v3994_v35 = vadd.f32 %v3993_v33, %v7497_v14  ;;  %v6612_v37 = vld [vmem:[#allocation9 + $0xdc] sm:$0xf] }
 0x2f0   :  { %4213 = vmatmul.bf16.vlgmr.msrb.gmra.mxu1 %v7404_v27  ;;  %v5157_v42 = vld [vmem:[#allocation9 + $0x4f8] sm:$0xf0]  ;;  %v4648_v45 = vor.u32 %v6612_v37, %v4645_v13  ;;  %v4021_v13 = vpop.f32.mrf.mxu2 }
 0x2f1   :  { %4238 = vmatpush.bf16.msrb.mxu3 %v6340_v47  ;;  %4257 = vmatpush.bf16.msra.mxu1 %v5032_v6  ;;  %v4007_v3 = vadd.f32 %v4006_v34, %v3994_v35  ;;  %v6804_v43 = vld [vmem:[#allocation9 + $0x6dc] sm:$0xf]  ;;  %v4904_v47 = vor.u32 %v6676_v0, %v4901_v40  ;;  %v5160_v6 = vor.u32 %v6740_v41, %v5157_v42 }
 0x2f2   :  { %4226 = vmatmul.bf16.vlgmr.msrb.gmra.mxu2 %v7406_v59  ;;  %v5413_v44 = vld [vmem:[#allocation9 + $0x6f8] sm:$0xf0] }
 0x2f3   :  { %4270 = vmatpush.bf16.msra.mxu2 %v5288_v50  ;;  %4245 = vmatpush.bf16.msra.mxu0 %v4744_v4  ;;  %v6604_v14 = vld [vmem:[#allocation9 + $0x9c] sm:$0xf]  ;;  %v5416_v16 = vor.u32 %v6804_v43, %v5413_v44  ;;  %v4020_v2 = vadd.f32 %v4019_v52, %v4007_v3  ;;  %v4389_v43 = vperm.slane %v7504_v29, 0 }
 0x2f4   :  { %4239 = vmatmul.bf16.vlgmr.msrb.gmra.mxu3 %v7408_v60  ;;  %v4613_v48 = vld [vmem:[#allocation9 + $0xb8] sm:$0xf0] }
 0x2f5   :  { %4283 = vmatpush.bf16.msra.mxu3 %v5544_v51  ;;  %4258 = vmatpush.bf16.msra.mxu1 %v5000_v5  ;;  %v6668_v49 = vld [vmem:[#allocation9 + $0x29c] sm:$0xf]  ;;  %v3995_v4 = vpop.f32.mrf.mxu0  ;;  %v4008_v5 = vpop.f32.mrf.mxu1  ;;  %v4616_v7 = vor.u32 %v6604_v14, %v4613_v48  ;;  %v4033_v11 = vadd.f32 %v4032_v54, %v4020_v2 }
 0x2f6   :  { %v4869_v50 = vld [vmem:[#allocation9 + $0x2b8] sm:$0xf0] }
 0x2f7   :  { %4271 = vmatpush.bf16.msra.mxu2 %v5256_v9  ;;  %4246 = vmatpush.bf16.msra.mxu0 %v4712_v20  ;;  %v6732_v51 = vld [vmem:[#allocation9 + $0x49c] sm:$0xf]  ;;  %v4872_v8 = vor.u32 %v6668_v49, %v4869_v50  ;;  %v4352_v23 = vmul.f32 0.5, %v4033_v11 }
 0x2f8   :  { %v5125_v58 = vld [vmem:[#allocation9 + $0x4b8] sm:$0xf0] }
 0x2f9   :  { %4284 = vmatpush.bf16.msra.mxu3 %v5512_v10  ;;  %4259 = vmatpush.bf16.msra.mxu1 %v4968_v21  ;;  %v6796_v63 = vld [vmem:[#allocation9 + $0x69c] sm:$0xf]  ;;  %v5128_v12 = vor.u32 %v6732_v51, %v5125_v58  ;;  %7118 = vtanh.f32 %v4352_v23 }
 0x2fa   :  { %v5381_v1 = vld [vmem:[#allocation9 + $0x6b8] sm:$0xf0] }
 0x2fb   :  { %4272 = vmatpush.bf16.msra.mxu2 %v5224_v24  ;;  %4247 = vmatpush.bf16.msra.mxu0 %v4680_v28  ;;  %v6596_v9 = vld [vmem:[#allocation9 + $0x5c] sm:$0xf]  ;;  %v5384_v15 = vor.u32 %v6796_v63, %v5381_v1 }
 0x2fc   :  { %v4581_v10 = vld [vmem:[#allocation9 + $0x78] sm:$0xf0] }
 0x2fd   :  { %4285 = vmatpush.bf16.msra.mxu3 %v5480_v25  ;;  %4260 = vmatpush.bf16.msra.mxu1 %v4936_v36  ;;  %v6660_v17 = vld [vmem:[#allocation9 + $0x25c] sm:$0xf]  ;;  %v4584_v46 = vor.u32 %v6596_v9, %v4581_v10 }
 0x2fe   :  { %v4837_v18 = vld [vmem:[#allocation9 + $0x278] sm:$0xf0] }
 0x2ff   :  { %4273 = vmatpush.bf16.msra.mxu2 %v5192_v38  ;;  %4248 = vmatpush.bf16.msra.mxu0 %v4648_v45  ;;  %v6724_v19 = vld [vmem:[#allocation9 + $0x45c] sm:$0xf]  ;;  %v4840_v30 = vor.u32 %v6660_v17, %v4837_v18  ;;  %v4034_v38 = vpop.f32.mrf.mxu3  ;;  %v7119_v54 = vpop.eup %7118 }
 0x300   :  { %v5093_v20 = vld [vmem:[#allocation9 + $0x478] sm:$0xf0]  ;;  %v4368_v5 = vmul.f32 0.5, %v7119_v54 }
 0x301   :  { %4286 = vmatpush.bf16.msra.mxu3 %v5448_v39  ;;  %4261 = vmatpush.bf16.msra.mxu1 %v4904_v47  ;;  %v6788_v21 = vld [vmem:[#allocation9 + $0x65c] sm:$0xf]  ;;  %v5096_v34 = vor.u32 %v6724_v19, %v5093_v20 }
 0x302   :  { %v5349_v22 = vld [vmem:[#allocation9 + $0x678] sm:$0xf0]  ;;  %v4376_v10 = vadd.f32 0.5, %v4368_v5  ;;  %v4071_v5 = vpop.f32.mrf.mxu2 }
 0x303   :  { %4274 = vmatpush.bf16.msra.mxu2 %v5160_v6  ;;  %v6588_v24 = vld [vmem:[#allocation9 + $0x1c] sm:$0xf]  ;;  %4249 = vmatpush.bf16.msra.mxu0 %v4616_v7  ;;  %v5352_v35 = vor.u32 %v6788_v21, %v5349_v22  ;;  %v4405_v7 = vperm.slane %v4389_v43, 0 }
 0x304   :  { %v4549_v25 = vld [vmem:[#allocation9 + $0x38] sm:$0xf0] }
 0x305   :  { %4287 = vmatpush.bf16.msra.mxu3 %v5416_v16  ;;  %4262 = vmatpush.bf16.msra.mxu1 %v4872_v8  ;;  %v6652_v32 = vld [vmem:[#allocation9 + $0x21c] sm:$0xf]  ;;  %v4552_v44 = vor.u32 %v6588_v24, %v4549_v25  ;;  %v4413_v23 = vmul.f32 %v4405_v7, %v4376_v10 }
 0x306   :  { %v4805_v26 = vld [vmem:[#allocation9 + $0x238] sm:$0xf0] }
 0x307   :  { %v6716_v33 = vld [vmem:[#allocation9 + $0x41c] sm:$0xf]  ;;  %4275 = vmatpush.bf16.msra.mxu2 %v5128_v12  ;;  %4250 = vmatpush.bf16.msra.mxu0 %v4584_v46  ;;  %v4808_v45 = vor.u32 %v6652_v32, %v4805_v26  ;;  %v7511_v32 = vld [vmem:[#allocation11] sm:$0xff]  ;;  %v4084_v7 = vpop.f32.mrf.mxu3 }
 0x308   :  { %v5061_v28 = vld [vmem:[#allocation9 + $0x438] sm:$0xf0]  ;;  %v945_v26 = vperm.slane %v7511_v32, 5 }
 0x309   :  { %4288 = vmatpush.bf16.msra.mxu3 %v5384_v15  ;;  %v6780_v36 = vld [vmem:[#allocation9 + $0x61c] sm:$0xf]  ;;  %4263 = vmatpush.bf16.msra.mxu1 %v4840_v30  ;;  %v5064_v48 = vor.u32 %v6716_v33, %v5061_v28 }
 0x30a   :  { %v5317_v37 = vld [vmem:[#allocation9 + $0x638] sm:$0xf0] }
 0x30b   :  { %v6900_v39 = vld [vmem:[#allocation9 + $0x9dc] sm:$0xf]  ;;  %4276 = vmatpush.bf16.msra.mxu2 %v5096_v34  ;;  %v5320_v6 = vor.u32 %v6780_v36, %v5317_v37  ;;  %4251 = vmatpush.bf16.msra.mxu0 %v4552_v44 }
 0x30c   :  { %v5797_v0 = vld [vmem:[#allocation9 + $0x9f8] sm:$0xf0] }
 0x30d   :  { %v6964_v40 = vld [vmem:[#allocation9 + $0xbdc] sm:$0xf]  ;;  %4289 = vmatpush.bf16.msra.mxu3 %v5352_v35  ;;  %v5800_v16 = vor.u32 %v6900_v39, %v5797_v0  ;;  %4264 = vmatpush.bf16.msra.mxu1 %v4808_v45  ;;  %v4045_v39 = vpop.f32.mrf.mxu0  ;;  %v4058_v0 = vpop.f32.mrf.mxu1 }
 0x30e   :  { %v6053_v41 = vld [vmem:[#allocation9 + $0xbf8] sm:$0xf0]  ;;  %4252 = vmatmul.bf16.vlgmr.msra.gmra.mxu0 %v7390_v55  ;;  %v4424_v55 = vsel %vm343_vm1, %v4413_v23, 0.0 }
 0x30f   :  { %v7028_v3 = vld [vmem:[#allocation9 + $0xddc] sm:$0xf]  ;;  %v6056_v49 = vor.u32 %v6964_v40, %v6053_v41  ;;  %4277 = vmatpush.bf16.msra.mxu2 %v5064_v48  ;;  %4296 = vmatpush.bf16.msrb.mxu0 %v5800_v16  ;;  %v4046_v40 = vadd.f32 %v4045_v39, %v945_v26 }
 0x310   :  { %v6309_v42 = vld [vmem:[#allocation9 + $0xdf8] sm:$0xf0]  ;;  %4265 = vmatmul.bf16.vlgmr.msra.gmra.mxu1 %v7392_v56 }
 0x311   :  { %v7092_v47 = vld [vmem:[#allocation9 + $0xfdc] sm:$0xf]  ;;  %v6312_v58 = vor.u32 %v7028_v3, %v6309_v42  ;;  %4290 = vmatpush.bf16.msra.mxu3 %v5320_v6  ;;  %4309 = vmatpush.bf16.msrb.mxu1 %v6056_v49  ;;  %v4059_v48 = vadd.f32 %v4058_v0, %v4046_v40 }
 0x312   :  { %v6565_v14 = vld [vmem:[#allocation9 + $0xff8] sm:$0xf0]  ;;  %4278 = vmatmul.bf16.vlgmr.msra.gmra.mxu2 %v7394_v61 }
 0x313   :  { %v6892_v50 = vld [vmem:[#allocation9 + $0x99c] sm:$0xf]  ;;  %v6568_v63 = vor.u32 %v7092_v47, %v6565_v14  ;;  %4322 = vmatpush.bf16.msrb.mxu2 %v6312_v58 }
 0x314   :  { %v5765_v51 = vld [vmem:[#allocation9 + $0x9b8] sm:$0xf0]  ;;  %4291 = vmatmul.bf16.vlgmr.msra.gmra.mxu3 %v7396_v62  ;;  %v7516_v62 = vadd.f32 %v4424_v55, %v7495_v31 }
 0x315   :  { %v6956_v52 = vld [vmem:[#allocation9 + $0xb9c] sm:$0xf]  ;;  %v5768_v11 = vor.u32 %v6892_v50, %v5765_v51  ;;  %4335 = vmatpush.bf16.msrb.mxu3 %v6568_v63 }
 0x316   :  { %v6021_v1 = vld [vmem:[#allocation9 + $0xbb8] sm:$0xf0] }
 0x317   :  { %v7020_v2 = vld [vmem:[#allocation9 + $0xd9c] sm:$0xf]  ;;  %v6024_v12 = vor.u32 %v6956_v52, %v6021_v1  ;;  %4297 = vmatpush.bf16.msrb.mxu0 %v5768_v11  ;;  %v4072_v11 = vadd.f32 %v4071_v5, %v4059_v48 }
 0x318   :  { %v6277_v4 = vld [vmem:[#allocation9 + $0xdb8] sm:$0xf0] }
 0x319   :  { %v7084_v8 = vld [vmem:[#allocation9 + $0xf9c] sm:$0xf]  ;;  %v6280_v18 = vor.u32 %v7020_v2, %v6277_v4  ;;  %4310 = vmatpush.bf16.msrb.mxu1 %v6024_v12  ;;  %v4047_v12 = vpop.f32.mrf.mxu0 }
 0x31a   :  { %v6533_v9 = vld [vmem:[#allocation9 + $0xfb8] sm:$0xf0] }
 0x31b   :  { %v6884_v15 = vld [vmem:[#allocation9 + $0x95c] sm:$0xf]  ;;  %v6536_v19 = vor.u32 %v7084_v8, %v6533_v9  ;;  %4323 = vmatpush.bf16.msrb.mxu2 %v6280_v18 }
 0x31c   :  { %v5733_v17 = vld [vmem:[#allocation9 + $0x978] sm:$0xf0] }
 0x31d   :  { %v6948_v20 = vld [vmem:[#allocation9 + $0xb5c] sm:$0xf]  ;;  %v5736_v46 = vor.u32 %v6884_v15, %v5733_v17  ;;  %4336 = vmatpush.bf16.msrb.mxu3 %v6536_v19  ;;  %v4060_v15 = vpop.f32.mrf.mxu1 }
 0x31e   :  { %v5989_v21 = vld [vmem:[#allocation9 + $0xb78] sm:$0xf0] }
 0x31f   :  { %v7012_v22 = vld [vmem:[#allocation9 + $0xd5c] sm:$0xf]  ;;  %v5992_v30 = vor.u32 %v6948_v20, %v5989_v21  ;;  %4298 = vmatpush.bf16.msrb.mxu0 %v5736_v46  ;;  %v4085_v21 = vadd.f32 %v4084_v7, %v4072_v11 }
 0x320   :  { %v6245_v24 = vld [vmem:[#allocation9 + $0xd78] sm:$0xf0] }
 0x321   :  { %v7076_v25 = vld [vmem:[#allocation9 + $0xf5c] sm:$0xf]  ;;  %v6248_v56 = vor.u32 %v7012_v22, %v6245_v24  ;;  %4311 = vmatpush.bf16.msrb.mxu1 %v5992_v30 }
 0x322   :  { %v6501_v57 = vld [vmem:[#allocation9 + $0xf78] sm:$0xf0] }
 0x323   :  { %v6876_v33 = vld [vmem:[#allocation9 + $0x91c] sm:$0xf]  ;;  %v6504_v35 = vor.u32 %v7076_v25, %v6501_v57  ;;  %4324 = vmatpush.bf16.msrb.mxu2 %v6248_v56 }
 0x324   :  { %v5701_v34 = vld [vmem:[#allocation9 + $0x938] sm:$0xf0] }
 0x325   :  { %v6940_v28 = vld [vmem:[#allocation9 + $0xb1c] sm:$0xf]  ;;  %v5704_v41 = vor.u32 %v6876_v33, %v5701_v34  ;;  %4337 = vmatpush.bf16.msrb.mxu3 %v6504_v35 }
 0x326   :  { %v5957_v61 = vld [vmem:[#allocation9 + $0xb38] sm:$0xf0] }
 0x327   :  { %v7004_v36 = vld [vmem:[#allocation9 + $0xd1c] sm:$0xf]  ;;  %v5960_v3 = vor.u32 %v6940_v28, %v5957_v61  ;;  %4299 = vmatpush.bf16.msrb.mxu0 %v5704_v41 }
 0x328   :  { %v6213_v37 = vld [vmem:[#allocation9 + $0xd38] sm:$0xf0] }
 0x329   :  { %v7068_v13 = vld [vmem:[#allocation9 + $0xf1c] sm:$0xf]  ;;  %v6216_v44 = vor.u32 %v7004_v36, %v6213_v37  ;;  %4312 = vmatpush.bf16.msrb.mxu1 %v5960_v3 }
 0x32a   :  { %v6469_v38 = vld [vmem:[#allocation9 + $0xf38] sm:$0xf0] }
 0x32b   :  { %v6868_v42 = vld [vmem:[#allocation9 + $0x8dc] sm:$0xf]  ;;  %v6472_v45 = vor.u32 %v7068_v13, %v6469_v38  ;;  %4325 = vmatpush.bf16.msrb.mxu2 %v6216_v44  ;;  %v4073_v13 = vpop.f32.mrf.mxu2  ;;  %v4086_v38 = vpop.f32.mrf.mxu3 }
 0x32c   :  { %v5669_v43 = vld [vmem:[#allocation9 + $0x8f8] sm:$0xf0]  ;;  %v4097_v44 = vpop.f32.mrf.mxu0 }
 0x32d   :  { %v6932_v47 = vld [vmem:[#allocation9 + $0xadc] sm:$0xf]  ;;  %v5672_v50 = vor.u32 %v6868_v42, %v5669_v43  ;;  %4338 = vmatpush.bf16.msrb.mxu3 %v6472_v45  ;;  %v4110_v45 = vpop.f32.mrf.mxu1 }
 0x32e   :  { %v5925_v14 = vld [vmem:[#allocation9 + $0xaf8] sm:$0xf0] }
 0x32f   :  { %v6996_v31 = vld [vmem:[#allocation9 + $0xcdc] sm:$0xf]  ;;  %v5928_v51 = vor.u32 %v6932_v47, %v5925_v14  ;;  %4300 = vmatpush.bf16.msrb.mxu0 %v5672_v50  ;;  %v4098_v47 = vadd.f32 %v4097_v44, %v4085_v21 }
 0x330   :  { %v6181_v6 = vld [vmem:[#allocation9 + $0xcf8] sm:$0xf0] }
 0x331   :  { %v7060_v16 = vld [vmem:[#allocation9 + $0xedc] sm:$0xf]  ;;  %v6184_v58 = vor.u32 %v6996_v31, %v6181_v6  ;;  %4313 = vmatpush.bf16.msrb.mxu1 %v5928_v51  ;;  %v4111_v14 = vadd.f32 %v4110_v45, %v4098_v47 }
 0x332   :  { %v6437_v49 = vld [vmem:[#allocation9 + $0xef8] sm:$0xf0] }
 0x333   :  { %v6860_v52 = vld [vmem:[#allocation9 + $0x89c] sm:$0xf]  ;;  %v6440_v63 = vor.u32 %v7060_v16, %v6437_v49  ;;  %4326 = vmatpush.bf16.msrb.mxu2 %v6184_v58  ;;  %v4123_v31 = vpop.f32.mrf.mxu2  ;;  %v4136_v48 = vpop.f32.mrf.mxu3 }
 0x334   :  { %v5637_v54 = vld [vmem:[#allocation9 + $0x8b8] sm:$0xf0]  ;;  %v4124_v6 = vadd.f32 %v4123_v31, %v4111_v14  ;;  %v4099_v16 = vpop.f32.mrf.mxu0 }
 0x335   :  { %v6924_v1 = vld [vmem:[#allocation9 + $0xa9c] sm:$0xf]  ;;  %v5640_v17 = vor.u32 %v6860_v52, %v5637_v54  ;;  %4339 = vmatpush.bf16.msrb.mxu3 %v6440_v63  ;;  %v4112_v49 = vpop.f32.mrf.mxu1 }
 0x336   :  { %v5893_v2 = vld [vmem:[#allocation9 + $0xab8] sm:$0xf0]  ;;  %v4137_v50 = vadd.f32 %v4136_v48, %v4124_v6 }
 0x337   :  { %v6988_v4 = vld [vmem:[#allocation9 + $0xc9c] sm:$0xf]  ;;  %v5896_v18 = vor.u32 %v6924_v1, %v5893_v2  ;;  %4301 = vmatpush.bf16.msrb.mxu0 %v5640_v17  ;;  %v946_v1 = vperm.slane %v7511_v32, 6 }
 0x338   :  { %v6149_v8 = vld [vmem:[#allocation9 + $0xcb8] sm:$0xf0]  ;;  %v4353_v51 = vmul.f32 0.5, %v4137_v50 }
 0x339   :  { %v7052_v9 = vld [vmem:[#allocation9 + $0xe9c] sm:$0xf]  ;;  %v6152_v22 = vor.u32 %v6988_v4, %v6149_v8  ;;  %4314 = vmatpush.bf16.msrb.mxu1 %v5896_v18 }
 0x33a   :  { %v6405_v10 = vld [vmem:[#allocation9 + $0xeb8] sm:$0xf0]  ;;  %7120 = vtanh.f32 %v4353_v51 }
 0x33b   :  { %v6852_v19 = vld [vmem:[#allocation9 + $0x85c] sm:$0xf]  ;;  %v6408_v23 = vor.u32 %v7052_v9, %v6405_v10  ;;  %4327 = vmatpush.bf16.msrb.mxu2 %v6152_v22  ;;  %v4125_v52 = vpop.f32.mrf.mxu2 }
 0x33c   :  { %v5605_v20 = vld [vmem:[#allocation9 + $0x878] sm:$0xf0]  ;;  %v4149_v5 = vpop.f32.mrf.mxu0 }
 0x33d   :  { %v6916_v24 = vld [vmem:[#allocation9 + $0xa5c] sm:$0xf]  ;;  %v5608_v33 = vor.u32 %v6852_v19, %v5605_v20  ;;  %4340 = vmatpush.bf16.msrb.mxu3 %v6408_v23  ;;  %v4162_v7 = vpop.f32.mrf.mxu1  ;;  %v4150_v8 = vadd.f32 %v4149_v5, %v946_v1 }
 0x33e   :  { %v5861_v25 = vld [vmem:[#allocation9 + $0xa78] sm:$0xf0] }
 0x33f   :  { %v6980_v57 = vld [vmem:[#allocation9 + $0xc5c] sm:$0xf]  ;;  %v5864_v34 = vor.u32 %v6916_v24, %v5861_v25  ;;  %4302 = vmatpush.bf16.msrb.mxu0 %v5608_v33  ;;  %v4163_v9 = vadd.f32 %v4162_v7, %v4150_v8 }
 0x340   :  { %v6117_v46 = vld [vmem:[#allocation9 + $0xc78] sm:$0xf0]  ;;  %v7121_v54 = vpop.eup %7120 }
 0x341   :  { %v7044_v30 = vld [vmem:[#allocation9 + $0xe5c] sm:$0xf]  ;;  %v6120_v35 = vor.u32 %v6980_v57, %v6117_v46  ;;  %4315 = vmatpush.bf16.msrb.mxu1 %v5864_v34 }
 0x342   :  { %v6373_v26 = vld [vmem:[#allocation9 + $0xe78] sm:$0xf0] }
 0x343   :  { %v6844_v55 = vld [vmem:[#allocation9 + $0x81c] sm:$0xf]  ;;  %v6376_v28 = vor.u32 %v7044_v30, %v6373_v26  ;;  %4328 = vmatpush.bf16.msrb.mxu2 %v6120_v35  ;;  %v4175_v10 = vpop.f32.mrf.mxu2 }
 0x344   :  { %v5573_v56 = vld [vmem:[#allocation9 + $0x838] sm:$0xf0]  ;;  %v4176_v12 = vadd.f32 %v4175_v10, %v4163_v9  ;;  %v4151_v15 = vpop.f32.mrf.mxu0  ;;  %v7105_v10 = vld [vmem:[#allocation3] ss:$0 sm:$0xff] }
 0x345   :  { %v6908_v61 = vld [vmem:[#allocation9 + $0xa1c] sm:$0xf]  ;;  %v5576_v41 = vor.u32 %v6844_v55, %v5573_v56  ;;  %4341 = vmatpush.bf16.msrb.mxu3 %v6376_v28  ;;  %v4164_v17 = vpop.f32.mrf.mxu1  ;;  %v4391_v56 = vperm.slane %v7504_v29, 4 }
 0x346   :  { %v5829_v36 = vld [vmem:[#allocation9 + $0xa38] sm:$0xf0] }
 0x347   :  { %v6972_v37 = vld [vmem:[#allocation9 + $0xc1c] sm:$0xf]  ;;  %v5832_v3 = vor.u32 %v6908_v61, %v5829_v36  ;;  %4303 = vmatpush.bf16.msrb.mxu0 %v5576_v41  ;;  %v4407_v61 = vperm.slane %v4391_v56, 0 }
 0x348   :  { %v6085_v39 = vld [vmem:[#allocation9 + $0xc38] sm:$0xf0] }
 0x349   :  { %v7036_v0 = vld [vmem:[#allocation9 + $0xe1c] sm:$0xf]  ;;  %v6088_v42 = vor.u32 %v6972_v37, %v6085_v39  ;;  %4316 = vmatpush.bf16.msrb.mxu1 %v5832_v3 }
 0x34a   :  { %v6341_v40 = vld [vmem:[#allocation9 + $0xe38] sm:$0xf0]  ;;  %4304 = vmatmul.bf16.vlgmr.msrb.gmra.mxu0 %v7402_v53  ;;  %v4138_v53 = vpop.f32.mrf.mxu3 }
 0x34b   :  { %v6344_v43 = vor.u32 %v7036_v0, %v6341_v40  ;;  %4329 = vmatpush.bf16.msrb.mxu2 %v6088_v42  ;;  %v4177_v19 = vpop.f32.mrf.mxu2 }
 0x34c   :  { %4317 = vmatmul.bf16.vlgmr.msrb.gmra.mxu1 %v7404_v27  ;;  %v4390_v27 = vperm.slane %v7504_v29, 2 }
 0x34d   :  { %4342 = vmatpush.bf16.msrb.mxu3 %v6344_v43  ;;  %v947_v43 = vperm.slane %v7511_v32, 7 }
 0x34e   :  { %4330 = vmatmul.bf16.vlgmr.msrb.gmra.mxu2 %v7406_v59  ;;  %v4369_v59 = vmul.f32 0.5, %v7121_v54  ;;  %v4406_v58 = vperm.slane %v4390_v27, 0 }
 0x350   :  { %4343 = vmatmul.bf16.vlgmr.msrb.gmra.mxu3 %v7408_v60  ;;  %v4377_v60 = vadd.f32 0.5, %v4369_v59 }
 0x352   :  { %v4414_v63 = vmul.f32 %v4406_v58, %v4377_v60  ;;  %v4188_v11 = vpop.f32.mrf.mxu3 }
 0x353   :  { %v4189_v18 = vadd.f32 %v4188_v11, %v4176_v12 }
 0x354   :  { %v4426_v2 = vsel %vm343_vm1, %v4414_v63, 0.0  ;;  %v4392_v63 = vperm.slane %v7504_v29, 6 }
 0x355   :  { %v4427_v4 = vadd.f32 %v4426_v2, %v7516_v62 }
 0x35a   :  { %v4190_v20 = vpop.f32.mrf.mxu3 }
 0x36b   :  { %v4201_v21 = vpop.f32.mrf.mxu0 }
 0x36c   :  { %v4202_v23 = vadd.f32 %v4201_v21, %v4189_v18 }
 0x36d   :  { %v4214_v22 = vpop.f32.mrf.mxu1 }
 0x36e   :  { %v4215_v24 = vadd.f32 %v4214_v22, %v4202_v23 }
 0x373   :  { %v4203_v62 = vpop.f32.mrf.mxu0 }
 0x375   :  { %v4227_v25 = vpop.f32.mrf.mxu2  ;;  %v4216_v30 = vpop.f32.mrf.mxu1 }
 0x376   :  { %v4228_v46 = vadd.f32 %v4227_v25, %v4215_v24 }
 0x377   :  { %v4240_v57 = vpop.f32.mrf.mxu3 }
 0x378   :  { %v4241_v26 = vadd.f32 %v4240_v57, %v4228_v46 }
 0x37a   :  { %v4354_v33 = vmul.f32 0.5, %v4241_v26 }
 0x37c   :  { %7122 = vtanh.f32 %v4354_v33 }
 0x37d   :  { %v4229_v34 = vpop.f32.mrf.mxu2 }
 0x37f   :  { %v4242_v55 = vpop.f32.mrf.mxu3 }
 0x382   :  { %v7123_v35 = vpop.eup %7122 }
 0x383   :  { %v4370_v28 = vmul.f32 0.5, %v7123_v35 }
 0x385   :  { %v4378_v36 = vadd.f32 0.5, %v4370_v28 }
 0x387   :  { %v4415_v37 = vmul.f32 %v4407_v61, %v4378_v36 }
 0x389   :  { %v4428_v13 = vsel %vm343_vm1, %v4415_v37, 0.0 }
 0x38a   :  { %v4429_v38 = vadd.f32 %v4428_v13, %v4427_v4  ;;  %v4408_v4 = vperm.slane %v4392_v63, 0 }
 0x38b   :  { %v4253_v39 = vpop.f32.mrf.mxu0 }
 0x38c   :  { %v4254_v47 = vadd.f32 %v4253_v39, %v947_v43 }
 0x38d   :  { %v4266_v0 = vpop.f32.mrf.mxu1 }
 0x38e   :  { %v4267_v14 = vadd.f32 %v4266_v0, %v4254_v47 }
 0x393   :  { %v4255_v3 = vpop.f32.mrf.mxu0 }
 0x395   :  { %v4279_v40 = vpop.f32.mrf.mxu2  ;;  %v4268_v42 = vpop.f32.mrf.mxu1 }
 0x396   :  { %v4280_v31 = vadd.f32 %v4279_v40, %v4267_v14 }
 0x397   :  { %v4292_v41 = vpop.f32.mrf.mxu3 }
 0x398   :  { %v4293_v48 = vadd.f32 %v4292_v41, %v4280_v31 }
 0x39d   :  { %v4281_v44 = vpop.f32.mrf.mxu2 }
 0x39f   :  { %v4294_v45 = vpop.f32.mrf.mxu3 }
 0x3c7   :  { %v4305_v6 = vpop.f32.mrf.mxu0 }
 0x3c8   :  { %v4306_v49 = vadd.f32 %v4305_v6, %v4293_v48 }
 0x3c9   :  { %v4318_v16 = vpop.f32.mrf.mxu1 }
 0x3ca   :  { %v4319_v50 = vadd.f32 %v4318_v16, %v4306_v49 }
 0x3cf   :  { %v4307_v27 = vpop.f32.mrf.mxu0 }
 0x3d1   :  { %v4331_v51 = vpop.f32.mrf.mxu2  ;;  %v4320_v54 = vpop.f32.mrf.mxu1 }
 0x3d2   :  { %v4332_v53 = vadd.f32 %v4331_v51, %v4319_v50 }
 0x3d3   :  { %v4344_v52 = vpop.f32.mrf.mxu3 }
 0x3d4   :  { %v4345_v59 = vadd.f32 %v4344_v52, %v4332_v53 }
 0x3d6   :  { %v4355_v58 = vmul.f32 0.5, %v4345_v59 }
 0x3d8   :  { %7124 = vtanh.f32 %v4355_v58 }
 0x3d9   :  { %v4333_v60 = vpop.f32.mrf.mxu2 }
 0x3db   :  { %v4346_v32 = vpop.f32.mrf.mxu3 }
 0x3de   :  { %v7125_v1 = vpop.eup %7124 }
 0x3df   :  { %v4371_v2 = vmul.f32 0.5, %v7125_v1 }
 0x3e1   :  { %v4379_v5 = vadd.f32 0.5, %v4371_v2 }
 0x3e3   :  { %v4416_v7 = vmul.f32 %v4408_v4, %v4379_v5 }
 0x3e5   :  { %v4430_v8 = vsel %vm343_vm1, %v4416_v7, 0.0 }
 0x3e6   :  { %v4431_v9 = vadd.f32 %v4430_v8, %v4429_v38 }
 0x3e8   :  { %4432 = vadd.xlane.f32.xlu0 %v4431_v9 }
 0x45b   :  { %v4433_v11 = vpop.xlane.xlu0 %4432 }
 0x45c   :  { %v4438_v12 = vadd.f32 %v7105_v10, %v4433_v11 }
 0x45e   :  { %4440 = vst.msk [vmem:[%s7541_s7] sm:$0x3] %vm4439_vm4, %v4438_v12 }
 0x45f   :  { %4445 = vsyncpa [#allocation5], 1 }
 0x460   :  { %4446 = vsyncpa [#allocation7], 1 }
 0x461   :  { %4447 = vsyncpa [#allocation10], 1 }
 0x462   :  { %4448 = vsyncpa [#allocation13], 1 }

</bundles_post_ra>
